<compile_context>
chip_gen: v7x
topology: tpu7x:2x2x1
jax: 0.10.0
libtpu: 0.0.40
codegen_flags: <defaults>
</compile_context>

<pallas_src>
import numpy as np
import jax
import jax.numpy as jnp
from jax.experimental import pallas as pl
from jax.experimental.pallas import tpu as pltpu


# ----------------------------------------------------------------------------
# In-kernel helpers (traced into the single fused kernel body)
# ----------------------------------------------------------------------------
def _leaky(y):
    return jnp.where(y >= 0.0, y, 0.1 * y)


def _pad_store(pad_ref, x_hwc):
    """Zero `pad_ref` ((H+2, W+2, C) VMEM scratch) and write x into its interior."""
    H, W, _ = x_hwc.shape
    pad_ref[...] = jnp.zeros(pad_ref.shape, pad_ref.dtype)
    pad_ref[pl.ds(1, H), pl.ds(1, W), :] = x_hwc.astype(pad_ref.dtype)


def _conv3x3(pad_ref, H, W, w_ref, b_ref):
    """3x3 / stride 1 / SAME conv + folded-BN bias + LeakyReLU as ONE im2col matmul.

    pad_ref : (H+2, W+2, C) zero-padded input (VMEM scratch, f32)
    w_ref   : (9*C, Cout) bf16 weights, BN scale folded in, rows ordered (kh, kw, cin)
    b_ref   : (1, Cout) f32 folded bias
    returns : (H*W, Cout) f32
    """
    C = pad_ref.shape[-1]
    taps = []
    for kh in range(3):
        for kw in range(3):
            t = pad_ref[pl.ds(kh, H), pl.ds(kw, W), :]               # (H, W, C)
            taps.append(t.reshape(H * W, C).astype(jnp.bfloat16))
    m = jnp.concatenate(taps, axis=-1)                               # (H*W, 9C) bf16
    y = jnp.dot(m, w_ref[...], preferred_element_type=jnp.float32) + b_ref[...]
    return _leaky(y)


def _conv1x1(x, w_ref, b_ref):
    y = jnp.dot(x.astype(jnp.bfloat16), w_ref[...],
                preferred_element_type=jnp.float32) + b_ref[...]
    return _leaky(y)


# ----------------------------------------------------------------------------
# The fused backbone kernel (one batch element per grid step)
# ----------------------------------------------------------------------------
def _backbone_kernel(xcol_ref,
                     w11, b11, w12, b12, w13, b13, w14, b14,
                     w21, b21, w22, b22, w23, b23, w24, b24,
                     out_ref, feat0_ref, feat1_ref,
                     s1, s2, pool):
    H1, W1, H2, W2 = 16, 16, 8, 8

    # ---------------- Resblock_body(1, 64) ----------------
    # conv1 (3x3, 1->64): only its second 32 channels are ever used by BackBone
    # (block-1's `feat` is discarded), so w11/b11 were pre-sliced in the wrapper.
    y1h = _leaky(jnp.dot(xcol_ref[0], w11[...],
                         preferred_element_type=jnp.float32) + b11[...])   # (256, 32)
    _pad_store(s1, y1h.reshape(H1, W1, 32))
    y2 = _conv3x3(s1, H1, W1, w12, b12)                                    # (256, 32)  route1
    _pad_store(s1, y2.reshape(H1, W1, 32))
    y3 = _conv3x3(s1, H1, W1, w13, b13)                                    # (256, 32)
    cat1 = jnp.concatenate([y3, y2], axis=-1)                              # (256, 64)
    x1 = _conv1x1(cat1, w14, b14)                                          # (256, 64)
    feat0_ref[0] = x1.reshape(H1, W1, 64)

    # ---------------- MaxPool2d(2, 2) ----------------
    xs = x1.reshape(H2, 2, W1, 64)                 # leading-dim split: layout-free
    pool[...] = jnp.maximum(xs[:, 0], xs[:, 1])    # (8, 16, 64), H-direction pooled
    # W-direction pool: write pooled columns straight into the padded rb2-conv1
    # input (the only consumer), so the pooled image is never materialized in HBM.
    s2[...] = jnp.zeros(s2.shape, s2.dtype)
    for j in range(W2):
        cmax = jnp.maximum(pool[:, 2 * j, :], pool[:, 2 * j + 1, :])       # (8, 64)
        s2[pl.ds(1, H2), j + 1, :] = cmax.astype(s2.dtype)

    # ---------------- Resblock_body(64, 128) ----------------
    z1 = _conv3x3(s2, H2, W2, w21, b21)                                    # (64, 128) route
    feat1_ref[0, :, :, pl.ds(0, 128)] = z1.reshape(H2, W2, 128)            # feat1[..., :128] = route
    zh = z1[:, 64:]                                                        # second half of channels
    _pad_store(s2, zh.reshape(H2, W2, 64))
    z2 = _conv3x3(s2, H2, W2, w22, b22)                                    # (64, 64)   route1
    _pad_store(s2, z2.reshape(H2, W2, 64))
    z3 = _conv3x3(s2, H2, W2, w23, b23)                                    # (64, 64)
    cat2 = jnp.concatenate([z3, z2], axis=-1)                              # (64, 128)
    x2 = _conv1x1(cat2, w24, b24)                                          # (64, 128)
    out_ref[0] = x2.reshape(H2, W2, 128)
    feat1_ref[0, :, :, pl.ds(128, 128)] = x2.reshape(H2, W2, 128)          # feat1[..., 128:] = x


# ----------------------------------------------------------------------------
# Host-side wrapper: one pallas_call for the entire backbone
# ----------------------------------------------------------------------------
def _im2col_input(x_nchw):
    """(N, 1, 16, 16) NCHW -> (N, 256, 9) bf16 im2col of the network input (one-time glue)."""
    N, C, H, W = x_nchw.shape
    img = x_nchw.reshape(N, H, W)                     # C == 1
    xp = jnp.pad(img, ((0, 0), (1, 1), (1, 1)))
    cols = [xp[:, kh:kh + H, kw:kw + W].reshape(N, H * W)
            for kh in range(3) for kw in range(3)]
    return jnp.stack(cols, axis=-1).astype(jnp.bfloat16)


def backbone_forward(x_nchw, params):
    N, Cin, H, W = x_nchw.shape
    assert (Cin, H, W) == (1, 16, 16)
    xcol = _im2col_input(x_nchw)

    p = dict(params)
    # Dead-channel elimination: BackBone never uses the first half of rb1-conv1's output.
    p["w11"] = p["w11"][:, 32:]
    p["b11"] = p["b11"][:, 32:]
    order = ["w11", "b11", "w12", "b12", "w13", "b13", "w14", "b14",
             "w21", "b21", "w22", "b22", "w23", "b23", "w24", "b24"]
    flat = [p[k] for k in order]

    def full_spec(a):
        return pl.BlockSpec(a.shape, lambda n, nd=a.ndim: (0,) * nd)

    in_specs = ([pl.BlockSpec((1, H * W, 9), lambda n: (n, 0, 0))]
                + [full_spec(a) for a in flat])

    out_shapes = (jax.ShapeDtypeStruct((N, 8, 8, 128), jnp.float32),
                  jax.ShapeDtypeStruct((N, 16, 16, 64), jnp.float32),
                  jax.ShapeDtypeStruct((N, 8, 8, 256), jnp.float32))
    out_specs = (pl.BlockSpec((1, 8, 8, 128), lambda n: (n, 0, 0, 0)),
                 pl.BlockSpec((1, 16, 16, 64), lambda n: (n, 0, 0, 0)),
                 pl.BlockSpec((1, 8, 8, 256), lambda n: (n, 0, 0, 0)))

    per_n = (256 * (9 * 32 + 288 * 32 + 288 * 32 + 64 * 64)
             + 64 * (576 * 128 + 576 * 64 + 576 * 64 + 128 * 128))
    flops = 2 * N * per_n
    bytes_accessed = int(xcol.size * 2
                         + sum(a.size * a.dtype.itemsize for a in flat)
                         + sum(int(np.prod(s.shape)) * 4 for s in out_shapes))

    out, feat0, feat1 = pl.pallas_call(
        _backbone_kernel,
        out_shape=out_shapes,
        grid=(N,),
        in_specs=in_specs,
        out_specs=out_specs,
        scratch_shapes=[
            pltpu.VMEM((18, 18, 32), jnp.float32),   # padded input for rb1 conv2/conv3
            pltpu.VMEM((10, 10, 64), jnp.float32),   # padded input for rb2 conv1/2/3
            pltpu.VMEM((8, 16, 64), jnp.float32),    # row-pooled buffer for maxpool
        ],
        compiler_params=pltpu.CompilerParams(dimension_semantics=("parallel",)),
        cost_estimate=pl.CostEstimate(flops=flops, transcendentals=0,
                                      bytes_accessed=bytes_accessed),
    )(xcol, *flat)

    # NHWC (TPU-native inside the kernel) -> NCHW to match the PyTorch module.
    to_nchw = lambda t: jnp.transpose(t, (0, 3, 1, 2))
    return to_nchw(out), to_nchw(feat0), to_nchw(feat1)


# ----------------------------------------------------------------------------
# Parameter construction (deterministic synthetic weights; BN folded, eval mode)
# ----------------------------------------------------------------------------
def _make_conv_params(key, cin, cout, ksize):
    kw_, kg, kb, km, kv = jax.random.split(key, 5)
    fan_in = cin * ksize * ksize
    w = jax.random.normal(kw_, (ksize, ksize, cin, cout), jnp.float32) / np.sqrt(fan_in)
    gamma = jax.random.uniform(kg, (cout,), jnp.float32, 0.5, 1.5)
    beta = 0.1 * jax.random.normal(kb, (cout,), jnp.float32)
    mean = 0.1 * jax.random.normal(km, (cout,), jnp.float32)
    var = jax.random.uniform(kv, (cout,), jnp.float32, 0.5, 1.5)
    scale = gamma * jax.lax.rsqrt(var + 1e-5)
    bias = beta - mean * scale
    # Fold the BN scale into the weights and store as an im2col matrix
    # (k*k*cin, cout) with rows ordered (kh, kw, cin); bf16 for the MXU.
    w_folded = (w * scale[None, None, None, :]).reshape(ksize * ksize * cin, cout)
    return w_folded.astype(jnp.bfloat16), bias.reshape(1, cout).astype(jnp.float32)


def make_backbone_params(key):
    ks = jax.random.split(key, 8)
    p = {}
    p["w11"], p["b11"] = _make_conv_params(ks[0], 1, 64, 3)
    p["w12"], p["b12"] = _make_conv_params(ks[1], 32, 32, 3)
    p["w13"], p["b13"] = _make_conv_params(ks[2], 32, 32, 3)
    p["w14"], p["b14"] = _make_conv_params(ks[3], 64, 64, 1)
    p["w21"], p["b21"] = _make_conv_params(ks[4], 64, 128, 3)
    p["w22"], p["b22"] = _make_conv_params(ks[5], 64, 64, 3)
    p["w23"], p["b23"] = _make_conv_params(ks[6], 64, 64, 3)
    p["w24"], p["b24"] = _make_conv_params(ks[7], 128, 128, 1)
    return p


# ----------------------------------------------------------------------------
# Pure-JAX (f32) reference of the same forward pass, for a correctness check
# ----------------------------------------------------------------------------
def _ref_conv(x_nhwc, w, b, ksize):
    N, H, W, C = x_nhwc.shape
    w = w.astype(jnp.float32)
    if ksize == 1:
        y = jnp.einsum("nhwc,cd->nhwd", x_nhwc, w) + b.reshape(1, 1, 1, -1)
    else:
        xp = jnp.pad(x_nhwc, ((0, 0), (1, 1), (1, 1), (0, 0)))
        cols = jnp.concatenate(
            [xp[:, kh:kh + H, kw:kw + W, :] for kh in range(3) for kw in range(3)],
            axis=-1)
        y = jnp.einsum("nhwk,kd->nhwd", cols, w) + b.reshape(1, 1, 1, -1)
    return jnp.where(y >= 0, y, 0.1 * y)


def backbone_reference(x_nchw, p):
    x = jnp.transpose(x_nchw, (0, 2, 3, 1)).astype(jnp.bfloat16).astype(jnp.float32)
    # Resblock_body(1, 64)
    r = _ref_conv(x, p["w11"], p["b11"], 3)
    t = _ref_conv(r[..., 32:], p["w12"], p["b12"], 3)
    u = _ref_conv(t, p["w13"], p["b13"], 3)
    v = _ref_conv(jnp.concatenate([u, t], -1), p["w14"], p["b14"], 1)
    feat0 = v
    # MaxPool2d(2)
    N, H, W, C = v.shape
    pooled = v.reshape(N, H // 2, 2, W // 2, 2, C).max(axis=(2, 4))
    # Resblock_body(64, 128)
    r2 = _ref_conv(pooled, p["w21"], p["b21"], 3)
    t2 = _ref_conv(r2[..., 64:], p["w22"], p["b22"], 3)
    u2 = _ref_conv(t2, p["w23"], p["b23"], 3)
    v2 = _ref_conv(jnp.concatenate([u2, t2], -1), p["w24"], p["b24"], 1)
    feat1 = jnp.concatenate([r2, v2], -1)
    to_nchw = lambda q: jnp.transpose(q, (0, 3, 1, 2))
    return to_nchw(v2), to_nchw(feat0), to_nchw(feat1)


if __name__ == "__main__":
    root = jax.random.PRNGKey(0)
    kx, kp = jax.random.split(root)
    x = jax.random.normal(kx, (2, 1, 16, 16), jnp.float32)   # NCHW like the PyTorch module
    params = make_backbone_params(kp)

    out, feat0, feat1 = jax.jit(backbone_forward)(x, params)
    jax.block_until_ready((out, feat0, feat1))

    assert out.shape == (2, 128, 8, 8), out.shape
    assert feat0.shape == (2, 64, 16, 16), feat0.shape
    assert feat1.shape == (2, 256, 8, 8), feat1.shape

    ro, rf0, rf1 = backbone_reference(x, params)
    for got, ref in ((out, ro), (feat0, rf0), (feat1, rf1)):
        assert bool(jnp.all(jnp.isfinite(got)))
        np.testing.assert_allclose(np.asarray(got), np.asarray(ref), rtol=0.1, atol=0.1)

    print("KERNEL_OK")
</pallas_src>

<mosaic_0001>
module attributes {stable_mosaic.version = 11 : i64} {
  func.func @_backbone_kernel(%arg0: i32, %arg1: memref<1x256x9xbf16, #tpu.memory_space<vmem>>, %arg2: memref<9x32xbf16, #tpu.memory_space<vmem>>, %arg3: memref<1x32xf32, #tpu.memory_space<vmem>>, %arg4: memref<288x32xbf16, #tpu.memory_space<vmem>>, %arg5: memref<1x32xf32, #tpu.memory_space<vmem>>, %arg6: memref<288x32xbf16, #tpu.memory_space<vmem>>, %arg7: memref<1x32xf32, #tpu.memory_space<vmem>>, %arg8: memref<64x64xbf16, #tpu.memory_space<vmem>>, %arg9: memref<1x64xf32, #tpu.memory_space<vmem>>, %arg10: memref<576x128xbf16, #tpu.memory_space<vmem>>, %arg11: memref<1x128xf32, #tpu.memory_space<vmem>>, %arg12: memref<576x64xbf16, #tpu.memory_space<vmem>>, %arg13: memref<1x64xf32, #tpu.memory_space<vmem>>, %arg14: memref<576x64xbf16, #tpu.memory_space<vmem>>, %arg15: memref<1x64xf32, #tpu.memory_space<vmem>>, %arg16: memref<128x128xbf16, #tpu.memory_space<vmem>>, %arg17: memref<1x128xf32, #tpu.memory_space<vmem>>, %arg18: memref<1x8x8x128xf32, #tpu.memory_space<vmem>>, %arg19: memref<1x16x16x64xf32, #tpu.memory_space<vmem>>, %arg20: memref<1x8x8x256xf32, #tpu.memory_space<vmem>>, %arg21: memref<18x18x32xf32, #tpu.memory_space<vmem>>, %arg22: memref<10x10x64xf32, #tpu.memory_space<vmem>>, %arg23: memref<8x16x64xf32, #tpu.memory_space<vmem>>) attributes {dimension_semantics = [#tpu.dimension_semantics<parallel>], iteration_bounds = array<i64: 2>, scalar_prefetch = 0 : i64, scratch_operands = 3 : i64, tpu.core_type = #tpu.core_type<tc>, window_params = [{transform_indices = @transform_0, window_bounds = array<i64: 1, 256, 9>}, {pipeline_mode = #tpu.pipeline_mode<synchronous>, transform_indices = @transform_1, window_bounds = array<i64: 9, 32>}, {pipeline_mode = #tpu.pipeline_mode<synchronous>, transform_indices = @transform_2, window_bounds = array<i64: 1, 32>}, {pipeline_mode = #tpu.pipeline_mode<synchronous>, transform_indices = @transform_3, window_bounds = array<i64: 288, 32>}, {pipeline_mode = #tpu.pipeline_mode<synchronous>, transform_indices = @transform_4, window_bounds = array<i64: 1, 32>}, {pipeline_mode = #tpu.pipeline_mode<synchronous>, transform_indices = @transform_5, window_bounds = array<i64: 288, 32>}, {pipeline_mode = #tpu.pipeline_mode<synchronous>, transform_indices = @transform_6, window_bounds = array<i64: 1, 32>}, {pipeline_mode = #tpu.pipeline_mode<synchronous>, transform_indices = @transform_7, window_bounds = array<i64: 64, 64>}, {pipeline_mode = #tpu.pipeline_mode<synchronous>, transform_indices = @transform_8, window_bounds = array<i64: 1, 64>}, {pipeline_mode = #tpu.pipeline_mode<synchronous>, transform_indices = @transform_9, window_bounds = array<i64: 576, 128>}, {pipeline_mode = #tpu.pipeline_mode<synchronous>, transform_indices = @transform_10, window_bounds = array<i64: 1, 128>}, {pipeline_mode = #tpu.pipeline_mode<synchronous>, transform_indices = @transform_11, window_bounds = array<i64: 576, 64>}, {pipeline_mode = #tpu.pipeline_mode<synchronous>, transform_indices = @transform_12, window_bounds = array<i64: 1, 64>}, {pipeline_mode = #tpu.pipeline_mode<synchronous>, transform_indices = @transform_13, window_bounds = array<i64: 576, 64>}, {pipeline_mode = #tpu.pipeline_mode<synchronous>, transform_indices = @transform_14, window_bounds = array<i64: 1, 64>}, {pipeline_mode = #tpu.pipeline_mode<synchronous>, transform_indices = @transform_15, window_bounds = array<i64: 128, 128>}, {pipeline_mode = #tpu.pipeline_mode<synchronous>, transform_indices = @transform_16, window_bounds = array<i64: 1, 128>}, {transform_indices = @transform_17, window_bounds = array<i64: 1, 8, 8, 128>}, {transform_indices = @transform_18, window_bounds = array<i64: 1, 16, 16, 64>}, {transform_indices = @transform_19, window_bounds = array<i64: 1, 8, 8, 256>}]} {
    %c0 = arith.constant 0 : index
    %c0_0 = arith.constant 0 : index
    %c0_1 = arith.constant 0 : index
    %0 = vector.load %arg1[%c0, %c0_0, %c0_1] : memref<1x256x9xbf16, #tpu.memory_space<vmem>>, vector<1x256x9xbf16>
    %1 = vector.shape_cast %0 : vector<1x256x9xbf16> to vector<256x9xbf16>
    %c0_2 = arith.constant 0 : index
    %c0_3 = arith.constant 0 : index
    %2 = vector.load %arg2[%c0_2, %c0_3] : memref<9x32xbf16, #tpu.memory_space<vmem>>, vector<9x32xbf16>
    %cst = arith.constant dense<0.000000e+00> : vector<256x32xf32>
    %3 = tpu.matmul %1, %2, %cst {dimension_numbers = #tpu.dot_dimension_numbers<[1], [0], [0], [1], [0, 0, 1, 1], [], []>} : vector<256x9xbf16>, vector<9x32xbf16>, vector<256x32xf32> -> vector<256x32xf32>
    %c0_4 = arith.constant 0 : index
    %c0_5 = arith.constant 0 : index
    %4 = vector.load %arg3[%c0_4, %c0_5] : memref<1x32xf32, #tpu.memory_space<vmem>>, vector<1x32xf32>
    %5 = vector.broadcast %4 : vector<1x32xf32> to vector<256x32xf32>
    %6 = arith.addf %3, %5 : vector<256x32xf32>
    %cst_6 = arith.constant 0.000000e+00 : f32
    %7 = vector.broadcast %cst_6 : f32 to vector<256x32xf32>
    %8 = arith.cmpf oge, %6, %7 : vector<256x32xf32>
    %cst_7 = arith.constant 1.000000e-01 : f32
    %9 = vector.broadcast %cst_7 : f32 to vector<256x32xf32>
    %10 = arith.mulf %9, %6 : vector<256x32xf32>
    %11 = arith.select %8, %6, %10 : vector<256x32xi1>, vector<256x32xf32>
    %12 = vector.shape_cast %11 : vector<256x32xf32> to vector<16x16x32xf32>
    %cst_8 = arith.constant 0.000000e+00 : f32
    %13 = vector.broadcast %cst_8 : f32 to vector<18x18x32xf32>
    %c0_9 = arith.constant 0 : index
    %c0_10 = arith.constant 0 : index
    %c0_11 = arith.constant 0 : index
    %14 = vector.load %arg21[%c0_9, %c0_10, %c0_11] : memref<18x18x32xf32, #tpu.memory_space<vmem>>, vector<18x18x32xf32>
    tpu.vector_store %arg21[%c0_9, %c0_10, %c0_11], %13 {strides = array<i32>} : memref<18x18x32xf32, #tpu.memory_space<vmem>>, vector<18x18x32xf32>,
    %c1 = arith.constant 1 : index
    %c1_12 = arith.constant 1 : index
    %c0_13 = arith.constant 0 : index
    %15 = vector.load %arg21[%c1, %c1_12, %c0_13] : memref<18x18x32xf32, #tpu.memory_space<vmem>>, vector<16x16x32xf32>
    tpu.vector_store %arg21[%c1, %c1_12, %c0_13], %12 {strides = array<i32>} : memref<18x18x32xf32, #tpu.memory_space<vmem>>, vector<16x16x32xf32>,
    %c0_14 = arith.constant 0 : index
    %c0_15 = arith.constant 0 : index
    %c0_16 = arith.constant 0 : index
    %16 = vector.load %arg21[%c0_14, %c0_15, %c0_16] : memref<18x18x32xf32, #tpu.memory_space<vmem>>, vector<16x16x32xf32>
    %17 = vector.shape_cast %16 : vector<16x16x32xf32> to vector<256x32xf32>
    %18 = arith.truncf %17 : vector<256x32xf32> to vector<256x32xbf16>
    %c0_17 = arith.constant 0 : index
    %c1_18 = arith.constant 1 : index
    %c0_19 = arith.constant 0 : index
    %19 = vector.load %arg21[%c0_17, %c1_18, %c0_19] : memref<18x18x32xf32, #tpu.memory_space<vmem>>, vector<16x16x32xf32>
    %20 = vector.shape_cast %19 : vector<16x16x32xf32> to vector<256x32xf32>
    %21 = arith.truncf %20 : vector<256x32xf32> to vector<256x32xbf16>
    %c0_20 = arith.constant 0 : index
    %c2 = arith.constant 2 : index
    %c0_21 = arith.constant 0 : index
    %22 = vector.load %arg21[%c0_20, %c2, %c0_21] : memref<18x18x32xf32, #tpu.memory_space<vmem>>, vector<16x16x32xf32>
    %23 = vector.shape_cast %22 : vector<16x16x32xf32> to vector<256x32xf32>
    %24 = arith.truncf %23 : vector<256x32xf32> to vector<256x32xbf16>
    %c1_22 = arith.constant 1 : index
    %c0_23 = arith.constant 0 : index
    %c0_24 = arith.constant 0 : index
    %25 = vector.load %arg21[%c1_22, %c0_23, %c0_24] : memref<18x18x32xf32, #tpu.memory_space<vmem>>, vector<16x16x32xf32>
    %26 = vector.shape_cast %25 : vector<16x16x32xf32> to vector<256x32xf32>
    %27 = arith.truncf %26 : vector<256x32xf32> to vector<256x32xbf16>
    %c1_25 = arith.constant 1 : index
    %c1_26 = arith.constant 1 : index
    %c0_27 = arith.constant 0 : index
    %28 = vector.load %arg21[%c1_25, %c1_26, %c0_27] : memref<18x18x32xf32, #tpu.memory_space<vmem>>, vector<16x16x32xf32>
    %29 = vector.shape_cast %28 : vector<16x16x32xf32> to vector<256x32xf32>
    %30 = arith.truncf %29 : vector<256x32xf32> to vector<256x32xbf16>
    %c1_28 = arith.constant 1 : index
    %c2_29 = arith.constant 2 : index
    %c0_30 = arith.constant 0 : index
    %31 = vector.load %arg21[%c1_28, %c2_29, %c0_30] : memref<18x18x32xf32, #tpu.memory_space<vmem>>, vector<16x16x32xf32>
    %32 = vector.shape_cast %31 : vector<16x16x32xf32> to vector<256x32xf32>
    %33 = arith.truncf %32 : vector<256x32xf32> to vector<256x32xbf16>
    %c2_31 = arith.constant 2 : index
    %c0_32 = arith.constant 0 : index
    %c0_33 = arith.constant 0 : index
    %34 = vector.load %arg21[%c2_31, %c0_32, %c0_33] : memref<18x18x32xf32, #tpu.memory_space<vmem>>, vector<16x16x32xf32>
    %35 = vector.shape_cast %34 : vector<16x16x32xf32> to vector<256x32xf32>
    %36 = arith.truncf %35 : vector<256x32xf32> to vector<256x32xbf16>
    %c2_34 = arith.constant 2 : index
    %c1_35 = arith.constant 1 : index
    %c0_36 = arith.constant 0 : index
    %37 = vector.load %arg21[%c2_34, %c1_35, %c0_36] : memref<18x18x32xf32, #tpu.memory_space<vmem>>, vector<16x16x32xf32>
    %38 = vector.shape_cast %37 : vector<16x16x32xf32> to vector<256x32xf32>
    %39 = arith.truncf %38 : vector<256x32xf32> to vector<256x32xbf16>
    %c2_37 = arith.constant 2 : index
    %c2_38 = arith.constant 2 : index
    %c0_39 = arith.constant 0 : index
    %40 = vector.load %arg21[%c2_37, %c2_38, %c0_39] : memref<18x18x32xf32, #tpu.memory_space<vmem>>, vector<16x16x32xf32>
    %41 = vector.shape_cast %40 : vector<16x16x32xf32> to vector<256x32xf32>
    %42 = arith.truncf %41 : vector<256x32xf32> to vector<256x32xbf16>
    %43 = tpu.concatenate %18, %21, %24, %27, %30, %33, %36, %39, %42 in 1 : vector<256x32xbf16>, vector<256x32xbf16>, vector<256x32xbf16>, vector<256x32xbf16>, vector<256x32xbf16>, vector<256x32xbf16>, vector<256x32xbf16>, vector<256x32xbf16>, vector<256x32xbf16> -> vector<256x288xbf16>
    %c0_40 = arith.constant 0 : index
    %c0_41 = arith.constant 0 : index
    %44 = vector.load %arg4[%c0_40, %c0_41] : memref<288x32xbf16, #tpu.memory_space<vmem>>, vector<288x32xbf16>
    %cst_42 = arith.constant dense<0.000000e+00> : vector<256x32xf32>
    %45 = tpu.matmul %43, %44, %cst_42 {dimension_numbers = #tpu.dot_dimension_numbers<[1], [0], [0], [1], [0, 0, 1, 1], [], []>} : vector<256x288xbf16>, vector<288x32xbf16>, vector<256x32xf32> -> vector<256x32xf32>
    %c0_43 = arith.constant 0 : index
    %c0_44 = arith.constant 0 : index
    %46 = vector.load %arg5[%c0_43, %c0_44] : memref<1x32xf32, #tpu.memory_space<vmem>>, vector<1x32xf32>
    %47 = vector.broadcast %46 : vector<1x32xf32> to vector<256x32xf32>
    %48 = arith.addf %45, %47 : vector<256x32xf32>
    %cst_45 = arith.constant 0.000000e+00 : f32
    %49 = vector.broadcast %cst_45 : f32 to vector<256x32xf32>
    %50 = arith.cmpf oge, %48, %49 : vector<256x32xf32>
    %cst_46 = arith.constant 1.000000e-01 : f32
    %51 = vector.broadcast %cst_46 : f32 to vector<256x32xf32>
    %52 = arith.mulf %51, %48 : vector<256x32xf32>
    %53 = arith.select %50, %48, %52 : vector<256x32xi1>, vector<256x32xf32>
    %54 = vector.shape_cast %53 : vector<256x32xf32> to vector<16x16x32xf32>
    %cst_47 = arith.constant 0.000000e+00 : f32
    %55 = vector.broadcast %cst_47 : f32 to vector<18x18x32xf32>
    %c0_48 = arith.constant 0 : index
    %c0_49 = arith.constant 0 : index
    %c0_50 = arith.constant 0 : index
    %56 = vector.load %arg21[%c0_48, %c0_49, %c0_50] : memref<18x18x32xf32, #tpu.memory_space<vmem>>, vector<18x18x32xf32>
    tpu.vector_store %arg21[%c0_48, %c0_49, %c0_50], %55 {strides = array<i32>} : memref<18x18x32xf32, #tpu.memory_space<vmem>>, vector<18x18x32xf32>,
    %c1_51 = arith.constant 1 : index
    %c1_52 = arith.constant 1 : index
    %c0_53 = arith.constant 0 : index
    %57 = vector.load %arg21[%c1_51, %c1_52, %c0_53] : memref<18x18x32xf32, #tpu.memory_space<vmem>>, vector<16x16x32xf32>
    tpu.vector_store %arg21[%c1_51, %c1_52, %c0_53], %54 {strides = array<i32>} : memref<18x18x32xf32, #tpu.memory_space<vmem>>, vector<16x16x32xf32>,
    %c0_54 = arith.constant 0 : index
    %c0_55 = arith.constant 0 : index
    %c0_56 = arith.constant 0 : index
    %58 = vector.load %arg21[%c0_54, %c0_55, %c0_56] : memref<18x18x32xf32, #tpu.memory_space<vmem>>, vector<16x16x32xf32>
    %59 = vector.shape_cast %58 : vector<16x16x32xf32> to vector<256x32xf32>
    %60 = arith.truncf %59 : vector<256x32xf32> to vector<256x32xbf16>
    %c0_57 = arith.constant 0 : index
    %c1_58 = arith.constant 1 : index
    %c0_59 = arith.constant 0 : index
    %61 = vector.load %arg21[%c0_57, %c1_58, %c0_59] : memref<18x18x32xf32, #tpu.memory_space<vmem>>, vector<16x16x32xf32>
    %62 = vector.shape_cast %61 : vector<16x16x32xf32> to vector<256x32xf32>
    %63 = arith.truncf %62 : vector<256x32xf32> to vector<256x32xbf16>
    %c0_60 = arith.constant 0 : index
    %c2_61 = arith.constant 2 : index
    %c0_62 = arith.constant 0 : index
    %64 = vector.load %arg21[%c0_60, %c2_61, %c0_62] : memref<18x18x32xf32, #tpu.memory_space<vmem>>, vector<16x16x32xf32>
    %65 = vector.shape_cast %64 : vector<16x16x32xf32> to vector<256x32xf32>
    %66 = arith.truncf %65 : vector<256x32xf32> to vector<256x32xbf16>
    %c1_63 = arith.constant 1 : index
    %c0_64 = arith.constant 0 : index
    %c0_65 = arith.constant 0 : index
    %67 = vector.load %arg21[%c1_63, %c0_64, %c0_65] : memref<18x18x32xf32, #tpu.memory_space<vmem>>, vector<16x16x32xf32>
    %68 = vector.shape_cast %67 : vector<16x16x32xf32> to vector<256x32xf32>
    %69 = arith.truncf %68 : vector<256x32xf32> to vector<256x32xbf16>
    %c1_66 = arith.constant 1 : index
    %c1_67 = arith.constant 1 : index
    %c0_68 = arith.constant 0 : index
    %70 = vector.load %arg21[%c1_66, %c1_67, %c0_68] : memref<18x18x32xf32, #tpu.memory_space<vmem>>, vector<16x16x32xf32>
    %71 = vector.shape_cast %70 : vector<16x16x32xf32> to vector<256x32xf32>
    %72 = arith.truncf %71 : vector<256x32xf32> to vector<256x32xbf16>
    %c1_69 = arith.constant 1 : index
    %c2_70 = arith.constant 2 : index
    %c0_71 = arith.constant 0 : index
    %73 = vector.load %arg21[%c1_69, %c2_70, %c0_71] : memref<18x18x32xf32, #tpu.memory_space<vmem>>, vector<16x16x32xf32>
    %74 = vector.shape_cast %73 : vector<16x16x32xf32> to vector<256x32xf32>
    %75 = arith.truncf %74 : vector<256x32xf32> to vector<256x32xbf16>
    %c2_72 = arith.constant 2 : index
    %c0_73 = arith.constant 0 : index
    %c0_74 = arith.constant 0 : index
    %76 = vector.load %arg21[%c2_72, %c0_73, %c0_74] : memref<18x18x32xf32, #tpu.memory_space<vmem>>, vector<16x16x32xf32>
    %77 = vector.shape_cast %76 : vector<16x16x32xf32> to vector<256x32xf32>
    %78 = arith.truncf %77 : vector<256x32xf32> to vector<256x32xbf16>
    %c2_75 = arith.constant 2 : index
    %c1_76 = arith.constant 1 : index
    %c0_77 = arith.constant 0 : index
    %79 = vector.load %arg21[%c2_75, %c1_76, %c0_77] : memref<18x18x32xf32, #tpu.memory_space<vmem>>, vector<16x16x32xf32>
    %80 = vector.shape_cast %79 : vector<16x16x32xf32> to vector<256x32xf32>
    %81 = arith.truncf %80 : vector<256x32xf32> to vector<256x32xbf16>
    %c2_78 = arith.constant 2 : index
    %c2_79 = arith.constant 2 : index
    %c0_80 = arith.constant 0 : index
    %82 = vector.load %arg21[%c2_78, %c2_79, %c0_80] : memref<18x18x32xf32, #tpu.memory_space<vmem>>, vector<16x16x32xf32>
    %83 = vector.shape_cast %82 : vector<16x16x32xf32> to vector<256x32xf32>
    %84 = arith.truncf %83 : vector<256x32xf32> to vector<256x32xbf16>
    %85 = tpu.concatenate %60, %63, %66, %69, %72, %75, %78, %81, %84 in 1 : vector<256x32xbf16>, vector<256x32xbf16>, vector<256x32xbf16>, vector<256x32xbf16>, vector<256x32xbf16>, vector<256x32xbf16>, vector<256x32xbf16>, vector<256x32xbf16>, vector<256x32xbf16> -> vector<256x288xbf16>
    %c0_81 = arith.constant 0 : index
    %c0_82 = arith.constant 0 : index
    %86 = vector.load %arg6[%c0_81, %c0_82] : memref<288x32xbf16, #tpu.memory_space<vmem>>, vector<288x32xbf16>
    %cst_83 = arith.constant dense<0.000000e+00> : vector<256x32xf32>
    %87 = tpu.matmul %85, %86, %cst_83 {dimension_numbers = #tpu.dot_dimension_numbers<[1], [0], [0], [1], [0, 0, 1, 1], [], []>} : vector<256x288xbf16>, vector<288x32xbf16>, vector<256x32xf32> -> vector<256x32xf32>
    %c0_84 = arith.constant 0 : index
    %c0_85 = arith.constant 0 : index
    %88 = vector.load %arg7[%c0_84, %c0_85] : memref<1x32xf32, #tpu.memory_space<vmem>>, vector<1x32xf32>
    %89 = vector.broadcast %88 : vector<1x32xf32> to vector<256x32xf32>
    %90 = arith.addf %87, %89 : vector<256x32xf32>
    %cst_86 = arith.constant 0.000000e+00 : f32
    %91 = vector.broadcast %cst_86 : f32 to vector<256x32xf32>
    %92 = arith.cmpf oge, %90, %91 : vector<256x32xf32>
    %cst_87 = arith.constant 1.000000e-01 : f32
    %93 = vector.broadcast %cst_87 : f32 to vector<256x32xf32>
    %94 = arith.mulf %93, %90 : vector<256x32xf32>
    %95 = arith.select %92, %90, %94 : vector<256x32xi1>, vector<256x32xf32>
    %96 = tpu.concatenate %95, %53 in 1 : vector<256x32xf32>, vector<256x32xf32> -> vector<256x64xf32>
    %97 = arith.truncf %96 : vector<256x64xf32> to vector<256x64xbf16>
    %c0_88 = arith.constant 0 : index
    %c0_89 = arith.constant 0 : index
    %98 = vector.load %arg8[%c0_88, %c0_89] : memref<64x64xbf16, #tpu.memory_space<vmem>>, vector<64x64xbf16>
    %cst_90 = arith.constant dense<0.000000e+00> : vector<256x64xf32>
    %99 = tpu.matmul %97, %98, %cst_90 {dimension_numbers = #tpu.dot_dimension_numbers<[1], [0], [0], [1], [0, 0, 1, 1], [], []>} : vector<256x64xbf16>, vector<64x64xbf16>, vector<256x64xf32> -> vector<256x64xf32>
    %c0_91 = arith.constant 0 : index
    %c0_92 = arith.constant 0 : index
    %100 = vector.load %arg9[%c0_91, %c0_92] : memref<1x64xf32, #tpu.memory_space<vmem>>, vector<1x64xf32>
    %101 = vector.broadcast %100 : vector<1x64xf32> to vector<256x64xf32>
    %102 = arith.addf %99, %101 : vector<256x64xf32>
    %cst_93 = arith.constant 0.000000e+00 : f32
    %103 = vector.broadcast %cst_93 : f32 to vector<256x64xf32>
    %104 = arith.cmpf oge, %102, %103 : vector<256x64xf32>
    %cst_94 = arith.constant 1.000000e-01 : f32
    %105 = vector.broadcast %cst_94 : f32 to vector<256x64xf32>
    %106 = arith.mulf %105, %102 : vector<256x64xf32>
    %107 = arith.select %104, %102, %106 : vector<256x64xi1>, vector<256x64xf32>
    %108 = vector.shape_cast %107 : vector<256x64xf32> to vector<16x16x64xf32>
    %c0_95 = arith.constant 0 : index
    %c0_96 = arith.constant 0 : index
    %c0_97 = arith.constant 0 : index
    %c0_98 = arith.constant 0 : index
    %109 = vector.load %arg19[%c0_95, %c0_96, %c0_97, %c0_98] : memref<1x16x16x64xf32, #tpu.memory_space<vmem>>, vector<1x16x16x64xf32>
    %110 = vector.shape_cast %109 : vector<1x16x16x64xf32> to vector<16x16x64xf32>
    %111 = vector.shape_cast %108 : vector<16x16x64xf32> to vector<1x16x16x64xf32>
    tpu.vector_store %arg19[%c0_95, %c0_96, %c0_97, %c0_98], %111 {strides = array<i32>} : memref<1x16x16x64xf32, #tpu.memory_space<vmem>>, vector<1x16x16x64xf32>,
    %112 = vector.shape_cast %107 : vector<256x64xf32> to vector<8x2x16x64xf32>
    %113 = vector.extract_strided_slice %112 {offsets = [0, 0, 0, 0], sizes = [8, 1, 16, 64], strides = [1, 1, 1, 1]} : vector<8x2x16x64xf32> to vector<8x1x16x64xf32>
    %114 = vector.shape_cast %113 : vector<8x1x16x64xf32> to vector<8x16x64xf32>
    %115 = vector.extract_strided_slice %112 {offsets = [0, 1, 0, 0], sizes = [8, 1, 16, 64], strides = [1, 1, 1, 1]} : vector<8x2x16x64xf32> to vector<8x1x16x64xf32>
    %116 = vector.shape_cast %115 : vector<8x1x16x64xf32> to vector<8x16x64xf32>
    %117 = arith.maximumf %114, %116 : vector<8x16x64xf32>
    %c0_99 = arith.constant 0 : index
    %c0_100 = arith.constant 0 : index
    %c0_101 = arith.constant 0 : index
    %118 = vector.load %arg23[%c0_99, %c0_100, %c0_101] : memref<8x16x64xf32, #tpu.memory_space<vmem>>, vector<8x16x64xf32>
    tpu.vector_store %arg23[%c0_99, %c0_100, %c0_101], %117 {strides = array<i32>} : memref<8x16x64xf32, #tpu.memory_space<vmem>>, vector<8x16x64xf32>,
    %cst_102 = arith.constant 0.000000e+00 : f32
    %119 = vector.broadcast %cst_102 : f32 to vector<10x10x64xf32>
    %c0_103 = arith.constant 0 : index
    %c0_104 = arith.constant 0 : index
    %c0_105 = arith.constant 0 : index
    %120 = vector.load %arg22[%c0_103, %c0_104, %c0_105] : memref<10x10x64xf32, #tpu.memory_space<vmem>>, vector<10x10x64xf32>
    tpu.vector_store %arg22[%c0_103, %c0_104, %c0_105], %119 {strides = array<i32>} : memref<10x10x64xf32, #tpu.memory_space<vmem>>, vector<10x10x64xf32>,
    %c0_106 = arith.constant 0 : index
    %c0_107 = arith.constant 0 : index
    %c0_108 = arith.constant 0 : index
    %121 = vector.load %arg23[%c0_106, %c0_107, %c0_108] : memref<8x16x64xf32, #tpu.memory_space<vmem>>, vector<8x1x64xf32>
    %122 = vector.shape_cast %121 : vector<8x1x64xf32> to vector<8x64xf32>
    %c0_109 = arith.constant 0 : index
    %c1_110 = arith.constant 1 : index
    %c0_111 = arith.constant 0 : index
    %123 = vector.load %arg23[%c0_109, %c1_110, %c0_111] : memref<8x16x64xf32, #tpu.memory_space<vmem>>, vector<8x1x64xf32>
    %124 = vector.shape_cast %123 : vector<8x1x64xf32> to vector<8x64xf32>
    %125 = arith.maximumf %122, %124 : vector<8x64xf32>
    %c1_112 = arith.constant 1 : index
    %c1_113 = arith.constant 1 : index
    %c0_114 = arith.constant 0 : index
    %126 = vector.load %arg22[%c1_112, %c1_113, %c0_114] : memref<10x10x64xf32, #tpu.memory_space<vmem>>, vector<8x1x64xf32>
    %127 = vector.shape_cast %126 : vector<8x1x64xf32> to vector<8x64xf32>
    %128 = vector.shape_cast %125 : vector<8x64xf32> to vector<8x1x64xf32>
    tpu.vector_store %arg22[%c1_112, %c1_113, %c0_114], %128 {strides = array<i32>} : memref<10x10x64xf32, #tpu.memory_space<vmem>>, vector<8x1x64xf32>,
    %c0_115 = arith.constant 0 : index
    %c2_116 = arith.constant 2 : index
    %c0_117 = arith.constant 0 : index
    %129 = vector.load %arg23[%c0_115, %c2_116, %c0_117] : memref<8x16x64xf32, #tpu.memory_space<vmem>>, vector<8x1x64xf32>
    %130 = vector.shape_cast %129 : vector<8x1x64xf32> to vector<8x64xf32>
    %c0_118 = arith.constant 0 : index
    %c3 = arith.constant 3 : index
    %c0_119 = arith.constant 0 : index
    %131 = vector.load %arg23[%c0_118, %c3, %c0_119] : memref<8x16x64xf32, #tpu.memory_space<vmem>>, vector<8x1x64xf32>
    %132 = vector.shape_cast %131 : vector<8x1x64xf32> to vector<8x64xf32>
    %133 = arith.maximumf %130, %132 : vector<8x64xf32>
    %c1_120 = arith.constant 1 : index
    %c2_121 = arith.constant 2 : index
    %c0_122 = arith.constant 0 : index
    %134 = vector.load %arg22[%c1_120, %c2_121, %c0_122] : memref<10x10x64xf32, #tpu.memory_space<vmem>>, vector<8x1x64xf32>
    %135 = vector.shape_cast %134 : vector<8x1x64xf32> to vector<8x64xf32>
    %136 = vector.shape_cast %133 : vector<8x64xf32> to vector<8x1x64xf32>
    tpu.vector_store %arg22[%c1_120, %c2_121, %c0_122], %136 {strides = array<i32>} : memref<10x10x64xf32, #tpu.memory_space<vmem>>, vector<8x1x64xf32>,
    %c0_123 = arith.constant 0 : index
    %c4 = arith.constant 4 : index
    %c0_124 = arith.constant 0 : index
    %137 = vector.load %arg23[%c0_123, %c4, %c0_124] : memref<8x16x64xf32, #tpu.memory_space<vmem>>, vector<8x1x64xf32>
    %138 = vector.shape_cast %137 : vector<8x1x64xf32> to vector<8x64xf32>
    %c0_125 = arith.constant 0 : index
    %c5 = arith.constant 5 : index
    %c0_126 = arith.constant 0 : index
    %139 = vector.load %arg23[%c0_125, %c5, %c0_126] : memref<8x16x64xf32, #tpu.memory_space<vmem>>, vector<8x1x64xf32>
    %140 = vector.shape_cast %139 : vector<8x1x64xf32> to vector<8x64xf32>
    %141 = arith.maximumf %138, %140 : vector<8x64xf32>
    %c1_127 = arith.constant 1 : index
    %c3_128 = arith.constant 3 : index
    %c0_129 = arith.constant 0 : index
    %142 = vector.load %arg22[%c1_127, %c3_128, %c0_129] : memref<10x10x64xf32, #tpu.memory_space<vmem>>, vector<8x1x64xf32>
    %143 = vector.shape_cast %142 : vector<8x1x64xf32> to vector<8x64xf32>
    %144 = vector.shape_cast %141 : vector<8x64xf32> to vector<8x1x64xf32>
    tpu.vector_store %arg22[%c1_127, %c3_128, %c0_129], %144 {strides = array<i32>} : memref<10x10x64xf32, #tpu.memory_space<vmem>>, vector<8x1x64xf32>,
    %c0_130 = arith.constant 0 : index
    %c6 = arith.constant 6 : index
    %c0_131 = arith.constant 0 : index
    %145 = vector.load %arg23[%c0_130, %c6, %c0_131] : memref<8x16x64xf32, #tpu.memory_space<vmem>>, vector<8x1x64xf32>
    %146 = vector.shape_cast %145 : vector<8x1x64xf32> to vector<8x64xf32>
    %c0_132 = arith.constant 0 : index
    %c7 = arith.constant 7 : index
    %c0_133 = arith.constant 0 : index
    %147 = vector.load %arg23[%c0_132, %c7, %c0_133] : memref<8x16x64xf32, #tpu.memory_space<vmem>>, vector<8x1x64xf32>
    %148 = vector.shape_cast %147 : vector<8x1x64xf32> to vector<8x64xf32>
    %149 = arith.maximumf %146, %148 : vector<8x64xf32>
    %c1_134 = arith.constant 1 : index
    %c4_135 = arith.constant 4 : index
    %c0_136 = arith.constant 0 : index
    %150 = vector.load %arg22[%c1_134, %c4_135, %c0_136] : memref<10x10x64xf32, #tpu.memory_space<vmem>>, vector<8x1x64xf32>
    %151 = vector.shape_cast %150 : vector<8x1x64xf32> to vector<8x64xf32>
    %152 = vector.shape_cast %149 : vector<8x64xf32> to vector<8x1x64xf32>
    tpu.vector_store %arg22[%c1_134, %c4_135, %c0_136], %152 {strides = array<i32>} : memref<10x10x64xf32, #tpu.memory_space<vmem>>, vector<8x1x64xf32>,
    %c0_137 = arith.constant 0 : index
    %c8 = arith.constant 8 : index
    %c0_138 = arith.constant 0 : index
    %153 = vector.load %arg23[%c0_137, %c8, %c0_138] : memref<8x16x64xf32, #tpu.memory_space<vmem>>, vector<8x1x64xf32>
    %154 = vector.shape_cast %153 : vector<8x1x64xf32> to vector<8x64xf32>
    %c0_139 = arith.constant 0 : index
    %c9 = arith.constant 9 : index
    %c0_140 = arith.constant 0 : index
    %155 = vector.load %arg23[%c0_139, %c9, %c0_140] : memref<8x16x64xf32, #tpu.memory_space<vmem>>, vector<8x1x64xf32>
    %156 = vector.shape_cast %155 : vector<8x1x64xf32> to vector<8x64xf32>
    %157 = arith.maximumf %154, %156 : vector<8x64xf32>
    %c1_141 = arith.constant 1 : index
    %c5_142 = arith.constant 5 : index
    %c0_143 = arith.constant 0 : index
    %158 = vector.load %arg22[%c1_141, %c5_142, %c0_143] : memref<10x10x64xf32, #tpu.memory_space<vmem>>, vector<8x1x64xf32>
    %159 = vector.shape_cast %158 : vector<8x1x64xf32> to vector<8x64xf32>
    %160 = vector.shape_cast %157 : vector<8x64xf32> to vector<8x1x64xf32>
    tpu.vector_store %arg22[%c1_141, %c5_142, %c0_143], %160 {strides = array<i32>} : memref<10x10x64xf32, #tpu.memory_space<vmem>>, vector<8x1x64xf32>,
    %c0_144 = arith.constant 0 : index
    %c10 = arith.constant 10 : index
    %c0_145 = arith.constant 0 : index
    %161 = vector.load %arg23[%c0_144, %c10, %c0_145] : memref<8x16x64xf32, #tpu.memory_space<vmem>>, vector<8x1x64xf32>
    %162 = vector.shape_cast %161 : vector<8x1x64xf32> to vector<8x64xf32>
    %c0_146 = arith.constant 0 : index
    %c11 = arith.constant 11 : index
    %c0_147 = arith.constant 0 : index
    %163 = vector.load %arg23[%c0_146, %c11, %c0_147] : memref<8x16x64xf32, #tpu.memory_space<vmem>>, vector<8x1x64xf32>
    %164 = vector.shape_cast %163 : vector<8x1x64xf32> to vector<8x64xf32>
    %165 = arith.maximumf %162, %164 : vector<8x64xf32>
    %c1_148 = arith.constant 1 : index
    %c6_149 = arith.constant 6 : index
    %c0_150 = arith.constant 0 : index
    %166 = vector.load %arg22[%c1_148, %c6_149, %c0_150] : memref<10x10x64xf32, #tpu.memory_space<vmem>>, vector<8x1x64xf32>
    %167 = vector.shape_cast %166 : vector<8x1x64xf32> to vector<8x64xf32>
    %168 = vector.shape_cast %165 : vector<8x64xf32> to vector<8x1x64xf32>
    tpu.vector_store %arg22[%c1_148, %c6_149, %c0_150], %168 {strides = array<i32>} : memref<10x10x64xf32, #tpu.memory_space<vmem>>, vector<8x1x64xf32>,
    %c0_151 = arith.constant 0 : index
    %c12 = arith.constant 12 : index
    %c0_152 = arith.constant 0 : index
    %169 = vector.load %arg23[%c0_151, %c12, %c0_152] : memref<8x16x64xf32, #tpu.memory_space<vmem>>, vector<8x1x64xf32>
    %170 = vector.shape_cast %169 : vector<8x1x64xf32> to vector<8x64xf32>
    %c0_153 = arith.constant 0 : index
    %c13 = arith.constant 13 : index
    %c0_154 = arith.constant 0 : index
    %171 = vector.load %arg23[%c0_153, %c13, %c0_154] : memref<8x16x64xf32, #tpu.memory_space<vmem>>, vector<8x1x64xf32>
    %172 = vector.shape_cast %171 : vector<8x1x64xf32> to vector<8x64xf32>
    %173 = arith.maximumf %170, %172 : vector<8x64xf32>
    %c1_155 = arith.constant 1 : index
    %c7_156 = arith.constant 7 : index
    %c0_157 = arith.constant 0 : index
    %174 = vector.load %arg22[%c1_155, %c7_156, %c0_157] : memref<10x10x64xf32, #tpu.memory_space<vmem>>, vector<8x1x64xf32>
    %175 = vector.shape_cast %174 : vector<8x1x64xf32> to vector<8x64xf32>
    %176 = vector.shape_cast %173 : vector<8x64xf32> to vector<8x1x64xf32>
    tpu.vector_store %arg22[%c1_155, %c7_156, %c0_157], %176 {strides = array<i32>} : memref<10x10x64xf32, #tpu.memory_space<vmem>>, vector<8x1x64xf32>,
    %c0_158 = arith.constant 0 : index
    %c14 = arith.constant 14 : index
    %c0_159 = arith.constant 0 : index
    %177 = vector.load %arg23[%c0_158, %c14, %c0_159] : memref<8x16x64xf32, #tpu.memory_space<vmem>>, vector<8x1x64xf32>
    %178 = vector.shape_cast %177 : vector<8x1x64xf32> to vector<8x64xf32>
    %c0_160 = arith.constant 0 : index
    %c15 = arith.constant 15 : index
    %c0_161 = arith.constant 0 : index
    %179 = vector.load %arg23[%c0_160, %c15, %c0_161] : memref<8x16x64xf32, #tpu.memory_space<vmem>>, vector<8x1x64xf32>
    %180 = vector.shape_cast %179 : vector<8x1x64xf32> to vector<8x64xf32>
    %181 = arith.maximumf %178, %180 : vector<8x64xf32>
    %c1_162 = arith.constant 1 : index
    %c8_163 = arith.constant 8 : index
    %c0_164 = arith.constant 0 : index
    %182 = vector.load %arg22[%c1_162, %c8_163, %c0_164] : memref<10x10x64xf32, #tpu.memory_space<vmem>>, vector<8x1x64xf32>
    %183 = vector.shape_cast %182 : vector<8x1x64xf32> to vector<8x64xf32>
    %184 = vector.shape_cast %181 : vector<8x64xf32> to vector<8x1x64xf32>
    tpu.vector_store %arg22[%c1_162, %c8_163, %c0_164], %184 {strides = array<i32>} : memref<10x10x64xf32, #tpu.memory_space<vmem>>, vector<8x1x64xf32>,
    %c0_165 = arith.constant 0 : index
    %c0_166 = arith.constant 0 : index
    %c0_167 = arith.constant 0 : index
    %185 = vector.load %arg22[%c0_165, %c0_166, %c0_167] : memref<10x10x64xf32, #tpu.memory_space<vmem>>, vector<8x8x64xf32>
    %186 = vector.shape_cast %185 : vector<8x8x64xf32> to vector<64x64xf32>
    %187 = arith.truncf %186 : vector<64x64xf32> to vector<64x64xbf16>
    %c0_168 = arith.constant 0 : index
    %c1_169 = arith.constant 1 : index
    %c0_170 = arith.constant 0 : index
    %188 = vector.load %arg22[%c0_168, %c1_169, %c0_170] : memref<10x10x64xf32, #tpu.memory_space<vmem>>, vector<8x8x64xf32>
    %189 = vector.shape_cast %188 : vector<8x8x64xf32> to vector<64x64xf32>
    %190 = arith.truncf %189 : vector<64x64xf32> to vector<64x64xbf16>
    %c0_171 = arith.constant 0 : index
    %c2_172 = arith.constant 2 : index
    %c0_173 = arith.constant 0 : index
    %191 = vector.load %arg22[%c0_171, %c2_172, %c0_173] : memref<10x10x64xf32, #tpu.memory_space<vmem>>, vector<8x8x64xf32>
    %192 = vector.shape_cast %191 : vector<8x8x64xf32> to vector<64x64xf32>
    %193 = arith.truncf %192 : vector<64x64xf32> to vector<64x64xbf16>
    %c1_174 = arith.constant 1 : index
    %c0_175 = arith.constant 0 : index
    %c0_176 = arith.constant 0 : index
    %194 = vector.load %arg22[%c1_174, %c0_175, %c0_176] : memref<10x10x64xf32, #tpu.memory_space<vmem>>, vector<8x8x64xf32>
    %195 = vector.shape_cast %194 : vector<8x8x64xf32> to vector<64x64xf32>
    %196 = arith.truncf %195 : vector<64x64xf32> to vector<64x64xbf16>
    %c1_177 = arith.constant 1 : index
    %c1_178 = arith.constant 1 : index
    %c0_179 = arith.constant 0 : index
    %197 = vector.load %arg22[%c1_177, %c1_178, %c0_179] : memref<10x10x64xf32, #tpu.memory_space<vmem>>, vector<8x8x64xf32>
    %198 = vector.shape_cast %197 : vector<8x8x64xf32> to vector<64x64xf32>
    %199 = arith.truncf %198 : vector<64x64xf32> to vector<64x64xbf16>
    %c1_180 = arith.constant 1 : index
    %c2_181 = arith.constant 2 : index
    %c0_182 = arith.constant 0 : index
    %200 = vector.load %arg22[%c1_180, %c2_181, %c0_182] : memref<10x10x64xf32, #tpu.memory_space<vmem>>, vector<8x8x64xf32>
    %201 = vector.shape_cast %200 : vector<8x8x64xf32> to vector<64x64xf32>
    %202 = arith.truncf %201 : vector<64x64xf32> to vector<64x64xbf16>
    %c2_183 = arith.constant 2 : index
    %c0_184 = arith.constant 0 : index
    %c0_185 = arith.constant 0 : index
    %203 = vector.load %arg22[%c2_183, %c0_184, %c0_185] : memref<10x10x64xf32, #tpu.memory_space<vmem>>, vector<8x8x64xf32>
    %204 = vector.shape_cast %203 : vector<8x8x64xf32> to vector<64x64xf32>
    %205 = arith.truncf %204 : vector<64x64xf32> to vector<64x64xbf16>
    %c2_186 = arith.constant 2 : index
    %c1_187 = arith.constant 1 : index
    %c0_188 = arith.constant 0 : index
    %206 = vector.load %arg22[%c2_186, %c1_187, %c0_188] : memref<10x10x64xf32, #tpu.memory_space<vmem>>, vector<8x8x64xf32>
    %207 = vector.shape_cast %206 : vector<8x8x64xf32> to vector<64x64xf32>
    %208 = arith.truncf %207 : vector<64x64xf32> to vector<64x64xbf16>
    %c2_189 = arith.constant 2 : index
    %c2_190 = arith.constant 2 : index
    %c0_191 = arith.constant 0 : index
    %209 = vector.load %arg22[%c2_189, %c2_190, %c0_191] : memref<10x10x64xf32, #tpu.memory_space<vmem>>, vector<8x8x64xf32>
    %210 = vector.shape_cast %209 : vector<8x8x64xf32> to vector<64x64xf32>
    %211 = arith.truncf %210 : vector<64x64xf32> to vector<64x64xbf16>
    %212 = tpu.concatenate %187, %190, %193, %196, %199, %202, %205, %208, %211 in 1 : vector<64x64xbf16>, vector<64x64xbf16>, vector<64x64xbf16>, vector<64x64xbf16>, vector<64x64xbf16>, vector<64x64xbf16>, vector<64x64xbf16>, vector<64x64xbf16>, vector<64x64xbf16> -> vector<64x576xbf16>
    %c0_192 = arith.constant 0 : index
    %c0_193 = arith.constant 0 : index
    %213 = vector.load %arg10[%c0_192, %c0_193] : memref<576x128xbf16, #tpu.memory_space<vmem>>, vector<576x128xbf16>
    %cst_194 = arith.constant dense<0.000000e+00> : vector<64x128xf32>
    %214 = tpu.matmul %212, %213, %cst_194 {dimension_numbers = #tpu.dot_dimension_numbers<[1], [0], [0], [1], [0, 0, 1, 1], [], []>} : vector<64x576xbf16>, vector<576x128xbf16>, vector<64x128xf32> -> vector<64x128xf32>
    %c0_195 = arith.constant 0 : index
    %c0_196 = arith.constant 0 : index
    %215 = vector.load %arg11[%c0_195, %c0_196] : memref<1x128xf32, #tpu.memory_space<vmem>>, vector<1x128xf32>
    %216 = vector.broadcast %215 : vector<1x128xf32> to vector<64x128xf32>
    %217 = arith.addf %214, %216 : vector<64x128xf32>
    %cst_197 = arith.constant 0.000000e+00 : f32
    %218 = vector.broadcast %cst_197 : f32 to vector<64x128xf32>
    %219 = arith.cmpf oge, %217, %218 : vector<64x128xf32>
    %cst_198 = arith.constant 1.000000e-01 : f32
    %220 = vector.broadcast %cst_198 : f32 to vector<64x128xf32>
    %221 = arith.mulf %220, %217 : vector<64x128xf32>
    %222 = arith.select %219, %217, %221 : vector<64x128xi1>, vector<64x128xf32>
    %223 = vector.shape_cast %222 : vector<64x128xf32> to vector<8x8x128xf32>
    %c0_199 = arith.constant 0 : index
    %c0_200 = arith.constant 0 : index
    %c0_201 = arith.constant 0 : index
    %c0_202 = arith.constant 0 : index
    %224 = vector.load %arg20[%c0_199, %c0_200, %c0_201, %c0_202] : memref<1x8x8x256xf32, #tpu.memory_space<vmem>>, vector<1x8x8x128xf32>
    %225 = vector.shape_cast %224 : vector<1x8x8x128xf32> to vector<8x8x128xf32>
    %226 = vector.shape_cast %223 : vector<8x8x128xf32> to vector<1x8x8x128xf32>
    tpu.vector_store %arg20[%c0_199, %c0_200, %c0_201, %c0_202], %226 {strides = array<i32>} : memref<1x8x8x256xf32, #tpu.memory_space<vmem>>, vector<1x8x8x128xf32>,
    %227 = vector.extract_strided_slice %222 {offsets = [0, 64], sizes = [64, 64], strides = [1, 1]} : vector<64x128xf32> to vector<64x64xf32>
    %228 = vector.shape_cast %227 : vector<64x64xf32> to vector<8x8x64xf32>
    %cst_203 = arith.constant 0.000000e+00 : f32
    %229 = vector.broadcast %cst_203 : f32 to vector<10x10x64xf32>
    %c0_204 = arith.constant 0 : index
    %c0_205 = arith.constant 0 : index
    %c0_206 = arith.constant 0 : index
    %230 = vector.load %arg22[%c0_204, %c0_205, %c0_206] : memref<10x10x64xf32, #tpu.memory_space<vmem>>, vector<10x10x64xf32>
    tpu.vector_store %arg22[%c0_204, %c0_205, %c0_206], %229 {strides = array<i32>} : memref<10x10x64xf32, #tpu.memory_space<vmem>>, vector<10x10x64xf32>,
    %c1_207 = arith.constant 1 : index
    %c1_208 = arith.constant 1 : index
    %c0_209 = arith.constant 0 : index
    %231 = vector.load %arg22[%c1_207, %c1_208, %c0_209] : memref<10x10x64xf32, #tpu.memory_space<vmem>>, vector<8x8x64xf32>
    tpu.vector_store %arg22[%c1_207, %c1_208, %c0_209], %228 {strides = array<i32>} : memref<10x10x64xf32, #tpu.memory_space<vmem>>, vector<8x8x64xf32>,
    %c0_210 = arith.constant 0 : index
    %c0_211 = arith.constant 0 : index
    %c0_212 = arith.constant 0 : index
    %232 = vector.load %arg22[%c0_210, %c0_211, %c0_212] : memref<10x10x64xf32, #tpu.memory_space<vmem>>, vector<8x8x64xf32>
    %233 = vector.shape_cast %232 : vector<8x8x64xf32> to vector<64x64xf32>
    %234 = arith.truncf %233 : vector<64x64xf32> to vector<64x64xbf16>
    %c0_213 = arith.constant 0 : index
    %c1_214 = arith.constant 1 : index
    %c0_215 = arith.constant 0 : index
    %235 = vector.load %arg22[%c0_213, %c1_214, %c0_215] : memref<10x10x64xf32, #tpu.memory_space<vmem>>, vector<8x8x64xf32>
    %236 = vector.shape_cast %235 : vector<8x8x64xf32> to vector<64x64xf32>
    %237 = arith.truncf %236 : vector<64x64xf32> to vector<64x64xbf16>
    %c0_216 = arith.constant 0 : index
    %c2_217 = arith.constant 2 : index
    %c0_218 = arith.constant 0 : index
    %238 = vector.load %arg22[%c0_216, %c2_217, %c0_218] : memref<10x10x64xf32, #tpu.memory_space<vmem>>, vector<8x8x64xf32>
    %239 = vector.shape_cast %238 : vector<8x8x64xf32> to vector<64x64xf32>
    %240 = arith.truncf %239 : vector<64x64xf32> to vector<64x64xbf16>
    %c1_219 = arith.constant 1 : index
    %c0_220 = arith.constant 0 : index
    %c0_221 = arith.constant 0 : index
    %241 = vector.load %arg22[%c1_219, %c0_220, %c0_221] : memref<10x10x64xf32, #tpu.memory_space<vmem>>, vector<8x8x64xf32>
    %242 = vector.shape_cast %241 : vector<8x8x64xf32> to vector<64x64xf32>
    %243 = arith.truncf %242 : vector<64x64xf32> to vector<64x64xbf16>
    %c1_222 = arith.constant 1 : index
    %c1_223 = arith.constant 1 : index
    %c0_224 = arith.constant 0 : index
    %244 = vector.load %arg22[%c1_222, %c1_223, %c0_224] : memref<10x10x64xf32, #tpu.memory_space<vmem>>, vector<8x8x64xf32>
    %245 = vector.shape_cast %244 : vector<8x8x64xf32> to vector<64x64xf32>
    %246 = arith.truncf %245 : vector<64x64xf32> to vector<64x64xbf16>
    %c1_225 = arith.constant 1 : index
    %c2_226 = arith.constant 2 : index
    %c0_227 = arith.constant 0 : index
    %247 = vector.load %arg22[%c1_225, %c2_226, %c0_227] : memref<10x10x64xf32, #tpu.memory_space<vmem>>, vector<8x8x64xf32>
    %248 = vector.shape_cast %247 : vector<8x8x64xf32> to vector<64x64xf32>
    %249 = arith.truncf %248 : vector<64x64xf32> to vector<64x64xbf16>
    %c2_228 = arith.constant 2 : index
    %c0_229 = arith.constant 0 : index
    %c0_230 = arith.constant 0 : index
    %250 = vector.load %arg22[%c2_228, %c0_229, %c0_230] : memref<10x10x64xf32, #tpu.memory_space<vmem>>, vector<8x8x64xf32>
    %251 = vector.shape_cast %250 : vector<8x8x64xf32> to vector<64x64xf32>
    %252 = arith.truncf %251 : vector<64x64xf32> to vector<64x64xbf16>
    %c2_231 = arith.constant 2 : index
    %c1_232 = arith.constant 1 : index
    %c0_233 = arith.constant 0 : index
    %253 = vector.load %arg22[%c2_231, %c1_232, %c0_233] : memref<10x10x64xf32, #tpu.memory_space<vmem>>, vector<8x8x64xf32>
    %254 = vector.shape_cast %253 : vector<8x8x64xf32> to vector<64x64xf32>
    %255 = arith.truncf %254 : vector<64x64xf32> to vector<64x64xbf16>
    %c2_234 = arith.constant 2 : index
    %c2_235 = arith.constant 2 : index
    %c0_236 = arith.constant 0 : index
    %256 = vector.load %arg22[%c2_234, %c2_235, %c0_236] : memref<10x10x64xf32, #tpu.memory_space<vmem>>, vector<8x8x64xf32>
    %257 = vector.shape_cast %256 : vector<8x8x64xf32> to vector<64x64xf32>
    %258 = arith.truncf %257 : vector<64x64xf32> to vector<64x64xbf16>
    %259 = tpu.concatenate %234, %237, %240, %243, %246, %249, %252, %255, %258 in 1 : vector<64x64xbf16>, vector<64x64xbf16>, vector<64x64xbf16>, vector<64x64xbf16>, vector<64x64xbf16>, vector<64x64xbf16>, vector<64x64xbf16>, vector<64x64xbf16>, vector<64x64xbf16> -> vector<64x576xbf16>
    %c0_237 = arith.constant 0 : index
    %c0_238 = arith.constant 0 : index
    %260 = vector.load %arg12[%c0_237, %c0_238] : memref<576x64xbf16, #tpu.memory_space<vmem>>, vector<576x64xbf16>
    %cst_239 = arith.constant dense<0.000000e+00> : vector<64x64xf32>
    %261 = tpu.matmul %259, %260, %cst_239 {dimension_numbers = #tpu.dot_dimension_numbers<[1], [0], [0], [1], [0, 0, 1, 1], [], []>} : vector<64x576xbf16>, vector<576x64xbf16>, vector<64x64xf32> -> vector<64x64xf32>
    %c0_240 = arith.constant 0 : index
    %c0_241 = arith.constant 0 : index
    %262 = vector.load %arg13[%c0_240, %c0_241] : memref<1x64xf32, #tpu.memory_space<vmem>>, vector<1x64xf32>
    %263 = vector.broadcast %262 : vector<1x64xf32> to vector<64x64xf32>
    %264 = arith.addf %261, %263 : vector<64x64xf32>
    %cst_242 = arith.constant 0.000000e+00 : f32
    %265 = vector.broadcast %cst_242 : f32 to vector<64x64xf32>
    %266 = arith.cmpf oge, %264, %265 : vector<64x64xf32>
    %cst_243 = arith.constant 1.000000e-01 : f32
    %267 = vector.broadcast %cst_243 : f32 to vector<64x64xf32>
    %268 = arith.mulf %267, %264 : vector<64x64xf32>
    %269 = arith.select %266, %264, %268 : vector<64x64xi1>, vector<64x64xf32>
    %270 = vector.shape_cast %269 : vector<64x64xf32> to vector<8x8x64xf32>
    %cst_244 = arith.constant 0.000000e+00 : f32
    %271 = vector.broadcast %cst_244 : f32 to vector<10x10x64xf32>
    %c0_245 = arith.constant 0 : index
    %c0_246 = arith.constant 0 : index
    %c0_247 = arith.constant 0 : index
    %272 = vector.load %arg22[%c0_245, %c0_246, %c0_247] : memref<10x10x64xf32, #tpu.memory_space<vmem>>, vector<10x10x64xf32>
    tpu.vector_store %arg22[%c0_245, %c0_246, %c0_247], %271 {strides = array<i32>} : memref<10x10x64xf32, #tpu.memory_space<vmem>>, vector<10x10x64xf32>,
    %c1_248 = arith.constant 1 : index
    %c1_249 = arith.constant 1 : index
    %c0_250 = arith.constant 0 : index
    %273 = vector.load %arg22[%c1_248, %c1_249, %c0_250] : memref<10x10x64xf32, #tpu.memory_space<vmem>>, vector<8x8x64xf32>
    tpu.vector_store %arg22[%c1_248, %c1_249, %c0_250], %270 {strides = array<i32>} : memref<10x10x64xf32, #tpu.memory_space<vmem>>, vector<8x8x64xf32>,
    %c0_251 = arith.constant 0 : index
    %c0_252 = arith.constant 0 : index
    %c0_253 = arith.constant 0 : index
    %274 = vector.load %arg22[%c0_251, %c0_252, %c0_253] : memref<10x10x64xf32, #tpu.memory_space<vmem>>, vector<8x8x64xf32>
    %275 = vector.shape_cast %274 : vector<8x8x64xf32> to vector<64x64xf32>
    %276 = arith.truncf %275 : vector<64x64xf32> to vector<64x64xbf16>
    %c0_254 = arith.constant 0 : index
    %c1_255 = arith.constant 1 : index
    %c0_256 = arith.constant 0 : index
    %277 = vector.load %arg22[%c0_254, %c1_255, %c0_256] : memref<10x10x64xf32, #tpu.memory_space<vmem>>, vector<8x8x64xf32>
    %278 = vector.shape_cast %277 : vector<8x8x64xf32> to vector<64x64xf32>
    %279 = arith.truncf %278 : vector<64x64xf32> to vector<64x64xbf16>
    %c0_257 = arith.constant 0 : index
    %c2_258 = arith.constant 2 : index
    %c0_259 = arith.constant 0 : index
    %280 = vector.load %arg22[%c0_257, %c2_258, %c0_259] : memref<10x10x64xf32, #tpu.memory_space<vmem>>, vector<8x8x64xf32>
    %281 = vector.shape_cast %280 : vector<8x8x64xf32> to vector<64x64xf32>
    %282 = arith.truncf %281 : vector<64x64xf32> to vector<64x64xbf16>
    %c1_260 = arith.constant 1 : index
    %c0_261 = arith.constant 0 : index
    %c0_262 = arith.constant 0 : index
    %283 = vector.load %arg22[%c1_260, %c0_261, %c0_262] : memref<10x10x64xf32, #tpu.memory_space<vmem>>, vector<8x8x64xf32>
    %284 = vector.shape_cast %283 : vector<8x8x64xf32> to vector<64x64xf32>
    %285 = arith.truncf %284 : vector<64x64xf32> to vector<64x64xbf16>
    %c1_263 = arith.constant 1 : index
    %c1_264 = arith.constant 1 : index
    %c0_265 = arith.constant 0 : index
    %286 = vector.load %arg22[%c1_263, %c1_264, %c0_265] : memref<10x10x64xf32, #tpu.memory_space<vmem>>, vector<8x8x64xf32>
    %287 = vector.shape_cast %286 : vector<8x8x64xf32> to vector<64x64xf32>
    %288 = arith.truncf %287 : vector<64x64xf32> to vector<64x64xbf16>
    %c1_266 = arith.constant 1 : index
    %c2_267 = arith.constant 2 : index
    %c0_268 = arith.constant 0 : index
    %289 = vector.load %arg22[%c1_266, %c2_267, %c0_268] : memref<10x10x64xf32, #tpu.memory_space<vmem>>, vector<8x8x64xf32>
    %290 = vector.shape_cast %289 : vector<8x8x64xf32> to vector<64x64xf32>
    %291 = arith.truncf %290 : vector<64x64xf32> to vector<64x64xbf16>
    %c2_269 = arith.constant 2 : index
    %c0_270 = arith.constant 0 : index
    %c0_271 = arith.constant 0 : index
    %292 = vector.load %arg22[%c2_269, %c0_270, %c0_271] : memref<10x10x64xf32, #tpu.memory_space<vmem>>, vector<8x8x64xf32>
    %293 = vector.shape_cast %292 : vector<8x8x64xf32> to vector<64x64xf32>
    %294 = arith.truncf %293 : vector<64x64xf32> to vector<64x64xbf16>
    %c2_272 = arith.constant 2 : index
    %c1_273 = arith.constant 1 : index
    %c0_274 = arith.constant 0 : index
    %295 = vector.load %arg22[%c2_272, %c1_273, %c0_274] : memref<10x10x64xf32, #tpu.memory_space<vmem>>, vector<8x8x64xf32>
    %296 = vector.shape_cast %295 : vector<8x8x64xf32> to vector<64x64xf32>
    %297 = arith.truncf %296 : vector<64x64xf32> to vector<64x64xbf16>
    %c2_275 = arith.constant 2 : index
    %c2_276 = arith.constant 2 : index
    %c0_277 = arith.constant 0 : index
    %298 = vector.load %arg22[%c2_275, %c2_276, %c0_277] : memref<10x10x64xf32, #tpu.memory_space<vmem>>, vector<8x8x64xf32>
    %299 = vector.shape_cast %298 : vector<8x8x64xf32> to vector<64x64xf32>
    %300 = arith.truncf %299 : vector<64x64xf32> to vector<64x64xbf16>
    %301 = tpu.concatenate %276, %279, %282, %285, %288, %291, %294, %297, %300 in 1 : vector<64x64xbf16>, vector<64x64xbf16>, vector<64x64xbf16>, vector<64x64xbf16>, vector<64x64xbf16>, vector<64x64xbf16>, vector<64x64xbf16>, vector<64x64xbf16>, vector<64x64xbf16> -> vector<64x576xbf16>
    %c0_278 = arith.constant 0 : index
    %c0_279 = arith.constant 0 : index
    %302 = vector.load %arg14[%c0_278, %c0_279] : memref<576x64xbf16, #tpu.memory_space<vmem>>, vector<576x64xbf16>
    %cst_280 = arith.constant dense<0.000000e+00> : vector<64x64xf32>
    %303 = tpu.matmul %301, %302, %cst_280 {dimension_numbers = #tpu.dot_dimension_numbers<[1], [0], [0], [1], [0, 0, 1, 1], [], []>} : vector<64x576xbf16>, vector<576x64xbf16>, vector<64x64xf32> -> vector<64x64xf32>
    %c0_281 = arith.constant 0 : index
    %c0_282 = arith.constant 0 : index
    %304 = vector.load %arg15[%c0_281, %c0_282] : memref<1x64xf32, #tpu.memory_space<vmem>>, vector<1x64xf32>
    %305 = vector.broadcast %304 : vector<1x64xf32> to vector<64x64xf32>
    %306 = arith.addf %303, %305 : vector<64x64xf32>
    %cst_283 = arith.constant 0.000000e+00 : f32
    %307 = vector.broadcast %cst_283 : f32 to vector<64x64xf32>
    %308 = arith.cmpf oge, %306, %307 : vector<64x64xf32>
    %cst_284 = arith.constant 1.000000e-01 : f32
    %309 = vector.broadcast %cst_284 : f32 to vector<64x64xf32>
    %310 = arith.mulf %309, %306 : vector<64x64xf32>
    %311 = arith.select %308, %306, %310 : vector<64x64xi1>, vector<64x64xf32>
    %312 = tpu.concatenate %311, %269 in 1 : vector<64x64xf32>, vector<64x64xf32> -> vector<64x128xf32>
    %313 = arith.truncf %312 : vector<64x128xf32> to vector<64x128xbf16>
    %c0_285 = arith.constant 0 : index
    %c0_286 = arith.constant 0 : index
    %314 = vector.load %arg16[%c0_285, %c0_286] : memref<128x128xbf16, #tpu.memory_space<vmem>>, vector<128x128xbf16>
    %cst_287 = arith.constant dense<0.000000e+00> : vector<64x128xf32>
    %315 = tpu.matmul %313, %314, %cst_287 {dimension_numbers = #tpu.dot_dimension_numbers<[1], [0], [0], [1], [0, 0, 1, 1], [], []>} : vector<64x128xbf16>, vector<128x128xbf16>, vector<64x128xf32> -> vector<64x128xf32>
    %c0_288 = arith.constant 0 : index
    %c0_289 = arith.constant 0 : index
    %316 = vector.load %arg17[%c0_288, %c0_289] : memref<1x128xf32, #tpu.memory_space<vmem>>, vector<1x128xf32>
    %317 = vector.broadcast %316 : vector<1x128xf32> to vector<64x128xf32>
    %318 = arith.addf %315, %317 : vector<64x128xf32>
    %cst_290 = arith.constant 0.000000e+00 : f32
    %319 = vector.broadcast %cst_290 : f32 to vector<64x128xf32>
    %320 = arith.cmpf oge, %318, %319 : vector<64x128xf32>
    %cst_291 = arith.constant 1.000000e-01 : f32
    %321 = vector.broadcast %cst_291 : f32 to vector<64x128xf32>
    %322 = arith.mulf %321, %318 : vector<64x128xf32>
    %323 = arith.select %320, %318, %322 : vector<64x128xi1>, vector<64x128xf32>
    %324 = vector.shape_cast %323 : vector<64x128xf32> to vector<8x8x128xf32>
    %c0_292 = arith.constant 0 : index
    %c0_293 = arith.constant 0 : index
    %c0_294 = arith.constant 0 : index
    %c0_295 = arith.constant 0 : index
    %325 = vector.load %arg18[%c0_292, %c0_293, %c0_294, %c0_295] : memref<1x8x8x128xf32, #tpu.memory_space<vmem>>, vector<1x8x8x128xf32>
    %326 = vector.shape_cast %325 : vector<1x8x8x128xf32> to vector<8x8x128xf32>
    %327 = vector.shape_cast %324 : vector<8x8x128xf32> to vector<1x8x8x128xf32>
    tpu.vector_store %arg18[%c0_292, %c0_293, %c0_294, %c0_295], %327 {strides = array<i32>} : memref<1x8x8x128xf32, #tpu.memory_space<vmem>>, vector<1x8x8x128xf32>,
    %328 = vector.shape_cast %323 : vector<64x128xf32> to vector<8x8x128xf32>
    %c0_296 = arith.constant 0 : index
    %c0_297 = arith.constant 0 : index
    %c0_298 = arith.constant 0 : index
    %c128 = arith.constant 128 : index
    %329 = vector.load %arg20[%c0_296, %c0_297, %c0_298, %c128] : memref<1x8x8x256xf32, #tpu.memory_space<vmem>>, vector<1x8x8x128xf32>
    %330 = vector.shape_cast %329 : vector<1x8x8x128xf32> to vector<8x8x128xf32>
    %331 = vector.shape_cast %328 : vector<8x8x128xf32> to vector<1x8x8x128xf32>
    tpu.vector_store %arg20[%c0_296, %c0_297, %c0_298, %c128], %331 {strides = array<i32>} : memref<1x8x8x256xf32, #tpu.memory_space<vmem>>, vector<1x8x8x128xf32>,
    return
  }
  func.func @transform_0(%arg0: i32) -> (i32, i32, i32) {
    %c0_i32 = arith.constant 0 : i32
    %c0_i32_0 = arith.constant 0 : i32
    %c0_i32_1 = arith.constant 0 : i32
    return %arg0, %c0_i32, %c0_i32_0 : i32, i32, i32
  }
  func.func @transform_1(%arg0: i32) -> (i32, i32) {
    %c0_i32 = arith.constant 0 : i32
    %c0_i32_0 = arith.constant 0 : i32
    %c0_i32_1 = arith.constant 0 : i32
    return %c0_i32, %c0_i32_0 : i32, i32
  }
  func.func @transform_2(%arg0: i32) -> (i32, i32) {
    %c0_i32 = arith.constant 0 : i32
    %c0_i32_0 = arith.constant 0 : i32
    %c0_i32_1 = arith.constant 0 : i32
    return %c0_i32, %c0_i32_0 : i32, i32
  }
  func.func @transform_3(%arg0: i32) -> (i32, i32) {
    %c0_i32 = arith.constant 0 : i32
    %c0_i32_0 = arith.constant 0 : i32
    %c0_i32_1 = arith.constant 0 : i32
    return %c0_i32, %c0_i32_0 : i32, i32
  }
  func.func @transform_4(%arg0: i32) -> (i32, i32) {
    %c0_i32 = arith.constant 0 : i32
    %c0_i32_0 = arith.constant 0 : i32
    %c0_i32_1 = arith.constant 0 : i32
    return %c0_i32, %c0_i32_0 : i32, i32
  }
  func.func @transform_5(%arg0: i32) -> (i32, i32) {
    %c0_i32 = arith.constant 0 : i32
    %c0_i32_0 = arith.constant 0 : i32
    %c0_i32_1 = arith.constant 0 : i32
    return %c0_i32, %c0_i32_0 : i32, i32
  }
  func.func @transform_6(%arg0: i32) -> (i32, i32) {
    %c0_i32 = arith.constant 0 : i32
    %c0_i32_0 = arith.constant 0 : i32
    %c0_i32_1 = arith.constant 0 : i32
    return %c0_i32, %c0_i32_0 : i32, i32
  }
  func.func @transform_7(%arg0: i32) -> (i32, i32) {
    %c0_i32 = arith.constant 0 : i32
    %c0_i32_0 = arith.constant 0 : i32
    %c0_i32_1 = arith.constant 0 : i32
    return %c0_i32, %c0_i32_0 : i32, i32
  }
  func.func @transform_8(%arg0: i32) -> (i32, i32) {
    %c0_i32 = arith.constant 0 : i32
    %c0_i32_0 = arith.constant 0 : i32
    %c0_i32_1 = arith.constant 0 : i32
    return %c0_i32, %c0_i32_0 : i32, i32
  }
  func.func @transform_9(%arg0: i32) -> (i32, i32) {
    %c0_i32 = arith.constant 0 : i32
    %c0_i32_0 = arith.constant 0 : i32
    %c0_i32_1 = arith.constant 0 : i32
    return %c0_i32, %c0_i32_0 : i32, i32
  }
  func.func @transform_10(%arg0: i32) -> (i32, i32) {
    %c0_i32 = arith.constant 0 : i32
    %c0_i32_0 = arith.constant 0 : i32
    %c0_i32_1 = arith.constant 0 : i32
    return %c0_i32, %c0_i32_0 : i32, i32
  }
  func.func @transform_11(%arg0: i32) -> (i32, i32) {
    %c0_i32 = arith.constant 0 : i32
    %c0_i32_0 = arith.constant 0 : i32
    %c0_i32_1 = arith.constant 0 : i32
    return %c0_i32, %c0_i32_0 : i32, i32
  }
  func.func @transform_12(%arg0: i32) -> (i32, i32) {
    %c0_i32 = arith.constant 0 : i32
    %c0_i32_0 = arith.constant 0 : i32
    %c0_i32_1 = arith.constant 0 : i32
    return %c0_i32, %c0_i32_0 : i32, i32
  }
  func.func @transform_13(%arg0: i32) -> (i32, i32) {
    %c0_i32 = arith.constant 0 : i32
    %c0_i32_0 = arith.constant 0 : i32
    %c0_i32_1 = arith.constant 0 : i32
    return %c0_i32, %c0_i32_0 : i32, i32
  }
  func.func @transform_14(%arg0: i32) -> (i32, i32) {
    %c0_i32 = arith.constant 0 : i32
    %c0_i32_0 = arith.constant 0 : i32
    %c0_i32_1 = arith.constant 0 : i32
    return %c0_i32, %c0_i32_0 : i32, i32
  }
  func.func @transform_15(%arg0: i32) -> (i32, i32) {
    %c0_i32 = arith.constant 0 : i32
    %c0_i32_0 = arith.constant 0 : i32
    %c0_i32_1 = arith.constant 0 : i32
    return %c0_i32, %c0_i32_0 : i32, i32
  }
  func.func @transform_16(%arg0: i32) -> (i32, i32) {
    %c0_i32 = arith.constant 0 : i32
    %c0_i32_0 = arith.constant 0 : i32
    %c0_i32_1 = arith.constant 0 : i32
    return %c0_i32, %c0_i32_0 : i32, i32
  }
  func.func @transform_17(%arg0: i32) -> (i32, i32, i32, i32) {
    %c0_i32 = arith.constant 0 : i32
    %c0_i32_0 = arith.constant 0 : i32
    %c0_i32_1 = arith.constant 0 : i32
    %c0_i32_2 = arith.constant 0 : i32
    return %arg0, %c0_i32, %c0_i32_0, %c0_i32_1 : i32, i32, i32, i32
  }
  func.func @transform_18(%arg0: i32) -> (i32, i32, i32, i32) {
    %c0_i32 = arith.constant 0 : i32
    %c0_i32_0 = arith.constant 0 : i32
    %c0_i32_1 = arith.constant 0 : i32
    %c0_i32_2 = arith.constant 0 : i32
    return %arg0, %c0_i32, %c0_i32_0, %c0_i32_1 : i32, i32, i32, i32
  }
  func.func @transform_19(%arg0: i32) -> (i32, i32, i32, i32) {
    %c0_i32 = arith.constant 0 : i32
    %c0_i32_0 = arith.constant 0 : i32
    %c0_i32_1 = arith.constant 0 : i32
    %c0_i32_2 = arith.constant 0 : i32
    return %arg0, %c0_i32, %c0_i32_0, %c0_i32_1 : i32, i32, i32, i32
  }
}

</mosaic_0001>

<bundles_post_ra>
// kernel: backbone_forward.1
= control target key start
LH: loop header
LB: loop body
LE: loop exit
PB: predicated region body
PF: predicated region fallthrough
CT: control target
= control target key end

     0   :  { %s13182_s0 = inlined_call_operand.vmem [shape: bf16[2,256,9], index: 0, kind: input, shape index: {}]   ;;  %s13183_s1 = inlined_call_operand.vmem [shape: bf16[9,32], index: 1, kind: input, shape index: {}]   ;;  %s13184_s2 = inlined_call_operand.vmem [shape: f32[1,32], index: 2, kind: input, shape index: {}]   ;;  %s13185_s3 = inlined_call_operand.vmem [shape: bf16[288,32], index: 3, kind: input, shape index: {}]   ;;  %s13186_s4 = inlined_call_operand.vmem [shape: f32[1,32], index: 4, kind: input, shape index: {}]   ;;  %s13187_s5 = inlined_call_operand.vmem [shape: bf16[288,32], index: 5, kind: input, shape index: {}]   ;;  %s13188_s6 = inlined_call_operand.vmem [shape: f32[1,32], index: 6, kind: input, shape index: {}]   ;;  %s13189_s7 = inlined_call_operand.vmem [shape: bf16[64,64], index: 7, kind: input, shape index: {}]   ;;  %s13190_s8 = inlined_call_operand.vmem [shape: f32[1,64], index: 8, kind: input, shape index: {}]   ;;  %s13191_s9 = inlined_call_operand.vmem [shape: bf16[576,128], index: 9, kind: input, shape index: {}]   ;;  %s13192_s10 = inlined_call_operand.vmem [shape: f32[1,128], index: 10, kind: input, shape index: {}]   ;;  %s13193_s11 = inlined_call_operand.vmem [shape: bf16[576,64], index: 11, kind: input, shape index: {}]   ;;  %s13194_s12 = inlined_call_operand.vmem [shape: f32[1,64], index: 12, kind: input, shape index: {}]   ;;  %s13195_s13 = inlined_call_operand.vmem [shape: bf16[576,64], index: 13, kind: input, shape index: {}]   ;;  %s13196_s14 = inlined_call_operand.vmem [shape: f32[1,64], index: 14, kind: input, shape index: {}]   ;;  %s13197_s15 = inlined_call_operand.vmem [shape: bf16[128,128], index: 15, kind: input, shape index: {}]   ;;  %s13198_s16 = inlined_call_operand.vmem [shape: f32[1,128], index: 16, kind: input, shape index: {}]   ;;  %s13199_s17 = inlined_call_operand.hbm [shape: f32[2,8,8,128], index: 17, kind: output, shape index: {0}]   ;;  %s13200_s18 = inlined_call_operand.hbm [shape: f32[2,16,16,64], index: 18, kind: output, shape index: {1}]   ;;  %s13201_s19 = inlined_call_operand.hbm [shape: f32[2,8,8,256], index: 19, kind: output, shape index: {2}]  }
   0x1   :  { %13250 = sst [smem:[#allocation65_spill]] %s13182_s0 }
   0x2   :  { %13251 = sst [smem:[#allocation66_spill]] %s13183_s1 }
   0x3   :  { %13252 = sst [smem:[#allocation67_spill]] %s13184_s2 }
   0x4   :  { %13253 = sst [smem:[#allocation68_spill]] %s13185_s3 }
   0x5   :  { %13254 = sst [smem:[#allocation69_spill]] %s13186_s4 }
   0x6   :  { %13255 = sst [smem:[#allocation70_spill]] %s13187_s5 }
   0x7   :  { %13256 = sst [smem:[#allocation71_spill]] %s13188_s6 }
   0x8   :  { %13257 = sst [smem:[#allocation72_spill]] %s13189_s7 }
   0x9   :  { %25 = vsyncpa [#allocation6], 0 }
   0xa   :  { %27 = vsyncpa [#allocation6 + $0x1], 0 }
   0xb   :  { %28 = vsyncpa [#allocation8], 0 }
   0xc   :  { %30 = vsyncpa [#allocation8 + $0x1], 0  ;;  %s9677_s0 = smov 0   ;;  %s9679_s30 = smov 0  }
   0xd   :  { %s9681_s20 = smov 0   ;;  %s9683_s21 = smov 0  }
   0xe LB: > { %13258 = sst [smem:[#allocation12_spill]] %s9559_s20  ;;  %s9698_s1 = sadd.s32 4294967295, %s9563_s21   ;;  %s9563_s21 = sphi %s9683_s21, %s13414_s21   ;;  %s9559_s20 = sphi %s9681_s20, %s13416_s20   ;;  %s9555_s30 = sphi %s9679_s30, %s13418_s30   ;;  %s9551_s0 = sphi %s9677_s0, %s13417_s0  }
   0xf   : > { %s13203_s22 = sadd.s32 4294967294, %s9563_s21   ;;  %s9702_s2 = sadd.s32 1, %s9563_s21  }
  0x10   : > { %13259 = sst [smem:[#allocation13_spill]] %s9702_s2  ;;  %s405_s23 = sadd.s32 1, %s9559_s20 }
  0x11   : > { %s402_s24 = ssub.s32 %s9563_s21, %s9702_s2  ;;  %p415_p0 = scmp.ne.s32.totalorder %s9559_s20, %s9555_s30 }
  0x12   : > { %p403_p1 = scmp.eq.s32.totalorder %s402_s24, 0  ;;  %p416_p2 = scmp.eq.s32.totalorder %s9698_s1, 1 }
  0x13   : > { %p421_p3 = scmp.ne.s32.totalorder %s9555_s30, %s9551_s0  ;;  %p422_p4 = scmp.eq.s32.totalorder %s13203_s22, 1 }
  0x14   : > { %s9715_s25 = scalar_select %p403_p1, %s9559_s20, %s405_s23  }
  0x15   : > { %p9717_p5 = por %p416_p2, %p415_p0  ;;  %p9721_p6 = por %p422_p4, %p421_p3 }
  0x16   : > { %13260 = sst [smem:[#allocation14_spill]] %s9715_s25  ;;  %p8023_p7 = scmp.ge.s32.totalorder %s9563_s21, 1 }
  0x17   : > { %s13262_s26 = scalar_select %p9721_p6, 1, 0 }
  0x18   : > { %p548_p8 = scmp.lt.s32.totalorder %s9563_s21, 3 }
  0x19   : > { %13263 = sst [smem:[#allocation15_spill]] %s13262_s26 }
  0x1a   : > { %p549_p9 = pnand %p8023_p7, %p548_p8 }
  0x1c   : > { %552 = sbr.rel (%p549_p9) target bundleno = 2928 (0xb70), region = 88 }
  0x23   : > { %s13264_s29 = sld [smem:[#allocation66_spill]]  ;;  %vm795_vm0 = vcmask 1043456   ;;  %vm796_vm1 = vcmask 1044480   ;;  %p614_p10 = scmp.lt.s32.totalorder %s9698_s1, 1  ;;  %v9565_v1 = vmov 65535   ;;  %vm746_vm2 = vcmask 72704  }
  0x24   : > { %v797_v2 = vsel %vm795_vm0, 4294967295, %v9565_v1  ;;  %s13265_s20 = sld [smem:[#allocation65_spill]]  ;;  %vm1059_vm3 = vcmask 261120   ;;  %vm1062_vm4 = vcmask 254976   ;;  %v13212_v21 = vmov 0.0   ;;  %s13209_s22 = smov 32  }
  0x25   : > { %v798_v3 = vsel %vm796_vm1, %v797_v2, 0  ;;  %s615_s23 = scalar_select %p614_p10, %s9698_s1, 1  ;;  %1067 = vst.msk [vmem:[#allocation2 + $0x30] sm:$0xff] %vm1059_vm3, %v13212_v21  ;;  %1068 = vst.msk [vmem:[#allocation2 + $0x38] sm:$0xff] %vm1059_vm3, %v13212_v21  ;;  %vm1917_vm5 = vcmask 523264  }
  0x26   : > { %1060 = vst.msk [vmem:[#allocation2] sm:$0xff] %vm1059_vm3, %v13212_v21  ;;  %1061 = vst.msk [vmem:[#allocation2 + $0x8] sm:$0xff] %vm1059_vm3, %v13212_v21  ;;  %s13266_s27 = sld [smem:[#allocation68_spill]]  ;;  %s13267_s26 = sld [smem:[#allocation67_spill]] }
  0x27   : > { %s8297_s24 = sshll.u32 %s615_s23, 7  ;;  %1064 = vst.msk [vmem:[#allocation2 + $0x18] sm:$0xff] %vm1059_vm3, %v13212_v21  ;;  %1065 = vst.msk [vmem:[#allocation2 + $0x20] sm:$0xff] %vm1059_vm3, %v13212_v21  ;;  %s13276_s23 = smov 32  }
  0x28   : > { %1070 = vst.msk [vmem:[#allocation2 + $0x48] sm:$0xff] %vm1059_vm3, %v13212_v21  ;;  %1071 = vst.msk [vmem:[#allocation2 + $0x50] sm:$0xff] %vm1059_vm3, %v13212_v21  ;;  %s13374_s5 = sld [smem:[#allocation70_spill]]  ;;  %s13381_s4 = sld [smem:[#allocation69_spill]] }
  0x29   : > { %v9266_v0 = vld [vmem:[%s13264_s29] sm:$0x1f]   ;;  %1073 = vst.msk [vmem:[#allocation2 + $0x60] sm:$0xff] %vm1059_vm3, %v13212_v21  ;;  %1074 = vst.msk [vmem:[#allocation2 + $0x68] sm:$0xff] %vm1059_vm3, %v13212_v21  ;;  %s13403_s7 = sld [smem:[#allocation72_spill]]  ;;  %s13408_s6 = sld [smem:[#allocation71_spill]] }
  0x2a   : > { %v800_v4 = vand.u32 %v9266_v0, %v798_v3  ;;  %s9735_s2 = scalar_lea.vmem %s13265_s20, %s8297_s24  ;;  %1076 = vst.msk [vmem:[#allocation2 + $0x78] sm:$0xff] %vm1059_vm3, %v13212_v21  ;;  %1077 = vst.msk [vmem:[#allocation2 + $0x80] sm:$0xff] %vm1059_vm3, %v13212_v21  ;;  %s13207_s20 = smov 64  }
  0x2b   : > { %v9267_v5 = vld [vmem:[%s9735_s2] sm:$0xff]   ;;  %v9268_v6 = vld [vmem:[%s9735_s2 + $0x8] sm:$0xff]   ;;  %v9269_v7 = vld [vmem:[%s9735_s2 + $0x10] sm:$0xff]   ;;  %1079 = vst.msk [vmem:[#allocation2 + $0x90] sm:$0xff] %vm1059_vm3, %v13212_v21  ;;  %s8299_s28 = sshll.u32 %s9698_s1, 12 }
  0x2c   : > { %8874 = vmatprep.subr.bf16.mxu0 %v800_v4  ;;  %8876 = vmatprep.mubr.msk.bf16.mxu0 %vm746_vm2, %v9267_v5  ;;  %v9270_v8 = vld [vmem:[%s9735_s2 + $0x18] sm:$0xff]   ;;  %v9271_v9 = vld [vmem:[%s9735_s2 + $0x20] sm:$0xff]   ;;  %v9272_v10 = vld [vmem:[%s9735_s2 + $0x28] sm:$0xff]   ;;  %1080 = vst.msk [vmem:[#allocation2 + $0x98] sm:$0xff] %vm1059_vm3, %v13212_v21 }
  0x2d   : > { %8875 = vmatpush3.bf16.msra.mxu0 %v800_v4  ;;  %v9273_v11 = vld [vmem:[%s9735_s2 + $0x30] sm:$0xff]   ;;  %v9274_v12 = vld [vmem:[%s9735_s2 + $0x38] sm:$0xff]   ;;  %v9275_v13 = vld [vmem:[%s9735_s2 + $0x40] sm:$0xff]   ;;  %1082 = vst.msk [vmem:[#allocation2 + $0xa8] sm:$0xff] %vm1059_vm3, %v13212_v21 }
  0x2e   : > { %v9276_v14 = vld [vmem:[%s9735_s2 + $0x48] sm:$0xff]   ;;  %v9277_v15 = vld [vmem:[%s9735_s2 + $0x50] sm:$0xff]   ;;  %v9278_v16 = vld [vmem:[%s9735_s2 + $0x58] sm:$0xff]   ;;  %1083 = vst.msk [vmem:[#allocation2 + $0xb0] sm:$0xff] %vm1059_vm3, %v13212_v21 }
  0x2f   : > { %v9279_v17 = vld [vmem:[%s9735_s2 + $0x60] sm:$0xff]   ;;  %v9280_v18 = vld [vmem:[%s9735_s2 + $0x68] sm:$0xff]   ;;  %v9281_v19 = vld [vmem:[%s9735_s2 + $0x70] sm:$0xff]   ;;  %1085 = vst.msk [vmem:[#allocation2 + $0xc0] sm:$0xff] %vm1059_vm3, %v13212_v21 }
  0x30   : > { %8877 = vmatmul.mubr.msk.bf16.vlgmr.msra.gmra.mrb[0].mxu0 %vm746_vm2, %v9268_v6  ;;  %v9282_v20 = vld [vmem:[%s9735_s2 + $0x78] sm:$0xff]   ;;  %1086 = vst.msk [vmem:[#allocation2 + $0xc8] sm:$0xff] %vm1059_vm3, %v13212_v21  ;;  %1088 = vst.msk [vmem:[#allocation2 + $0xd8] sm:$0xff] %vm1059_vm3, %v13212_v21  ;;  %v1244_v22 = vld [vmem:[#allocation2 + $0x2] sm:$0xff] }
  0x31   : > { %8880 = vmatprep.mubr.msk.bf16.mxu0 %vm746_vm2, %v9269_v7  ;;  %1089 = vst.msk [vmem:[#allocation2 + $0xe0] sm:$0xff] %vm1059_vm3, %v13212_v21  ;;  %1091 = vst.msk [vmem:[#allocation2 + $0xf0] sm:$0xff] %vm1059_vm3, %v13212_v21  ;;  %v1196_v24 = vld [vmem:[#allocation2 + $0x1] sm:$0xff]  ;;  %v9287_v32 = vld [vmem:[%s13266_s27 + $0x50] sm:$0xff]  }
  0x32   : > { %1092 = vst.msk [vmem:[#allocation2 + $0xf8] sm:$0xff] %vm1059_vm3, %v13212_v21  ;;  %1094 = vst.msk [vmem:[#allocation2 + $0x108] sm:$0xff] %vm1059_vm3, %v13212_v21  ;;  %v9283_v28 = vld [vmem:[%s13266_s27 + $0x40] sm:$0xff]   ;;  %v9285_v30 = vld [vmem:[%s13266_s27 + $0x48] sm:$0xff]  }
  0x33   : > { %1095 = vst.msk [vmem:[#allocation2 + $0x110] sm:$0xff] %vm1059_vm3, %v13212_v21  ;;  %1097 = vst.msk [vmem:[#allocation2 + $0x120] sm:$0xff] %vm1059_vm3, %v13212_v21  ;;  %8318 = vmatprep.subr.bf16.mxu0 %v9283_v28  ;;  %9092 = vmatprep.subr.bf16.mxu1 %v9283_v28  ;;  %v9284_v29 = vld [vmem:[%s13266_s27] sm:$0xff]   ;;  %v9286_v31 = vld [vmem:[%s13266_s27 + $0x8] sm:$0xff]  }
  0x34   : > { %1098 = vst.msk [vmem:[#allocation2 + $0x128] sm:$0xff] %vm1059_vm3, %v13212_v21  ;;  %1100 = vst.msk [vmem:[#allocation2 + $0x138] sm:$0xff] %vm1059_vm3, %v13212_v21  ;;  %8319 = vmatpush3.bf16.msra.mxu0 %v9284_v29  ;;  %9100 = vmatpush3.bf16.msra.mxu1 %v9284_v29  ;;  %v9288_v33 = vld [vmem:[%s13266_s27 + $0x10] sm:$0xff]   ;;  %v9289_v34 = vld [vmem:[%s13266_s27 + $0x58] sm:$0xff]  }
  0x35   : > { %1101 = vst.msk [vmem:[#allocation2 + $0x140] sm:$0xff] %vm1059_vm3, %v13212_v21  ;;  %1103 = vst.msk [vmem:[#allocation2 + $0x150] sm:$0xff] %vm1059_vm3, %v13212_v21  ;;  %8320 = vmatprep.subr.bf16.mxu0 %v9285_v30  ;;  %9093 = vmatprep.subr.bf16.mxu1 %v9285_v30  ;;  %v9290_v35 = vld [vmem:[%s13266_s27 + $0x18] sm:$0xff]   ;;  %v9291_v36 = vld [vmem:[%s13266_s27 + $0x60] sm:$0xff]  }
  0x36   : > { %1104 = vst.msk [vmem:[#allocation2 + $0x158] sm:$0xff] %vm1059_vm3, %v13212_v21  ;;  %1106 = vst.msk [vmem:[#allocation2 + $0x168] sm:$0xff] %vm1059_vm3, %v13212_v21  ;;  %v9292_v37 = vld [vmem:[%s13266_s27 + $0x20] sm:$0xff]   ;;  %v9916_v39 = vld [vmem:[#allocation2 + $0x8] sm:$0xff] }
  0x37   : > { %1107 = vst.msk [vmem:[#allocation2 + $0x170] sm:$0xff] %vm1059_vm3, %v13212_v21  ;;  %1109 = vst.msk [vmem:[#allocation2 + $0x180] sm:$0xff] %vm1059_vm3, %v13212_v21  ;;  %v9914_v38 = vld [vmem:[%s13267_s26] ss:$0 sm:$0xff]  ;;  %v9293_v41 = vld [vmem:[%s13266_s27 + $0x68] sm:$0xff]   ;;  %s13272_s26 = smov 64  }
  0x38   : > { %8881 = vmatmul.mubr.msk.bf16.gmra.mrb[4].mxu0 %vm746_vm2, %v9270_v8  ;;  %1110 = vst.msk [vmem:[#allocation2 + $0x188] sm:$0xff] %vm1059_vm3, %v13212_v21  ;;  %1112 = vst.msk [vmem:[#allocation2 + $0x198] sm:$0xff] %vm1059_vm3, %v13212_v21  ;;  %9101 = vmatpush3.bf16.msra.mxu1 %v9286_v31  ;;  %v9918_v40 = vld [vmem:[#allocation2] sm:$0xff]  ;;  %v9294_v48 = vld [vmem:[%s13266_s27 + $0x28] sm:$0xff]  }
  0x39   : > { %8884 = vmatprep.mubr.msk.bf16.mxu0 %vm746_vm2, %v9271_v9  ;;  %1113 = vst.msk [vmem:[#allocation2 + $0x1a0] sm:$0xff] %vm1059_vm3, %v13212_v21  ;;  %8321 = vmatpush3.bf16.msra.mxu0 %v9286_v31  ;;  %13268 = vst [vmem:[#allocation16_spill] sm:$0xff] %v9916_v39  ;;  %v9295_v63 = vld [vmem:[%s13266_s27 + $0x70] sm:$0xff]  }
  0x3a   : > { %1069 = vst.msk [vmem:[#allocation2 + $0x40] sm:$0x3] %vm1062_vm4, %v13212_v21  ;;  %1063 = vst.msk [vmem:[#allocation2 + $0x10] sm:$0x3] %vm1062_vm4, %v13212_v21  ;;  %8322 = vmatprep.subr.bf16.mxu0 %v9287_v32  ;;  %9094 = vmatprep.subr.bf16.mxu1 %v9287_v32  ;;  %v9296_v2 = vld [vmem:[%s13266_s27 + $0x30] sm:$0xff]   ;;  %v9297_v32 = vld [vmem:[%s13266_s27 + $0x78] sm:$0xff]  }
  0x3b   : > { %1066 = vst.msk [vmem:[#allocation2 + $0x28] sm:$0x3] %vm1062_vm4, %v13212_v21  ;;  %1072 = vst.msk [vmem:[#allocation2 + $0x58] sm:$0x3] %vm1062_vm4, %v13212_v21 }
  0x3c   : > { %1075 = vst.msk [vmem:[#allocation2 + $0x70] sm:$0x3] %vm1062_vm4, %v13212_v21  ;;  %1078 = vst.msk [vmem:[#allocation2 + $0x88] sm:$0x3] %vm1062_vm4, %v13212_v21  ;;  %9102 = vmatpush3.bf16.msra.mxu1 %v9288_v33 }
  0x3d   : > { %1081 = vst.msk [vmem:[#allocation2 + $0xa0] sm:$0x3] %vm1062_vm4, %v13212_v21  ;;  %1084 = vst.msk [vmem:[#allocation2 + $0xb8] sm:$0x3] %vm1062_vm4, %v13212_v21  ;;  %8323 = vmatpush3.bf16.msra.mxu0 %v9288_v33  ;;  %9095 = vmatprep.subr.bf16.mxu1 %v9289_v34 }
  0x3e   : > { %1087 = vst.msk [vmem:[#allocation2 + $0xd0] sm:$0x3] %vm1062_vm4, %v13212_v21  ;;  %1090 = vst.msk [vmem:[#allocation2 + $0xe8] sm:$0x3] %vm1062_vm4, %v13212_v21  ;;  %8324 = vmatprep.subr.bf16.mxu0 %v9289_v34 }
  0x3f   : > { %1093 = vst.msk [vmem:[#allocation2 + $0x100] sm:$0x3] %vm1062_vm4, %v13212_v21  ;;  %1096 = vst.msk [vmem:[#allocation2 + $0x118] sm:$0x3] %vm1062_vm4, %v13212_v21 }
  0x40   : > { %8885 = vmatmul.mubr.msk.bf16.gmra.mrb[8].mxu0 %vm746_vm2, %v9272_v10  ;;  %1099 = vst.msk [vmem:[#allocation2 + $0x130] sm:$0x3] %vm1062_vm4, %v13212_v21  ;;  %1102 = vst.msk [vmem:[#allocation2 + $0x148] sm:$0x3] %vm1062_vm4, %v13212_v21  ;;  %9103 = vmatpush3.bf16.msra.mxu1 %v9290_v35 }
  0x41   : > { %8888 = vmatprep.mubr.msk.bf16.mxu0 %vm746_vm2, %v9273_v11  ;;  %1105 = vst.msk [vmem:[#allocation2 + $0x160] sm:$0x3] %vm1062_vm4, %v13212_v21  ;;  %1108 = vst.msk [vmem:[#allocation2 + $0x178] sm:$0x3] %vm1062_vm4, %v13212_v21  ;;  %v1245_v23 = vld [vmem:[#allocation2 + $0xa] sm:$0xff]  ;;  %8325 = vmatpush3.bf16.msra.mxu0 %v9290_v35  ;;  %v9298_v35 = vld [vmem:[%s13266_s27 + $0x38] sm:$0xff]  }
  0x42   : > { %1111 = vst.msk [vmem:[#allocation2 + $0x190] sm:$0x3] %vm1062_vm4, %v13212_v21  ;;  %1114 = vst.msk [vmem:[#allocation2 + $0x1a8] sm:$0x3] %vm1062_vm4, %v13212_v21  ;;  %v1276_v25 = vpack.c.bf16 %v1245_v23, %v1244_v22  ;;  %v1197_v26 = vld [vmem:[#allocation2 + $0x9] sm:$0xff]  ;;  %8326 = vmatprep.subr.bf16.mxu0 %v9291_v36  ;;  %9096 = vmatprep.subr.bf16.mxu1 %v9291_v36 }
  0x43   : > { %v1228_v27 = vpack.c.bf16 %v1197_v26, %v1196_v24  ;;  %2746 = vst.msk [vmem:[#allocation2 + $0x10] sm:$0x3] %vm1062_vm4, %v13212_v21  ;;  %13269 = vst [vmem:[#allocation17_spill] sm:$0xff] %v9918_v40 }
  0x44   : > { %1645 = vrot.lane.b32.xlu1 %v1276_v25, %s13207_s20  ;;  %9104 = vmatpush3.bf16.msra.mxu1 %v9292_v37  ;;  %2745 = vst.msk [vmem:[#allocation2 + $0x8] sm:$0xff] %vm1059_vm3, %v13212_v21  ;;  %2744 = vst.msk [vmem:[#allocation2] sm:$0xff] %vm1059_vm3, %v13212_v21 }
  0x45   : > { %1597 = vrot.lane.b32.xlu0 %v1228_v27, %s13209_s22  ;;  %8327 = vmatpush3.bf16.msra.mxu0 %v9292_v37  ;;  %5007 = vst.msk [vmem:[#allocation3] sm:$0xff] %vm1917_vm5, %v13212_v21  ;;  %5010 = vst.msk [vmem:[#allocation3 + $0x10] sm:$0xff] %vm1917_vm5, %v13212_v21  ;;  %s13241_s22 = smov 96  }
  0x46   : > { %8328 = vmatprep.subr.bf16.mxu0 %v9293_v41  ;;  %9097 = vmatprep.subr.bf16.mxu1 %v9293_v41  ;;  %5012 = vst.msk [vmem:[#allocation3 + $0x20] sm:$0xff] %vm1917_vm5, %v13212_v21  ;;  %5014 = vst.msk [vmem:[#allocation3 + $0x30] sm:$0xff] %vm1917_vm5, %v13212_v21 }
  0x47   : > { %5016 = vst.msk [vmem:[#allocation3 + $0x40] sm:$0xff] %vm1917_vm5, %v13212_v21  ;;  %5018 = vst.msk [vmem:[#allocation3 + $0x50] sm:$0xff] %vm1917_vm5, %v13212_v21 }
  0x48   : > { %8889 = vmatmul.mubr.msk.bf16.gmra.mrb[12].mxu0 %vm746_vm2, %v9274_v12  ;;  %5020 = vst.msk [vmem:[#allocation3 + $0x60] sm:$0xff] %vm1917_vm5, %v13212_v21  ;;  %5022 = vst.msk [vmem:[#allocation3 + $0x70] sm:$0xff] %vm1917_vm5, %v13212_v21  ;;  %9105 = vmatpush3.bf16.msra.mxu1 %v9294_v48 }
  0x49   : > { %8892 = vmatprep.mubr.msk.bf16.mxu0 %vm746_vm2, %v9275_v13  ;;  %5024 = vst.msk [vmem:[#allocation3 + $0x80] sm:$0xff] %vm1917_vm5, %v13212_v21  ;;  %5026 = vst.msk [vmem:[#allocation3 + $0x90] sm:$0xff] %vm1917_vm5, %v13212_v21  ;;  %8329 = vmatpush3.bf16.msra.mxu0 %v9294_v48 }
  0x4a   : > { %8330 = vmatprep.subr.bf16.mxu0 %v9295_v63  ;;  %9098 = vmatprep.subr.bf16.mxu1 %v9295_v63 }
  0x4c   : > { %9106 = vmatpush3.bf16.msra.mxu1 %v9296_v2 }
  0x4d   : > { %8331 = vmatpush3.bf16.msra.mxu0 %v9296_v2  ;;  %9099 = vmatprep.subr.bf16.mxu1 %v9297_v32 }
  0x4e   : > { %8332 = vmatprep.subr.bf16.mxu0 %v9297_v32 }
  0x50   : > { %8893 = vmatmul.mubr.msk.bf16.gmra.mrb[16].mxu0 %vm746_vm2, %v9276_v14  ;;  %9107 = vmatpush3.bf16.msra.mxu1 %v9298_v35 }
  0x51   : > { %8896 = vmatprep.mubr.msk.bf16.mxu0 %vm746_vm2, %v9277_v15  ;;  %8333 = vmatpush3.bf16.msra.mxu0 %v9298_v35 }
  0x58   : > { %8897 = vmatmul.mubr.msk.bf16.gmra.mrb[20].mxu0 %vm746_vm2, %v9278_v16 }
  0x59   : > { %8900 = vmatprep.mubr.msk.bf16.mxu0 %vm746_vm2, %v9279_v17 }
  0x60   : > { %8901 = vmatmul.mubr.msk.bf16.gmra.mrb[24].mxu0 %vm746_vm2, %v9280_v18 }
  0x61   : > { %8904 = vmatprep.mubr.msk.bf16.mxu0 %vm746_vm2, %v9281_v19 }
  0x68   : > { %8905 = vmatmul.mubr.msk.bf16.gmra.mrb[28].mxu0 %vm746_vm2, %v9282_v20 }
 0x103   : > { %v8878_v43 = vpop.f32.mrb[0].mxu0 }
 0x104   : > { %v845_v44 = vadd.f32 %v8878_v43, %v9914_v38  ;;  %v836_v45 = vpop.f32.mrb[1].mxu0 }
 0x105   : > { %v837_v46 = vadd.f32 %v9914_v38, %v836_v45  ;;  %v8879_v47 = vpop.f32.mrb[2].mxu0 }
 0x106   : > { %vm965_vm6 = vcmp.ge.f32.partialorder %v845_v44, 0.0  ;;  %v997_v49 = vmul.f32 0.1, %v845_v44  ;;  %v848_v50 = vadd.f32 %v8879_v47, %v9914_v38  ;;  %v839_v51 = vpop.f32.mrb[3].mxu0 }
 0x107   : > { %vm963_vm7 = vcmp.ge.f32.partialorder %v837_v46, 0.0  ;;  %v995_v52 = vmul.f32 0.1, %v837_v46  ;;  %v840_v53 = vadd.f32 %v9914_v38, %v839_v51 }
 0x108   : > { %v1029_v54 = vsel %vm965_vm6, %v845_v44, %v997_v49  ;;  %vm966_vm8 = vcmp.ge.f32.partialorder %v848_v50, 0.0  ;;  %v998_v55 = vmul.f32 0.1, %v848_v50 }
 0x109   : > { %1118 = vst.msk [vmem:[#allocation2 + $0x31] sm:$0xff] %vm1059_vm3, %v1029_v54  ;;  %v1027_v56 = vsel %vm963_vm7, %v837_v46, %v995_v52  ;;  %vm964_vm9 = vcmp.ge.f32.partialorder %v840_v53, 0.0  ;;  %v996_v57 = vmul.f32 0.1, %v840_v53 }
 0x10a   : > { %1116 = vst.msk [vmem:[#allocation2 + $0x19] sm:$0xff] %vm1059_vm3, %v1027_v56  ;;  %v1030_v58 = vsel %vm966_vm8, %v848_v50, %v998_v55  ;;  %v10022_v50 = vld [vmem:[%s13266_s27 + $0x80] sm:$0xff]  }
 0x10b   : > { %1119 = vst.msk [vmem:[#allocation2 + $0x39] sm:$0xff] %vm1059_vm3, %v1030_v58  ;;  %v1028_v59 = vsel %vm964_vm9, %v840_v53, %v996_v57  ;;  %v8882_v60 = vpop.f32.mrb[4].mxu0  ;;  %13275 = vst [vmem:[#allocation22_spill] sm:$0xff] %v10022_v50  ;;  %8908 = vmatprep.subr.bf16.mxu0 %v10022_v50 }
 0x10c   : > { %1117 = vst.msk [vmem:[#allocation2 + $0x21] sm:$0xff] %vm1059_vm3, %v1028_v59  ;;  %v861_v61 = vadd.f32 %v8882_v60, %v9914_v38  ;;  %v852_v62 = vpop.f32.mrb[5].mxu0 }
 0x10d   : > { %v853_v0 = vadd.f32 %v9914_v38, %v852_v62  ;;  %v8883_v1 = vpop.f32.mrb[6].mxu0 }
 0x10e   : > { %vm969_vm10 = vcmp.ge.f32.partialorder %v861_v61, 0.0  ;;  %v1001_v3 = vmul.f32 0.1, %v861_v61  ;;  %v864_v4 = vadd.f32 %v8883_v1, %v9914_v38  ;;  %v855_v5 = vpop.f32.mrb[7].mxu0 }
 0x10f   : > { %vm967_vm11 = vcmp.ge.f32.partialorder %v853_v0, 0.0  ;;  %v999_v6 = vmul.f32 0.1, %v853_v0  ;;  %v856_v7 = vadd.f32 %v9914_v38, %v855_v5 }
 0x110   : > { %v1033_v8 = vsel %vm969_vm10, %v861_v61, %v1001_v3  ;;  %vm970_vm12 = vcmp.ge.f32.partialorder %v864_v4, 0.0  ;;  %v1002_v9 = vmul.f32 0.1, %v864_v4  ;;  %v1485_v10 = vld [vmem:[#allocation2 + $0x31] sm:$0xff] }
 0x111   : > { %1122 = vst.msk [vmem:[#allocation2 + $0x61] sm:$0xff] %vm1059_vm3, %v1033_v8  ;;  %v1031_v11 = vsel %vm967_vm11, %v853_v0, %v999_v6  ;;  %vm968_vm13 = vcmp.ge.f32.partialorder %v856_v7, 0.0  ;;  %v1000_v12 = vmul.f32 0.1, %v856_v7  ;;  %v1437_v13 = vld [vmem:[#allocation2 + $0x30] sm:$0xff]  ;;  %v9972_v14 = vld [vmem:[#allocation2 + $0x18] sm:$0xff] }
 0x112   : > { %v9974_v15 = vld [vmem:[#allocation2 + $0x19] sm:$0xff]  ;;  %1120 = vst.msk [vmem:[#allocation2 + $0x49] sm:$0xff] %vm1059_vm3, %v1031_v11  ;;  %v1034_v16 = vsel %vm970_vm12, %v864_v4, %v1002_v9 }
 0x113   : > { %v1486_v17 = vld [vmem:[#allocation2 + $0x39] sm:$0xff]  ;;  %1123 = vst.msk [vmem:[#allocation2 + $0x69] sm:$0xff] %vm1059_vm3, %v1034_v16  ;;  %v1032_v20 = vsel %vm968_vm13, %v856_v7, %v1000_v12  ;;  %v1389_v26 = vld [vmem:[#allocation2 + $0x22] sm:$0xff]  ;;  %v8886_v27 = vpop.f32.mrb[8].mxu0 }
 0x114   : > { %v1438_v18 = vld [vmem:[#allocation2 + $0x38] sm:$0xff]  ;;  %v9978_v22 = vpack.c.bf16 %v1486_v17, %v1485_v10  ;;  %1121 = vst.msk [vmem:[#allocation2 + $0x51] sm:$0xff] %vm1059_vm3, %v1032_v20  ;;  %v877_v28 = vadd.f32 %v8886_v27, %v9914_v38  ;;  %v868_v29 = vpop.f32.mrb[9].mxu0  ;;  %v9984_v30 = vld [vmem:[#allocation2 + $0x20] sm:$0xff] }
 0x115   : > { %v1390_v19 = vld [vmem:[#allocation2 + $0x32] sm:$0xff]  ;;  %v9980_v23 = vpack.c.bf16 %v1438_v18, %v1437_v13  ;;  %v1391_v24 = vld [vmem:[#allocation2 + $0x3a] sm:$0xff]  ;;  %v869_v33 = vadd.f32 %v9914_v38, %v868_v29  ;;  %v8887_v34 = vpop.f32.mrb[10].mxu0 }
 0x116   : > { %13270 = vst [vmem:[#allocation18_spill] sm:$0xff] %v9978_v22  ;;  %v1388_v25 = vld [vmem:[#allocation2 + $0x1a] sm:$0xff]  ;;  %1837 = vrot.lane.b32.xlu0 %v9978_v22, %s13241_s22  ;;  %v10003_v36 = vld [vmem:[#allocation2 + $0x32] sm:$0xff]  ;;  %vm973_vm14 = vcmp.ge.f32.partialorder %v877_v28, 0.0  ;;  %v1005_v41 = vmul.f32 0.1, %v877_v28  ;;  %v880_v43 = vadd.f32 %v8887_v34, %v9914_v38  ;;  %v10016_v45 = vpack.c.bf16 %v1391_v24, %v1390_v19 }
 0x117   : > { %13271 = vst [vmem:[#allocation19_spill] sm:$0xff] %v9980_v23  ;;  %v9986_v31 = vld [vmem:[#allocation2 + $0x21] sm:$0xff]  ;;  %2747 = vst.msk [vmem:[#allocation2 + $0x18] sm:$0xff] %vm1059_vm3, %v13212_v21  ;;  %1789 = vrot.lane.b32.xlu1 %v9980_v23, %s13272_s26  ;;  %v871_v44 = vpop.f32.mrb[11].mxu0  ;;  %vm971_vm15 = vcmp.ge.f32.partialorder %v869_v33, 0.0  ;;  %v10031_v54 = vpack.c.bf16 %v1389_v26, %v1388_v25 }
 0x118   : > { %2749 = vst.msk [vmem:[#allocation2 + $0x28] sm:$0x3] %vm1062_vm4, %v13212_v21  ;;  %13273 = vst [vmem:[#allocation20_spill] sm:$0xff] %v10003_v36  ;;  %v10005_v37 = vld [vmem:[#allocation2 + $0x3a] sm:$0xff]  ;;  %v1003_v46 = vmul.f32 0.1, %v869_v33  ;;  %v872_v47 = vadd.f32 %v9914_v38, %v871_v44  ;;  %v1037_v48 = vsel %vm973_vm14, %v877_v28, %v1005_v41 }
 0x119   : > { %13274 = vst [vmem:[#allocation21_spill] sm:$0xff] %v10005_v37  ;;  %2748 = vst.msk [vmem:[#allocation2 + $0x20] sm:$0xff] %vm1059_vm3, %v13212_v21  ;;  %vm974_vm0 = vcmp.ge.f32.partialorder %v880_v43, 0.0  ;;  %v1006_v49 = vmul.f32 0.1, %v880_v43  ;;  %v1441_v55 = vld [vmem:[#allocation2 + $0x60] sm:$0xff] }
 0x11a   : > { %2750 = vst.msk [vmem:[#allocation2 + $0x30] sm:$0xff] %vm1059_vm3, %v13212_v21  ;;  %2751 = vst.msk [vmem:[#allocation2 + $0x38] sm:$0xff] %vm1059_vm3, %v13212_v21  ;;  %1743 = vrot.lane.b32.xlu0 %v10016_v45, %s13276_s23  ;;  %v1035_v51 = vsel %vm971_vm15, %v869_v33, %v1003_v46  ;;  %vm972_vm1 = vcmp.ge.f32.partialorder %v872_v47, 0.0  ;;  %v1004_v52 = vmul.f32 0.1, %v872_v47  ;;  %v1442_v56 = vld [vmem:[#allocation2 + $0x68] sm:$0xff] }
 0x11b   : > { %2752 = vst.msk [vmem:[#allocation2 + $0x40] sm:$0x3] %vm1062_vm4, %v13212_v21  ;;  %1695 = vrot.lane.b32.xlu1 %v9980_v23, %s13241_s22  ;;  %v1038_v53 = vsel %vm974_vm0, %v880_v43, %v1006_v49  ;;  %v1490_v58 = vld [vmem:[#allocation2 + $0x69] sm:$0xff]  ;;  %v8890_v59 = vpop.f32.mrb[12].mxu0  ;;  %v1489_v60 = vld [vmem:[#allocation2 + $0x61] sm:$0xff]  ;;  %v10039_v63 = vld [vmem:[#allocation2 + $0x51] sm:$0xff]  ;;  %v10072_v19 = vpack.c.bf16 %v1442_v56, %v1441_v55 }
 0x11c   : > { %1126 = vst.msk [vmem:[#allocation2 + $0x91] sm:$0xff] %vm1059_vm3, %v1037_v48  ;;  %1124 = vst.msk [vmem:[#allocation2 + $0x79] sm:$0xff] %vm1059_vm3, %v1035_v51  ;;  %v1036_v57 = vsel %vm972_vm1, %v872_v47, %v1004_v52  ;;  %v10035_v61 = vld [vmem:[#allocation2 + $0x62] sm:$0xff]  ;;  %v10037_v62 = vld [vmem:[#allocation2 + $0x6a] sm:$0xff]  ;;  %v893_v1 = vadd.f32 %v8890_v59, %v9914_v38  ;;  %v884_v2 = vpop.f32.mrb[13].mxu0  ;;  %v10103_v44 = vpack.c.bf16 %v1490_v58, %v1489_v60 }
 0x11d   : > { %1127 = vst.msk [vmem:[#allocation2 + $0x99] sm:$0xff] %vm1059_vm3, %v1038_v53  ;;  %1125 = vst.msk [vmem:[#allocation2 + $0x81] sm:$0xff] %vm1059_vm3, %v1036_v57  ;;  %v10041_v0 = vld [vmem:[#allocation2 + $0x52] sm:$0xff]  ;;  %v10048_v3 = vld [vmem:[#allocation2 + $0x48] sm:$0xff]  ;;  %v885_v6 = vadd.f32 %v9914_v38, %v884_v2  ;;  %v8891_v7 = vpop.f32.mrb[14].mxu0 }
 0x11e   : > { %1741 = vrot.lane.b32.xlu0 %v10031_v54, %s13276_s23  ;;  %v10050_v4 = vld [vmem:[#allocation2 + $0x50] sm:$0xff]  ;;  %v10055_v8 = vld [vmem:[#allocation2 + $0x62] sm:$0xff]  ;;  %vm977_vm2 = vcmp.ge.f32.partialorder %v893_v1, 0.0  ;;  %v1009_v12 = vmul.f32 0.1, %v893_v1  ;;  %v896_v13 = vadd.f32 %v8891_v7, %v9914_v38  ;;  %v887_v16 = vpop.f32.mrb[15].mxu0  ;;  %v10146_v7 = vpack.c.bf16 %v9986_v31, %v9974_v15 }
 0x11f   : > { %1601 = vrot.lane.b32.xlu1 %v9978_v22, %s13276_s23  ;;  %v10052_v5 = vld [vmem:[#allocation2 + $0x49] sm:$0xff]  ;;  %13277 = vst [vmem:[#allocation23_spill] sm:$0xff] %v10055_v8  ;;  %v10061_v11 = vld [vmem:[#allocation2 + $0x51] sm:$0xff]  ;;  %v10068_v17 = vld [vmem:[#allocation2 + $0x60] sm:$0xff]  ;;  %vm975_vm6 = vcmp.ge.f32.partialorder %v885_v6, 0.0  ;;  %v888_v25 = vadd.f32 %v9914_v38, %v887_v16 }
 0x120   : > { %v10057_v9 = vld [vmem:[#allocation2 + $0x6a] sm:$0xff]  ;;  %13280 = vst [vmem:[#allocation26_spill] sm:$0xff] %v10061_v11  ;;  %2755 = vst.msk [vmem:[#allocation2 + $0x58] sm:$0x3] %vm1062_vm4, %v13212_v21  ;;  %v1007_v24 = vmul.f32 0.1, %v885_v6  ;;  %v1041_v28 = vsel %vm977_vm2, %v893_v1, %v1009_v12 }
 0x121   : > { %13278 = vst [vmem:[#allocation24_spill] sm:$0xff] %v10057_v9  ;;  %v10059_v10 = vld [vmem:[#allocation2 + $0x49] sm:$0xff]  ;;  %2758 = vst.msk [vmem:[#allocation2 + $0x70] sm:$0x3] %vm1062_vm4, %v13212_v21  ;;  %vm978_vm7 = vcmp.ge.f32.partialorder %v896_v13, 0.0  ;;  %vm976_vm8 = vcmp.ge.f32.partialorder %v888_v25, 0.0 }
 0x122   : > { %13279 = vst [vmem:[#allocation25_spill] sm:$0xff] %v10059_v10  ;;  %13281 = vst [vmem:[#allocation27_spill] sm:$0xff] %v10068_v17  ;;  %v10070_v18 = vld [vmem:[#allocation2 + $0x68] sm:$0xff]  ;;  %v10083_v27 = vld [vmem:[#allocation2 + $0x50] sm:$0xff]  ;;  %v1010_v29 = vmul.f32 0.1, %v896_v13  ;;  %1793 = vrot.lane.b32.xlu0 %v10072_v19, %s13272_s26  ;;  %v1039_v33 = vsel %vm975_vm6, %v885_v6, %v1007_v24 }
 0x123   : > { %13282 = vst [vmem:[#allocation28_spill] sm:$0xff] %v10070_v18  ;;  %v10074_v20 = vld [vmem:[#allocation2 + $0x4a] sm:$0xff]  ;;  %2756 = vst.msk [vmem:[#allocation2 + $0x60] sm:$0xff] %vm1059_vm3, %v13212_v21  ;;  %1649 = vrot.lane.b32.xlu1 %v10016_v45, %s13272_s26  ;;  %v1008_v34 = vmul.f32 0.1, %v888_v25  ;;  %v10107_v45 = vpack.c.bf16 %v9984_v30, %v9972_v14  ;;  %v8894_v55 = vpop.f32.mrb[16].mxu0 }
 0x124   : > { %2757 = vst.msk [vmem:[#allocation2 + $0x68] sm:$0xff] %vm1059_vm3, %v13212_v21  ;;  %v10081_v26 = vld [vmem:[#allocation2 + $0x48] sm:$0xff]  ;;  %13284 = vst [vmem:[#allocation30_spill] sm:$0xff] %v10083_v27  ;;  %v1042_v41 = vsel %vm978_vm7, %v896_v13, %v1010_v29  ;;  %v10101_v43 = vld [vmem:[#allocation2 + $0x99] sm:$0xff]  ;;  %v909_v60 = vadd.f32 %v8894_v55, %v9914_v38  ;;  %v900_v1 = vpop.f32.mrb[17].mxu0 }
 0x125   : > { %13283 = vst [vmem:[#allocation29_spill] sm:$0xff] %v10081_v26  ;;  %2753 = vst.msk [vmem:[#allocation2 + $0x48] sm:$0xff] %vm1059_vm3, %v13212_v21  ;;  %v10109_v46 = vld [vmem:[#allocation2 + $0x90] sm:$0xff]  ;;  %v10111_v47 = vld [vmem:[#allocation2 + $0x98] sm:$0xff]  ;;  %v1040_v48 = vsel %vm976_vm8, %v888_v25, %v1008_v34  ;;  %v901_v12 = vadd.f32 %v9914_v38, %v900_v1  ;;  %v8895_v13 = vpop.f32.mrb[18].mxu0 }
 0x126   : > { %2754 = vst.msk [vmem:[#allocation2 + $0x50] sm:$0xff] %vm1059_vm3, %v13212_v21  ;;  %1130 = vst.msk [vmem:[#allocation2 + $0xc1] sm:$0xff] %vm1059_vm3, %v1041_v28  ;;  %v10114_v49 = vld [vmem:[#allocation2 + $0x91] sm:$0xff]  ;;  %v10118_v52 = vld [vmem:[#allocation2 + $0x9a] sm:$0xff]  ;;  %1841 = vrot.lane.b32.xlu0 %v10103_v44, %s13241_s22  ;;  %v10159_v28 = vpack.c.bf16 %v10037_v62, %v10035_v61  ;;  %vm981_vm9 = vcmp.ge.f32.partialorder %v909_v60, 0.0  ;;  %v912_v15 = vadd.f32 %v8895_v13, %v9914_v38  ;;  %v903_v31 = vpop.f32.mrb[19].mxu0 }
 0x127   : > { %1128 = vst.msk [vmem:[#allocation2 + $0xa9] sm:$0xff] %vm1059_vm3, %v1039_v33  ;;  %13285 = vst [vmem:[#allocation31_spill] sm:$0xff] %v10103_v44  ;;  %v10116_v51 = vld [vmem:[#allocation2 + $0x92] sm:$0xff]  ;;  %v10120_v53 = vld [vmem:[#allocation2 + $0x81] sm:$0xff]  ;;  %1693 = vrot.lane.b32.xlu1 %v10107_v45, %s13241_s22  ;;  %v1013_v29 = vmul.f32 0.1, %v909_v60  ;;  %v904_v62 = vadd.f32 %v9914_v38, %v903_v31 }
 0x128   : > { %13286 = vst [vmem:[#allocation32_spill] sm:$0xff] %v10107_v45  ;;  %1131 = vst.msk [vmem:[#allocation2 + $0xc9] sm:$0xff] %vm1059_vm3, %v1042_v41  ;;  %v10122_v56 = vld [vmem:[#allocation2 + $0x91] sm:$0xff]  ;;  %v10127_v30 = vld [vmem:[#allocation2 + $0x80] sm:$0xff]  ;;  %vm979_vm10 = vcmp.ge.f32.partialorder %v901_v12, 0.0  ;;  %vm982_vm11 = vcmp.ge.f32.partialorder %v912_v15, 0.0 }
 0x129   : > { %13287 = vst [vmem:[#allocation33_spill] sm:$0xff] %v10122_v56  ;;  %1129 = vst.msk [vmem:[#allocation2 + $0xb1] sm:$0xff] %vm1059_vm3, %v1040_v48  ;;  %v10125_v14 = vld [vmem:[#allocation2 + $0x78] sm:$0xff]  ;;  %v10133_v59 = vld [vmem:[#allocation2 + $0x82] sm:$0xff]  ;;  %v1011_v61 = vmul.f32 0.1, %v901_v12  ;;  %v1045_v48 = vsel %vm981_vm9, %v909_v60, %v1013_v29  ;;  %v10191_v29 = vpack.c.bf16 %v10050_v4, %v10048_v3 }
 0x12a   : > { %v10129_v57 = vld [vmem:[#allocation2 + $0x79] sm:$0xff]  ;;  %v10151_v16 = vld [vmem:[#allocation2 + $0x81] sm:$0xff]  ;;  %v10153_v24 = vld [vmem:[#allocation2 + $0x90] sm:$0xff]  ;;  %v1014_v55 = vmul.f32 0.1, %v912_v15  ;;  %1747 = vrot.lane.b32.xlu0 %v10159_v28, %s13276_s23  ;;  %1134 = vst.msk [vmem:[#allocation2 + $0xf1] sm:$0xff] %vm1059_vm3, %v1045_v48 }
 0x12b   : > { %v10131_v58 = vld [vmem:[#allocation2 + $0x7a] sm:$0xff]  ;;  %13290 = vst [vmem:[#allocation36_spill] sm:$0xff] %v10151_v16  ;;  %13291 = vst [vmem:[#allocation37_spill] sm:$0xff] %v10153_v24  ;;  %1599 = vrot.lane.b32.xlu1 %v10146_v7, %s13276_s23  ;;  %v1043_v13 = vsel %vm979_vm10, %v901_v12, %v1011_v61  ;;  %vm980_vm12 = vcmp.ge.f32.partialorder %v904_v62, 0.0  ;;  %v1012_v31 = vmul.f32 0.1, %v904_v62 }
 0x12c   : > { %v10136_v2 = vld [vmem:[#allocation2 + $0x99] sm:$0xff]  ;;  %2761 = vst.msk [vmem:[#allocation2 + $0x88] sm:$0x3] %vm1062_vm4, %v13212_v21  ;;  %v1046_v41 = vsel %vm982_vm11, %v912_v15, %v1014_v55  ;;  %v8898_v55 = vpop.f32.mrb[20].mxu0 }
 0x12d   : > { %13288 = vst [vmem:[#allocation34_spill] sm:$0xff] %v10136_v2  ;;  %v10138_v6 = vld [vmem:[#allocation2 + $0x79] sm:$0xff]  ;;  %2764 = vst.msk [vmem:[#allocation2 + $0xa0] sm:$0x3] %vm1062_vm4, %v13212_v21  ;;  %v1044_v35 = vsel %vm980_vm12, %v904_v62, %v1012_v31  ;;  %v10198_v48 = vld [vmem:[#allocation2 + $0xc1] sm:$0xff]  ;;  %v925_v31 = vadd.f32 %v8898_v55, %v9914_v38  ;;  %vm1950_vm12 = vcmask 785408  }
 0x12e   : > { %13289 = vst [vmem:[#allocation35_spill] sm:$0xff] %v10138_v6  ;;  %v10155_v25 = vld [vmem:[#allocation2 + $0x98] sm:$0xff]  ;;  %2762 = vst.msk [vmem:[#allocation2 + $0x90] sm:$0xff] %vm1059_vm3, %v13212_v21  ;;  %v10170_v34 = vld [vmem:[#allocation2 + $0x80] sm:$0xff]  ;;  %1791 = vrot.lane.b32.xlu0 %v10191_v29, %s13272_s26 }
 0x12f   : > { %13292 = vst [vmem:[#allocation38_spill] sm:$0xff] %v10155_v25  ;;  %2763 = vst.msk [vmem:[#allocation2 + $0x98] sm:$0xff] %vm1059_vm3, %v13212_v21  ;;  %v10168_v33 = vld [vmem:[#allocation2 + $0x78] sm:$0xff]  ;;  %v10187_v60 = vld [vmem:[#allocation2 + $0xc9] sm:$0xff]  ;;  %1647 = vrot.lane.b32.xlu1 %v10031_v54, %s13272_s26  ;;  %vm985_vm13 = vcmp.ge.f32.partialorder %v925_v31, 0.0 }
 0x130   : > { %13293 = vst [vmem:[#allocation39_spill] sm:$0xff] %v10168_v33  ;;  %13294 = vst [vmem:[#allocation40_spill] sm:$0xff] %v10170_v34  ;;  %v10193_v1 = vld [vmem:[#allocation2 + $0xc0] sm:$0xff]  ;;  %v10195_v32 = vld [vmem:[#allocation2 + $0xc8] sm:$0xff]  ;;  %v13298_v33 = vmov 0.0  }
 0x131   : > { %2759 = vst.msk [vmem:[#allocation2 + $0x78] sm:$0xff] %vm1059_vm3, %v13212_v21  ;;  %2760 = vst.msk [vmem:[#allocation2 + $0x80] sm:$0xff] %vm1059_vm3, %v13212_v21  ;;  %v10200_v12 = vld [vmem:[#allocation2 + $0xc2] sm:$0xff]  ;;  %v10202_v61 = vld [vmem:[#allocation2 + $0xca] sm:$0xff]  ;;  %v916_v21 = vpop.f32.mrb[21].mxu0 }
 0x132   : > { %1132 = vst.msk [vmem:[#allocation2 + $0xd9] sm:$0xff] %vm1059_vm3, %v1043_v13  ;;  %1135 = vst.msk [vmem:[#allocation2 + $0xf9] sm:$0xff] %vm1059_vm3, %v1046_v41  ;;  %v10204_v15 = vld [vmem:[#allocation2 + $0xb1] sm:$0xff]  ;;  %v10206_v13 = vld [vmem:[#allocation2 + $0xc1] sm:$0xff] }
 0x133   : > { %13295 = vst [vmem:[#allocation41_spill] sm:$0xff] %v10206_v13  ;;  %1133 = vst.msk [vmem:[#allocation2 + $0xe1] sm:$0xff] %vm1059_vm3, %v1044_v35  ;;  %v10209_v3 = vld [vmem:[#allocation2 + $0xa8] sm:$0xff]  ;;  %v10211_v4 = vld [vmem:[#allocation2 + $0xb0] sm:$0xff]  ;;  %v917_v35 = vadd.f32 %v9914_v38, %v916_v21  ;;  %v8899_v13 = vpop.f32.mrb[22].mxu0  ;;  %1699 = vrot.lane.b32.xlu1 %v10072_v19, %s13241_s22 }
 0x134   : > { %v10213_v42 = vld [vmem:[#allocation2 + $0xa9] sm:$0xff]  ;;  %v10217_v41 = vld [vmem:[#allocation2 + $0xb2] sm:$0xff]  ;;  %v10233_v55 = vld [vmem:[#allocation2 + $0xc0] sm:$0xff]  ;;  %v928_v54 = vadd.f32 %v8899_v13, %v9914_v38  ;;  %v919_v56 = vpop.f32.mrb[23].mxu0 }
 0x135   : > { %v10215_v62 = vld [vmem:[#allocation2 + $0xaa] sm:$0xff]  ;;  %13300 = vst [vmem:[#allocation45_spill] sm:$0xff] %v10233_v55  ;;  %2768 = vst.msk [vmem:[#allocation2 + $0xc0] sm:$0xff] %vm1059_vm3, %v13298_v33  ;;  %vm983_vm14 = vcmp.ge.f32.partialorder %v917_v35, 0.0 }
 0x136   : > { %v10220_v24 = vld [vmem:[#allocation2 + $0xc9] sm:$0xff]  ;;  %v10231_v34 = vld [vmem:[#allocation2 + $0xb1] sm:$0xff]  ;;  %vm986_vm15 = vcmp.ge.f32.partialorder %v928_v54, 0.0  ;;  %v1018_v18 = vmul.f32 0.1, %v928_v54 }
 0x137   : > { %13296 = vst [vmem:[#allocation42_spill] sm:$0xff] %v10220_v24  ;;  %v10222_v25 = vld [vmem:[#allocation2 + $0xa9] sm:$0xff]  ;;  %2770 = vst.msk [vmem:[#allocation2 + $0xd0] sm:$0x3] %vm1062_vm4, %v13298_v33  ;;  %v10239_v24 = vpack.c.bf16 %v10039_v63, %v10052_v5  ;;  %v1015_v63 = vmul.f32 0.1, %v917_v35  ;;  %v920_v5 = vadd.f32 %v9914_v38, %v919_v56  ;;  %1605 = vrot.lane.b32.xlu1 %v10103_v44, %s13276_s23 }
 0x138   : > { %13297 = vst [vmem:[#allocation43_spill] sm:$0xff] %v10222_v25  ;;  %13299 = vst [vmem:[#allocation44_spill] sm:$0xff] %v10231_v34  ;;  %v10235_v2 = vld [vmem:[#allocation2 + $0xc8] sm:$0xff]  ;;  %v1017_v25 = vmul.f32 0.1, %v925_v31  ;;  %v10250_v34 = vld [vmem:[#allocation2 + $0xb0] sm:$0xff]  ;;  %v1050_v55 = vsel %vm986_vm15, %v928_v54, %v1018_v18 }
 0x139   : > { %13301 = vst [vmem:[#allocation46_spill] sm:$0xff] %v10235_v2  ;;  %2767 = vst.msk [vmem:[#allocation2 + $0xb8] sm:$0x3] %vm1062_vm4, %v13298_v33  ;;  %v10248_v21 = vld [vmem:[#allocation2 + $0xa8] sm:$0xff]  ;;  %1839 = vrot.lane.b32.xlu0 %v10239_v24, %s13241_s22  ;;  %v1047_v56 = vsel %vm983_vm14, %v917_v35, %v1015_v63  ;;  %vm984_vm0 = vcmp.ge.f32.partialorder %v920_v5, 0.0  ;;  %v10273_v16 = vld [vmem:[#allocation2 + $0xf0] sm:$0xff] }
 0x13a   : > { %2769 = vst.msk [vmem:[#allocation2 + $0xc8] sm:$0xff] %vm1059_vm3, %v13298_v33  ;;  %13302 = vst [vmem:[#allocation47_spill] sm:$0xff] %v10248_v21  ;;  %v1049_v17 = vsel %vm985_vm13, %v925_v31, %v1017_v25  ;;  %v1016_v13 = vmul.f32 0.1, %v920_v5  ;;  %v10267_v25 = vld [vmem:[#allocation2 + $0xf9] sm:$0xff]  ;;  %v10271_v31 = vpack.c.bf16 %v10041_v0, %v10074_v20  ;;  %v10284_v18 = vld [vmem:[#allocation2 + $0xe1] sm:$0xff] }
 0x13b   : > { %13303 = vst [vmem:[#allocation48_spill] sm:$0xff] %v10250_v34  ;;  %2765 = vst.msk [vmem:[#allocation2 + $0xa8] sm:$0xff] %vm1059_vm3, %v13298_v33  ;;  %v10275_v2 = vld [vmem:[#allocation2 + $0xf8] sm:$0xff]  ;;  %v8902_v54 = vpop.f32.mrb[24].mxu0  ;;  %v10291_v20 = vld [vmem:[#allocation2 + $0xe0] sm:$0xff]  ;;  %1653 = vrot.lane.b32.xlu1 %v10159_v28, %s13272_s26 }
 0x13c   : > { %2766 = vst.msk [vmem:[#allocation2 + $0xb0] sm:$0xff] %vm1059_vm3, %v13298_v33  ;;  %1138 = vst.msk [vmem:[#allocation2 + $0x121] sm:$0xff] %vm1059_vm3, %v1049_v17  ;;  %v1048_v19 = vsel %vm984_vm0, %v920_v5, %v1016_v13  ;;  %v10278_v17 = vld [vmem:[#allocation2 + $0xf1] sm:$0xff]  ;;  %v10282_v63 = vld [vmem:[#allocation2 + $0xfa] sm:$0xff]  ;;  %v941_v13 = vadd.f32 %v8902_v54, %v9914_v38  ;;  %v932_v34 = vpop.f32.mrb[25].mxu0 }
 0x13d   : > { %1136 = vst.msk [vmem:[#allocation2 + $0x109] sm:$0xff] %vm1059_vm3, %v1047_v56  ;;  %1139 = vst.msk [vmem:[#allocation2 + $0x129] sm:$0xff] %vm1059_vm3, %v1050_v55  ;;  %v10280_v35 = vld [vmem:[#allocation2 + $0xf2] sm:$0xff]  ;;  %v10295_v55 = vld [vmem:[#allocation2 + $0xda] sm:$0xff]  ;;  %1745 = vrot.lane.b32.xlu0 %v10271_v31, %s13276_s23 }
 0x13e   : > { %v10286_v56 = vld [vmem:[#allocation2 + $0xf1] sm:$0xff]  ;;  %1137 = vst.msk [vmem:[#allocation2 + $0x111] sm:$0xff] %vm1059_vm3, %v1048_v19  ;;  %v10293_v21 = vld [vmem:[#allocation2 + $0xd9] sm:$0xff]  ;;  %v10297_v5 = vld [vmem:[#allocation2 + $0xe2] sm:$0xff]  ;;  %v933_v19 = vadd.f32 %v9914_v38, %v932_v34  ;;  %vm989_vm1 = vcmp.ge.f32.partialorder %v941_v13, 0.0 }
 0x13f   : > { %13304 = vst [vmem:[#allocation49_spill] sm:$0xff] %v10286_v56  ;;  %v10289_v0 = vld [vmem:[#allocation2 + $0xd8] sm:$0xff]  ;;  %v8903_v56 = vpop.f32.mrb[26].mxu0  ;;  %v10311_v27 = vld [vmem:[#allocation2 + $0xe1] sm:$0xff]  ;;  %v10313_v54 = vld [vmem:[#allocation2 + $0xf0] sm:$0xff]  ;;  %1697 = vrot.lane.b32.xlu1 %v10191_v29, %s13241_s22 }
 0x140   : > { %v10300_v6 = vld [vmem:[#allocation2 + $0xf9] sm:$0xff]  ;;  %13307 = vst [vmem:[#allocation52_spill] sm:$0xff] %v10311_v27  ;;  %13308 = vst [vmem:[#allocation53_spill] sm:$0xff] %v10313_v54  ;;  %v944_v44 = vadd.f32 %v8903_v56, %v9914_v38  ;;  %v935_v11 = vpop.f32.mrb[27].mxu0  ;;  %vm987_vm2 = vcmp.ge.f32.partialorder %v933_v19, 0.0 }
 0x141   : > { %13305 = vst [vmem:[#allocation50_spill] sm:$0xff] %v10300_v6  ;;  %v10302_v26 = vld [vmem:[#allocation2 + $0xd9] sm:$0xff]  ;;  %2776 = vst.msk [vmem:[#allocation2 + $0x100] sm:$0x3] %vm1062_vm4, %v13298_v33  ;;  %v10319_v6 = vpack.c.bf16 %v10111_v47, %v10109_v46  ;;  %v1019_v46 = vmul.f32 0.1, %v933_v19  ;;  %v936_v47 = vadd.f32 %v9914_v38, %v935_v11 }
 0x142   : > { %13306 = vst [vmem:[#allocation51_spill] sm:$0xff] %v10302_v26  ;;  %v10315_v23 = vld [vmem:[#allocation2 + $0xf8] sm:$0xff]  ;;  %v1021_v26 = vmul.f32 0.1, %v941_v13  ;;  %2773 = vst.msk [vmem:[#allocation2 + $0xe8] sm:$0x3] %vm1062_vm4, %v13298_v33 }
 0x143   : > { %13309 = vst [vmem:[#allocation54_spill] sm:$0xff] %v10315_v23  ;;  %2774 = vst.msk [vmem:[#allocation2 + $0xf0] sm:$0xff] %vm1059_vm3, %v13298_v33  ;;  %v10328_v34 = vld [vmem:[#allocation2 + $0xd8] sm:$0xff]  ;;  %v10330_v27 = vld [vmem:[#allocation2 + $0xe0] sm:$0xff]  ;;  %vm990_vm6 = vcmp.ge.f32.partialorder %v944_v44, 0.0  ;;  %1797 = vrot.lane.b32.xlu0 %v10319_v6, %s13272_s26  ;;  %v1051_v11 = vsel %vm987_vm2, %v933_v19, %v1019_v46  ;;  %vm988_vm7 = vcmp.ge.f32.partialorder %v936_v47, 0.0  ;;  %1603 = vrot.lane.b32.xlu1 %v10239_v24, %s13276_s23 }
 0x144   : > { %2775 = vst.msk [vmem:[#allocation2 + $0xf8] sm:$0xff] %vm1059_vm3, %v13298_v33  ;;  %13310 = vst [vmem:[#allocation55_spill] sm:$0xff] %v10328_v34  ;;  %v1457_v10 = vld [vmem:[#allocation2 + $0x120] sm:$0xff]  ;;  %v1053_v22 = vsel %vm989_vm1, %v941_v13, %v1021_v26  ;;  %v1022_v45 = vmul.f32 0.1, %v944_v44  ;;  %v1455_v54 = vld [vmem:[#allocation2 + $0x108] sm:$0xff] }
 0x145   : > { %13311 = vst [vmem:[#allocation56_spill] sm:$0xff] %v10330_v27  ;;  %2771 = vst.msk [vmem:[#allocation2 + $0xd8] sm:$0xff] %vm1059_vm3, %v13298_v33  ;;  %v10340_v9 = vld [vmem:[#allocation2 + $0x121] sm:$0xff]  ;;  %v1020_v56 = vmul.f32 0.1, %v936_v47  ;;  %v10354_v34 = vld [vmem:[#allocation2 + $0x129] sm:$0xff] }
 0x146   : > { %2772 = vst.msk [vmem:[#allocation2 + $0xe0] sm:$0xff] %vm1059_vm3, %v13298_v33  ;;  %1142 = vst.msk [vmem:[#allocation2 + $0x151] sm:$0xff] %vm1059_vm3, %v1053_v22  ;;  %v10349_v26 = vld [vmem:[#allocation2 + $0x120] sm:$0xff]  ;;  %v10351_v13 = vld [vmem:[#allocation2 + $0x108] sm:$0xff]  ;;  %v1054_v8 = vsel %vm990_vm6, %v944_v44, %v1022_v45  ;;  %v10362_v22 = vpack.c.bf16 %v10101_v43, %v10114_v49  ;;  %v8906_v44 = vpop.f32.mrb[28].mxu0 }
 0x147   : > { %13312 = vst [vmem:[#allocation57_spill] sm:$0xff] %v10349_v26  ;;  %13313 = vst [vmem:[#allocation58_spill] sm:$0xff] %v10351_v13  ;;  %v1458_v23 = vld [vmem:[#allocation2 + $0x128] sm:$0xff]  ;;  %v1052_v19 = vsel %vm988_vm7, %v936_v47, %v1020_v56  ;;  %v1456_v37 = vld [vmem:[#allocation2 + $0x110] sm:$0xff]  ;;  %v10407_v47 = vpack.c.bf16 %v10118_v52, %v10116_v51  ;;  %1651 = vrot.lane.b32.xlu1 %v10271_v31, %s13272_s26 }
 0x148   : > { %1140 = vst.msk [vmem:[#allocation2 + $0x139] sm:$0xff] %vm1059_vm3, %v1051_v11  ;;  %v10356_v27 = vld [vmem:[#allocation2 + $0x122] sm:$0xff]  ;;  %v10364_v28 = vpack.c.bf16 %v1458_v23, %v1457_v10  ;;  %1143 = vst.msk [vmem:[#allocation2 + $0x159] sm:$0xff] %vm1059_vm3, %v1054_v8  ;;  %v10367_v46 = vld [vmem:[#allocation2 + $0x12a] sm:$0xff]  ;;  %v10374_v45 = vpack.c.bf16 %v1456_v37, %v1455_v54  ;;  %v957_v8 = vadd.f32 %v8906_v44, %v9914_v38  ;;  %v948_v10 = vpop.f32.mrb[29].mxu0  ;;  %1845 = vrot.lane.b32.xlu0 %v10362_v22, %s13241_s22 }
 0x149   : > { %v10358_v50 = vld [vmem:[#allocation2 + $0x109] sm:$0xff]  ;;  %v10369_v11 = vld [vmem:[#allocation2 + $0x111] sm:$0xff]  ;;  %2780 = vst.msk [vmem:[#allocation2 + $0x120] sm:$0xff] %vm1059_vm3, %v13298_v33  ;;  %1141 = vst.msk [vmem:[#allocation2 + $0x141] sm:$0xff] %vm1059_vm3, %v1052_v19  ;;  %v949_v37 = vadd.f32 %v9914_v38, %v948_v10  ;;  %v8907_v54 = vpop.f32.mrb[30].mxu0 }
 0x14a   : > { %v10376_v43 = vld [vmem:[#allocation2 + $0x10a] sm:$0xff]  ;;  %v10378_v23 = vld [vmem:[#allocation2 + $0x112] sm:$0xff]  ;;  %2782 = vst.msk [vmem:[#allocation2 + $0x130] sm:$0x3] %vm1062_vm4, %v13298_v33  ;;  %vm993_vm8 = vcmp.ge.f32.partialorder %v957_v8, 0.0  ;;  %v960_v29 = vadd.f32 %v8907_v54, %v9914_v38  ;;  %v951_v44 = vpop.f32.mrb[31].mxu0 }
 0x14b   : > { %v10383_v49 = vld [vmem:[#allocation2 + $0x128] sm:$0xff]  ;;  %2779 = vst.msk [vmem:[#allocation2 + $0x118] sm:$0x3] %vm1062_vm4, %v13298_v33  ;;  %v10396_v56 = vld [vmem:[#allocation2 + $0x110] sm:$0xff]  ;;  %v1025_v19 = vmul.f32 0.1, %v957_v8  ;;  %1703 = vrot.lane.b32.xlu1 %v10319_v6, %s13241_s22 }
 0x14c   : > { %13314 = vst [vmem:[#allocation59_spill] sm:$0xff] %v10383_v49  ;;  %2781 = vst.msk [vmem:[#allocation2 + $0x128] sm:$0xff] %vm1059_vm3, %v13298_v33  ;;  %vm991_vm9 = vcmp.ge.f32.partialorder %v949_v37, 0.0  ;;  %v1023_v26 = vmul.f32 0.1, %v949_v37  ;;  %v952_v49 = vadd.f32 %v9914_v38, %v951_v44  ;;  %vm994_vm10 = vcmp.ge.f32.partialorder %v960_v29, 0.0  ;;  %1751 = vrot.lane.b32.xlu0 %v10407_v47, %s13276_s23 }
 0x14d   : > { %13315 = vst [vmem:[#allocation60_spill] sm:$0xff] %v10396_v56  ;;  %2777 = vst.msk [vmem:[#allocation2 + $0x108] sm:$0xff] %vm1059_vm3, %v13298_v33  ;;  %v1461_v36 = vld [vmem:[#allocation2 + $0x150] sm:$0xff]  ;;  %v1057_v40 = vsel %vm993_vm8, %v957_v8, %v1025_v19  ;;  %v1026_v39 = vmul.f32 0.1, %v960_v29  ;;  %v1472_v44 = vpack.c.bf16 %v10127_v30, %v10125_v14  ;;  %v1520_v30 = vpack.c.bf16 %v10120_v53, %v10129_v57 }
 0x14e   : > { %2778 = vst.msk [vmem:[#allocation2 + $0x110] sm:$0xff] %vm1059_vm3, %v13298_v33  ;;  %v10414_v54 = vld [vmem:[#allocation2 + $0x151] sm:$0xff]  ;;  %1146 = vst.msk [vmem:[#allocation2 + $0x181] sm:$0xff] %vm1059_vm3, %v1057_v40  ;;  %v1055_v51 = vsel %vm991_vm9, %v949_v37, %v1023_v26  ;;  %vm992_vm11 = vcmp.ge.f32.partialorder %v952_v49, 0.0  ;;  %v1024_v52 = vmul.f32 0.1, %v952_v49 }
 0x14f   : > { %v1459_v10 = vld [vmem:[#allocation2 + $0x138] sm:$0xff]  ;;  %1144 = vst.msk [vmem:[#allocation2 + $0x169] sm:$0xff] %vm1059_vm3, %v1055_v51  ;;  %v1058_v38 = vsel %vm994_vm10, %v960_v29, %v1026_v39  ;;  %1609 = vrot.lane.b32.xlu1 %v10362_v22, %s13276_s23  ;;  %v10511_v22 = vpack.c.bf16 %v10202_v61, %v10200_v12  ;;  %v10543_v12 = vpack.c.bf16 %v10282_v63, %v10280_v35 }
 0x150   : > { %v1462_v13 = vld [vmem:[#allocation2 + $0x158] sm:$0xff]  ;;  %1147 = vst.msk [vmem:[#allocation2 + $0x189] sm:$0xff] %vm1059_vm3, %v1058_v38  ;;  %v1056_v40 = vsel %vm992_vm11, %v952_v49, %v1024_v52  ;;  %v1460_v37 = vld [vmem:[#allocation2 + $0x140] sm:$0xff]  ;;  %1795 = vrot.lane.b32.xlu0 %v1472_v44, %s13272_s26  ;;  %v10559_v61 = vpack.c.bf16 %v10297_v5, %v10295_v55  ;;  %v13320_v5 = vld [vmem:[#allocation16_spill] sm:$0xff] }
 0x151   : > { %v10418_v8 = vld [vmem:[#allocation2 + $0x152] sm:$0xff]  ;;  %v10424_v24 = vpack.c.bf16 %v1462_v13, %v1461_v36  ;;  %v10429_v26 = vld [vmem:[#allocation2 + $0x15a] sm:$0xff]  ;;  %1145 = vst.msk [vmem:[#allocation2 + $0x171] sm:$0xff] %vm1059_vm3, %v1056_v40  ;;  %v10434_v39 = vpack.c.bf16 %v1460_v37, %v1459_v10  ;;  %v10440_v36 = vld [vmem:[#allocation2 + $0x142] sm:$0xff]  ;;  %v10468_v40 = vpack.c.bf16 %v10133_v59, %v10131_v58  ;;  %v1475_v58 = vpack.c.bf16 %v10195_v32, %v10193_v1 }
 0x152   : > { %v10420_v19 = vld [vmem:[#allocation2 + $0x139] sm:$0xff]  ;;  %2786 = vst.msk [vmem:[#allocation2 + $0x150] sm:$0xff] %vm1059_vm3, %v13298_v33  ;;  %v10436_v29 = vld [vmem:[#allocation2 + $0x141] sm:$0xff]  ;;  %13316 = vst [vmem:[#allocation61_spill] sm:$0xff] %v10440_v36  ;;  %v1523_v59 = vpack.c.bf16 %v10187_v60, %v10198_v48  ;;  %v1474_v32 = vpack.c.bf16 %v10211_v4, %v10209_v3  ;;  %v1522_v1 = vpack.c.bf16 %v10204_v15, %v10213_v42  ;;  %v1646_v15 = vpop.permute.xlu1 %1645  ;;  %v1598_v3 = vpop.permute.xlu0 %1597 }
 0x153   : > { %v10426_v56 = vld [vmem:[#allocation2 + $0x159] sm:$0xff]  ;;  %2785 = vst.msk [vmem:[#allocation2 + $0x148] sm:$0x3] %vm1062_vm4, %v13298_v33  ;;  %1657 = vrot.lane.b32.xlu1 %v10407_v47, %s13272_s26  ;;  %v10527_v60 = vpack.c.bf16 %v10217_v41, %v10215_v62  ;;  %v1477_v48 = vpack.c.bf16 %v10275_v2, %v10273_v16  ;;  %v1525_v42 = vpack.c.bf16 %v10267_v25, %v10278_v17 }
 0x154   : > { %v10438_v14 = vld [vmem:[#allocation2 + $0x13a] sm:$0xff]  ;;  %2788 = vst.msk [vmem:[#allocation2 + $0x160] sm:$0x3] %vm1062_vm4, %v13298_v33  ;;  %1843 = vrot.lane.b32.xlu0 %v1520_v30, %s13241_s22  ;;  %v1476_v2 = vpack.c.bf16 %v10291_v20, %v10289_v0  ;;  %v1524_v16 = vpack.c.bf16 %v10284_v18, %v10293_v21  ;;  %v10570_v4 = vpack.c.bf16 %v10354_v34, %v10340_v9 }
 0x155   : > { %2787 = vst.msk [vmem:[#allocation2 + $0x158] sm:$0xff] %vm1059_vm3, %v13298_v33  ;;  %2783 = vst.msk [vmem:[#allocation2 + $0x138] sm:$0xff] %vm1059_vm3, %v13298_v33  ;;  %v1465_v13 = vld [vmem:[#allocation2 + $0x180] sm:$0xff]  ;;  %v10577_v21 = vpack.c.bf16 %v10367_v46, %v10356_v27  ;;  %v10590_v27 = vpack.c.bf16 %v10369_v11, %v10358_v50  ;;  %v10604_v50 = vpack.c.bf16 %v10378_v23, %v10376_v43  ;;  %v9300_v43 = vld [vmem:[%s13266_s27 + $0x88] sm:$0xff]   ;;  %s13382_s27 = smov 96  }
 0x156   : > { %2784 = vst.msk [vmem:[#allocation2 + $0x140] sm:$0xff] %vm1059_vm3, %v13298_v33  ;;  %v10460_v49 = vld [vmem:[#allocation2 + $0x181] sm:$0xff]  ;;  %v10462_v52 = vld [vmem:[#allocation2 + $0x169] sm:$0xff] }
 0x157   : > { %13317 = vst [vmem:[#allocation62_spill] sm:$0xff] %v10460_v49  ;;  %v1463_v10 = vld [vmem:[#allocation2 + $0x168] sm:$0xff]  ;;  %13318 = vst [vmem:[#allocation63_spill] sm:$0xff] %v10462_v52  ;;  %1701 = vrot.lane.b32.xlu1 %v1472_v44, %s13241_s22 }
 0x158   : > { %v1466_v51 = vld [vmem:[#allocation2 + $0x188] sm:$0xff]  ;;  %v1464_v57 = vld [vmem:[#allocation2 + $0x170] sm:$0xff]  ;;  %1749 = vrot.lane.b32.xlu0 %v10468_v40, %s13276_s23 }
 0x159   : > { %v10464_v38 = vld [vmem:[#allocation2 + $0x182] sm:$0xff]  ;;  %v10470_v37 = vpack.c.bf16 %v1466_v51, %v1465_v13  ;;  %v10474_v36 = vld [vmem:[#allocation2 + $0x16a] sm:$0xff]  ;;  %v10478_v6 = vpack.c.bf16 %v1464_v57, %v1463_v10  ;;  %v10482_v52 = vld [vmem:[#allocation2 + $0x172] sm:$0xff] }
 0x15a   : > { %13319 = vst [vmem:[#allocation64_spill] sm:$0xff] %v10464_v38  ;;  %v10472_v53 = vld [vmem:[#allocation2 + $0x189] sm:$0xff]  ;;  %2792 = vst.msk [vmem:[#allocation2 + $0x180] sm:$0xff] %vm1059_vm3, %v13298_v33  ;;  %v10480_v49 = vld [vmem:[#allocation2 + $0x171] sm:$0xff] }
 0x15b   : > { %v10484_v38 = vld [vmem:[#allocation2 + $0x18a] sm:$0xff]  ;;  %2789 = vst.msk [vmem:[#allocation2 + $0x168] sm:$0xff] %vm1059_vm3, %v13298_v33  ;;  %2790 = vst.msk [vmem:[#allocation2 + $0x170] sm:$0xff] %vm1059_vm3, %v13298_v33  ;;  %1607 = vrot.lane.b32.xlu1 %v1520_v30, %s13276_s23  ;;  %v13324_v13 = vld [vmem:[#allocation21_spill] sm:$0xff] }
 0x15c   : > { %2791 = vst.msk [vmem:[#allocation2 + $0x178] sm:$0x3] %vm1062_vm4, %v13298_v33  ;;  %2794 = vst.msk [vmem:[#allocation2 + $0x190] sm:$0x3] %vm1062_vm4, %v13298_v33  ;;  %1801 = vrot.lane.b32.xlu0 %v1475_v58, %s13272_s26  ;;  %v13323_v30 = vld [vmem:[#allocation20_spill] sm:$0xff]  ;;  %v13325_v51 = vld [vmem:[#allocation22_spill] sm:$0xff] }
 0x15d   : > { %2793 = vst.msk [vmem:[#allocation2 + $0x188] sm:$0xff] %vm1059_vm3, %v13298_v33  ;;  %v1565_v10 = vpack.c.bf16 %v13324_v13, %v13323_v30  ;;  %v13335_v13 = vld [vmem:[#allocation30_spill] sm:$0xff] }
 0x15f   : > { %1655 = vrot.lane.b32.xlu1 %v10468_v40, %s13272_s26 }
 0x160   : > { %1849 = vrot.lane.b32.xlu0 %v1523_v59, %s13241_s22 }
 0x163   : > { %1707 = vrot.lane.b32.xlu1 %v1475_v58, %s13241_s22 }
 0x164   : > { %1755 = vrot.lane.b32.xlu0 %v10511_v22, %s13276_s23 }
 0x167   : > { %1613 = vrot.lane.b32.xlu1 %v1523_v59, %s13276_s23  ;;  %v10631_v59 = vpack.c.bf16 %v10426_v56, %v10414_v54 }
 0x168   : > { %1799 = vrot.lane.b32.xlu0 %v1474_v32, %s13272_s26 }
 0x16b   : > { %1661 = vrot.lane.b32.xlu1 %v10511_v22, %s13272_s26 }
 0x16c   : > { %1847 = vrot.lane.b32.xlu0 %v1522_v1, %s13241_s22 }
 0x16f   : > { %1705 = vrot.lane.b32.xlu1 %v1474_v32, %s13241_s22 }
 0x170   : > { %1753 = vrot.lane.b32.xlu0 %v10527_v60, %s13276_s23 }
 0x173   : > { %1611 = vrot.lane.b32.xlu1 %v1522_v1, %s13276_s23 }
 0x174   : > { %1805 = vrot.lane.b32.xlu0 %v1477_v48, %s13272_s26 }
 0x177   : > { %1659 = vrot.lane.b32.xlu1 %v10527_v60, %s13272_s26 }
 0x178   : > { %1853 = vrot.lane.b32.xlu0 %v1525_v42, %s13241_s22 }
 0x17b   : > { %1711 = vrot.lane.b32.xlu1 %v1477_v48, %s13241_s22  ;;  %v10639_v48 = vpack.c.bf16 %v10429_v26, %v10418_v8 }
 0x17c   : > { %1759 = vrot.lane.b32.xlu0 %v10543_v12, %s13276_s23 }
 0x17f   : > { %1617 = vrot.lane.b32.xlu1 %v1525_v42, %s13276_s23  ;;  %v13326_v42 = vld [vmem:[#allocation23_spill] sm:$0xff] }
 0x180   : > { %1803 = vrot.lane.b32.xlu0 %v1476_v2, %s13272_s26 }
 0x183   : > { %1665 = vrot.lane.b32.xlu1 %v10543_v12, %s13272_s26 }
 0x184   : > { %1851 = vrot.lane.b32.xlu0 %v1524_v16, %s13241_s22 }
 0x187   : > { %1709 = vrot.lane.b32.xlu1 %v1476_v2, %s13241_s22  ;;  %v13327_v2 = vld [vmem:[#allocation24_spill] sm:$0xff] }
 0x188   : > { %1757 = vrot.lane.b32.xlu0 %v10559_v61, %s13276_s23  ;;  %v1838_v62 = vpop.permute.xlu0 %1837 }
 0x189   : > { %v1790_v41 = vpop.permute.xlu1 %1789 }
 0x18b   : > { %1615 = vrot.lane.b32.xlu1 %v1524_v16, %s13276_s23  ;;  %v1567_v16 = vpack.c.bf16 %v13327_v2, %v13326_v42 }
 0x18c   : > { %1809 = vrot.lane.b32.xlu0 %v10364_v28, %s13272_s26  ;;  %v1744_v25 = vpop.permute.xlu0 %1743 }
 0x18d   : > { %v1696_v17 = vpop.permute.xlu1 %1695 }
 0x18f   : > { %1663 = vrot.lane.b32.xlu1 %v10559_v61, %s13272_s26 }
 0x190   : > { %1857 = vrot.lane.b32.xlu0 %v10570_v4, %s13241_s22  ;;  %v1742_v35 = vpop.permute.xlu0 %1741 }
 0x191   : > { %v10586_v9 = vpop.permute.xlu1 %1601  ;;  %v2001_v63 = vsel %vm1059_vm3, %v10146_v7, %v1742_v35  ;;  %v13321_v7 = vld [vmem:[#allocation17_spill] sm:$0xff]  ;;  %v13331_v35 = vld [vmem:[#allocation26_spill] sm:$0xff] }
 0x192   : > { %v2048_v18 = vsel %vm1917_vm5, %v2001_v63, %v1790_v41  ;;  %v13322_v34 = vpack.c.bf16 %v13320_v5, %v13321_v7  ;;  %v10668_v5 = vpack.c.bf16 %v10436_v29, %v10420_v19 }
 0x193   : > { %1715 = vrot.lane.b32.xlu1 %v10364_v28, %s13241_s22  ;;  %v2080_v0 = vsel %vm1950_vm12, %v2048_v18, %v1838_v62 }
 0x194   : > { %1763 = vrot.lane.b32.xlu0 %v10577_v21, %s13276_s23  ;;  %v1794_v55 = vpop.permute.xlu0 %1793  ;;  %2358 = vmatprep.mubr.bf16.mxu0 %v2080_v0  ;;  %v1871_v46 = vsel %vm1059_vm3, %v13322_v34, %v1598_v3 }
 0x195   : > { %v10600_v20 = vpop.permute.xlu1 %1649  ;;  %v1919_v11 = vsel %vm1917_vm5, %v1871_v46, %v1646_v15  ;;  %v13328_v15 = vld [vmem:[#allocation32_spill] sm:$0xff]  ;;  %v13332_v46 = vld [vmem:[#allocation61_spill] sm:$0xff] }
 0x197   : > { %1621 = vrot.lane.b32.xlu1 %v10570_v4, %s13276_s23 }
 0x198   : > { %1807 = vrot.lane.b32.xlu0 %v10374_v45, %s13272_s26  ;;  %v1842_v28 = vpop.permute.xlu0 %1841 }
 0x199   : > { %v1694_v44 = vpop.permute.xlu1 %1693 }
 0x19a   : > { %v1952_v23 = vsel %vm1950_vm12, %v1919_v11, %v1694_v44  ;;  %v10685_v11 = vpack.c.bf16 %v13332_v46, %v10438_v14 }
 0x19b   : > { %2359 = vmatmul.mubr.bf16.vlgmr.msra.gmra.mrb[32].mxu0 %v1952_v23  ;;  %1669 = vrot.lane.b32.xlu1 %v10577_v21, %s13272_s26 }
 0x19c   : > { %1855 = vrot.lane.b32.xlu0 %v10590_v27, %s13241_s22  ;;  %8909 = vmatpush3.bf16.msra.mxu0 %v13325_v51  ;;  %v10627_v57 = vpop.permute.xlu0 %1747 }
 0x19d   : > { %8912 = vmatprep.mubr.msk.bf16.mxu0 %vm1059_vm3, %v1565_v10  ;;  %v1600_v58 = vpop.permute.xlu1 %1599  ;;  %8910 = vmatprep.subr.bf16.mxu0 %v9300_v43  ;;  %v13336_v10 = vld [vmem:[#allocation29_spill] sm:$0xff] }
 0x19e   : > { %v1874_v56 = vsel %vm1059_vm3, %v13328_v15, %v1600_v58  ;;  %v13337_v51 = vpack.c.bf16 %v13335_v13, %v13336_v10 }
 0x19f   : > { %1713 = vrot.lane.b32.xlu1 %v10374_v45, %s13241_s22  ;;  %v13329_v45 = vld [vmem:[#allocation18_spill] sm:$0xff] }
 0x1a0   : > { %1761 = vrot.lane.b32.xlu0 %v10604_v50, %s13276_s23  ;;  %8911 = vmatpush3.bf16.msra.mxu0 %v9300_v43  ;;  %v1792_v32 = vpop.permute.xlu0 %1791  ;;  %v2004_v54 = vsel %vm1059_vm3, %v13329_v45, %v1744_v25  ;;  %v13330_v25 = vld [vmem:[#allocation25_spill] sm:$0xff] }
 0x1a1   : > { %v1648_v1 = vpop.permute.xlu1 %1647  ;;  %v2050_v8 = vsel %vm1917_vm5, %v2004_v54, %v1792_v32  ;;  %v1374_v63 = vpack.c.bf16 %v13331_v35, %v13330_v25  ;;  %v1515_v45 = vld [vmem:[#allocation2 + $0x199] sm:$0xff]  ;;  %v1516_v54 = vld [vmem:[#allocation2 + $0x1a1] sm:$0xff]  ;;  %v1434_v25 = vpack.c.bf16 %v10482_v52, %v10474_v36  ;;  %v13342_v36 = vld [vmem:[#allocation64_spill] sm:$0xff] }
 0x1a2   : > { %v1921_v3 = vsel %vm1917_vm5, %v1874_v56, %v1648_v1  ;;  %v1468_v56 = vld [vmem:[#allocation2 + $0x1a0] sm:$0xff]  ;;  %v1435_v52 = vpack.c.bf16 %v10484_v38, %v13342_v36  ;;  %v1532_v38 = vpack.c.bf16 %v1516_v54, %v1515_v45 }
 0x1a3   : > { %8913 = vmatmul.mubr.msk.bf16.vlgmr.msra.gmra.mrb[36].mxu0 %vm1059_vm3, %v10271_v31  ;;  %1619 = vrot.lane.b32.xlu1 %v10590_v27, %s13276_s23  ;;  %v1955_v31 = vsel %vm1950_vm12, %v1921_v3, %v1696_v17  ;;  %v1563_v3 = vld [vmem:[#allocation2 + $0x19a] sm:$0xff] }
 0x1a4   : > { %1813 = vrot.lane.b32.xlu0 %v10424_v24, %s13272_s26  ;;  %8916 = vmatprep.mubr.msk.bf16.mxu0 %vm1059_vm3, %v1567_v16  ;;  %v13339_v16 = vld [vmem:[#allocation63_spill] sm:$0xff] }
 0x1a5   : > { %v1700_v62 = vpop.permute.xlu1 %1699 }
 0x1a7   : > { %1667 = vrot.lane.b32.xlu1 %v10604_v50, %s13272_s26 }
 0x1a8   : > { %1861 = vrot.lane.b32.xlu0 %v10631_v59, %s13241_s22 }
 0x1a9   : > { %v10664_v0 = vpop.permute.xlu1 %1605 }
 0x1ab   : > { %v1840_v26 = vpop.permute.xlu0 %1839  ;;  %8917 = vmatmul.mubr.msk.bf16.gmra.mrb[40].mxu0 %vm1059_vm3, %v10468_v40  ;;  %1719 = vrot.lane.b32.xlu1 %v10424_v24, %s13241_s22  ;;  %v13333_v40 = vld [vmem:[#allocation19_spill] sm:$0xff] }
 0x1ac   : > { %1767 = vrot.lane.b32.xlu0 %v10639_v48, %s13276_s23  ;;  %v2083_v41 = vsel %vm1950_vm12, %v2050_v8, %v1840_v26  ;;  %8920 = vmatprep.mubr.msk.bf16.mxu0 %vm1059_vm3, %v10407_v47  ;;  %v1564_v8 = vld [vmem:[#allocation2 + $0x1a2] sm:$0xff]  ;;  %v13341_v26 = vld [vmem:[#allocation36_spill] sm:$0xff] }
 0x1ad   : > { %2366 = vmatprep.mubr.bf16.mxu1 %v2083_v41  ;;  %v10681_v29 = vpop.permute.xlu1 %1653  ;;  %2796 = vst.msk [vmem:[#allocation2 + $0x1a0] sm:$0xff] %vm1059_vm3, %v13298_v33 }
 0x1ae   : > { %2367 = vmatmul.mubr.bf16.vlgmr.msra.gmra.mrb[0].mxu1 %v1955_v31  ;;  %2797 = vst.msk [vmem:[#allocation2 + $0x1a8] sm:$0x3] %vm1062_vm4, %v13298_v33 }
 0x1af   : > { %v1746_v18 = vpop.permute.xlu0 %1745  ;;  %1625 = vrot.lane.b32.xlu1 %v10631_v59, %s13276_s23 }
 0x1b0   : > { %1811 = vrot.lane.b32.xlu0 %v10434_v39, %s13272_s26  ;;  %v2007_v7 = vsel %vm1059_vm3, %v1374_v63, %v1746_v18 }
 0x1b1   : > { %v2052_v17 = vsel %vm1917_vm5, %v2007_v7, %v1794_v55  ;;  %v1877_v55 = vsel %vm1059_vm3, %v13333_v40, %v10586_v9  ;;  %v1698_v44 = vpop.permute.xlu1 %1697 }
 0x1b2   : > { %v2086_v34 = vsel %vm1950_vm12, %v2052_v17, %v1842_v28  ;;  %v1923_v47 = vsel %vm1917_vm5, %v1877_v55, %v10600_v20  ;;  %v13334_v20 = vld [vmem:[#allocation62_spill] sm:$0xff] }
 0x1b3   : > { %2374 = vmatprep.mubr.bf16.mxu1 %v2086_v34  ;;  %v1958_v43 = vsel %vm1950_vm12, %v1923_v47, %v1698_v44  ;;  %8921 = vmatmul.mubr.msk.bf16.gmra.mrb[44].mxu0 %vm1059_vm3, %v10527_v60  ;;  %v10709_v23 = vpack.c.bf16 %v10472_v53, %v13334_v20  ;;  %v13338_v53 = vld [vmem:[#allocation31_spill] sm:$0xff]  ;;  %v13347_v20 = vld [vmem:[#allocation34_spill] sm:$0xff] }
 0x1b4   : > { %1859 = vrot.lane.b32.xlu0 %v10668_v5, %s13241_s22  ;;  %1717 = vrot.lane.b32.xlu1 %v10434_v39, %s13241_s22  ;;  %v2010_v58 = vsel %vm1059_vm3, %v13338_v53, %v10627_v57  ;;  %v1467_v57 = vld [vmem:[#allocation2 + $0x198] sm:$0xff] }
 0x1b5   : > { %v1798_v19 = vpop.permute.xlu0 %1797  ;;  %8924 = vmatprep.mubr.msk.bf16.mxu0 %vm1059_vm3, %v10511_v22  ;;  %v1604_v9 = vpop.permute.xlu1 %1603  ;;  %2795 = vst.msk [vmem:[#allocation2 + $0x198] sm:$0xff] %vm1059_vm3, %v13298_v33  ;;  %v1484_v34 = vpack.c.bf16 %v1468_v56, %v1467_v57 }
 0x1b6   : > { %2375 = vmatmul.mubr.bf16.gmra.mrb[4].mxu1 %v1958_v43  ;;  %v1880_v22 = vsel %vm1059_vm3, %v13337_v51, %v1604_v9  ;;  %v13346_v9 = vld [vmem:[#allocation33_spill] sm:$0xff] }
 0x1b8   : > { %1765 = vrot.lane.b32.xlu0 %v10685_v11, %s13276_s23  ;;  %1623 = vrot.lane.b32.xlu1 %v10668_v5, %s13276_s23 }
 0x1b9   : > { %v1652_v30 = vpop.permute.xlu1 %1651 }
 0x1ba   : > { %v1846_v28 = vpop.permute.xlu0 %1845  ;;  %v1925_v32 = vsel %vm1917_vm5, %v1880_v22, %v1652_v30  ;;  %v13349_v30 = vld [vmem:[#allocation39_spill] sm:$0xff] }
 0x1bb   : > { %8925 = vmatmul.mubr.msk.bf16.gmra.mrb[48].mxu0 %vm1059_vm3, %v10559_v61  ;;  %v10736_v61 = vpack.c.bf16 %v10480_v49, %v13339_v16  ;;  %v13340_v49 = vld [vmem:[#allocation35_spill] sm:$0xff]  ;;  %v13352_v16 = vld [vmem:[#allocation44_spill] sm:$0xff] }
 0x1bc   : > { %1817 = vrot.lane.b32.xlu0 %v10470_v37, %s13272_s26  ;;  %1671 = vrot.lane.b32.xlu1 %v10685_v11, %s13272_s26  ;;  %v1376_v41 = vpack.c.bf16 %v13341_v26, %v13340_v49  ;;  %v13353_v26 = vld [vmem:[#allocation38_spill] sm:$0xff] }
 0x1bd   : > { %8928 = vmatprep.mubr.msk.bf16.mxu0 %vm1059_vm3, %v10543_v12  ;;  %v10732_v2 = vpop.permute.xlu1 %1703  ;;  %v1961_v12 = vsel %vm1950_vm12, %v1925_v32, %v1700_v62 }
 0x1be   : > { %v10705_v14 = vpop.permute.xlu0 %1751 }
 0x1c0   : > { %1865 = vrot.lane.b32.xlu0 %v10709_v23, %s13241_s22  ;;  %1673 = vrot.lane.b32.xlu1 %v10639_v48, %s13272_s26 }
 0x1c1   : > { %v1610_v31 = vpop.permute.xlu1 %1609 }
 0x1c2   : > { %v1796_v60 = vpop.permute.xlu0 %1795 }
 0x1c3   : > { %v2054_v1 = vsel %vm1917_vm5, %v2010_v58, %v1796_v60  ;;  %8929 = vmatmul.mubr.msk.bf16.gmra.mrb[52].mxu0 %vm1059_vm3, %v10604_v50  ;;  %v13343_v50 = vld [vmem:[#allocation28_spill] sm:$0xff]  ;;  %v1377_v60 = vpack.c.bf16 %v13347_v20, %v13346_v9 }
 0x1c4   : > { %1815 = vrot.lane.b32.xlu0 %v10478_v6, %s13272_s26  ;;  %1721 = vrot.lane.b32.xlu1 %v10478_v6, %s13241_s22 }
 0x1c5   : > { %8932 = vmatprep.mubr.msk.bf16.mxu0 %vm1059_vm3, %v10577_v21  ;;  %v1658_v17 = vpop.permute.xlu1 %1657 }
 0x1c6   : > { %v1844_v42 = vpop.permute.xlu0 %1843 }
 0x1c7   : > { %v2089_v15 = vsel %vm1950_vm12, %v2054_v1, %v1844_v42  ;;  %v1580_v1 = vpack.c.bf16 %v1564_v8, %v1563_v3  ;;  %v13351_v42 = vld [vmem:[#allocation43_spill] sm:$0xff] }
 0x1c8   : > { %1863 = vrot.lane.b32.xlu0 %v10736_v61, %s13241_s22  ;;  %2382 = vmatprep.mubr.bf16.mxu1 %v2089_v15  ;;  %v1378_v15 = vpack.c.bf16 %v13352_v16, %v13351_v42 }
 0x1c9   : > { %2383 = vmatmul.mubr.bf16.gmra.mrb[8].mxu1 %v1961_v12  ;;  %1627 = vrot.lane.b32.xlu1 %v10736_v61, %s13276_s23  ;;  %v1702_v47 = vpop.permute.xlu1 %1701 }
 0x1ca   : > { %v1750_v62 = vpop.permute.xlu0 %1749 }
 0x1cb   : > { %v2013_v35 = vsel %vm1059_vm3, %v1376_v41, %v1750_v62  ;;  %8933 = vmatmul.mubr.msk.bf16.gmra.mrb[56].mxu0 %vm1059_vm3, %v10685_v11  ;;  %v13348_v11 = vld [vmem:[#allocation40_spill] sm:$0xff] }
 0x1cc   : > { %1769 = vrot.lane.b32.xlu0 %v1434_v25, %s13276_s23  ;;  %v2056_v63 = vsel %vm1917_vm5, %v2013_v35, %v1798_v19  ;;  %v13344_v19 = vld [vmem:[#allocation27_spill] sm:$0xff]  ;;  %8936 = vmatprep.mubr.msk.bf16.mxu0 %vm1059_vm3, %v10639_v48  ;;  %v13350_v13 = vpack.c.bf16 %v13348_v11, %v13349_v30  ;;  %v2016_v48 = vsel %vm1059_vm3, %v1377_v60, %v10705_v14 }
 0x1cd   : > { %v2092_v18 = vsel %vm1950_vm12, %v2056_v63, %v1846_v28  ;;  %v13345_v46 = vpack.c.bf16 %v13343_v50, %v13344_v19  ;;  %1675 = vrot.lane.b32.xlu1 %v1434_v25, %s13272_s26  ;;  %v1608_v44 = vpop.permute.xlu1 %1607  ;;  %v13358_v19 = vld [vmem:[#allocation48_spill] sm:$0xff] }
 0x1ce   : > { %v1802_v7 = vpop.permute.xlu0 %1801  ;;  %2390 = vmatprep.mubr.bf16.mxu1 %v2092_v18  ;;  %v1886_v10 = vsel %vm1059_vm3, %v13350_v13, %v1608_v44 }
 0x1cf   : > { %v1883_v40 = vsel %vm1059_vm3, %v13345_v46, %v10664_v0  ;;  %v13359_v46 = vld [vmem:[#allocation47_spill] sm:$0xff] }
 0x1d0   : > { %1771 = vrot.lane.b32.xlu0 %v1435_v52, %s13276_s23  ;;  %v1927_v21 = vsel %vm1917_vm5, %v1883_v40, %v10681_v29  ;;  %v13360_v40 = vpack.c.bf16 %v13358_v19, %v13359_v46 }
 0x1d1   : > { %v1964_v28 = vsel %vm1950_vm12, %v1927_v21, %v1702_v47  ;;  %1723 = vrot.lane.b32.xlu1 %v10470_v37, %s13241_s22  ;;  %v1656_v43 = vpop.permute.xlu1 %1655 }
 0x1d2   : > { %v1850_v55 = vpop.permute.xlu0 %1849  ;;  %2391 = vmatmul.mubr.bf16.gmra.mrb[12].mxu1 %v1964_v28  ;;  %v1929_v51 = vsel %vm1917_vm5, %v1886_v10, %v1656_v43  ;;  %v13362_v43 = vld [vmem:[#allocation52_spill] sm:$0xff] }
 0x1d3   : > { %8937 = vmatmul.mubr.msk.bf16.gmra.mrb[60].mxu0 %vm1059_vm3, %v1434_v25  ;;  %v1967_v32 = vsel %vm1950_vm12, %v1929_v51, %v10732_v2  ;;  %v13354_v2 = vld [vmem:[#allocation37_spill] sm:$0xff] }
 0x1d4   : > { %1819 = vrot.lane.b32.xlu0 %v1484_v34, %s13272_s26  ;;  %8940 = vmatprep.mubr.msk.bf16.mxu0 %vm1059_vm3, %v1435_v52  ;;  %v13355_v3 = vpack.c.bf16 %v13353_v26, %v13354_v2  ;;  %v13356_v52 = vld [vmem:[#allocation41_spill] sm:$0xff]  ;;  %v13357_v34 = vld [vmem:[#allocation42_spill] sm:$0xff]  ;;  %v13369_v26 = vld [vmem:[#allocation55_spill] sm:$0xff] }
 0x1d5   : > { %v1708_v53 = vpop.permute.xlu1 %1707  ;;  %v1379_v50 = vpack.c.bf16 %v13357_v34, %v13356_v52  ;;  %v13364_v51 = vld [vmem:[#allocation45_spill] sm:$0xff]  ;;  %v3149_v34 = vld [vmem:[#allocation2 + $0x1a0] sm:$0xff] }
 0x1d6   : > { %v1756_v0 = vpop.permute.xlu0 %1755  ;;  %v1889_v8 = vsel %vm1059_vm3, %v13355_v3, %v1610_v31  ;;  %v3148_v52 = vld [vmem:[#allocation2 + $0x198] sm:$0xff] }
 0x1d7   : > { %v1931_v41 = vsel %vm1917_vm5, %v1889_v8, %v1658_v17  ;;  %v2022_v31 = vsel %vm1059_vm3, %v1379_v50, %v1756_v0  ;;  %v2879_v8 = vld [vmem:[#allocation2 + $0x9] sm:$0xff]  ;;  %v3165_v19 = vpack.c.bf16 %v3149_v34, %v3148_v52 }
 0x1d8   : > { %1867 = vrot.lane.b32.xlu0 %v1532_v38, %s13241_s22  ;;  %v2926_v50 = vld [vmem:[#allocation2 + $0x2] sm:$0xff]  ;;  %s13042_s22 = scalar_lea.hbm %s13200_s18, %s8299_s28 }
 0x1d9   : > { %v1614_v57 = vpop.permute.xlu1 %1613 }
 0x1da   : > { %v1800_v29 = vpop.permute.xlu0 %1799 }
 0x1db   : > { %v2058_v37 = vsel %vm1917_vm5, %v2016_v48, %v1800_v29  ;;  %8941 = vmatmul.mubr.msk.bf16.gmra.mrb[64].mxu0 %vm1059_vm3, %v1580_v1  ;;  %v13361_v29 = vld [vmem:[#allocation51_spill] sm:$0xff]  ;;  %v13363_v48 = vld [vmem:[#allocation46_spill] sm:$0xff] }
 0x1dc   : > { %v1380_v9 = vpack.c.bf16 %v13362_v43, %v13361_v29  ;;  %3500 = vrot.lane.b32.xlu0 %v3165_v19, %s13272_s26 }
 0x1dd   : > { %v1662_v49 = vpop.permute.xlu1 %1661 }
 0x1de   : > { %v1848_v22 = vpop.permute.xlu0 %1847 }
 0x1df   : > { %v2095_v58 = vsel %vm1950_vm12, %v2058_v37, %v1848_v22  ;;  %v13365_v37 = vpack.c.bf16 %v13363_v48, %v13364_v51 }
 0x1e0   : > { %2398 = vmatprep.mubr.bf16.mxu1 %v2095_v58 }
 0x1e1   : > { %2399 = vmatmul.mubr.bf16.gmra.mrb[16].mxu1 %v1967_v32  ;;  %v1706_v25 = vpop.permute.xlu1 %1705  ;;  %v1895_v22 = vsel %vm1059_vm3, %v13365_v37, %v1614_v57  ;;  %v2878_v57 = vld [vmem:[#allocation2 + $0x1] sm:$0xff]  ;;  %v13375_v37 = vld [vmem:[#allocation60_spill] sm:$0xff] }
 0x1e2   : > { %v1754_v14 = vpop.permute.xlu0 %1753  ;;  %v1970_v35 = vsel %vm1950_vm12, %v1931_v41, %v1706_v25 }
 0x1e3   : > { %v2019_v56 = vsel %vm1059_vm3, %v1378_v15, %v1754_v14 }
 0x1e4   : > { %v2060_v45 = vsel %vm1917_vm5, %v2019_v56, %v1802_v7  ;;  %v13366_v56 = vld [vmem:[#allocation49_spill] sm:$0xff] }
 0x1e5   : > { %v2098_v12 = vsel %vm1950_vm12, %v2060_v45, %v1850_v55  ;;  %v1612_v18 = vpop.permute.xlu1 %1611  ;;  %v13367_v45 = vld [vmem:[#allocation50_spill] sm:$0xff] }
 0x1e6   : > { %v1806_v54 = vpop.permute.xlu0 %1805  ;;  %2406 = vmatprep.mubr.bf16.mxu1 %v2098_v12  ;;  %v1892_v21 = vsel %vm1059_vm3, %v13360_v40, %v1612_v18  ;;  %v1381_v12 = vpack.c.bf16 %v13367_v45, %v13366_v56 }
 0x1e9   : > { %2407 = vmatmul.mubr.bf16.gmra.mrb[20].mxu1 %v1970_v35  ;;  %v1660_v36 = vpop.permute.xlu1 %1659 }
 0x1ea   : > { %v1854_v62 = vpop.permute.xlu0 %1853  ;;  %v1933_v17 = vsel %vm1917_vm5, %v1892_v21, %v1660_v36 }
 0x1eb   : > { %v1973_v44 = vsel %vm1950_vm12, %v1933_v17, %v1708_v53  ;;  %v1935_v53 = vsel %vm1917_vm5, %v1895_v22, %v1662_v49  ;;  %v13376_v22 = vld [vmem:[#allocation58_spill] sm:$0xff] }
 0x1ed   : > { %v1712_v28 = vpop.permute.xlu1 %1711 }
 0x1ee   : > { %v1760_v63 = vpop.permute.xlu0 %1759 }
 0x1ef   : > { %v2028_v49 = vsel %vm1059_vm3, %v1381_v12, %v1760_v63  ;;  %v2927_v63 = vld [vmem:[#allocation2 + $0xa] sm:$0xff] }
 0x1f0   : > { %v2958_v21 = vpack.c.bf16 %v2927_v63, %v2926_v50 }
 0x1f1   : > { %v1618_v60 = vpop.permute.xlu1 %1617 }
 0x1f2   : > { %v1804_v7 = vpop.permute.xlu0 %1803 }
 0x1f3   : > { %v2062_v55 = vsel %vm1917_vm5, %v2022_v31, %v1804_v7 }
 0x1f5   : > { %v1666_v10 = vpop.permute.xlu1 %1665 }
 0x1f6   : > { %v1852_v47 = vpop.permute.xlu0 %1851 }
 0x1f7   : > { %v2101_v38 = vsel %vm1950_vm12, %v2062_v55, %v1852_v47 }
 0x1f8   : > { %2414 = vmatprep.mubr.bf16.mxu1 %v2101_v38  ;;  %v13371_v38 = vld [vmem:[#allocation54_spill] sm:$0xff] }
 0x1f9   : > { %2415 = vmatmul.mubr.bf16.gmra.mrb[24].mxu1 %v1973_v44  ;;  %v1710_v32 = vpop.permute.xlu1 %1709  ;;  %v13372_v44 = vld [vmem:[#allocation53_spill] sm:$0xff] }
 0x1fa   : > { %v1758_v20 = vpop.permute.xlu0 %1757  ;;  %v1976_v1 = vsel %vm1950_vm12, %v1935_v53, %v1710_v32  ;;  %v13373_v29 = vpack.c.bf16 %v13371_v38, %v13372_v44  ;;  %v13377_v53 = vpack.c.bf16 %v13375_v37, %v13376_v22  ;;  %v9302_v32 = vld [vmem:[%s13374_s5 + $0x88] sm:$0xff]  }
 0x1fb   : > { %v2025_v11 = vsel %vm1059_vm3, %v1380_v9, %v1758_v20 }
 0x1fc   : > { %v2064_v0 = vsel %vm1917_vm5, %v2025_v11, %v1806_v54  ;;  %v13368_v54 = vld [vmem:[#allocation56_spill] sm:$0xff]  ;;  %v1901_v43 = vsel %vm1059_vm3, %v13373_v29, %v1618_v60 }
 0x1fd   : > { %v2104_v30 = vsel %vm1950_vm12, %v2064_v0, %v1854_v62  ;;  %v1616_v16 = vpop.permute.xlu1 %1615  ;;  %v13370_v2 = vpack.c.bf16 %v13368_v54, %v13369_v26  ;;  %v2910_v62 = vpack.c.bf16 %v2879_v8, %v2878_v57  ;;  %v1939_v20 = vsel %vm1917_vm5, %v1901_v43, %v1666_v10  ;;  %v13378_v26 = vld [vmem:[#allocation59_spill] sm:$0xff] }
 0x1fe   : > { %v1810_v13 = vpop.permute.xlu0 %1809  ;;  %2422 = vmatprep.mubr.bf16.mxu1 %v2104_v30 }
 0x1ff   : > { %v1898_v3 = vsel %vm1059_vm3, %v13370_v2, %v1616_v16  ;;  %3278 = vrot.lane.b32.xlu1 %v2910_v62, %s13276_s23  ;;  %v13379_v2 = vld [vmem:[#allocation57_spill] sm:$0xff] }
 0x201   : > { %2423 = vmatmul.mubr.bf16.gmra.mrb[28].mxu1 %v1976_v1  ;;  %v1664_v14 = vpop.permute.xlu1 %1663 }
 0x202   : > { %v1858_v58 = vpop.permute.xlu0 %1857  ;;  %v1937_v41 = vsel %vm1917_vm5, %v1898_v3, %v1664_v14  ;;  %v13380_v3 = vpack.c.bf16 %v13378_v26, %v13379_v2  ;;  %v9310_v2 = vld [vmem:[%s13374_s5 + $0x18] sm:$0xff]  }
 0x203   : > { %v1979_v36 = vsel %vm1950_vm12, %v1937_v41, %v1712_v28  ;;  %3326 = vrot.lane.b32.xlu1 %v2958_v21, %s13272_s26 }
 0x205   : > { %v1716_v18 = vpop.permute.xlu1 %1715 }
 0x206   : > { %v1764_v42 = vpop.permute.xlu0 %1763 }
 0x207   : > { %v2034_v10 = vsel %vm1059_vm3, %v10570_v4, %v1764_v42 }
 0x209   : > { %v1622_v40 = vpop.permute.xlu1 %1621 }
 0x20a   : > { %v1808_v15 = vpop.permute.xlu0 %1807  ;;  %v1907_v57 = vsel %vm1059_vm3, %v13380_v3, %v1622_v40 }
 0x20b   : > { %v2066_v25 = vsel %vm1917_vm5, %v2028_v49, %v1808_v15 }
 0x20d   : > { %v1670_v28 = vpop.permute.xlu1 %1669 }
 0x20e   : > { %v1856_v35 = vpop.permute.xlu0 %1855  ;;  %v1943_v49 = vsel %vm1917_vm5, %v1907_v57, %v1670_v28 }
 0x20f   : > { %v2107_v7 = vsel %vm1950_vm12, %v2066_v25, %v1856_v35 }
 0x210   : > { %2430 = vmatprep.mubr.bf16.mxu1 %v2107_v7 }
 0x211   : > { %2431 = vmatmul.mubr.bf16.gmra.mrb[32].mxu1 %v1979_v36 }
 0x212   : > { %v1762_v46 = vpop.permute.xlu0 %1761 }
 0x213   : > { %v2031_v31 = vsel %vm1059_vm3, %v10590_v27, %v1762_v46  ;;  %v1714_v27 = vpop.permute.xlu1 %1713 }
 0x214   : > { %v2068_v17 = vsel %vm1917_vm5, %v2031_v31, %v1810_v13  ;;  %v1982_v11 = vsel %vm1950_vm12, %v1939_v20, %v1714_v27  ;;  %v9301_v13 = vld [vmem:[%s13374_s5 + $0x80] sm:$0xff]  }
 0x215   : > { %v2110_v55 = vsel %vm1950_vm12, %v2068_v17, %v1858_v58  ;;  %8944 = vmatprep.subr.bf16.mxu1 %v9301_v13 }
 0x216   : > { %v1814_v47 = vpop.permute.xlu0 %1813  ;;  %2438 = vmatprep.mubr.bf16.mxu1 %v2110_v55  ;;  %8945 = vmatpush3.bf16.msra.mxu1 %v9301_v13 }
 0x217   : > { %v1620_v30 = vpop.permute.xlu1 %1619  ;;  %8946 = vmatprep.subr.bf16.mxu1 %v9302_v32 }
 0x218   : > { %v1904_v60 = vsel %vm1059_vm3, %v13377_v53, %v1620_v30  ;;  %v9305_v53 = vld [vmem:[%s13374_s5 + $0x48] sm:$0xff]  }
 0x219   : > { %2439 = vmatmul.mubr.bf16.gmra.mrb[36].mxu1 %v1982_v11 }
 0x21a   : > { %v1862_v9 = vpop.permute.xlu0 %1861  ;;  %8947 = vmatpush3.bf16.msra.mxu1 %v9302_v32 }
 0x21b   : > { %v1668_v51 = vpop.permute.xlu1 %1667 }
 0x21c   : > { %v1941_v58 = vsel %vm1917_vm5, %v1904_v60, %v1668_v51  ;;  %v10921_v60 = vld [vmem:[%s13381_s4] ss:$0 sm:$0xff] }
 0x21d   : > { %v1985_v56 = vsel %vm1950_vm12, %v1941_v58, %v1716_v18  ;;  %v9307_v58 = vld [vmem:[%s13374_s5 + $0x50] sm:$0xff]  }
 0x21e   : > { %v1768_v0 = vpop.permute.xlu0 %1767 }
 0x21f   : > { %v1720_v15 = vpop.permute.xlu1 %1719  ;;  %v2040_v36 = vsel %vm1059_vm3, %v10631_v59, %v1768_v0 }
 0x222   : > { %v1812_v48 = vpop.permute.xlu0 %1811 }
 0x223   : > { %v2070_v1 = vsel %vm1917_vm5, %v2034_v10, %v1812_v48  ;;  %v1626_v42 = vpop.permute.xlu1 %1625  ;;  %v9306_v10 = vld [vmem:[%s13374_s5 + $0x8] sm:$0xff]  }
 0x224   : > { %v1913_v17 = vsel %vm1059_vm3, %v10424_v24, %v1626_v42 }
 0x226   : > { %v1860_v16 = vpop.permute.xlu0 %1859 }
 0x227   : > { %v2113_v14 = vsel %vm1950_vm12, %v2070_v1, %v1860_v16  ;;  %v1718_v41 = vpop.permute.xlu1 %1717 }
 0x228   : > { %2446 = vmatprep.mubr.bf16.mxu1 %v2113_v14  ;;  %v1988_v62 = vsel %vm1950_vm12, %v1943_v49, %v1718_v41 }
 0x229   : > { %2447 = vmatmul.mubr.bf16.gmra.mrb[40].mxu1 %v1985_v56 }
 0x22a   : > { %v1766_v45 = vpop.permute.xlu0 %1765 }
 0x22b   : > { %v2037_v4 = vsel %vm1059_vm3, %v10668_v5, %v1766_v45  ;;  %v1624_v5 = vpop.permute.xlu1 %1623 }
 0x22c   : > { %v2072_v12 = vsel %vm1917_vm5, %v2037_v4, %v1814_v47  ;;  %v1910_v7 = vsel %vm1059_vm3, %v10434_v39, %v1624_v5 }
 0x22d   : > { %v2116_v54 = vsel %vm1950_vm12, %v2072_v12, %v1862_v9 }
 0x22e   : > { %v1818_v8 = vpop.permute.xlu0 %1817  ;;  %2454 = vmatprep.mubr.bf16.mxu1 %v2116_v54  ;;  %v9309_v54 = vld [vmem:[%s13374_s5 + $0x58] sm:$0xff]  }
 0x22f   : > { %v1672_v18 = vpop.permute.xlu1 %1671 }
 0x230   : > { %v1945_v52 = vsel %vm1917_vm5, %v1910_v7, %v1672_v18 }
 0x231   : > { %2455 = vmatmul.mubr.bf16.gmra.mrb[44].mxu1 %v1988_v62  ;;  %v1991_v46 = vsel %vm1950_vm12, %v1945_v52, %v1720_v15  ;;  %v9308_v15 = vld [vmem:[%s13374_s5 + $0x10] sm:$0xff]  }
 0x232   : > { %v1866_v25 = vpop.permute.xlu0 %1865 }
 0x233   : > { %v1674_v19 = vpop.permute.xlu1 %1673 }
 0x234   : > { %v1947_v47 = vsel %vm1917_vm5, %v1913_v17, %v1674_v19 }
 0x236   : > { %v1816_v35 = vpop.permute.xlu0 %1815 }
 0x237   : > { %v2074_v34 = vsel %vm1917_vm5, %v2040_v36, %v1816_v35  ;;  %v1722_v39 = vpop.permute.xlu1 %1721  ;;  %v9311_v35 = vld [vmem:[%s13374_s5 + $0x60] sm:$0xff]  }
 0x238   : > { %v1994_v38 = vsel %vm1950_vm12, %v1947_v47, %v1722_v39 }
 0x23a   : > { %v1864_v50 = vpop.permute.xlu0 %1863 }
 0x23b   : > { %v2119_v63 = vsel %vm1950_vm12, %v2074_v34, %v1864_v50  ;;  %v1628_v28 = vpop.permute.xlu1 %1627  ;;  %v9312_v34 = vld [vmem:[%s13374_s5 + $0x20] sm:$0xff]  }
 0x23c   : > { %2462 = vmatprep.mubr.bf16.mxu1 %v2119_v63  ;;  %v1916_v43 = vsel %vm1059_vm3, %v10478_v6, %v1628_v28  ;;  %v9304_v6 = vld [vmem:[%s13374_s5] sm:$0xff]  }
 0x23d   : > { %2463 = vmatmul.mubr.bf16.gmra.mrb[48].mxu1 %v1991_v46 }
 0x23e   : > { %v1770_v40 = vpop.permute.xlu0 %1769 }
 0x23f   : > { %v2043_v21 = vsel %vm1059_vm3, %v10736_v61, %v1770_v40  ;;  %v1676_v29 = vpop.permute.xlu1 %1675  ;;  %v9313_v40 = vld [vmem:[%s13374_s5 + $0x68] sm:$0xff]  }
 0x240   : > { %v2076_v31 = vsel %vm1917_vm5, %v2043_v21, %v1818_v8  ;;  %v1949_v24 = vsel %vm1917_vm5, %v1916_v43, %v1676_v29 }
 0x241   : > { %v2122_v59 = vsel %vm1950_vm12, %v2076_v31, %v1866_v25  ;;  %v9314_v31 = vld [vmem:[%s13374_s5 + $0x28] sm:$0xff]  }
 0x242   : > { %v1772_v55 = vpop.permute.xlu0 %1771  ;;  %2470 = vmatprep.mubr.bf16.mxu1 %v2122_v59 }
 0x243   : > { %v2046_v61 = vsel %vm1059_vm3, %v10709_v23, %v1772_v55  ;;  %v1724_v27 = vpop.permute.xlu1 %1723  ;;  %v9303_v23 = vld [vmem:[%s13374_s5 + $0x40] sm:$0xff]  }
 0x244   : > { %v1997_v0 = vsel %vm1950_vm12, %v1949_v24, %v1724_v27  ;;  %8448 = vmatprep.subr.bf16.mxu0 %v9303_v23  ;;  %v9315_v24 = vld [vmem:[%s13374_s5 + $0x70] sm:$0xff]  }
 0x245   : > { %2471 = vmatmul.mubr.bf16.gmra.mrb[52].mxu1 %v1994_v38  ;;  %8449 = vmatpush3.bf16.msra.mxu0 %v9304_v6 }
 0x246   : > { %v1820_v44 = vpop.permute.xlu0 %1819  ;;  %8450 = vmatprep.subr.bf16.mxu0 %v9305_v53 }
 0x247   : > { %v2078_v9 = vsel %vm1917_vm5, %v2046_v61, %v1820_v44 }
 0x249   : > { %8451 = vmatpush3.bf16.msra.mxu0 %v9306_v10 }
 0x24a   : > { %v1868_v20 = vpop.permute.xlu0 %1867  ;;  %8452 = vmatprep.subr.bf16.mxu0 %v9307_v58 }
 0x24b   : > { %v2125_v11 = vsel %vm1950_vm12, %v2078_v9, %v1868_v20 }
 0x24c   : > { %2478 = vmatprep.mubr.bf16.mxu1 %v2125_v11 }
 0x24d   : > { %2479 = vmatmul.mubr.bf16.gmra.mrb[56].mxu1 %v1997_v0  ;;  %8453 = vmatpush3.bf16.msra.mxu0 %v9308_v15 }
 0x24e   : > { %8454 = vmatprep.subr.bf16.mxu0 %v9309_v54 }
 0x251   : > { %8455 = vmatpush3.bf16.msra.mxu0 %v9310_v2 }
 0x252   : > { %8456 = vmatprep.subr.bf16.mxu0 %v9311_v35 }
 0x255   : > { %8457 = vmatpush3.bf16.msra.mxu0 %v9312_v34 }
 0x256   : > { %8458 = vmatprep.subr.bf16.mxu0 %v9313_v40 }
 0x259   : > { %8459 = vmatpush3.bf16.msra.mxu0 %v9314_v31 }
 0x25a   : > { %8460 = vmatprep.subr.bf16.mxu0 %v9315_v24 }
 0x26e   : > { %v8334_v30 = vpop.f32.mrb[32].mxu0 }
 0x26f   : > { %v8335_v13 = vpop.f32.mrb[33].mxu0 }
 0x270   : > { %v8336_v48 = vadd.f32 %v8335_v13, %v8334_v30  ;;  %v8337_v51 = vpop.f32.mrb[34].mxu0  ;;  %v9316_v30 = vld [vmem:[%s13374_s5 + $0x30] sm:$0xff]  }
 0x271   : > { %v8338_v37 = vpop.f32.mrb[35].mxu0  ;;  %8461 = vmatpush3.bf16.msra.mxu0 %v9316_v30 }
 0x272   : > { %v8339_v22 = vadd.f32 %v8338_v37, %v8337_v51  ;;  %v2361_v1 = vadd.f32 %v8336_v48, %v10921_v60  ;;  %v9317_v51 = vld [vmem:[%s13374_s5 + $0x78] sm:$0xff]  }
 0x273   : > { %8462 = vmatprep.subr.bf16.mxu0 %v9317_v51 }
 0x274   : > { %v2364_v45 = vadd.f32 %v8339_v22, %v10921_v60 }
 0x276   : > { %v8914_v32 = vpop.f32.mrb[36].mxu0 }
 0x277   : > { %v2521_v16 = vpop.f32.mrb[37].mxu0 }
 0x278   : > { %v2522_v14 = vadd.f32 %v2521_v16, %v2361_v1  ;;  %v8915_v56 = vpop.f32.mrb[38].mxu0 }
 0x279   : > { %v2524_v4 = vpop.f32.mrb[39].mxu0 }
 0x27a   : > { %vm2648_vm4 = vcmp.ge.f32.partialorder %v2522_v14, 0.0  ;;  %v2680_v42 = vmul.f32 0.1, %v2522_v14  ;;  %v2525_v12 = vadd.f32 %v2524_v4, %v2364_v45 }
 0x27c   : > { %v10940_v3 = vsel %vm2648_vm4, %v2522_v14, %v2680_v42  ;;  %vm2649_vm13 = vcmp.ge.f32.partialorder %v2525_v12, 0.0  ;;  %v2681_v57 = vmul.f32 0.1, %v2525_v12 }
 0x27d   : > { %2798 = vst.msk [vmem:[#allocation2 + $0x19] sm:$0xff] %vm1059_vm3, %v10940_v3 }
 0x27e   : > { %v10944_v62 = vsel %vm2649_vm13, %v2525_v12, %v2681_v57  ;;  %v10946_v5 = vpop.f32.mrb[40].mxu0 }
 0x27f   : > { %2799 = vst.msk [vmem:[#allocation2 + $0x21] sm:$0xff] %vm1059_vm3, %v10944_v62  ;;  %v2537_v52 = vpop.f32.mrb[41].mxu0 }
 0x280   : > { %v10959_v50 = vpop.f32.mrb[42].mxu0 }
 0x281   : > { %v8340_v26 = vpop.f32.mrb[0].mxu1  ;;  %v2540_v46 = vpop.f32.mrb[43].mxu0 }
 0x282   : > { %v8341_v8 = vpop.f32.mrb[1].mxu1 }
 0x283   : > { %v8342_v49 = vadd.f32 %v8341_v8, %v8340_v26  ;;  %v8343_v41 = vpop.f32.mrb[2].mxu1 }
 0x284   : > { %v8344_v25 = vpop.f32.mrb[3].mxu1  ;;  %v2974_v55 = vld [vmem:[#allocation2 + $0x18] sm:$0xff] }
 0x285   : > { %v2369_v7 = vadd.f32 %v8342_v49, %v10921_v60  ;;  %v8345_v36 = vadd.f32 %v8344_v25, %v8343_v41  ;;  %v2880_v22 = vld [vmem:[#allocation2 + $0x19] sm:$0xff] }
 0x286   : > { %v10972_v47 = vpop.f32.mrb[44].mxu0  ;;  %v3070_v28 = vld [vmem:[#allocation2 + $0x1a] sm:$0xff]  ;;  %v3071_v38 = vld [vmem:[#allocation2 + $0x22] sm:$0xff] }
 0x287   : > { %v2530_v19 = vadd.f32 %v8914_v32, %v2369_v7  ;;  %v2372_v63 = vadd.f32 %v8345_v36, %v10921_v60  ;;  %v2975_v44 = vld [vmem:[#allocation2 + $0x20] sm:$0xff]  ;;  %v10976_v43 = vpop.f32.mrb[45].mxu0  ;;  %v3102_v9 = vpack.c.bf16 %v3071_v38, %v3070_v28  ;;  %v9318_v32 = vld [vmem:[%s13374_s5 + $0x38] sm:$0xff]  }
 0x288   : > { %v3006_v20 = vpack.c.bf16 %v2975_v44, %v2974_v55  ;;  %v10983_v11 = vpop.f32.mrb[46].mxu0  ;;  %v2881_v0 = vld [vmem:[#allocation2 + $0x21] sm:$0xff]  ;;  %8463 = vmatpush3.bf16.msra.mxu0 %v9318_v32 }
 0x289   : > { %vm2650_vm14 = vcmp.ge.f32.partialorder %v2530_v19, 0.0  ;;  %v2682_v21 = vmul.f32 0.1, %v2530_v19  ;;  %v2533_v39 = vadd.f32 %v8915_v56, %v2372_v63  ;;  %v8346_v61 = vpop.f32.mrb[4].mxu1  ;;  %v10990_v48 = vpop.f32.mrb[47].mxu0  ;;  %3422 = vrot.lane.b32.xlu0 %v3102_v9, %s13276_s23  ;;  %v10998_v58 = vpack.c.bf16 %v2881_v0, %v2880_v22 }
 0x28a   : > { %v8347_v27 = vpop.f32.mrb[5].mxu1  ;;  %3374 = vrot.lane.b32.xlu1 %v3006_v20, %s13382_s27 }
 0x28b   : > { %v10968_v59 = vsel %vm2650_vm14, %v2530_v19, %v2682_v21  ;;  %vm2651_vm15 = vcmp.ge.f32.partialorder %v2533_v39, 0.0  ;;  %v2683_v17 = vmul.f32 0.1, %v2533_v39  ;;  %v8348_v13 = vadd.f32 %v8347_v27, %v8346_v61  ;;  %v8349_v6 = vpop.f32.mrb[6].mxu1 }
 0x28c   : > { %2800 = vst.msk [vmem:[#allocation2 + $0x31] sm:$0xff] %vm1059_vm3, %v10968_v59  ;;  %v8350_v37 = vpop.f32.mrb[7].mxu1 }
 0x28d   : > { %v10974_v29 = vsel %vm2651_vm15, %v2533_v39, %v2683_v17  ;;  %v2377_v53 = vadd.f32 %v8348_v13, %v10921_v60  ;;  %v8351_v10 = vadd.f32 %v8350_v37, %v8349_v6 }
 0x28e   : > { %2801 = vst.msk [vmem:[#allocation2 + $0x39] sm:$0xff] %vm1059_vm3, %v10974_v29  ;;  %3280 = vrot.lane.b32.xlu1 %v10998_v58, %s13276_s23  ;;  %v11006_v15 = vpop.f32.mrb[48].mxu0 }
 0x28f   : > { %v2538_v1 = vadd.f32 %v2537_v52, %v2377_v53  ;;  %v2380_v16 = vadd.f32 %v8351_v10, %v10921_v60  ;;  %v11008_v45 = vpop.f32.mrb[49].mxu0 }
 0x290   : > { %v11010_v12 = vpop.f32.mrb[50].mxu0 }
 0x291   : > { %vm2652_vm0 = vcmp.ge.f32.partialorder %v2538_v1, 0.0  ;;  %v2684_v14 = vmul.f32 0.1, %v2538_v1  ;;  %v2541_v56 = vadd.f32 %v2540_v46, %v2380_v16  ;;  %v11014_v49 = vpop.f32.mrb[51].mxu0 }
 0x292   : > { %3328 = vrot.lane.b32.xlu1 %v3102_v9, %s13272_s26 }
 0x293   : > { %v3118_v26 = vld [vmem:[#allocation2 + $0x30] sm:$0xff]  ;;  %v11012_v57 = vsel %vm2652_vm0, %v2538_v1, %v2684_v14  ;;  %vm2653_vm1 = vcmp.ge.f32.partialorder %v2541_v56, 0.0  ;;  %v2685_v8 = vmul.f32 0.1, %v2541_v56 }
 0x294   : > { %2802 = vst.msk [vmem:[#allocation2 + $0x49] sm:$0xff] %vm1059_vm3, %v11012_v57  ;;  %v3166_v52 = vld [vmem:[#allocation2 + $0x31] sm:$0xff] }
 0x295   : > { %v3214_v4 = vld [vmem:[#allocation2 + $0x32] sm:$0xff]  ;;  %v3215_v42 = vld [vmem:[#allocation2 + $0x3a] sm:$0xff]  ;;  %v11020_v35 = vsel %vm2653_vm1, %v2541_v56, %v2685_v8 }
 0x296   : > { %v3246_v54 = vpack.c.bf16 %v3215_v42, %v3214_v4  ;;  %v3119_v2 = vld [vmem:[#allocation2 + $0x38] sm:$0xff]  ;;  %2803 = vst.msk [vmem:[#allocation2 + $0x51] sm:$0xff] %vm1059_vm3, %v11020_v35  ;;  %v11028_v21 = vpop.f32.mrb[52].mxu0 }
 0x297   : > { %v3150_v41 = vpack.c.bf16 %v3119_v2, %v3118_v26  ;;  %v3167_v25 = vld [vmem:[#allocation2 + $0x39] sm:$0xff]  ;;  %v11032_v17 = vpop.f32.mrb[53].mxu0 }
 0x298   : > { %8948 = vmatprep.mubr.msk.bf16.mxu1 %vm1059_vm3, %v3246_v54  ;;  %v3198_v46 = vpack.c.bf16 %v3167_v25, %v3166_v52  ;;  %v11034_v55 = vpop.f32.mrb[54].mxu0 }
 0x299   : > { %3470 = vrot.lane.b32.xlu0 %v3150_v41, %s13272_s26  ;;  %3376 = vrot.lane.b32.xlu1 %v3150_v41, %s13382_s27  ;;  %v11038_v44 = vpop.f32.mrb[55].mxu0 }
 0x29b   : > { %v3120_v61 = vld [vmem:[#allocation2 + $0x48] sm:$0xff] }
 0x29c   : > { %v8352_v7 = vpop.f32.mrb[8].mxu1  ;;  %v3168_v1 = vld [vmem:[#allocation2 + $0x49] sm:$0xff] }
 0x29d   : > { %v8353_v36 = vpop.f32.mrb[9].mxu1  ;;  %3518 = vrot.lane.b32.xlu0 %v3198_v46, %s13382_s27  ;;  %3282 = vrot.lane.b32.xlu1 %v3198_v46, %s13276_s23  ;;  %v3216_v24 = vld [vmem:[#allocation2 + $0x4a] sm:$0xff]  ;;  %v3217_v27 = vld [vmem:[#allocation2 + $0x52] sm:$0xff] }
 0x29e   : > { %v8354_v19 = vadd.f32 %v8353_v36, %v8352_v7  ;;  %v8355_v63 = vpop.f32.mrb[10].mxu1  ;;  %v3121_v0 = vld [vmem:[#allocation2 + $0x50] sm:$0xff]  ;;  %v3247_v30 = vpack.c.bf16 %v3217_v27, %v3216_v24  ;;  %v11049_v51 = vpop.f32.mrb[56].mxu0 }
 0x29f   : > { %v8356_v40 = vpop.f32.mrb[11].mxu1  ;;  %v3151_v13 = vpack.c.bf16 %v3121_v0, %v3120_v61  ;;  %v11054_v53 = vpop.f32.mrb[57].mxu0 }
 0x2a0   : > { %v2385_v39 = vadd.f32 %v8354_v19, %v10921_v60  ;;  %v8357_v31 = vadd.f32 %v8356_v40, %v8355_v63  ;;  %8949 = vmatmul.mubr.msk.bf16.vlgmr.msra.gmra.mrb[60].mxu1 %vm1059_vm3, %v3247_v30  ;;  %v11058_v32 = vpop.f32.mrb[58].mxu0 }
 0x2a1   : > { %3424 = vrot.lane.b32.xlu0 %v3246_v54, %s13276_s23  ;;  %3330 = vrot.lane.b32.xlu1 %v3246_v54, %s13272_s26  ;;  %v11062_v4 = vpop.f32.mrb[59].mxu0 }
 0x2a2   : > { %v2546_v28 = vadd.f32 %v10946_v5, %v2385_v39  ;;  %v2388_v38 = vadd.f32 %v8357_v31, %v10921_v60 }
 0x2a4   : > { %vm2654_vm2 = vcmp.ge.f32.partialorder %v2546_v28, 0.0  ;;  %v2686_v9 = vmul.f32 0.1, %v2546_v28  ;;  %v2549_v20 = vadd.f32 %v10959_v50, %v2388_v38  ;;  %v3169_v50 = vld [vmem:[#allocation2 + $0x51] sm:$0xff] }
 0x2a5   : > { %v8358_v22 = vpop.f32.mrb[12].mxu1  ;;  %3472 = vrot.lane.b32.xlu0 %v3151_v13, %s13272_s26  ;;  %3378 = vrot.lane.b32.xlu1 %v3151_v13, %s13382_s27  ;;  %v3199_v42 = vpack.c.bf16 %v3169_v50, %v3168_v1 }
 0x2a6   : > { %v11043_v6 = vsel %vm2654_vm2, %v2546_v28, %v2686_v9  ;;  %vm2655_vm6 = vcmp.ge.f32.partialorder %v2549_v20, 0.0  ;;  %v2687_v5 = vmul.f32 0.1, %v2549_v20  ;;  %v8359_v10 = vpop.f32.mrb[13].mxu1  ;;  %v11070_v25 = vpop.f32.mrb[60].mxu0 }
 0x2a7   : > { %2804 = vst.msk [vmem:[#allocation2 + $0x61] sm:$0xff] %vm1059_vm3, %v11043_v6  ;;  %v8360_v14 = vadd.f32 %v8359_v10, %v8358_v22  ;;  %v8361_v56 = vpop.f32.mrb[14].mxu1  ;;  %v11074_v52 = vpop.f32.mrb[61].mxu0 }
 0x2a8   : > { %v11051_v37 = vsel %vm2655_vm6, %v2549_v20, %v2687_v5  ;;  %v8362_v54 = vpop.f32.mrb[15].mxu1  ;;  %v11076_v46 = vpop.f32.mrb[62].mxu0 }
 0x2a9   : > { %2805 = vst.msk [vmem:[#allocation2 + $0x69] sm:$0xff] %vm1059_vm3, %v11051_v37  ;;  %v2393_v26 = vadd.f32 %v8360_v14, %v10921_v60  ;;  %v8363_v2 = vadd.f32 %v8362_v54, %v8361_v56  ;;  %3520 = vrot.lane.b32.xlu0 %v3199_v42, %s13382_s27  ;;  %3284 = vrot.lane.b32.xlu1 %v3199_v42, %s13276_s23  ;;  %v11080_v38 = vpop.f32.mrb[63].mxu0 }
 0x2ab   : > { %v2554_v8 = vadd.f32 %v10976_v43, %v2393_v26  ;;  %v2396_v41 = vadd.f32 %v8363_v2, %v10921_v60 }
 0x2ad   : > { %vm2656_vm7 = vcmp.ge.f32.partialorder %v2554_v8, 0.0  ;;  %v2688_v7 = vmul.f32 0.1, %v2554_v8  ;;  %v2557_v36 = vadd.f32 %v10990_v48, %v2396_v41  ;;  %3426 = vrot.lane.b32.xlu0 %v3247_v30, %s13276_s23  ;;  %3332 = vrot.lane.b32.xlu1 %v3247_v30, %s13272_s26 }
 0x2ae   : > { %v3122_v43 = vld [vmem:[#allocation2 + $0x60] sm:$0xff]  ;;  %v11094_v22 = vpop.f32.mrb[64].mxu0 }
 0x2af   : > { %v11078_v31 = vsel %vm2656_vm7, %v2554_v8, %v2688_v7  ;;  %vm2657_vm8 = vcmp.ge.f32.partialorder %v2557_v36, 0.0  ;;  %v2689_v28 = vmul.f32 0.1, %v2557_v36  ;;  %v3170_v27 = vld [vmem:[#allocation2 + $0x61] sm:$0xff]  ;;  %v11098_v14 = vpop.f32.mrb[65].mxu0 }
 0x2b0   : > { %v3218_v19 = vld [vmem:[#allocation2 + $0x62] sm:$0xff]  ;;  %v3219_v63 = vld [vmem:[#allocation2 + $0x6a] sm:$0xff]  ;;  %2806 = vst.msk [vmem:[#allocation2 + $0x79] sm:$0xff] %vm1059_vm3, %v11078_v31  ;;  %v11100_v56 = vpop.f32.mrb[66].mxu0 }
 0x2b1   : > { %v3248_v40 = vpack.c.bf16 %v3219_v63, %v3218_v19  ;;  %v3123_v39 = vld [vmem:[#allocation2 + $0x68] sm:$0xff]  ;;  %v11086_v9 = vsel %vm2657_vm8, %v2557_v36, %v2689_v28  ;;  %v11105_v26 = vpop.f32.mrb[67].mxu0 }
 0x2b2   : > { %v3152_v48 = vpack.c.bf16 %v3123_v39, %v3122_v43  ;;  %v3171_v61 = vld [vmem:[#allocation2 + $0x69] sm:$0xff]  ;;  %2807 = vst.msk [vmem:[#allocation2 + $0x81] sm:$0xff] %vm1059_vm3, %v11086_v9 }
 0x2b3   : > { %8952 = vmatprep.mubr.msk.bf16.mxu1 %vm1059_vm3, %v3248_v40  ;;  %v3200_v5 = vpack.c.bf16 %v3171_v61, %v3170_v27 }
 0x2b4   : > { %3474 = vrot.lane.b32.xlu0 %v3152_v48, %s13272_s26  ;;  %v8364_v20 = vpop.f32.mrb[16].mxu1  ;;  %3380 = vrot.lane.b32.xlu1 %v3152_v48, %s13382_s27 }
 0x2b5   : > { %v8365_v24 = vpop.f32.mrb[17].mxu1 }
 0x2b6   : > { %v8366_v30 = vadd.f32 %v8365_v24, %v8364_v20  ;;  %v8367_v13 = vpop.f32.mrb[18].mxu1 }
 0x2b7   : > { %v8368_v50 = vpop.f32.mrb[19].mxu1  ;;  %v3124_v2 = vld [vmem:[#allocation2 + $0x78] sm:$0xff] }
 0x2b8   : > { %v2401_v10 = vadd.f32 %v8366_v30, %v10921_v60  ;;  %v8369_v1 = vadd.f32 %v8368_v50, %v8367_v13  ;;  %3522 = vrot.lane.b32.xlu0 %v3200_v5, %s13382_s27  ;;  %3286 = vrot.lane.b32.xlu1 %v3200_v5, %s13276_s23  ;;  %v3172_v27 = vld [vmem:[#allocation2 + $0x79] sm:$0xff] }
 0x2b9   : > { %v3220_v7 = vld [vmem:[#allocation2 + $0x7a] sm:$0xff]  ;;  %v3221_v36 = vld [vmem:[#allocation2 + $0x82] sm:$0xff] }
 0x2ba   : > { %v2562_v42 = vadd.f32 %v10972_v47, %v2401_v10  ;;  %v2404_v54 = vadd.f32 %v8369_v1, %v10921_v60  ;;  %v3125_v19 = vld [vmem:[#allocation2 + $0x80] sm:$0xff]  ;;  %v3249_v63 = vpack.c.bf16 %v3221_v36, %v3220_v7 }
 0x2bb   : > { %v3153_v43 = vpack.c.bf16 %v3125_v19, %v3124_v2 }
 0x2bc   : > { %vm2658_vm9 = vcmp.ge.f32.partialorder %v2562_v42, 0.0  ;;  %v2690_v8 = vmul.f32 0.1, %v2562_v42  ;;  %v2565_v41 = vadd.f32 %v10983_v11, %v2404_v54  ;;  %3428 = vrot.lane.b32.xlu0 %v3248_v40, %s13276_s23  ;;  %3334 = vrot.lane.b32.xlu1 %v3248_v40, %s13272_s26  ;;  %v8370_v28 = vpop.f32.mrb[20].mxu1  ;;  %v3173_v11 = vld [vmem:[#allocation2 + $0x81] sm:$0xff] }
 0x2bd   : > { %8953 = vmatmul.mubr.msk.bf16.gmra.mrb[64].mxu1 %vm1059_vm3, %v3249_v63  ;;  %v8371_v61 = vpop.f32.mrb[21].mxu1  ;;  %v3201_v13 = vpack.c.bf16 %v3173_v11, %v3172_v27 }
 0x2be   : > { %v11109_v39 = vsel %vm2658_vm9, %v2562_v42, %v2690_v8  ;;  %vm2659_vm10 = vcmp.ge.f32.partialorder %v2565_v41, 0.0  ;;  %v2691_v47 = vmul.f32 0.1, %v2565_v41  ;;  %v8372_v20 = vadd.f32 %v8371_v61, %v8370_v28  ;;  %v8373_v24 = vpop.f32.mrb[22].mxu1 }
 0x2bf   : > { %2808 = vst.msk [vmem:[#allocation2 + $0x91] sm:$0xff] %vm1059_vm3, %v11109_v39  ;;  %v8374_v30 = vpop.f32.mrb[23].mxu1 }
 0x2c0   : > { %v11115_v48 = vsel %vm2659_vm10, %v2565_v41, %v2691_v47  ;;  %3476 = vrot.lane.b32.xlu0 %v3153_v43, %s13272_s26  ;;  %3382 = vrot.lane.b32.xlu1 %v3153_v43, %s13382_s27  ;;  %v2409_v5 = vadd.f32 %v8372_v20, %v10921_v60  ;;  %v8375_v50 = vadd.f32 %v8374_v30, %v8373_v24 }
 0x2c1   : > { %2809 = vst.msk [vmem:[#allocation2 + $0x99] sm:$0xff] %vm1059_vm3, %v11115_v48 }
 0x2c2   : > { %v2570_v10 = vadd.f32 %v11008_v45, %v2409_v5  ;;  %v2412_v1 = vadd.f32 %v8375_v50, %v10921_v60 }
 0x2c4   : > { %3524 = vrot.lane.b32.xlu0 %v3201_v13, %s13382_s27  ;;  %3288 = vrot.lane.b32.xlu1 %v3201_v13, %s13276_s23  ;;  %vm2660_vm11 = vcmp.ge.f32.partialorder %v2570_v10, 0.0  ;;  %v2692_v42 = vmul.f32 0.1, %v2570_v10  ;;  %v2573_v54 = vadd.f32 %v11014_v49, %v2412_v1 }
 0x2c6   : > { %v11130_v7 = vsel %vm2660_vm11, %v2570_v10, %v2692_v42  ;;  %vm2661_vm4 = vcmp.ge.f32.partialorder %v2573_v54, 0.0  ;;  %v2693_v36 = vmul.f32 0.1, %v2573_v54  ;;  %v3126_v43 = vld [vmem:[#allocation2 + $0x90] sm:$0xff] }
 0x2c7   : > { %2810 = vst.msk [vmem:[#allocation2 + $0xa9] sm:$0xff] %vm1059_vm3, %v11130_v7  ;;  %v3174_v20 = vld [vmem:[#allocation2 + $0x91] sm:$0xff] }
 0x2c8   : > { %3430 = vrot.lane.b32.xlu0 %v3249_v63, %s13276_s23  ;;  %v3222_v2 = vld [vmem:[#allocation2 + $0x92] sm:$0xff]  ;;  %v3223_v8 = vld [vmem:[#allocation2 + $0x9a] sm:$0xff]  ;;  %3336 = vrot.lane.b32.xlu1 %v3249_v63, %s13272_s26  ;;  %v11135_v47 = vsel %vm2661_vm4, %v2573_v54, %v2693_v36 }
 0x2c9   : > { %v3127_v41 = vld [vmem:[#allocation2 + $0x98] sm:$0xff]  ;;  %v3250_v19 = vpack.c.bf16 %v3223_v8, %v3222_v2  ;;  %2811 = vst.msk [vmem:[#allocation2 + $0xb1] sm:$0xff] %vm1059_vm3, %v11135_v47 }
 0x2ca   : > { %v3154_v45 = vpack.c.bf16 %v3127_v41, %v3126_v43  ;;  %v3175_v49 = vld [vmem:[#allocation2 + $0x99] sm:$0xff] }
 0x2cb   : > { %8956 = vmatprep.mubr.msk.bf16.mxu1 %vm1059_vm3, %v3250_v19  ;;  %v3202_v63 = vpack.c.bf16 %v3175_v49, %v3174_v20 }
 0x2cc   : > { %3478 = vrot.lane.b32.xlu0 %v3154_v45, %s13272_s26  ;;  %v8376_v28 = vpop.f32.mrb[24].mxu1  ;;  %3384 = vrot.lane.b32.xlu1 %v3154_v45, %s13382_s27 }
 0x2cd   : > { %v8377_v61 = vpop.f32.mrb[25].mxu1 }
 0x2ce   : > { %v8378_v24 = vadd.f32 %v8377_v61, %v8376_v28  ;;  %v8379_v27 = vpop.f32.mrb[26].mxu1  ;;  %v3128_v36 = vld [vmem:[#allocation2 + $0xa8] sm:$0xff] }
 0x2cf   : > { %v8380_v30 = vpop.f32.mrb[27].mxu1 }
 0x2d0   : > { %v2417_v13 = vadd.f32 %v8378_v24, %v10921_v60  ;;  %v8381_v5 = vadd.f32 %v8380_v30, %v8379_v27  ;;  %3526 = vrot.lane.b32.xlu0 %v3202_v63, %s13382_s27  ;;  %3290 = vrot.lane.b32.xlu1 %v3202_v63, %s13276_s23  ;;  %v3224_v1 = vld [vmem:[#allocation2 + $0xaa] sm:$0xff]  ;;  %v3225_v42 = vld [vmem:[#allocation2 + $0xb2] sm:$0xff] }
 0x2d1   : > { %v3129_v54 = vld [vmem:[#allocation2 + $0xb0] sm:$0xff]  ;;  %v3251_v41 = vpack.c.bf16 %v3225_v42, %v3224_v1 }
 0x2d2   : > { %v2578_v50 = vadd.f32 %v11006_v15, %v2417_v13  ;;  %v2420_v10 = vadd.f32 %v8381_v5, %v10921_v60  ;;  %v3155_v43 = vpack.c.bf16 %v3129_v54, %v3128_v36  ;;  %v3177_v28 = vld [vmem:[#allocation2 + $0xb1] sm:$0xff]  ;;  %v3176_v27 = vld [vmem:[#allocation2 + $0xa9] sm:$0xff] }
 0x2d3   : > { %8957 = vmatmul.mubr.msk.bf16.gmra.mrb[68].mxu1 %vm1059_vm3, %v3251_v41  ;;  %v3203_v30 = vpack.c.bf16 %v3177_v28, %v3176_v27 }
 0x2d4   : > { %vm2662_vm13 = vcmp.ge.f32.partialorder %v2578_v50, 0.0  ;;  %v2694_v2 = vmul.f32 0.1, %v2578_v50  ;;  %v2581_v8 = vadd.f32 %v11010_v12, %v2420_v10  ;;  %3432 = vrot.lane.b32.xlu0 %v3250_v19, %s13276_s23  ;;  %3338 = vrot.lane.b32.xlu1 %v3250_v19, %s13272_s26  ;;  %v8382_v49 = vpop.f32.mrb[28].mxu1 }
 0x2d5   : > { %v8383_v12 = vpop.f32.mrb[29].mxu1 }
 0x2d6   : > { %v11151_v45 = vsel %vm2662_vm13, %v2578_v50, %v2694_v2  ;;  %vm2663_vm14 = vcmp.ge.f32.partialorder %v2581_v8, 0.0  ;;  %v2695_v15 = vmul.f32 0.1, %v2581_v8  ;;  %v8384_v20 = vadd.f32 %v8383_v12, %v8382_v49  ;;  %v8385_v24 = vpop.f32.mrb[30].mxu1 }
 0x2d7   : > { %2812 = vst.msk [vmem:[#allocation2 + $0xc1] sm:$0xff] %vm1059_vm3, %v11151_v45  ;;  %v8386_v19 = vpop.f32.mrb[31].mxu1 }
 0x2d8   : > { %v11157_v61 = vsel %vm2663_vm14, %v2581_v8, %v2695_v15  ;;  %3480 = vrot.lane.b32.xlu0 %v3155_v43, %s13272_s26  ;;  %3386 = vrot.lane.b32.xlu1 %v3155_v43, %s13382_s27  ;;  %v2425_v13 = vadd.f32 %v8384_v20, %v10921_v60  ;;  %v8387_v5 = vadd.f32 %v8386_v19, %v8385_v24 }
 0x2d9   : > { %2813 = vst.msk [vmem:[#allocation2 + $0xc9] sm:$0xff] %vm1059_vm3, %v11157_v61 }
 0x2da   : > { %v2586_v50 = vadd.f32 %v11032_v17, %v2425_v13  ;;  %v2428_v10 = vadd.f32 %v8387_v5, %v10921_v60 }
 0x2dc   : > { %3528 = vrot.lane.b32.xlu0 %v3203_v30, %s13382_s27  ;;  %3292 = vrot.lane.b32.xlu1 %v3203_v30, %s13276_s23  ;;  %vm2664_vm15 = vcmp.ge.f32.partialorder %v2586_v50, 0.0  ;;  %v2696_v1 = vmul.f32 0.1, %v2586_v50  ;;  %v2589_v42 = vadd.f32 %v11038_v44, %v2428_v10 }
 0x2de   : > { %v11172_v36 = vsel %vm2664_vm15, %v2586_v50, %v2696_v1  ;;  %vm2665_vm0 = vcmp.ge.f32.partialorder %v2589_v42, 0.0  ;;  %v2697_v43 = vmul.f32 0.1, %v2589_v42  ;;  %v3130_v49 = vld [vmem:[#allocation2 + $0xc0] sm:$0xff] }
 0x2df   : > { %2814 = vst.msk [vmem:[#allocation2 + $0xd9] sm:$0xff] %vm1059_vm3, %v11172_v36  ;;  %v3178_v27 = vld [vmem:[#allocation2 + $0xc1] sm:$0xff] }
 0x2e0   : > { %3434 = vrot.lane.b32.xlu0 %v3251_v41, %s13276_s23  ;;  %v3226_v54 = vld [vmem:[#allocation2 + $0xc2] sm:$0xff]  ;;  %v3227_v2 = vld [vmem:[#allocation2 + $0xca] sm:$0xff]  ;;  %3340 = vrot.lane.b32.xlu1 %v3251_v41, %s13272_s26  ;;  %v11177_v28 = vsel %vm2665_vm0, %v2589_v42, %v2697_v43 }
 0x2e1   : > { %v3131_v8 = vld [vmem:[#allocation2 + $0xc8] sm:$0xff]  ;;  %v3252_v15 = vpack.c.bf16 %v3227_v2, %v3226_v54  ;;  %2815 = vst.msk [vmem:[#allocation2 + $0xe1] sm:$0xff] %vm1059_vm3, %v11177_v28 }
 0x2e2   : > { %v3156_v17 = vpack.c.bf16 %v3131_v8, %v3130_v49  ;;  %v3179_v44 = vld [vmem:[#allocation2 + $0xc9] sm:$0xff] }
 0x2e3   : > { %8960 = vmatprep.mubr.msk.bf16.mxu1 %vm1059_vm3, %v3252_v15  ;;  %v3204_v41 = vpack.c.bf16 %v3179_v44, %v3178_v27 }
 0x2e4   : > { %3482 = vrot.lane.b32.xlu0 %v3156_v17, %s13272_s26  ;;  %v8388_v12 = vpop.f32.mrb[32].mxu1  ;;  %3388 = vrot.lane.b32.xlu1 %v3156_v17, %s13382_s27 }
 0x2e5   : > { %v8389_v24 = vpop.f32.mrb[33].mxu1 }
 0x2e6   : > { %v8390_v19 = vadd.f32 %v8389_v24, %v8388_v12  ;;  %v8391_v30 = vpop.f32.mrb[34].mxu1  ;;  %v3132_v17 = vld [vmem:[#allocation2 + $0xd8] sm:$0xff] }
 0x2e7   : > { %v8392_v13 = vpop.f32.mrb[35].mxu1 }
 0x2e8   : > { %v2433_v5 = vadd.f32 %v8390_v19, %v10921_v60  ;;  %v8393_v50 = vadd.f32 %v8392_v13, %v8391_v30  ;;  %3530 = vrot.lane.b32.xlu0 %v3204_v41, %s13382_s27  ;;  %3294 = vrot.lane.b32.xlu1 %v3204_v41, %s13276_s23  ;;  %v3228_v42 = vld [vmem:[#allocation2 + $0xda] sm:$0xff]  ;;  %v3229_v54 = vld [vmem:[#allocation2 + $0xe2] sm:$0xff] }
 0x2e9   : > { %v3133_v2 = vld [vmem:[#allocation2 + $0xe0] sm:$0xff]  ;;  %v3253_v49 = vpack.c.bf16 %v3229_v54, %v3228_v42 }
 0x2ea   : > { %v2594_v10 = vadd.f32 %v11028_v21, %v2433_v5  ;;  %v2436_v1 = vadd.f32 %v8393_v50, %v10921_v60  ;;  %v3157_v44 = vpack.c.bf16 %v3133_v2, %v3132_v17  ;;  %v3181_v24 = vld [vmem:[#allocation2 + $0xe1] sm:$0xff]  ;;  %v3180_v30 = vld [vmem:[#allocation2 + $0xd9] sm:$0xff] }
 0x2eb   : > { %8961 = vmatmul.mubr.msk.bf16.gmra.mrb[72].mxu1 %vm1059_vm3, %v3253_v49 }
 0x2ec   : > { %vm2666_vm1 = vcmp.ge.f32.partialorder %v2594_v10, 0.0  ;;  %v2698_v8 = vmul.f32 0.1, %v2594_v10  ;;  %v2597_v43 = vadd.f32 %v11034_v55, %v2436_v1  ;;  %3436 = vrot.lane.b32.xlu0 %v3252_v15, %s13276_s23  ;;  %3342 = vrot.lane.b32.xlu1 %v3252_v15, %s13272_s26  ;;  %v8394_v55 = vpop.f32.mrb[36].mxu1  ;;  %v3205_v15 = vpack.c.bf16 %v3181_v24, %v3180_v30  ;;  %v11214_v24 = vpop.permute.xlu1 %3278 }
 0x2ed   : > { %v8395_v19 = vpop.f32.mrb[37].mxu1 }
 0x2ee   : > { %v11193_v12 = vsel %vm2666_vm1, %v2594_v10, %v2698_v8  ;;  %vm2667_vm2 = vcmp.ge.f32.partialorder %v2597_v43, 0.0  ;;  %v2699_v21 = vmul.f32 0.1, %v2597_v43  ;;  %v8396_v13 = vadd.f32 %v8395_v19, %v8394_v55  ;;  %v8397_v5 = vpop.f32.mrb[38].mxu1 }
 0x2ef   : > { %2816 = vst.msk [vmem:[#allocation2 + $0xf1] sm:$0xff] %vm1059_vm3, %v11193_v12  ;;  %v8398_v50 = vpop.f32.mrb[39].mxu1 }
 0x2f0   : > { %v11199_v27 = vsel %vm2667_vm2, %v2597_v43, %v2699_v21  ;;  %3484 = vrot.lane.b32.xlu0 %v3157_v44, %s13272_s26  ;;  %3390 = vrot.lane.b32.xlu1 %v3157_v44, %s13382_s27  ;;  %v2441_v10 = vadd.f32 %v8396_v13, %v10921_v60  ;;  %v8399_v1 = vadd.f32 %v8398_v50, %v8397_v5 }
 0x2f1   : > { %2817 = vst.msk [vmem:[#allocation2 + $0xf9] sm:$0xff] %vm1059_vm3, %v11199_v27 }
 0x2f2   : > { %v2602_v42 = vadd.f32 %v11054_v53, %v2441_v10  ;;  %v2444_v54 = vadd.f32 %v8399_v1, %v10921_v60 }
 0x2f4   : > { %3532 = vrot.lane.b32.xlu0 %v3205_v15, %s13382_s27  ;;  %3296 = vrot.lane.b32.xlu1 %v3205_v15, %s13276_s23  ;;  %vm2668_vm6 = vcmp.ge.f32.partialorder %v2602_v42, 0.0  ;;  %v2700_v8 = vmul.f32 0.1, %v2602_v42  ;;  %v2605_v43 = vadd.f32 %v11062_v4, %v2444_v54  ;;  %v3327_v54 = vpop.permute.xlu1 %3326 }
 0x2f6   : > { %v3134_v2 = vld [vmem:[#allocation2 + $0xf0] sm:$0xff]  ;;  %v11216_v30 = vsel %vm2668_vm6, %v2602_v42, %v2700_v8  ;;  %vm2669_vm7 = vcmp.ge.f32.partialorder %v2605_v43, 0.0  ;;  %v2701_v53 = vmul.f32 0.1, %v2605_v43 }
 0x2f7   : > { %2818 = vst.msk [vmem:[#allocation2 + $0x109] sm:$0xff] %vm1059_vm3, %v11216_v30  ;;  %v3182_v50 = vld [vmem:[#allocation2 + $0xf1] sm:$0xff] }
 0x2f8   : > { %3438 = vrot.lane.b32.xlu0 %v3253_v49, %s13276_s23  ;;  %v3230_v17 = vld [vmem:[#allocation2 + $0xf2] sm:$0xff]  ;;  %v3231_v44 = vld [vmem:[#allocation2 + $0xfa] sm:$0xff]  ;;  %3344 = vrot.lane.b32.xlu1 %v3253_v49, %s13272_s26  ;;  %v11222_v13 = vsel %vm2669_vm7, %v2605_v43, %v2701_v53 }
 0x2f9   : > { %v3135_v21 = vld [vmem:[#allocation2 + $0xf8] sm:$0xff]  ;;  %v3254_v55 = vpack.c.bf16 %v3231_v44, %v3230_v17  ;;  %2819 = vst.msk [vmem:[#allocation2 + $0x111] sm:$0xff] %vm1059_vm3, %v11222_v13 }
 0x2fa   : > { %v3158_v19 = vpack.c.bf16 %v3135_v21, %v3134_v2  ;;  %v3183_v4 = vld [vmem:[#allocation2 + $0xf9] sm:$0xff] }
 0x2fb   : > { %8964 = vmatprep.mubr.msk.bf16.mxu1 %vm1059_vm3, %v3254_v55  ;;  %v3206_v42 = vpack.c.bf16 %v3183_v4, %v3182_v50 }
 0x2fc   : > { %3486 = vrot.lane.b32.xlu0 %v3158_v19, %s13272_s26  ;;  %v8400_v5 = vpop.f32.mrb[40].mxu1  ;;  %3392 = vrot.lane.b32.xlu1 %v3158_v19, %s13382_s27  ;;  %v11236_v19 = vpop.permute.xlu0 %3500 }
 0x2fd   : > { %v8401_v15 = vpop.f32.mrb[41].mxu1  ;;  %13383 = vst [vmem:[#allocation16_spill] sm:$0xff] %v11236_v19  ;;  %v11239_v4 = vpop.permute.xlu1 %3374 }
 0x2fe   : > { %v8402_v49 = vadd.f32 %v8401_v15, %v8400_v5  ;;  %v8403_v1 = vpop.f32.mrb[42].mxu1  ;;  %v3136_v21 = vld [vmem:[#allocation2 + $0x108] sm:$0xff] }
 0x2ff   : > { %v8404_v2 = vpop.f32.mrb[43].mxu1 }
 0x300   : > { %v2449_v8 = vadd.f32 %v8402_v49, %v10921_v60  ;;  %v8405_v43 = vadd.f32 %v8404_v2, %v8403_v1  ;;  %3534 = vrot.lane.b32.xlu0 %v3206_v42, %s13382_s27  ;;  %3298 = vrot.lane.b32.xlu1 %v3206_v42, %s13276_s23  ;;  %v3232_v15 = vld [vmem:[#allocation2 + $0x10a] sm:$0xff]  ;;  %v3233_v50 = vld [vmem:[#allocation2 + $0x112] sm:$0xff] }
 0x301   : > { %v3137_v49 = vld [vmem:[#allocation2 + $0x110] sm:$0xff]  ;;  %v2831_v42 = vld [vmem:[#allocation2 + $0x8] sm:$0xff] }
 0x302   : > { %v2610_v17 = vadd.f32 %v11049_v51, %v2449_v8  ;;  %v2452_v44 = vadd.f32 %v8405_v43, %v10921_v60  ;;  %v3255_v51 = vpack.c.bf16 %v3233_v50, %v3232_v15  ;;  %v11241_v2 = vpack.c.bf16 %v3137_v49, %v3136_v21  ;;  %v2830_v8 = vld [vmem:[#allocation2] sm:$0xff]  ;;  %v3185_v11 = vld [vmem:[#allocation2 + $0x111] sm:$0xff]  ;;  %v3184_v49 = vld [vmem:[#allocation2 + $0x109] sm:$0xff] }
 0x304   : > { %vm2670_vm8 = vcmp.ge.f32.partialorder %v2610_v17, 0.0  ;;  %v2702_v53 = vmul.f32 0.1, %v2610_v17  ;;  %v2613_v5 = vadd.f32 %v11058_v32, %v2452_v44  ;;  %3440 = vrot.lane.b32.xlu0 %v3254_v55, %s13276_s23  ;;  %v8406_v1 = vpop.f32.mrb[44].mxu1  ;;  %3346 = vrot.lane.b32.xlu1 %v3254_v55, %s13272_s26 }
 0x305   : > { %v8407_v32 = vpop.f32.mrb[45].mxu1  ;;  %8965 = vmatmul.mubr.msk.bf16.gmra.mrb[76].mxu1 %vm1059_vm3, %v3255_v51 }
 0x306   : > { %v11243_v43 = vsel %vm2670_vm8, %v2610_v17, %v2702_v53  ;;  %vm2671_vm9 = vcmp.ge.f32.partialorder %v2613_v5, 0.0  ;;  %v2703_v10 = vmul.f32 0.1, %v2613_v5  ;;  %v8408_v44 = vadd.f32 %v8407_v32, %v8406_v1  ;;  %v8409_v20 = vpop.f32.mrb[46].mxu1  ;;  %v11253_v17 = vpop.permute.xlu1 %3280 }
 0x307   : > { %2820 = vst.msk [vmem:[#allocation2 + $0x121] sm:$0xff] %vm1059_vm3, %v11243_v43  ;;  %v8410_v21 = vpop.f32.mrb[47].mxu1  ;;  %v2862_v53 = vpack.c.bf16 %v2831_v42, %v2830_v8  ;;  %v3423_v32 = vpop.permute.xlu0 %3422 }
 0x308   : > { %v11249_v15 = vsel %vm2671_vm9, %v2613_v5, %v2703_v10  ;;  %3488 = vrot.lane.b32.xlu0 %v11241_v2, %s13272_s26  ;;  %v2457_v55 = vadd.f32 %v8408_v44, %v10921_v60  ;;  %v8411_v50 = vadd.f32 %v8410_v21, %v8409_v20  ;;  %3394 = vrot.lane.b32.xlu1 %v11241_v2, %s13382_s27 }
 0x309   : > { %2821 = vst.msk [vmem:[#allocation2 + $0x129] sm:$0xff] %vm1059_vm3, %v11249_v15  ;;  %v11262_v10 = vpack.c.bf16 %v3185_v11, %v3184_v49  ;;  %v3552_v20 = vsel %vm1059_vm3, %v2862_v53, %v11214_v24 }
 0x30a   : > { %v2618_v5 = vadd.f32 %v11074_v52, %v2457_v55  ;;  %v2460_v8 = vadd.f32 %v8411_v50, %v10921_v60  ;;  %v11268_v42 = vpop.permute.xlu1 %3328  ;;  %v3599_v50 = vsel %vm1917_vm5, %v3552_v20, %v3327_v54 }
 0x30b   : > { %v3471_v1 = vpop.permute.xlu0 %3470 }
 0x30c   : > { %3536 = vrot.lane.b32.xlu0 %v11262_v10, %s13382_s27  ;;  %vm2672_vm10 = vcmp.ge.f32.partialorder %v2618_v5, 0.0  ;;  %v2704_v44 = vmul.f32 0.1, %v2618_v5  ;;  %v2621_v21 = vadd.f32 %v11080_v38, %v2460_v8  ;;  %3300 = vrot.lane.b32.xlu1 %v11262_v10, %s13276_s23 }
 0x30e   : > { %v11275_v11 = vsel %vm2672_vm10, %v2618_v5, %v2704_v44  ;;  %vm2673_vm11 = vcmp.ge.f32.partialorder %v2621_v21, 0.0  ;;  %v2705_v52 = vmul.f32 0.1, %v2621_v21  ;;  %v3138_v55 = vld [vmem:[#allocation2 + $0x120] sm:$0xff]  ;;  %v11281_v53 = vpop.permute.xlu1 %3376  ;;  %v3680_v5 = vsel %vm1059_vm3, %v10998_v58, %v3423_v32 }
 0x30f   : > { %2822 = vst.msk [vmem:[#allocation2 + $0x139] sm:$0xff] %vm1059_vm3, %v11275_v11  ;;  %v3727_v20 = vsel %vm1917_vm5, %v3680_v5, %v3471_v1  ;;  %v3519_v63 = vpop.permute.xlu0 %3518 }
 0x310   : > { %3442 = vrot.lane.b32.xlu0 %v3255_v51, %s13276_s23  ;;  %v8412_v24 = vpop.f32.mrb[48].mxu1  ;;  %v3234_v38 = vld [vmem:[#allocation2 + $0x122] sm:$0xff]  ;;  %v3235_v49 = vld [vmem:[#allocation2 + $0x12a] sm:$0xff]  ;;  %v11285_v44 = vsel %vm2673_vm11, %v2621_v21, %v2705_v52  ;;  %3348 = vrot.lane.b32.xlu1 %v3255_v51, %s13272_s26  ;;  %v3759_v21 = vsel %vm1950_vm12, %v3727_v20, %v3519_v63 }
 0x311   : > { %v3139_v8 = vld [vmem:[#allocation2 + $0x128] sm:$0xff]  ;;  %v8413_v0 = vpop.f32.mrb[49].mxu1  ;;  %v11287_v41 = vpack.c.bf16 %v3235_v49, %v3234_v38  ;;  %2823 = vst.msk [vmem:[#allocation2 + $0x141] sm:$0xff] %vm1059_vm3, %v11285_v44  ;;  %4037 = vmatprep.mubr.bf16.mxu0 %v3759_v21  ;;  %v11311_v38 = vld [vmem:[%s13381_s4] ss:$0 sm:$0xff] }
 0x312   : > { %v11289_v54 = vpack.c.bf16 %v3139_v8, %v3138_v55  ;;  %v8414_v34 = vadd.f32 %v8413_v0, %v8412_v24  ;;  %v8415_v18 = vpop.f32.mrb[50].mxu1  ;;  %v3187_v52 = vld [vmem:[#allocation2 + $0x129] sm:$0xff]  ;;  %v3631_v55 = vsel %vm1950_vm12, %v3599_v50, %v11239_v4  ;;  %v11305_v51 = vpop.permute.xlu1 %3282  ;;  %v3186_v24 = vld [vmem:[#allocation2 + $0x121] sm:$0xff]  ;;  %v3025_v8 = vld [vmem:[#allocation2 + $0x39] sm:$0xff] }
 0x313   : > { %v8416_v32 = vpop.f32.mrb[51].mxu1  ;;  %8968 = vmatprep.mubr.msk.bf16.mxu1 %vm1059_vm3, %v11287_v41  ;;  %4038 = vmatmul.mubr.bf16.vlgmr.msra.gmra.mrb[68].mxu0 %v3631_v55  ;;  %v3425_v50 = vpop.permute.xlu0 %3424  ;;  %v2832_v55 = vld [vmem:[#allocation2 + $0x18] sm:$0xff] }
 0x314   : > { %v2465_v1 = vadd.f32 %v8414_v34, %v10921_v60  ;;  %v8417_v0 = vadd.f32 %v8416_v32, %v8415_v18  ;;  %3490 = vrot.lane.b32.xlu0 %v11289_v54, %s13272_s26  ;;  %3396 = vrot.lane.b32.xlu1 %v11289_v54, %s13382_s27  ;;  %v11316_v60 = vpack.c.bf16 %v3187_v52, %v3186_v24  ;;  %v2833_v18 = vld [vmem:[#allocation2 + $0x20] sm:$0xff] }
 0x316   : > { %v2626_v63 = vadd.f32 %v11070_v25, %v2465_v1  ;;  %v2468_v4 = vadd.f32 %v11311_v38, %v8417_v0  ;;  %v11321_v5 = vpop.permute.xlu1 %3330  ;;  %v3024_v0 = vld [vmem:[#allocation2 + $0x31] sm:$0xff] }
 0x317   : > { %v3473_v58 = vpop.permute.xlu0 %3472 }
 0x318   : > { %vm2674_vm4 = vcmp.ge.f32.partialorder %v2626_v63, 0.0  ;;  %v2706_v34 = vmul.f32 0.1, %v2626_v63  ;;  %v2629_v49 = vadd.f32 %v11076_v46, %v2468_v4  ;;  %3538 = vrot.lane.b32.xlu0 %v11316_v60, %s13382_s27  ;;  %v8418_v25 = vpop.f32.mrb[52].mxu1  ;;  %v3236_v32 = vld [vmem:[#allocation2 + $0x13a] sm:$0xff]  ;;  %v3237_v21 = vld [vmem:[#allocation2 + $0x142] sm:$0xff]  ;;  %3302 = vrot.lane.b32.xlu1 %v11316_v60, %s13276_s23  ;;  %v2863_v46 = vpack.c.bf16 %v2833_v18, %v2832_v55 }
 0x319   : > { %v8419_v20 = vpop.f32.mrb[53].mxu1  ;;  %v3055_v4 = vpack.c.bf16 %v3025_v8, %v3024_v0  ;;  %v11329_v23 = vpack.c.bf16 %v3237_v21, %v3236_v32  ;;  %v3141_v33 = vld [vmem:[#allocation2 + $0x140] sm:$0xff] }
 0x31a   : > { %v11323_v1 = vsel %vm2674_vm4, %v2626_v63, %v2706_v34  ;;  %vm2675_vm13 = vcmp.ge.f32.partialorder %v2629_v49, 0.0  ;;  %v2707_v52 = vmul.f32 0.1, %v2629_v49  ;;  %v8420_v24 = vadd.f32 %v8419_v20, %v8418_v25  ;;  %v8421_v40 = vpop.f32.mrb[54].mxu1  ;;  %v11335_v25 = vpop.permute.xlu1 %3378 }
 0x31b   : > { %2824 = vst.msk [vmem:[#allocation2 + $0x151] sm:$0xff] %vm1059_vm3, %v11323_v1  ;;  %v8422_v16 = vpop.f32.mrb[55].mxu1  ;;  %v3555_v18 = vsel %vm1059_vm3, %v2863_v46, %v11253_v17  ;;  %v3683_v8 = vsel %vm1059_vm3, %v3055_v4, %v3425_v50  ;;  %8969 = vmatmul.mubr.msk.bf16.gmra.mrb[80].mxu1 %vm1059_vm3, %v11329_v23  ;;  %v3521_v21 = vpop.permute.xlu0 %3520  ;;  %v3189_v50 = vld [vmem:[#allocation2 + $0x141] sm:$0xff]  ;;  %v3188_v46 = vld [vmem:[#allocation2 + $0x139] sm:$0xff] }
 0x31c   : > { %v11331_v63 = vsel %vm2675_vm13, %v2629_v49, %v2707_v52  ;;  %v8423_v34 = vadd.f32 %v8422_v16, %v8421_v40  ;;  %3444 = vrot.lane.b32.xlu0 %v11287_v41, %s13276_s23  ;;  %v2473_v20 = vadd.f32 %v11311_v38, %v8420_v24  ;;  %v3140_v49 = vld [vmem:[#allocation2 + $0x138] sm:$0xff]  ;;  %v3729_v40 = vsel %vm1917_vm5, %v3683_v8, %v3473_v58 }
 0x31d   : > { %2825 = vst.msk [vmem:[#allocation2 + $0x159] sm:$0xff] %vm1059_vm3, %v11331_v63  ;;  %3350 = vrot.lane.b32.xlu1 %v11287_v41, %s13272_s26  ;;  %v11352_v55 = vpack.c.bf16 %v3141_v33, %v3140_v49  ;;  %v3601_v52 = vsel %vm1917_vm5, %v3555_v18, %v11268_v42  ;;  %v3762_v0 = vsel %vm1950_vm12, %v3729_v40, %v3521_v21  ;;  %v2835_v49 = vld [vmem:[#allocation2 + $0x38] sm:$0xff] }
 0x31e   : > { %v2634_v32 = vadd.f32 %v11098_v14, %v2473_v20  ;;  %v2476_v17 = vadd.f32 %v11311_v38, %v8423_v34  ;;  %4045 = vmatprep.mubr.bf16.mxu0 %v3762_v0  ;;  %v3634_v41 = vsel %vm1950_vm12, %v3601_v52, %v11281_v53  ;;  %v11362_v33 = vpop.permute.xlu1 %3284  ;;  %v11364_v42 = vpack.c.bf16 %v3189_v50, %v3188_v46  ;;  %v3026_v46 = vld [vmem:[#allocation2 + $0x49] sm:$0xff] }
 0x31f   : > { %13384 = vst [vmem:[#allocation17_spill] sm:$0xff] %v11352_v55  ;;  %4046 = vmatmul.mubr.bf16.gmra.mrb[72].mxu0 %v3634_v41  ;;  %v3427_v18 = vpop.permute.xlu0 %3426 }
 0x320   : > { %vm2676_vm14 = vcmp.ge.f32.partialorder %v2634_v32, 0.0  ;;  %v2708_v24 = vmul.f32 0.1, %v2634_v32  ;;  %v2637_v58 = vadd.f32 %v11105_v26, %v2476_v17  ;;  %3492 = vrot.lane.b32.xlu0 %v11352_v55, %s13272_s26  ;;  %v8424_v14 = vpop.f32.mrb[56].mxu1  ;;  %v3027_v17 = vld [vmem:[#allocation2 + $0x51] sm:$0xff] }
 0x321   : > { %v8425_v4 = vpop.f32.mrb[57].mxu1  ;;  %3398 = vrot.lane.b32.xlu1 %v11352_v55, %s13382_s27 }
 0x322   : > { %v11366_v34 = vsel %vm2676_vm14, %v2634_v32, %v2708_v24  ;;  %vm2677_vm15 = vcmp.ge.f32.partialorder %v2637_v58, 0.0  ;;  %v2709_v20 = vmul.f32 0.1, %v2637_v58  ;;  %v8426_v26 = vadd.f32 %v8425_v4, %v8424_v14  ;;  %v8427_v8 = vpop.f32.mrb[58].mxu1  ;;  %v11377_v50 = vpop.permute.xlu1 %3332 }
 0x323   : > { %2826 = vst.msk [vmem:[#allocation2 + $0x169] sm:$0xff] %vm1059_vm3, %v11366_v34  ;;  %v8428_v53 = vpop.f32.mrb[59].mxu1 }
 0x324   : > { %v11372_v40 = vsel %vm2677_vm15, %v2637_v58, %v2709_v20  ;;  %v2481_v21 = vadd.f32 %v11311_v38, %v8426_v26  ;;  %v8429_v32 = vadd.f32 %v8428_v53, %v8427_v8  ;;  %3540 = vrot.lane.b32.xlu0 %v11364_v42, %s13382_s27  ;;  %v3238_v52 = vld [vmem:[#allocation2 + $0x152] sm:$0xff]  ;;  %v3239_v0 = vld [vmem:[#allocation2 + $0x15a] sm:$0xff]  ;;  %v3056_v53 = vpack.c.bf16 %v3027_v17, %v3026_v46 }
 0x325   : > { %2827 = vst.msk [vmem:[#allocation2 + $0x171] sm:$0xff] %vm1059_vm3, %v11372_v40  ;;  %v11383_v14 = vpack.c.bf16 %v3239_v0, %v3238_v52  ;;  %v2834_v58 = vld [vmem:[#allocation2 + $0x30] sm:$0xff]  ;;  %3304 = vrot.lane.b32.xlu1 %v11364_v42, %s13276_s23  ;;  %v3143_v26 = vld [vmem:[#allocation2 + $0x158] sm:$0xff] }
 0x326   : > { %v2642_v41 = vadd.f32 %v11094_v22, %v2481_v21  ;;  %v2484_v4 = vadd.f32 %v11311_v38, %v8429_v32  ;;  %v3475_v20 = vpop.permute.xlu0 %3474  ;;  %v2864_v8 = vpack.c.bf16 %v2835_v49, %v2834_v58  ;;  %v3381_v22 = vpop.permute.xlu1 %3380  ;;  %v3142_v21 = vld [vmem:[#allocation2 + $0x150] sm:$0xff]  ;;  %v3686_v32 = vsel %vm1059_vm3, %v3056_v53, %v3427_v18  ;;  %v3191_v18 = vld [vmem:[#allocation2 + $0x159] sm:$0xff] }
 0x327   : > { %8972 = vmatprep.mubr.msk.bf16.mxu1 %vm1059_vm3, %v11383_v14  ;;  %v11397_v0 = vpack.c.bf16 %v3143_v26, %v3142_v21  ;;  %v3731_v58 = vsel %vm1917_vm5, %v3686_v32, %v3475_v20  ;;  %v3190_v26 = vld [vmem:[#allocation2 + $0x151] sm:$0xff]  ;;  %v3028_v32 = vld [vmem:[#allocation2 + $0x61] sm:$0xff] }
 0x328   : > { %vm2678_vm0 = vcmp.ge.f32.partialorder %v2642_v41, 0.0  ;;  %v2710_v24 = vmul.f32 0.1, %v2642_v41  ;;  %v2645_v52 = vadd.f32 %v11100_v56, %v2484_v4  ;;  %3446 = vrot.lane.b32.xlu0 %v11329_v23, %s13276_s23  ;;  %v3558_v38 = vsel %vm1059_vm3, %v2864_v8, %v11305_v51 }
 0x329   : > { %13385 = vst [vmem:[#allocation20_spill] sm:$0xff] %v11397_v0  ;;  %3352 = vrot.lane.b32.xlu1 %v11329_v23, %s13272_s26  ;;  %v3603_v56 = vsel %vm1917_vm5, %v3558_v38, %v11321_v5  ;;  %v2837_v38 = vld [vmem:[#allocation2 + $0x50] sm:$0xff] }
 0x32a   : > { %v11399_v49 = vsel %vm2678_vm0, %v2642_v41, %v2710_v24  ;;  %vm2679_vm1 = vcmp.ge.f32.partialorder %v2645_v52, 0.0  ;;  %v2711_v17 = vmul.f32 0.1, %v2645_v52  ;;  %v3523_v46 = vpop.permute.xlu0 %3522  ;;  %v11413_v24 = vpop.permute.xlu1 %3286  ;;  %v3637_v23 = vsel %vm1950_vm12, %v3603_v56, %v11335_v25  ;;  %v3029_v25 = vld [vmem:[#allocation2 + $0x69] sm:$0xff] }
 0x32b   : > { %2828 = vst.msk [vmem:[#allocation2 + $0x181] sm:$0xff] %vm1059_vm3, %v11399_v49  ;;  %v3765_v51 = vsel %vm1950_vm12, %v3731_v58, %v3523_v46  ;;  %v2836_v58 = vld [vmem:[#allocation2 + $0x48] sm:$0xff]  ;;  %v3057_v46 = vpack.c.bf16 %v3029_v25, %v3028_v32 }
 0x32c   : > { %v11409_v4 = vsel %vm2679_vm1, %v2645_v52, %v2711_v17  ;;  %3494 = vrot.lane.b32.xlu0 %v11397_v0, %s13272_s26  ;;  %4053 = vmatprep.mubr.bf16.mxu0 %v3765_v51  ;;  %v3240_v41 = vld [vmem:[#allocation2 + $0x16a] sm:$0xff]  ;;  %v3241_v20 = vld [vmem:[#allocation2 + $0x172] sm:$0xff]  ;;  %v11425_v52 = vpack.c.bf16 %v3191_v18, %v3190_v26  ;;  %v2865_v51 = vpack.c.bf16 %v2837_v38, %v2836_v58  ;;  %v2838_v58 = vld [vmem:[#allocation2 + $0x60] sm:$0xff] }
 0x32d   : > { %2829 = vst.msk [vmem:[#allocation2 + $0x189] sm:$0xff] %vm1059_vm3, %v11409_v4  ;;  %4054 = vmatmul.mubr.bf16.gmra.mrb[76].mxu0 %v3637_v23  ;;  %v11419_v5 = vpack.c.bf16 %v3241_v20, %v3240_v41  ;;  %3400 = vrot.lane.b32.xlu1 %v11397_v0, %s13382_s27  ;;  %v3145_v56 = vld [vmem:[#allocation2 + $0x170] sm:$0xff]  ;;  %v3144_v8 = vld [vmem:[#allocation2 + $0x168] sm:$0xff] }
 0x32e   : > { %v3429_v53 = vpop.permute.xlu0 %3428  ;;  %v3335_v21 = vpop.permute.xlu1 %3334  ;;  %v3561_v16 = vsel %vm1059_vm3, %v2865_v51, %v11362_v33  ;;  %v11443_v25 = vpack.c.bf16 %v3145_v56, %v3144_v8  ;;  %v3193_v32 = vld [vmem:[#allocation2 + $0x171] sm:$0xff] }
 0x32f   : > { %8973 = vmatmul.mubr.msk.bf16.gmra.mrb[84].mxu1 %vm1059_vm3, %v11419_v5  ;;  %v3689_v20 = vsel %vm1059_vm3, %v3057_v46, %v3429_v53  ;;  %v3605_v38 = vsel %vm1917_vm5, %v3561_v16, %v11377_v50  ;;  %v3031_v50 = vld [vmem:[#allocation2 + $0x81] sm:$0xff]  ;;  %v3030_v46 = vld [vmem:[#allocation2 + $0x79] sm:$0xff] }
 0x330   : > { %3542 = vrot.lane.b32.xlu0 %v11425_v52, %s13382_s27  ;;  %13386 = vst [vmem:[#allocation21_spill] sm:$0xff] %v11443_v25 }
 0x331   : > { %3306 = vrot.lane.b32.xlu1 %v11425_v52, %s13276_s23 }
 0x332   : > { %v3477_v17 = vpop.permute.xlu0 %3476  ;;  %v3383_v18 = vpop.permute.xlu1 %3382 }
 0x333   : > { %v3733_v19 = vsel %vm1917_vm5, %v3689_v20, %v3477_v17  ;;  %v3640_v17 = vsel %vm1950_vm12, %v3605_v38, %v3381_v22  ;;  %v3058_v22 = vpack.c.bf16 %v3031_v50, %v3030_v46 }
 0x334   : > { %3448 = vrot.lane.b32.xlu0 %v11383_v14, %s13276_s23  ;;  %v3242_v23 = vld [vmem:[#allocation2 + $0x182] sm:$0xff]  ;;  %v3243_v41 = vld [vmem:[#allocation2 + $0x18a] sm:$0xff] }
 0x335   : > { %v11436_v26 = vpack.c.bf16 %v3243_v41, %v3242_v23  ;;  %3354 = vrot.lane.b32.xlu1 %v11383_v14, %s13272_s26  ;;  %v3192_v14 = vld [vmem:[#allocation2 + $0x169] sm:$0xff]  ;;  %v3244_v23 = vld [vmem:[#allocation2 + $0x19a] sm:$0xff] }
 0x336   : > { %v3525_v0 = vpop.permute.xlu0 %3524  ;;  %v3289_v33 = vpop.permute.xlu1 %3288  ;;  %v11455_v16 = vpack.c.bf16 %v3193_v32, %v3192_v14  ;;  %v3147_v51 = vld [vmem:[#allocation2 + $0x188] sm:$0xff] }
 0x337   : > { %8976 = vmatprep.mubr.msk.bf16.mxu1 %vm1059_vm3, %v11436_v26  ;;  %v3768_v53 = vsel %vm1950_vm12, %v3733_v19, %v3525_v0  ;;  %v2839_v0 = vld [vmem:[#allocation2 + $0x68] sm:$0xff] }
 0x338   : > { %3496 = vrot.lane.b32.xlu0 %v11443_v25, %s13272_s26  ;;  %4061 = vmatprep.mubr.bf16.mxu0 %v3768_v53  ;;  %v3245_v41 = vld [vmem:[#allocation2 + $0x1a2] sm:$0xff]  ;;  %v2866_v20 = vpack.c.bf16 %v2839_v0, %v2838_v58 }
 0x339   : > { %4062 = vmatmul.mubr.bf16.gmra.mrb[80].mxu0 %v3640_v17  ;;  %3402 = vrot.lane.b32.xlu1 %v11443_v25, %s13382_s27  ;;  %v3261_v53 = vpack.c.bf16 %v3245_v41, %v3244_v23  ;;  %v3146_v17 = vld [vmem:[#allocation2 + $0x180] sm:$0xff]  ;;  %v3195_v46 = vld [vmem:[#allocation2 + $0x189] sm:$0xff]  ;;  %v3032_v41 = vld [vmem:[#allocation2 + $0x91] sm:$0xff] }
 0x33a   : > { %v3431_v8 = vpop.permute.xlu0 %3430  ;;  %v3337_v19 = vpop.permute.xlu1 %3336  ;;  %v3564_v14 = vsel %vm1059_vm3, %v2866_v20, %v11413_v24  ;;  %v3164_v50 = vpack.c.bf16 %v3147_v51, %v3146_v17  ;;  %v3033_v51 = vld [vmem:[#allocation2 + $0x99] sm:$0xff]  ;;  %v3197_v23 = vld [vmem:[#allocation2 + $0x1a1] sm:$0xff] }
 0x33b   : > { %v3692_v32 = vsel %vm1059_vm3, %v3058_v22, %v3431_v8  ;;  %8977 = vmatmul.mubr.msk.bf16.gmra.mrb[88].mxu1 %vm1059_vm3, %v3261_v53  ;;  %v3607_v0 = vsel %vm1917_vm5, %v3564_v14, %v3335_v21  ;;  %v2840_v53 = vld [vmem:[#allocation2 + $0x78] sm:$0xff] }
 0x33c   : > { %3544 = vrot.lane.b32.xlu0 %v11455_v16, %s13382_s27  ;;  %v3643_v24 = vsel %vm1950_vm12, %v3607_v0, %v3383_v18  ;;  %v13387_v18 = vpack.i.bf16 %v10974_v29, %v10968_v59  ;;  %v13388_v59 = vpack.i.bf16 %v11051_v37, %v11043_v6  ;;  %v13390_v6 = vpack.i.bf16 %v10944_v62, %v10940_v3 }
 0x33d   : > { %3308 = vrot.lane.b32.xlu1 %v11455_v16, %s13276_s23 }
 0x33e   : > { %v3479_v56 = vpop.permute.xlu0 %3478  ;;  %v3385_v38 = vpop.permute.xlu1 %3384 }
 0x33f   : > { %v3735_v25 = vsel %vm1917_vm5, %v3692_v32, %v3479_v56  ;;  %v3194_v56 = vld [vmem:[#allocation2 + $0x181] sm:$0xff]  ;;  %v3059_v32 = vpack.c.bf16 %v3033_v51, %v3032_v41  ;;  %v13389_v51 = vpack.i.bf16 %v11115_v48, %v11109_v39  ;;  %v2842_v41 = vld [vmem:[#allocation2 + $0x90] sm:$0xff]  ;;  %v13392_v39 = vpack.i.bf16 %v11020_v35, %v11012_v57 }
 0x340   : > { %3450 = vrot.lane.b32.xlu0 %v11419_v5, %s13276_s23  ;;  %v13394_v57 = vpack.i.bf16 %v11086_v9, %v11078_v31  ;;  %v2845_v31 = vld [vmem:[#allocation2 + $0xb0] sm:$0xff]  ;;  %v3036_v9 = vld [vmem:[#allocation2 + $0xc1] sm:$0xff] }
 0x341   : > { %3356 = vrot.lane.b32.xlu1 %v11419_v5, %s13272_s26  ;;  %v11475_v5 = vpack.c.bf16 %v3195_v46, %v3194_v56 }
 0x342   : > { %v3527_v55 = vpop.permute.xlu0 %3526  ;;  %v3291_v8 = vpop.permute.xlu1 %3290 }
 0x343   : > { %v3771_v58 = vsel %vm1950_vm12, %v3735_v25, %v3527_v55  ;;  %v2841_v55 = vld [vmem:[#allocation2 + $0x80] sm:$0xff] }
 0x344   : > { %3498 = vrot.lane.b32.xlu0 %v3164_v50, %s13272_s26  ;;  %4069 = vmatprep.mubr.bf16.mxu0 %v3771_v58  ;;  %v3196_v25 = vld [vmem:[#allocation2 + $0x199] sm:$0xff]  ;;  %v2867_v17 = vpack.c.bf16 %v2841_v55, %v2840_v53  ;;  %v3035_v55 = vld [vmem:[#allocation2 + $0xb1] sm:$0xff] }
 0x345   : > { %4070 = vmatmul.mubr.bf16.gmra.mrb[84].mxu0 %v3643_v24  ;;  %3404 = vrot.lane.b32.xlu1 %v3164_v50, %s13382_s27  ;;  %v3213_v50 = vpack.c.bf16 %v3197_v23, %v3196_v25  ;;  %v3034_v25 = vld [vmem:[#allocation2 + $0xa9] sm:$0xff] }
 0x346   : > { %v3433_v22 = vpop.permute.xlu0 %3432  ;;  %v3339_v21 = vpop.permute.xlu1 %3338  ;;  %v3567_v58 = vsel %vm1059_vm3, %v2867_v17, %v3289_v33 }
 0x347   : > { %v3695_v0 = vsel %vm1059_vm3, %v3059_v32, %v3433_v22  ;;  %v3609_v29 = vsel %vm1917_vm5, %v3567_v58, %v3337_v19  ;;  %v2843_v19 = vld [vmem:[#allocation2 + $0x98] sm:$0xff] }
 0x348   : > { %3546 = vrot.lane.b32.xlu0 %v11475_v5, %s13382_s27  ;;  %v3646_v22 = vsel %vm1950_vm12, %v3609_v29, %v3385_v38  ;;  %v13391_v38 = vpack.i.bf16 %v11157_v61, %v11151_v45  ;;  %v13393_v45 = vpack.i.bf16 %v11199_v27, %v11193_v12  ;;  %v13395_v12 = vpack.i.bf16 %v11249_v15, %v11243_v43  ;;  %v3037_v27 = vld [vmem:[#allocation2 + $0xc9] sm:$0xff] }
 0x349   : > { %9172 = vrot.lane.b32.xlu1 %v13387_v18, %s13276_s23  ;;  %v2868_v18 = vpack.c.bf16 %v2843_v19, %v2842_v41  ;;  %v13398_v43 = vpack.i.bf16 %v11177_v28, %v11172_v36  ;;  %v13400_v36 = vpack.i.bf16 %v11222_v13, %v11216_v30  ;;  %v2846_v19 = vld [vmem:[#allocation2 + $0xc0] sm:$0xff]  ;;  %v13402_v13 = vpack.i.bf16 %v11372_v40, %v11366_v34 }
 0x34a   : > { %v3481_v20 = vpop.permute.xlu0 %3480  ;;  %v3387_v14 = vpop.permute.xlu1 %3386  ;;  %v9319_v34 = vld [vmem:[%s13403_s7] sm:$0xff]  }
 0x34b   : > { %v3737_v46 = vsel %vm1917_vm5, %v3695_v0, %v3481_v20  ;;  %v3060_v20 = vpack.c.bf16 %v3035_v55, %v3034_v25  ;;  %v3570_v62 = vsel %vm1059_vm3, %v2868_v18, %v3291_v8  ;;  %v2847_v55 = vld [vmem:[#allocation2 + $0xc8] sm:$0xff]  ;;  %8980 = vmatprep.subr.bf16.mxu1 %v9319_v34 }
 0x34c   : > { %3452 = vrot.lane.b32.xlu0 %v11436_v26, %s13276_s23  ;;  %v3611_v61 = vsel %vm1917_vm5, %v3570_v62, %v3339_v21  ;;  %v13396_v21 = vpack.i.bf16 %v11135_v47, %v11130_v7  ;;  %v2870_v30 = vpack.c.bf16 %v2847_v55, %v2846_v19  ;;  %8981 = vmatpush3.bf16.msra.mxu1 %v9319_v34 }
 0x34d   : > { %9182 = vrot.lane.b32.xlu1 %v13388_v59, %s13276_s23  ;;  %v3649_v8 = vsel %vm1950_vm12, %v3611_v61, %v3387_v14  ;;  %v13397_v14 = vpack.i.bf16 %v11331_v63, %v11323_v1  ;;  %v13399_v1 = vpack.i.bf16 %v11409_v4, %v11399_v49  ;;  %v13401_v49 = vpack.i.bf16 %v11285_v44, %v11275_v11 }
 0x34e   : > { %v3529_v24 = vpop.permute.xlu0 %3528  ;;  %v3293_v26 = vpop.permute.xlu1 %3292 }
 0x34f   : > { %v3774_v56 = vsel %vm1950_vm12, %v3737_v46, %v3529_v24  ;;  %v2844_v46 = vld [vmem:[#allocation2 + $0xa8] sm:$0xff]  ;;  %v3061_v24 = vpack.c.bf16 %v3037_v27, %v3036_v9 }
 0x350   : > { %3548 = vrot.lane.b32.xlu0 %v3213_v50, %s13382_s27  ;;  %4077 = vmatprep.mubr.bf16.mxu0 %v3774_v56  ;;  %v2869_v59 = vpack.c.bf16 %v2845_v31, %v2844_v46  ;;  %s11848_s27 = sand.u32 1, %s9555_s30  }
 0x351   : > { %4078 = vmatmul.mubr.bf16.gmra.mrb[88].mxu0 %v3646_v22  ;;  %9192 = vrot.lane.b32.xlu1 %v13389_v51, %s13276_s23  ;;  %v3039_v51 = vld [vmem:[#allocation2 + $0xe1] sm:$0xff]  ;;  %s8025_s24 = sshll.u32 %s11848_s27, 8  ;;  %s8026_s4 = sshll.u32 %s11848_s27, 7 }
 0x352   : > { %v3435_v33 = vpop.permute.xlu0 %3434  ;;  %v3341_v37 = vpop.permute.xlu1 %3340  ;;  %v3573_v47 = vsel %vm1059_vm3, %v2869_v59, %v3293_v26  ;;  %s11860_s20 = scalar_lea.vmem [#allocation7], %s8025_s24  ;;  %s12377_s24 = scalar_lea.vmem [#allocation9], %s8026_s4 }
 0x353   : > { %v3698_v3 = vsel %vm1059_vm3, %v3060_v20, %v3435_v33  ;;  %v3613_v63 = vsel %vm1917_vm5, %v3573_v47, %v3341_v37  ;;  %s7881_s5 = sshll.u32 %s11860_s20, 4  ;;  %s13045_s5 = int_to_ptr.vmem [resolvable:$true] %s7881_s5 }
 0x354   : > { %9167 = vrot.lane.b32.xlu0 %v13390_v6, %s13276_s23  ;;  %v3038_v6 = vld [vmem:[#allocation2 + $0xd9] sm:$0xff] }
 0x355   : > { %9202 = vrot.lane.b32.xlu1 %v13391_v38, %s13276_s23  ;;  %v3062_v25 = vpack.c.bf16 %v3039_v51, %v3038_v6 }
 0x356   : > { %v3483_v23 = vpop.permute.xlu0 %3482  ;;  %v3389_v48 = vpop.permute.xlu1 %3388 }
 0x357   : > { %v3739_v53 = vsel %vm1917_vm5, %v3698_v3, %v3483_v23  ;;  %v3652_v26 = vsel %vm1950_vm12, %v3613_v63, %v3389_v48  ;;  %v3041_v3 = vld [vmem:[#allocation2 + $0xf9] sm:$0xff] }
 0x358   : > { %9177 = vrot.lane.b32.xlu0 %v13392_v39, %s13276_s23 }
 0x359   : > { %9212 = vrot.lane.b32.xlu1 %v13393_v45, %s13276_s23 }
 0x35a   : > { %v3531_v32 = vpop.permute.xlu0 %3530  ;;  %v3295_v35 = vpop.permute.xlu1 %3294 }
 0x35b   : > { %v3777_v17 = vsel %vm1950_vm12, %v3739_v53, %v3531_v32  ;;  %v3576_v41 = vsel %vm1059_vm3, %v2870_v30, %v3295_v35  ;;  %v2849_v53 = vld [vmem:[#allocation2 + $0xe0] sm:$0xff]  ;;  %v3040_v32 = vld [vmem:[#allocation2 + $0xf1] sm:$0xff] }
 0x35c   : > { %9187 = vrot.lane.b32.xlu0 %v13394_v57, %s13276_s23  ;;  %4085 = vmatprep.mubr.bf16.mxu0 %v3777_v17  ;;  %v9320_v17 = vld [vmem:[%s13403_s7 + $0x8] sm:$0xff]   ;;  %v2848_v57 = vld [vmem:[#allocation2 + $0xd8] sm:$0xff]  ;;  %v3063_v35 = vpack.c.bf16 %v3041_v3, %v3040_v32 }
 0x35d   : > { %4086 = vmatmul.mubr.bf16.gmra.mrb[92].mxu0 %v3649_v8  ;;  %9222 = vrot.lane.b32.xlu1 %v13395_v12, %s13276_s23 }
 0x35e   : > { %v3437_v50 = vpop.permute.xlu0 %3436  ;;  %v3343_v0 = vpop.permute.xlu1 %3342  ;;  %8982 = vmatprep.subr.bf16.mxu1 %v9320_v17 }
 0x35f   : > { %v3701_v7 = vsel %vm1059_vm3, %v3061_v24, %v3437_v50  ;;  %v3615_v20 = vsel %vm1917_vm5, %v3576_v41, %v3343_v0  ;;  %v2871_v50 = vpack.c.bf16 %v2849_v53, %v2848_v57  ;;  %8983 = vmatpush3.bf16.msra.mxu1 %v9320_v17 }
 0x360   : > { %9197 = vrot.lane.b32.xlu0 %v13396_v21, %s13276_s23 }
 0x361   : > { %9232 = vrot.lane.b32.xlu1 %v13397_v14, %s13276_s23  ;;  %v9321_v14 = vld [vmem:[%s13403_s7 + $0x10] sm:$0xff]  }
 0x362   : > { %v3485_v58 = vpop.permute.xlu0 %3484  ;;  %v3391_v15 = vpop.permute.xlu1 %3390  ;;  %8984 = vmatprep.subr.bf16.mxu1 %v9321_v14 }
 0x363   : > { %v3741_v29 = vsel %vm1917_vm5, %v3701_v7, %v3485_v58  ;;  %v3655_v48 = vsel %vm1950_vm12, %v3615_v20, %v3391_v15  ;;  %8985 = vmatpush3.bf16.msra.mxu1 %v9321_v14  ;;  %v9322_v7 = vld [vmem:[%s13403_s7 + $0x18] sm:$0xff]   ;;  %s9570_s7 = smov [#allocation7]  }
 0x364   : > { %9207 = vrot.lane.b32.xlu0 %v13398_v43, %s13276_s23  ;;  %8986 = vmatprep.subr.bf16.mxu1 %v9322_v7  ;;  %v13404_v14 = vld [vmem:[#allocation17_spill] sm:$0xff]  ;;  %s9445_s2 = sshll.u32 %s9570_s7, 4  ;;  %s9446_s2 = int_to_ptr.vmem [resolvable:$false] %s9445_s2 }
 0x365   : > { %9242 = vrot.lane.b32.xlu1 %v13399_v1, %s13276_s23  ;;  %v2850_v1 = vld [vmem:[#allocation2 + $0xf0] sm:$0xff]  ;;  %s9447_s25 = scalar_lea.vmem %s9446_s2, 8192  ;;  %p9448_p0 = scmp.lt.s32.totalorder %s13045_s5, %s9446_s2 }
 0x366   : > { %v3533_v56 = vpop.permute.xlu0 %3532  ;;  %v3297_v28 = vpop.permute.xlu1 %3296 }
 0x367   : > { %v3780_v22 = vsel %vm1950_vm12, %v3741_v29, %v3533_v56  ;;  %v3579_v31 = vsel %vm1059_vm3, %v2871_v50, %v3297_v28  ;;  %v2851_v29 = vld [vmem:[#allocation2 + $0xf8] sm:$0xff]  ;;  %8987 = vmatpush3.bf16.msra.mxu1 %v9322_v7 }
 0x368   : > { %9217 = vrot.lane.b32.xlu0 %v13400_v36, %s13276_s23  ;;  %4093 = vmatprep.mubr.bf16.mxu0 %v3780_v22  ;;  %v2872_v63 = vpack.c.bf16 %v2851_v29, %v2850_v1 }
 0x369   : > { %4094 = vmatmul.mubr.bf16.gmra.mrb[96].mxu0 %v3652_v26 }
 0x36a   : > { %v3439_v33 = vpop.permute.xlu0 %3438  ;;  %v3345_v4 = vpop.permute.xlu1 %3344 }
 0x36b   : > { %v3704_v38 = vsel %vm1059_vm3, %v3062_v25, %v3439_v33  ;;  %v3617_v46 = vsel %vm1917_vm5, %v3579_v31, %v3345_v4 }
 0x36c   : > { %9227 = vrot.lane.b32.xlu0 %v13401_v49, %s13276_s23 }
 0x36e   : > { %v3487_v37 = vpop.permute.xlu0 %3486  ;;  %v3393_v23 = vpop.permute.xlu1 %3392 }
 0x36f   : > { %v3743_v11 = vsel %vm1917_vm5, %v3704_v38, %v3487_v37  ;;  %v3658_v43 = vsel %vm1950_vm12, %v3617_v46, %v3393_v23 }
 0x370   : > { %9237 = vrot.lane.b32.xlu0 %v13402_v13, %s13276_s23 }
 0x372   : > { %v3535_v44 = vpop.permute.xlu0 %3534  ;;  %v3299_v39 = vpop.permute.xlu1 %3298 }
 0x373   : > { %v3783_v18 = vsel %vm1950_vm12, %v3743_v11, %v3535_v44  ;;  %v11573_v45 = vpop.f32.mrb[60].mxu1  ;;  %v3582_v28 = vsel %vm1059_vm3, %v2872_v63, %v3299_v39  ;;  %v13405_v63 = vld [vmem:[#allocation20_spill] sm:$0xff] }
 0x374   : > { %4101 = vmatprep.mubr.bf16.mxu0 %v3783_v18  ;;  %v11578_v8 = vpop.f32.mrb[61].mxu1 }
 0x375   : > { %4102 = vmatmul.mubr.bf16.gmra.mrb[100].mxu0 %v3655_v48  ;;  %v11580_v12 = vpop.f32.mrb[62].mxu1 }
 0x376   : > { %v3441_v40 = vpop.permute.xlu0 %3440  ;;  %v3347_v62 = vpop.permute.xlu1 %3346 }
 0x377   : > { %v3707_v21 = vsel %vm1059_vm3, %v3063_v35, %v3441_v40  ;;  %v11583_v0 = vpop.f32.mrb[63].mxu1  ;;  %v3619_v51 = vsel %vm1917_vm5, %v3582_v28, %v3347_v62 }
 0x37a   : > { %v3489_v61 = vpop.permute.xlu0 %3488  ;;  %v3395_v27 = vpop.permute.xlu1 %3394 }
 0x37b   : > { %v3745_v9 = vsel %vm1917_vm5, %v3707_v21, %v3489_v61  ;;  %v3661_v55 = vsel %vm1950_vm12, %v3619_v51, %v3395_v27 }
 0x37e   : > { %v3537_v58 = vpop.permute.xlu0 %3536  ;;  %v3301_v59 = vpop.permute.xlu1 %3300 }
 0x37f   : > { %v3786_v24 = vsel %vm1950_vm12, %v3745_v9, %v3537_v58  ;;  %v3585_v41 = vsel %vm1059_vm3, %v11241_v2, %v3301_v59 }
 0x380   : > { %4109 = vmatprep.mubr.bf16.mxu0 %v3786_v24 }
 0x381   : > { %4110 = vmatmul.mubr.bf16.gmra.mrb[104].mxu0 %v3658_v43 }
 0x382   : > { %v3443_v15 = vpop.permute.xlu0 %3442  ;;  %v3349_v47 = vpop.permute.xlu1 %3348 }
 0x383   : > { %v3710_v36 = vsel %vm1059_vm3, %v11262_v10, %v3443_v15  ;;  %v3621_v20 = vsel %vm1917_vm5, %v3585_v41, %v3349_v47  ;;  %v13407_v41 = vld [vmem:[#allocation16_spill] sm:$0xff] }
 0x386   : > { %v3491_v56 = vpop.permute.xlu0 %3490  ;;  %v3397_v22 = vpop.permute.xlu1 %3396 }
 0x387   : > { %v3747_v26 = vsel %vm1917_vm5, %v3710_v36, %v3491_v56  ;;  %v3664_v48 = vsel %vm1950_vm12, %v3621_v20, %v3397_v22 }
 0x38a   : > { %v3539_v33 = vpop.permute.xlu0 %3538  ;;  %v3303_v4 = vpop.permute.xlu1 %3302 }
 0x38b   : > { %v3789_v49 = vsel %vm1950_vm12, %v3747_v26, %v3539_v33  ;;  %v3588_v2 = vsel %vm1059_vm3, %v11289_v54, %v3303_v4 }
 0x38c   : > { %4117 = vmatprep.mubr.bf16.mxu0 %v3789_v49 }
 0x38d   : > { %4118 = vmatmul.mubr.bf16.gmra.mrb[108].mxu0 %v3661_v55 }
 0x38e   : > { %v3445_v6 = vpop.permute.xlu0 %3444 }
 0x38f   : > { %v3351_v37 = vpop.permute.xlu1 %3350  ;;  %v3713_v23 = vsel %vm1059_vm3, %v11316_v60, %v3445_v6 }
 0x390   : > { %v11603_v19 = vpop.f32.mrb[64].mxu1  ;;  %v3623_v61 = vsel %vm1917_vm5, %v3588_v2, %v3351_v37  ;;  %v13406_v37 = vld [vmem:[#allocation21_spill] sm:$0xff] }
 0x391   : > { %v11605_v10 = vpop.f32.mrb[65].mxu1 }
 0x392   : > { %v3493_v25 = vpop.permute.xlu0 %3492  ;;  %v11607_v30 = vpop.f32.mrb[66].mxu1 }
 0x393   : > { %v3399_v13 = vpop.permute.xlu1 %3398  ;;  %v11611_v38 = vpop.f32.mrb[67].mxu1  ;;  %v3749_v11 = vsel %vm1917_vm5, %v3713_v23, %v3493_v25 }
 0x394   : > { %v3667_v35 = vsel %vm1950_vm12, %v3623_v61, %v3399_v13 }
 0x396   : > { %v3541_v44 = vpop.permute.xlu0 %3540 }
 0x397   : > { %v3792_v18 = vsel %vm1950_vm12, %v3749_v11, %v3541_v44  ;;  %v3305_v39 = vpop.permute.xlu1 %3304 }
 0x398   : > { %4125 = vmatprep.mubr.bf16.mxu0 %v3792_v18  ;;  %v3591_v46 = vsel %vm1059_vm3, %v13404_v14, %v3305_v39 }
 0x399   : > { %4126 = vmatmul.mubr.bf16.gmra.mrb[112].mxu0 %v3664_v48 }
 0x39a   : > { %v3447_v34 = vpop.permute.xlu0 %3446 }
 0x39b   : > { %v3353_v40 = vpop.permute.xlu1 %3352  ;;  %v3716_v62 = vsel %vm1059_vm3, %v11364_v42, %v3447_v34 }
 0x39c   : > { %v3625_v43 = vsel %vm1917_vm5, %v3591_v46, %v3353_v40 }
 0x39e   : > { %v3495_v60 = vpop.permute.xlu0 %3494 }
 0x39f   : > { %v3401_v3 = vpop.permute.xlu1 %3400  ;;  %v3751_v53 = vsel %vm1917_vm5, %v3716_v62, %v3495_v60  ;;  %v11679_v62 = vld [vmem:[%s13408_s6] ss:$0 sm:$0xff]  ;;  %s9441_s6 = scalar_lea.vmem %s13045_s5, 4096 }
 0x3a0   : > { %v3670_v47 = vsel %vm1950_vm12, %v3625_v43, %v3401_v3  ;;  %p9442_p11 = scmp.ne.s32.totalorder %s13045_s5, %s9441_s6  ;;  %p9449_p1 = scmp.lt.s32.totalorder %s9447_s25, %s9441_s6 }
 0x3a2   : > { %v3543_v32 = vpop.permute.xlu0 %3542  ;;  %p9443_p12 = pnand %p9442_p11, %p9717_p5  ;;  %p9450_p2 = por %p9449_p1, %p9448_p0 }
 0x3a3   : > { %v3795_v17 = vsel %vm1950_vm12, %v3751_v53, %v3543_v32  ;;  %v3307_v57 = vpop.permute.xlu1 %3306 }
 0x3a4   : > { %4133 = vmatprep.mubr.bf16.mxu0 %v3795_v17  ;;  %v3594_v22 = vsel %vm1059_vm3, %v13405_v63, %v3307_v57  ;;  %p9444_p13 = pneg %p9443_p12 }
 0x3a5   : > { %4134 = vmatmul.mubr.bf16.gmra.mrb[116].mxu0 %v3667_v35 }
 0x3a6   : > { %v3449_v50 = vpop.permute.xlu0 %3448  ;;  %v11627_v21 = vpop.f32.mrb[68].mxu1  ;;  %p9451_p3 = pnand %p9450_p2, %p9444_p13 }
 0x3a7   : > { %v3355_v27 = vpop.permute.xlu1 %3354  ;;  %v11629_v31 = vpop.f32.mrb[69].mxu1  ;;  %v3719_v58 = vsel %vm1059_vm3, %v11425_v52, %v3449_v50 }
 0x3a8   : > { %v11631_v54 = vpop.f32.mrb[70].mxu1  ;;  %v3627_v26 = vsel %vm1917_vm5, %v3594_v22, %v3355_v27 }
 0x3a9   : > { %v11633_v9 = vpop.f32.mrb[71].mxu1 }
 0x3aa   : > { %v3497_v42 = vpop.permute.xlu0 %3496 }
 0x3ab   : > { %v3753_v24 = vsel %vm1917_vm5, %v3719_v58, %v3497_v42  ;;  %v3403_v15 = vpop.permute.xlu1 %3402 }
 0x3ac   : > { %v3673_v49 = vsel %vm1950_vm12, %v3627_v26, %v3403_v15 }
 0x3ae   : > { %v3545_v59 = vpop.permute.xlu0 %3544 }
 0x3af   : > { %v3798_v7 = vsel %vm1950_vm12, %v3753_v24, %v3545_v59  ;;  %v3309_v56 = vpop.permute.xlu1 %3308 }
 0x3b0   : > { %4141 = vmatprep.mubr.bf16.mxu0 %v3798_v7  ;;  %v3597_v25 = vsel %vm1059_vm3, %v13406_v37, %v3309_v56 }
 0x3b1   : > { %4142 = vmatmul.mubr.bf16.gmra.mrb[120].mxu0 %v3670_v47 }
 0x3b2   : > { %v3451_v29 = vpop.permute.xlu0 %3450 }
 0x3b3   : > { %v3722_v52 = vsel %vm1059_vm3, %v11455_v16, %v3451_v29  ;;  %v3357_v33 = vpop.permute.xlu1 %3356 }
 0x3b4   : > { %v3629_v44 = vsel %vm1917_vm5, %v3597_v25, %v3357_v33 }
 0x3b6   : > { %v3499_v1 = vpop.permute.xlu0 %3498 }
 0x3b7   : > { %v3755_v36 = vsel %vm1917_vm5, %v3722_v52, %v3499_v1  ;;  %v3405_v16 = vpop.permute.xlu1 %3404 }
 0x3b8   : > { %v3676_v39 = vsel %vm1950_vm12, %v3629_v44, %v3405_v16 }
 0x3ba   : > { %v3547_v28 = vpop.permute.xlu0 %3546 }
 0x3bb   : > { %v3801_v51 = vsel %vm1950_vm12, %v3755_v36, %v3547_v28 }
 0x3bc   : > { %4149 = vmatprep.mubr.bf16.mxu0 %v3801_v51 }
 0x3bd   : > { %4150 = vmatmul.mubr.bf16.gmra.mrb[124].mxu0 %v3673_v49  ;;  %v9173_v49 = vpop.permute.xlu1 %9172 }
 0x3be   : > { %v3453_v4 = vpop.permute.xlu0 %3452  ;;  %v11653_v6 = vpop.f32.mrb[72].mxu1  ;;  %v9175_v25 = vunpack.i.h.bf16 %v9173_v49 }
 0x3bf   : > { %v3725_v55 = vsel %vm1059_vm3, %v11475_v5, %v3453_v4  ;;  %v11657_v23 = vpop.f32.mrb[73].mxu1 }
 0x3c0   : > { %v3757_v11 = vsel %vm1917_vm5, %v3725_v55, %v13407_v41  ;;  %v11663_v18 = vpop.f32.mrb[74].mxu1 }
 0x3c1   : > { %v11665_v5 = vpop.f32.mrb[75].mxu1 }
 0x3c2   : > { %v3549_v13 = vpop.permute.xlu0 %3548 }
 0x3c3   : > { %v3804_v20 = vsel %vm1950_vm12, %v3757_v11, %v3549_v13  ;;  %v9174_v13 = vunpack.i.l.bf16 %v9173_v49 }
 0x3c4   : > { %4157 = vmatprep.mubr.bf16.mxu0 %v3804_v20 }
 0x3c5   : > { %4158 = vmatmul.mubr.bf16.gmra.mrb[128].mxu0 %v3676_v39 }
 0x3c6   : > { %v9168_v27 = vpop.permute.xlu0 %9167 }
 0x3c7   : > { %v9170_v15 = vunpack.i.h.bf16 %v9168_v27  ;;  %v9169_v7 = vunpack.i.l.bf16 %v9168_v27 }
 0x3d8   : > { %v11668_v48 = vpop.f32.mrb[76].mxu1 }
 0x3d9   : > { %v11670_v34 = vpop.f32.mrb[77].mxu1 }
 0x3da   : > { %v11672_v40 = vpop.f32.mrb[78].mxu1 }
 0x3db   : > { %v11674_v60 = vpop.f32.mrb[79].mxu1 }
 0x3e6   : > { %v8464_v3 = vpop.f32.mrb[68].mxu0 }
 0x3e7   : > { %v8465_v2 = vpop.f32.mrb[69].mxu0 }
 0x3e8   : > { %v8466_v53 = vadd.f32 %v8465_v2, %v8464_v3  ;;  %v8467_v32 = vpop.f32.mrb[70].mxu0 }
 0x3e9   : > { %v8468_v61 = vpop.f32.mrb[71].mxu0 }
 0x3ea   : > { %v4040_v17 = vadd.f32 %v8466_v53, %v11679_v62  ;;  %v8469_v57 = vadd.f32 %v8468_v61, %v8467_v32 }
 0x3ec   : > { %v4201_v35 = vadd.f32 %v11578_v8, %v4040_v17  ;;  %v4043_v50 = vadd.f32 %v8469_v57, %v11679_v62 }
 0x3ee   : > { %vm4327_vm12 = vcmp.ge.f32.partialorder %v4201_v35, 0.0  ;;  %v4359_v42 = vmul.f32 0.1, %v4201_v35  ;;  %v4204_v58 = vadd.f32 %v11583_v0, %v4043_v50  ;;  %v11685_v14 = vpop.f32.mrb[80].mxu1 }
 0x3ef   : > { %v11687_v46 = vpop.f32.mrb[81].mxu1 }
 0x3f0   : > { %v4391_v24 = vsel %vm4327_vm12, %v4201_v35, %v4359_v42  ;;  %vm4328_vm2 = vcmp.ge.f32.partialorder %v4204_v58, 0.0  ;;  %v4360_v59 = vmul.f32 0.1, %v4204_v58  ;;  %v11689_v43 = vpop.f32.mrb[82].mxu1  ;;  %v9178_v42 = vpop.permute.xlu0 %9177 }
 0x3f1   : > { %v11691_v47 = vpop.f32.mrb[83].mxu1  ;;  %v4551_v1 = vsel %vm1059_vm3, %v4391_v24, %v9169_v7  ;;  %v9180_v7 = vunpack.i.h.bf16 %v9178_v42 }
 0x3f2   : > { %v4392_v8 = vsel %vm4328_vm2, %v4204_v58, %v4360_v59  ;;  %v8470_v29 = vpop.f32.mrb[72].mxu0 }
 0x3f3   : > { %v8471_v56 = vpop.f32.mrb[73].mxu0  ;;  %v4552_v0 = vsel %vm1059_vm3, %v4392_v8, %v9170_v15  ;;  %v9179_v8 = vunpack.i.l.bf16 %v9178_v42 }
 0x3f4   : > { %v8472_v52 = vadd.f32 %v8471_v56, %v8470_v29  ;;  %v8473_v63 = vpop.f32.mrb[74].mxu0  ;;  %v4583_v22 = vpack.c.bf16 %v4552_v0, %v4551_v1 }
 0x3f5   : > { %v8474_v36 = vpop.f32.mrb[75].mxu0 }
 0x3f6   : > { %v4048_v28 = vadd.f32 %v8472_v52, %v11679_v62  ;;  %v8475_v26 = vadd.f32 %v8474_v36, %v8473_v63  ;;  %8988 = vmatprep.mubr.msk.bf16.mxu1 %vm1917_vm5, %v4583_v22 }
 0x3f8   : > { %v4209_v33 = vadd.f32 %v11573_v45, %v4048_v28  ;;  %v4051_v51 = vadd.f32 %v8475_v26, %v11679_v62 }
 0x3fa   : > { %vm4329_vm6 = vcmp.ge.f32.partialorder %v4209_v33, 0.0  ;;  %v4361_v4 = vmul.f32 0.1, %v4209_v33  ;;  %v4212_v55 = vadd.f32 %v11580_v12, %v4051_v51  ;;  %v9183_v51 = vpop.permute.xlu1 %9182 }
 0x3fc   : > { %v4393_v16 = vsel %vm4329_vm6, %v4209_v33, %v4361_v4  ;;  %vm4330_vm7 = vcmp.ge.f32.partialorder %v4212_v55, 0.0  ;;  %v4362_v37 = vmul.f32 0.1, %v4212_v55 }
 0x3fd   : > { %v4553_v44 = vsel %vm1059_vm3, %v4393_v16, %v9174_v13  ;;  %v9185_v13 = vunpack.i.h.bf16 %v9183_v51 }
 0x3fe   : > { %v4394_v41 = vsel %vm4330_vm7, %v4212_v55, %v4362_v37 }
 0x3ff   : > { %v4554_v20 = vsel %vm1059_vm3, %v4394_v41, %v9175_v25  ;;  %v9184_v41 = vunpack.i.l.bf16 %v9183_v51 }
 0x400   : > { %v8476_v11 = vpop.f32.mrb[76].mxu0  ;;  %v4584_v45 = vpack.c.bf16 %v4554_v20, %v4553_v44 }
 0x401   : > { %v8477_v39 = vpop.f32.mrb[77].mxu0 }
 0x402   : > { %v8478_v3 = vadd.f32 %v8477_v39, %v8476_v11  ;;  %v8479_v2 = vpop.f32.mrb[78].mxu0  ;;  %v11702_v53 = vpop.f32.mrb[84].mxu1  ;;  %8989 = vmatmul.mubr.msk.bf16.vlgmr.msra.gmra.mrb[92].mxu1 %vm1917_vm5, %v4584_v45 }
 0x403   : > { %v8480_v32 = vpop.f32.mrb[79].mxu0  ;;  %v11704_v61 = vpop.f32.mrb[85].mxu1 }
 0x404   : > { %v4056_v12 = vadd.f32 %v8478_v3, %v11679_v62  ;;  %v8481_v17 = vadd.f32 %v8480_v32, %v8479_v2  ;;  %v11708_v57 = vpop.f32.mrb[86].mxu1 }
 0x405   : > { %v11710_v35 = vpop.f32.mrb[87].mxu1 }
 0x406   : > { %v4217_v50 = vadd.f32 %v11605_v10, %v4056_v12  ;;  %v4059_v27 = vadd.f32 %v8481_v17, %v11679_v62 }
 0x408   : > { %vm4331_vm8 = vcmp.ge.f32.partialorder %v4217_v50, 0.0  ;;  %v4363_v58 = vmul.f32 0.1, %v4217_v50  ;;  %v4220_v24 = vadd.f32 %v11611_v38, %v4059_v27 }
 0x40a   : > { %v4395_v59 = vsel %vm4331_vm8, %v4217_v50, %v4363_v58  ;;  %vm4332_vm9 = vcmp.ge.f32.partialorder %v4220_v24, 0.0  ;;  %v4364_v15 = vmul.f32 0.1, %v4220_v24  ;;  %v9188_v58 = vpop.permute.xlu0 %9187 }
 0x40b   : > { %v4555_v0 = vsel %vm1059_vm3, %v4395_v59, %v9179_v8  ;;  %v9190_v8 = vunpack.i.h.bf16 %v9188_v58 }
 0x40c   : > { %v4396_v29 = vsel %vm4332_vm9, %v4220_v24, %v4364_v15  ;;  %v8482_v56 = vpop.f32.mrb[80].mxu0 }
 0x40d   : > { %v8483_v1 = vpop.f32.mrb[81].mxu0  ;;  %v4556_v52 = vsel %vm1059_vm3, %v4396_v29, %v9180_v7  ;;  %v9189_v29 = vunpack.i.l.bf16 %v9188_v58 }
 0x40e   : > { %v8484_v10 = vadd.f32 %v8483_v1, %v8482_v56  ;;  %v8485_v63 = vpop.f32.mrb[82].mxu0  ;;  %v4585_v22 = vpack.c.bf16 %v4556_v52, %v4555_v0  ;;  %v11722_v55 = vpop.f32.mrb[88].mxu1 }
 0x40f   : > { %v8486_v36 = vpop.f32.mrb[83].mxu0  ;;  %v11724_v25 = vpop.f32.mrb[89].mxu1 }
 0x410   : > { %v4064_v28 = vadd.f32 %v8484_v10, %v11679_v62  ;;  %v8487_v26 = vadd.f32 %v8486_v36, %v8485_v63  ;;  %8992 = vmatprep.mubr.msk.bf16.mxu1 %vm1917_vm5, %v4585_v22 }
 0x412   : > { %v4225_v38 = vadd.f32 %v11603_v19, %v4064_v28  ;;  %v4067_v33 = vadd.f32 %v8487_v26, %v11679_v62 }
 0x414   : > { %vm4333_vm10 = vcmp.ge.f32.partialorder %v4225_v38, 0.0  ;;  %v4365_v49 = vmul.f32 0.1, %v4225_v38  ;;  %v4228_v4 = vadd.f32 %v11607_v30, %v4067_v33  ;;  %v11728_v30 = vpop.f32.mrb[90].mxu1  ;;  %v9193_v33 = vpop.permute.xlu1 %9192 }
 0x415   : > { %v11730_v12 = vpop.f32.mrb[91].mxu1 }
 0x416   : > { %v4397_v16 = vsel %vm4333_vm10, %v4225_v38, %v4365_v49  ;;  %vm4334_vm11 = vcmp.ge.f32.partialorder %v4228_v4, 0.0  ;;  %v4366_v37 = vmul.f32 0.1, %v4228_v4 }
 0x417   : > { %v4557_v19 = vsel %vm1059_vm3, %v4397_v16, %v9184_v41 }
 0x418   : > { %v4398_v11 = vsel %vm4334_vm11, %v4228_v4, %v4366_v37  ;;  %v8488_v44 = vpop.f32.mrb[84].mxu0  ;;  %v9195_v37 = vunpack.i.h.bf16 %v9193_v33 }
 0x419   : > { %v8489_v20 = vpop.f32.mrb[85].mxu0  ;;  %v4558_v39 = vsel %vm1059_vm3, %v4398_v11, %v9185_v13  ;;  %v9194_v13 = vunpack.i.l.bf16 %v9193_v33 }
 0x41a   : > { %v8490_v45 = vadd.f32 %v8489_v20, %v8488_v44  ;;  %v8491_v3 = vpop.f32.mrb[86].mxu0  ;;  %v4586_v2 = vpack.c.bf16 %v4558_v39, %v4557_v19 }
 0x41b   : > { %v8492_v32 = vpop.f32.mrb[87].mxu0 }
 0x41c   : > { %v4072_v17 = vadd.f32 %v8490_v45, %v11679_v62  ;;  %v8493_v50 = vadd.f32 %v8492_v32, %v8491_v3  ;;  %8993 = vmatmul.mubr.msk.bf16.gmra.mrb[96].mxu1 %vm1917_vm5, %v4586_v2 }
 0x41e   : > { %v4233_v27 = vadd.f32 %v11629_v31, %v4072_v17  ;;  %v4075_v42 = vadd.f32 %v8493_v50, %v11679_v62  ;;  %v9198_v50 = vpop.permute.xlu0 %9197 }
 0x420   : > { %vm4335_vm4 = vcmp.ge.f32.partialorder %v4233_v27, 0.0  ;;  %v4367_v24 = vmul.f32 0.1, %v4233_v27  ;;  %v4236_v59 = vadd.f32 %v11633_v9, %v4075_v42 }
 0x422   : > { %v4399_v15 = vsel %vm4335_vm4, %v4233_v27, %v4367_v24  ;;  %vm4336_vm13 = vcmp.ge.f32.partialorder %v4236_v59, 0.0  ;;  %v4368_v7 = vmul.f32 0.1, %v4236_v59  ;;  %vm5008_vm4 = vcmask 517120  }
 0x423   : > { %v4559_v52 = vsel %vm1059_vm3, %v4399_v15, %v9189_v29  ;;  %v9199_v15 = vunpack.i.l.bf16 %v9198_v50 }
 0x424   : > { %v4400_v56 = vsel %vm4336_vm13, %v4236_v59, %v4368_v7  ;;  %v8494_v1 = vpop.f32.mrb[88].mxu0  ;;  %v9200_v59 = vunpack.i.h.bf16 %v9198_v50 }
 0x425   : > { %v8495_v0 = vpop.f32.mrb[89].mxu0  ;;  %v4560_v10 = vsel %vm1059_vm3, %v4400_v56, %v9190_v8 }
 0x426   : > { %v8496_v31 = vadd.f32 %v8495_v0, %v8494_v1  ;;  %v8497_v63 = vpop.f32.mrb[90].mxu0  ;;  %v4587_v22 = vpack.c.bf16 %v4560_v10, %v4559_v52 }
 0x427   : > { %v8498_v36 = vpop.f32.mrb[91].mxu0 }
 0x428   : > { %v4080_v28 = vadd.f32 %v8496_v31, %v11679_v62  ;;  %v8499_v26 = vadd.f32 %v8498_v36, %v8497_v63  ;;  %8996 = vmatprep.mubr.msk.bf16.mxu1 %vm1917_vm5, %v4587_v22  ;;  %v9203_v36 = vpop.permute.xlu1 %9202 }
 0x429   : > { %v9205_v33 = vunpack.i.h.bf16 %v9203_v36 }
 0x42a   : > { %v4241_v9 = vadd.f32 %v11627_v21, %v4080_v28  ;;  %v4083_v38 = vadd.f32 %v8499_v26, %v11679_v62 }
 0x42c   : > { %vm4337_vm14 = vcmp.ge.f32.partialorder %v4241_v9, 0.0  ;;  %v4369_v51 = vmul.f32 0.1, %v4241_v9  ;;  %v4244_v49 = vadd.f32 %v11631_v54, %v4083_v38 }
 0x42e   : > { %v4401_v4 = vsel %vm4337_vm14, %v4241_v9, %v4369_v51  ;;  %vm4338_vm15 = vcmp.ge.f32.partialorder %v4244_v49, 0.0  ;;  %v4370_v16 = vmul.f32 0.1, %v4244_v49  ;;  %v9204_v51 = vunpack.i.l.bf16 %v9203_v36 }
 0x42f   : > { %v4561_v20 = vsel %vm1059_vm3, %v4401_v4, %v9194_v13 }
 0x430   : > { %v4402_v41 = vsel %vm4338_vm15, %v4244_v49, %v4370_v16  ;;  %v8500_v11 = vpop.f32.mrb[92].mxu0 }
 0x431   : > { %v8501_v44 = vpop.f32.mrb[93].mxu0  ;;  %v4562_v19 = vsel %vm1059_vm3, %v4402_v41, %v9195_v37 }
 0x432   : > { %v8502_v21 = vadd.f32 %v8501_v44, %v8500_v11  ;;  %v8503_v39 = vpop.f32.mrb[94].mxu0  ;;  %v4588_v45 = vpack.c.bf16 %v4562_v19, %v4561_v20 }
 0x433   : > { %v8504_v3 = vpop.f32.mrb[95].mxu0 }
 0x434   : > { %v4088_v2 = vadd.f32 %v8502_v21, %v11679_v62  ;;  %v8505_v32 = vadd.f32 %v8504_v3, %v8503_v39  ;;  %8997 = vmatmul.mubr.msk.bf16.gmra.mrb[100].mxu1 %vm1917_vm5, %v4588_v45  ;;  %v9208_v39 = vpop.permute.xlu0 %9207 }
 0x436   : > { %v4249_v54 = vadd.f32 %v11657_v23, %v4088_v2  ;;  %v4091_v17 = vadd.f32 %v8505_v32, %v11679_v62 }
 0x438   : > { %vm4339_vm0 = vcmp.ge.f32.partialorder %v4249_v54, 0.0  ;;  %v4371_v27 = vmul.f32 0.1, %v4249_v54  ;;  %v4252_v42 = vadd.f32 %v11665_v5, %v4091_v17  ;;  %v9209_v17 = vunpack.i.l.bf16 %v9208_v39 }
 0x43a   : > { %v4403_v58 = vsel %vm4339_vm0, %v4249_v54, %v4371_v27  ;;  %vm4340_vm1 = vcmp.ge.f32.partialorder %v4252_v42, 0.0  ;;  %v4372_v24 = vmul.f32 0.1, %v4252_v42  ;;  %v9210_v54 = vunpack.i.h.bf16 %v9208_v39 }
 0x43b   : > { %v4563_v56 = vsel %vm1059_vm3, %v4403_v58, %v9199_v15 }
 0x43c   : > { %v4404_v7 = vsel %vm4340_vm1, %v4252_v42, %v4372_v24  ;;  %v8506_v8 = vpop.f32.mrb[96].mxu0 }
 0x43d   : > { %v8507_v29 = vpop.f32.mrb[97].mxu0  ;;  %v4564_v1 = vsel %vm1059_vm3, %v4404_v7, %v9200_v59 }
 0x43e   : > { %v8508_v23 = vadd.f32 %v8507_v29, %v8506_v8  ;;  %v8509_v0 = vpop.f32.mrb[98].mxu0  ;;  %v4589_v52 = vpack.c.bf16 %v4564_v1, %v4563_v56  ;;  %v9213_v1 = vpop.permute.xlu1 %9212 }
 0x43f   : > { %v8510_v10 = vpop.f32.mrb[99].mxu0 }
 0x440   : > { %v4096_v31 = vadd.f32 %v8508_v23, %v11679_v62  ;;  %v8511_v63 = vadd.f32 %v8510_v10, %v8509_v0  ;;  %9000 = vmatprep.mubr.msk.bf16.mxu1 %vm1917_vm5, %v4589_v52 }
 0x442   : > { %v4257_v5 = vadd.f32 %v11653_v6, %v4096_v31  ;;  %v4099_v22 = vadd.f32 %v8511_v63, %v11679_v62  ;;  %v9215_v31 = vunpack.i.h.bf16 %v9213_v1  ;;  %v9214_v63 = vunpack.i.l.bf16 %v9213_v1 }
 0x444   : > { %vm4341_vm12 = vcmp.ge.f32.partialorder %v4257_v5, 0.0  ;;  %v4373_v28 = vmul.f32 0.1, %v4257_v5  ;;  %v4260_v26 = vadd.f32 %v11663_v18, %v4099_v22 }
 0x446   : > { %v4405_v9 = vsel %vm4341_vm12, %v4257_v5, %v4373_v28  ;;  %vm4342_vm2 = vcmp.ge.f32.partialorder %v4260_v26, 0.0  ;;  %v4374_v38 = vmul.f32 0.1, %v4260_v26 }
 0x447   : > { %v4565_v37 = vsel %vm1059_vm3, %v4405_v9, %v9204_v51 }
 0x448   : > { %v4406_v49 = vsel %vm4342_vm2, %v4260_v26, %v4374_v38  ;;  %v8512_v4 = vpop.f32.mrb[100].mxu0 }
 0x449   : > { %v8513_v16 = vpop.f32.mrb[101].mxu0  ;;  %v4566_v13 = vsel %vm1059_vm3, %v4406_v49, %v9205_v33 }
 0x44a   : > { %v8514_v6 = vadd.f32 %v8513_v16, %v8512_v4  ;;  %v8515_v41 = vpop.f32.mrb[102].mxu0  ;;  %v4590_v11 = vpack.c.bf16 %v4566_v13, %v4565_v37  ;;  %v9218_v16 = vpop.permute.xlu0 %9217 }
 0x44b   : > { %v8516_v44 = vpop.f32.mrb[103].mxu0 }
 0x44c   : > { %v4104_v20 = vadd.f32 %v8514_v6, %v11679_v62  ;;  %v8517_v19 = vadd.f32 %v8516_v44, %v8515_v41  ;;  %9001 = vmatmul.mubr.msk.bf16.gmra.mrb[104].mxu1 %vm1917_vm5, %v4590_v11  ;;  %v9220_v11 = vunpack.i.h.bf16 %v9218_v16  ;;  %v9219_v44 = vunpack.i.l.bf16 %v9218_v16 }
 0x44e   : > { %v4265_v18 = vadd.f32 %v11670_v34, %v4104_v20  ;;  %v4107_v21 = vadd.f32 %v8517_v19, %v11679_v62 }
 0x450   : > { %vm4343_vm6 = vcmp.ge.f32.partialorder %v4265_v18, 0.0  ;;  %v4375_v45 = vmul.f32 0.1, %v4265_v18  ;;  %v4268_v3 = vadd.f32 %v11674_v60, %v4107_v21 }
 0x452   : > { %v4407_v2 = vsel %vm4343_vm6, %v4265_v18, %v4375_v45  ;;  %vm4344_vm7 = vcmp.ge.f32.partialorder %v4268_v3, 0.0  ;;  %v4376_v32 = vmul.f32 0.1, %v4268_v3 }
 0x453   : > { %v4567_v58 = vsel %vm1059_vm3, %v4407_v2, %v9209_v17 }
 0x454   : > { %v4408_v50 = vsel %vm4344_vm7, %v4268_v3, %v4376_v32  ;;  %v8518_v27 = vpop.f32.mrb[104].mxu0  ;;  %v13409_v32 = vmov 0.0  }
 0x455   : > { %v8519_v42 = vpop.f32.mrb[105].mxu0  ;;  %v4568_v24 = vsel %vm1059_vm3, %v4408_v50, %v9210_v54  ;;  %5009 = vst.msk [vmem:[#allocation3 + $0x8] sm:$0x3] %vm5008_vm4, %v13409_v32  ;;  %5011 = vst.msk [vmem:[#allocation3 + $0x18] sm:$0x3] %vm5008_vm4, %v13409_v32 }
 0x456   : > { %v8520_v34 = vadd.f32 %v8519_v42, %v8518_v27  ;;  %v8521_v59 = vpop.f32.mrb[106].mxu0  ;;  %v4591_v15 = vpack.c.bf16 %v4568_v24, %v4567_v58  ;;  %5013 = vst.msk [vmem:[#allocation3 + $0x28] sm:$0x3] %vm5008_vm4, %v13409_v32  ;;  %5015 = vst.msk [vmem:[#allocation3 + $0x38] sm:$0x3] %vm5008_vm4, %v13409_v32  ;;  %v9223_v27 = vpop.permute.xlu1 %9222 }
 0x457   : > { %v8522_v7 = vpop.f32.mrb[107].mxu0  ;;  %5017 = vst.msk [vmem:[#allocation3 + $0x48] sm:$0x3] %vm5008_vm4, %v13409_v32  ;;  %5019 = vst.msk [vmem:[#allocation3 + $0x58] sm:$0x3] %vm5008_vm4, %v13409_v32 }
 0x458   : > { %v4112_v8 = vadd.f32 %v8520_v34, %v11679_v62  ;;  %v8523_v29 = vadd.f32 %v8522_v7, %v8521_v59  ;;  %9004 = vmatprep.mubr.msk.bf16.mxu1 %vm1917_vm5, %v4591_v15  ;;  %5021 = vst.msk [vmem:[#allocation3 + $0x68] sm:$0x3] %vm5008_vm4, %v13409_v32  ;;  %5023 = vst.msk [vmem:[#allocation3 + $0x78] sm:$0x3] %vm5008_vm4, %v13409_v32  ;;  %v9225_v59 = vunpack.i.h.bf16 %v9223_v27  ;;  %v9224_v15 = vunpack.i.l.bf16 %v9223_v27 }
 0x459   : > { %5025 = vst.msk [vmem:[#allocation3 + $0x88] sm:$0x3] %vm5008_vm4, %v13409_v32  ;;  %5027 = vst.msk [vmem:[#allocation3 + $0x98] sm:$0x3] %vm5008_vm4, %v13409_v32 }
 0x45a   : > { %v4273_v60 = vadd.f32 %v11668_v48, %v4112_v8  ;;  %v4115_v56 = vadd.f32 %v8523_v29, %v11679_v62  ;;  %v11808_v8 = vld [vmem:[#allocation3] sm:$0xff] }
 0x45c   : > { %vm4345_vm8 = vcmp.ge.f32.partialorder %v4273_v60, 0.0  ;;  %v4377_v23 = vmul.f32 0.1, %v4273_v60  ;;  %v4276_v0 = vadd.f32 %v11672_v40, %v4115_v56  ;;  %v11806_v7 = vld [vmem:[#allocation3 + $0x1] sm:$0xff] }
 0x45d   : > { %v11810_v29 = vld [vmem:[#allocation3 + $0x2] sm:$0xff] }
 0x45e   : > { %v4409_v52 = vsel %vm4345_vm8, %v4273_v60, %v4377_v23  ;;  %vm4346_vm9 = vcmp.ge.f32.partialorder %v4276_v0, 0.0  ;;  %v4378_v10 = vmul.f32 0.1, %v4276_v0  ;;  %6041 = vst.msk [vmem:[#allocation3] sm:$0xff] %vm1917_vm5, %v13409_v32 }
 0x45f   : > { %v4569_v28 = vsel %vm1059_vm3, %v4409_v52, %v9214_v63  ;;  %6042 = vst.msk [vmem:[#allocation3 + $0x8] sm:$0x3] %vm5008_vm4, %v13409_v32 }
 0x460   : > { %v4410_v5 = vsel %vm4346_vm9, %v4276_v0, %v4378_v10  ;;  %v8524_v22 = vpop.f32.mrb[108].mxu0 }
 0x461   : > { %v8525_v36 = vpop.f32.mrb[109].mxu0  ;;  %v4570_v26 = vsel %vm1059_vm3, %v4410_v5, %v9215_v31 }
 0x462   : > { %v8526_v48 = vadd.f32 %v8525_v36, %v8524_v22  ;;  %v8527_v9 = vpop.f32.mrb[110].mxu0  ;;  %v4592_v38 = vpack.c.bf16 %v4570_v26, %v4569_v28  ;;  %v9228_v36 = vpop.permute.xlu0 %9227 }
 0x463   : > { %v8528_v33 = vpop.f32.mrb[111].mxu0 }
 0x464   : > { %v4120_v51 = vadd.f32 %v8526_v48, %v11679_v62  ;;  %v8529_v49 = vadd.f32 %v8528_v33, %v8527_v9  ;;  %9005 = vmatmul.mubr.msk.bf16.gmra.mrb[108].mxu1 %vm1917_vm5, %v4592_v38  ;;  %v9230_v38 = vunpack.i.h.bf16 %v9228_v36  ;;  %v9229_v33 = vunpack.i.l.bf16 %v9228_v36 }
 0x466   : > { %v4281_v40 = vadd.f32 %v11687_v46, %v4120_v51  ;;  %v4123_v4 = vadd.f32 %v8529_v49, %v11679_v62 }
 0x468   : > { %vm4347_vm10 = vcmp.ge.f32.partialorder %v4281_v40, 0.0  ;;  %v4379_v37 = vmul.f32 0.1, %v4281_v40  ;;  %v4284_v13 = vadd.f32 %v11691_v47, %v4123_v4 }
 0x46a   : > { %v4411_v6 = vsel %vm4347_vm10, %v4281_v40, %v4379_v37  ;;  %vm4348_vm11 = vcmp.ge.f32.partialorder %v4284_v13, 0.0  ;;  %v4380_v41 = vmul.f32 0.1, %v4284_v13 }
 0x46b   : > { %v4571_v21 = vsel %vm1059_vm3, %v4411_v6, %v9219_v44 }
 0x46c   : > { %v4412_v20 = vsel %vm4348_vm11, %v4284_v13, %v4380_v41  ;;  %v8530_v19 = vpop.f32.mrb[112].mxu0 }
 0x46d   : > { %v8531_v18 = vpop.f32.mrb[113].mxu0  ;;  %v4572_v39 = vsel %vm1059_vm3, %v4412_v20, %v9220_v11  ;;  %v9233_v20 = vpop.permute.xlu1 %9232 }
 0x46e   : > { %v8532_v46 = vadd.f32 %v8531_v18, %v8530_v19  ;;  %v8533_v45 = vpop.f32.mrb[114].mxu0  ;;  %v4593_v3 = vpack.c.bf16 %v4572_v39, %v4571_v21 }
 0x46f   : > { %v8534_v2 = vpop.f32.mrb[115].mxu0 }
 0x470   : > { %v4128_v47 = vadd.f32 %v8532_v46, %v11679_v62  ;;  %v8535_v54 = vadd.f32 %v8534_v2, %v8533_v45  ;;  %9008 = vmatprep.mubr.msk.bf16.mxu1 %vm1917_vm5, %v4593_v3  ;;  %v9235_v46 = vunpack.i.h.bf16 %v9233_v20  ;;  %v9234_v45 = vunpack.i.l.bf16 %v9233_v20 }
 0x472   : > { %v4289_v17 = vadd.f32 %v11685_v14, %v4128_v47  ;;  %v4131_v50 = vadd.f32 %v8535_v54, %v11679_v62 }
 0x474   : > { %vm4349_vm13 = vcmp.ge.f32.partialorder %v4289_v17, 0.0  ;;  %v4381_v42 = vmul.f32 0.1, %v4289_v17  ;;  %v4292_v58 = vadd.f32 %v11689_v43, %v4131_v50 }
 0x476   : > { %v4413_v24 = vsel %vm4349_vm13, %v4289_v17, %v4381_v42  ;;  %vm4350_vm14 = vcmp.ge.f32.partialorder %v4292_v58, 0.0  ;;  %v4382_v34 = vmul.f32 0.1, %v4292_v58  ;;  %vm5053_vm13 = vcmask 516096  }
 0x477   : > { %v4573_v56 = vsel %vm1059_vm3, %v4413_v24, %v9224_v15 }
 0x478   : > { %v4414_v60 = vsel %vm4350_vm14, %v4292_v58, %v4382_v34  ;;  %v8536_v14 = vpop.f32.mrb[116].mxu0 }
 0x479   : > { %v8537_v43 = vpop.f32.mrb[117].mxu0  ;;  %v4574_v1 = vsel %vm1059_vm3, %v4414_v60, %v9225_v59  ;;  %v9238_v59 = vpop.permute.xlu0 %9237 }
 0x47a   : > { %v8538_v23 = vadd.f32 %v8537_v43, %v8536_v14  ;;  %v8539_v0 = vpop.f32.mrb[118].mxu0  ;;  %v4594_v52 = vpack.c.bf16 %v4574_v1, %v4573_v56 }
 0x47b   : > { %v8540_v10 = vpop.f32.mrb[119].mxu0 }
 0x47c   : > { %v4136_v31 = vadd.f32 %v8538_v23, %v11679_v62  ;;  %v8541_v63 = vadd.f32 %v8540_v10, %v8539_v0  ;;  %9009 = vmatmul.mubr.msk.bf16.gmra.mrb[112].mxu1 %vm1917_vm5, %v4594_v52  ;;  %v9240_v52 = vunpack.i.h.bf16 %v9238_v59  ;;  %v9239_v10 = vunpack.i.l.bf16 %v9238_v59 }
 0x47e   : > { %v4297_v5 = vadd.f32 %v11704_v61, %v4136_v31  ;;  %v4139_v22 = vadd.f32 %v8541_v63, %v11679_v62 }
 0x480   : > { %vm4351_vm15 = vcmp.ge.f32.partialorder %v4297_v5, 0.0  ;;  %v4383_v28 = vmul.f32 0.1, %v4297_v5  ;;  %v4300_v26 = vadd.f32 %v11710_v35, %v4139_v22 }
 0x482   : > { %v4415_v48 = vsel %vm4351_vm15, %v4297_v5, %v4383_v28  ;;  %vm4352_vm0 = vcmp.ge.f32.partialorder %v4300_v26, 0.0  ;;  %v4384_v9 = vmul.f32 0.1, %v4300_v26 }
 0x483   : > { %v4575_v4 = vsel %vm1059_vm3, %v4415_v48, %v9229_v33  ;;  %v9243_v48 = vpop.permute.xlu1 %9242 }
 0x484   : > { %v4416_v51 = vsel %vm4352_vm0, %v4300_v26, %v4384_v9  ;;  %v8542_v49 = vpop.f32.mrb[120].mxu0 }
 0x485   : > { %v8543_v40 = vpop.f32.mrb[121].mxu0  ;;  %v4576_v16 = vsel %vm1059_vm3, %v4416_v51, %v9230_v38 }
 0x486   : > { %v8544_v61 = vadd.f32 %v8543_v40, %v8542_v49  ;;  %v8545_v37 = vpop.f32.mrb[122].mxu0  ;;  %v4595_v13 = vpack.c.bf16 %v4576_v16, %v4575_v4  ;;  %v9245_v49 = vunpack.i.h.bf16 %v9243_v48  ;;  %v9244_v40 = vunpack.i.l.bf16 %v9243_v48  ;;  %v9328_v48 = vld [vmem:[%s13191_s9 + $0x10] sm:$0xff]  }
 0x487   : > { %v8546_v6 = vpop.f32.mrb[123].mxu0 }
 0x488   : > { %v4144_v41 = vadd.f32 %v8544_v61, %v11679_v62  ;;  %v8547_v11 = vadd.f32 %v8546_v6, %v8545_v37  ;;  %9012 = vmatprep.mubr.msk.bf16.mxu1 %vm1917_vm5, %v4595_v13 }
 0x48a   : > { %v4305_v35 = vadd.f32 %v11702_v53, %v4144_v41  ;;  %v4147_v44 = vadd.f32 %v8547_v11, %v11679_v62 }
 0x48c   : > { %vm4353_vm1 = vcmp.ge.f32.partialorder %v4305_v35, 0.0  ;;  %v4385_v19 = vmul.f32 0.1, %v4305_v35  ;;  %v4308_v18 = vadd.f32 %v11708_v57, %v4147_v44 }
 0x48e   : > { %v4417_v21 = vsel %vm4353_vm1, %v4305_v35, %v4385_v19  ;;  %vm4354_vm12 = vcmp.ge.f32.partialorder %v4308_v18, 0.0  ;;  %v4386_v39 = vmul.f32 0.1, %v4308_v18 }
 0x48f   : > { %v4577_v54 = vsel %vm1059_vm3, %v4417_v21, %v9234_v45 }
 0x490   : > { %v4418_v3 = vsel %vm4354_vm12, %v4308_v18, %v4386_v39  ;;  %v8548_v2 = vpop.f32.mrb[124].mxu0 }
 0x491   : > { %v8549_v47 = vpop.f32.mrb[125].mxu0  ;;  %v4578_v17 = vsel %vm1059_vm3, %v4418_v3, %v9235_v46 }
 0x492   : > { %v8550_v53 = vadd.f32 %v8549_v47, %v8548_v2  ;;  %v8551_v50 = vpop.f32.mrb[126].mxu0  ;;  %v4596_v27 = vpack.c.bf16 %v4578_v17, %v4577_v54  ;;  %v9323_v54 = vld [vmem:[%s13191_s9 + $0x40] sm:$0xff]  }
 0x493   : > { %v8552_v42 = vpop.f32.mrb[127].mxu0  ;;  %v9324_v17 = vld [vmem:[%s13191_s9] sm:$0xff]   ;;  %8598 = vmatprep.subr.bf16.mxu0 %v9323_v54  ;;  %v9336_v54 = vld [vmem:[%s13191_s9 + $0x30] sm:$0xff]  }
 0x494   : > { %v8553_v58 = vadd.f32 %v8552_v42, %v8551_v50  ;;  %9013 = vmatmul.mubr.msk.bf16.gmra.mrb[116].mxu1 %vm1917_vm5, %v4596_v27  ;;  %v4152_v57 = vadd.f32 %v8550_v53, %v11679_v62  ;;  %8599 = vmatpush3.bf16.msra.mxu0 %v9324_v17 }
 0x496   : > { %v4313_v24 = vadd.f32 %v11724_v25, %v4152_v57  ;;  %v4155_v34 = vadd.f32 %v8553_v58, %v11679_v62 }
 0x498   : > { %vm4355_vm2 = vcmp.ge.f32.partialorder %v4313_v24, 0.0  ;;  %v4387_v15 = vmul.f32 0.1, %v4313_v24  ;;  %v4316_v60 = vadd.f32 %v11730_v12, %v4155_v34  ;;  %v8554_v14 = vpop.f32.mrb[128].mxu0 }
 0x499   : > { %v8555_v43 = vpop.f32.mrb[129].mxu0 }
 0x49a   : > { %v4419_v56 = vsel %vm4355_vm2, %v4313_v24, %v4387_v15  ;;  %vm4356_vm6 = vcmp.ge.f32.partialorder %v4316_v60, 0.0  ;;  %v4388_v1 = vmul.f32 0.1, %v4316_v60  ;;  %v8556_v23 = vadd.f32 %v8555_v43, %v8554_v14  ;;  %v8557_v0 = vpop.f32.mrb[130].mxu0 }
 0x49b   : > { %v8558_v31 = vpop.f32.mrb[131].mxu0  ;;  %v4579_v22 = vsel %vm1059_vm3, %v4419_v56, %v9239_v10 }
 0x49c   : > { %v4420_v63 = vsel %vm4356_vm6, %v4316_v60, %v4388_v1  ;;  %v4160_v25 = vadd.f32 %v8556_v23, %v11679_v62  ;;  %v8559_v5 = vadd.f32 %v8558_v31, %v8557_v0 }
 0x49d   : > { %v4580_v36 = vsel %vm1059_vm3, %v4420_v63, %v9240_v52 }
 0x49e   : > { %v4321_v12 = vadd.f32 %v11722_v55, %v4160_v25  ;;  %v4163_v28 = vadd.f32 %v8559_v5, %v11679_v62  ;;  %v4597_v26 = vpack.c.bf16 %v4580_v36, %v4579_v22  ;;  %v9325_v22 = vld [vmem:[%s13191_s9 + $0x48] sm:$0xff]  }
 0x49f   : > { %v9326_v36 = vld [vmem:[%s13191_s9 + $0x8] sm:$0xff]   ;;  %8600 = vmatprep.subr.bf16.mxu0 %v9325_v22  ;;  %v9338_v22 = vld [vmem:[%s13191_s9 + $0x38] sm:$0xff]  }
 0x4a0   : > { %vm4357_vm7 = vcmp.ge.f32.partialorder %v4321_v12, 0.0  ;;  %v4389_v9 = vmul.f32 0.1, %v4321_v12  ;;  %v4324_v38 = vadd.f32 %v11728_v30, %v4163_v28  ;;  %9016 = vmatprep.mubr.msk.bf16.mxu1 %vm1917_vm5, %v4597_v26  ;;  %v11853_v30 = vld [vmem:[%s13190_s8] ss:$0 sm:$0xff]  ;;  %v9327_v28 = vld [vmem:[%s13191_s9 + $0x50] sm:$0xff]   ;;  %8601 = vmatpush3.bf16.msra.mxu0 %v9326_v36 }
 0x4a1   : > { %8602 = vmatprep.subr.bf16.mxu0 %v9327_v28 }
 0x4a2   : > { %v4421_v33 = vsel %vm4357_vm7, %v4321_v12, %v4389_v9  ;;  %vm4358_vm8 = vcmp.ge.f32.partialorder %v4324_v38, 0.0  ;;  %v4390_v51 = vmul.f32 0.1, %v4324_v38 }
 0x4a3   : > { %v4581_v16 = vsel %vm1059_vm3, %v4421_v33, %v9244_v40 }
 0x4a4   : > { %v4422_v4 = vsel %vm4358_vm8, %v4324_v38, %v4390_v51  ;;  %8603 = vmatpush3.bf16.msra.mxu0 %v9328_v48 }
 0x4a5   : > { %v4582_v55 = vsel %vm1059_vm3, %v4422_v4, %v9245_v49  ;;  %v9329_v49 = vld [vmem:[%s13191_s9 + $0x58] sm:$0xff]  }
 0x4a6   : > { %v4598_v62 = vpack.c.bf16 %v4582_v55, %v4581_v16  ;;  %8604 = vmatprep.subr.bf16.mxu0 %v9329_v49 }
 0x4a8   : > { %9017 = vmatmul.mubr.msk.bf16.gmra.mrb[120].mxu1 %vm1917_vm5, %v4598_v62 }
 0x4d5   : > { %v8990_v61 = vpop.f32.mrb[92].mxu1 }
 0x4d6   : > { %v4729_v37 = vadd.f32 %v8990_v61, %v11853_v30  ;;  %v4720_v13 = vpop.f32.mrb[93].mxu1  ;;  %v9330_v61 = vld [vmem:[%s13191_s9 + $0x18] sm:$0xff]  }
 0x4d7   : > { %v4721_v6 = vadd.f32 %v11853_v30, %v4720_v13  ;;  %v8991_v41 = vpop.f32.mrb[94].mxu1  ;;  %8605 = vmatpush3.bf16.msra.mxu0 %v9330_v61 }
 0x4d8   : > { %vm4849_vm3 = vcmp.ge.f32.partialorder %v4729_v37, 0.0  ;;  %v4881_v11 = vmul.f32 0.1, %v4729_v37  ;;  %v4732_v35 = vadd.f32 %v8991_v41, %v11853_v30  ;;  %v4723_v44 = vpop.f32.mrb[95].mxu1 }
 0x4d9   : > { %vm4847_vm9 = vcmp.ge.f32.partialorder %v4721_v6, 0.0  ;;  %v4879_v20 = vmul.f32 0.1, %v4721_v6  ;;  %v4724_v19 = vadd.f32 %v11853_v30, %v4723_v44 }
 0x4da   : > { %v4913_v18 = vsel %vm4849_vm3, %v4729_v37, %v4881_v11  ;;  %vm4850_vm10 = vcmp.ge.f32.partialorder %v4732_v35, 0.0  ;;  %v4882_v21 = vmul.f32 0.1, %v4732_v35  ;;  %v9331_v11 = vld [vmem:[%s13191_s9 + $0x60] sm:$0xff]  }
 0x4db   : > { %4945 = vst.msk [vmem:[%s11860_s20 + $0x10] sm:$0xff] %vm1917_vm5, %v4913_v18  ;;  %v4911_v39 = vsel %vm4847_vm9, %v4721_v6, %v4879_v20  ;;  %vm4848_vm11 = vcmp.ge.f32.partialorder %v4724_v19, 0.0  ;;  %v4880_v46 = vmul.f32 0.1, %v4724_v19  ;;  %8606 = vmatprep.subr.bf16.mxu0 %v9331_v11 }
 0x4dc   : > { %4943 = vst.msk [vmem:[%s11860_s20] sm:$0xff] %vm1917_vm5, %v4911_v39  ;;  %v4975_v45 = vmax.f32 %v4911_v39, %v4913_v18  ;;  %v4914_v3 = vsel %vm4850_vm10, %v4732_v35, %v4882_v21  ;;  %v9332_v39 = vld [vmem:[%s13191_s9 + $0x20] sm:$0xff]  }
 0x4dd   : > { %4946 = vst.msk [vmem:[%s11860_s20 + $0x18] sm:$0xff] %vm1917_vm5, %v4914_v3  ;;  %v4912_v2 = vsel %vm4848_vm11, %v4724_v19, %v4880_v46  ;;  %8607 = vmatpush3.bf16.msra.mxu0 %v9332_v39 }
 0x4de   : > { %4991 = vst.msk [vmem:[#allocation4] sm:$0xff] %vm1917_vm5, %v4975_v45  ;;  %4944 = vst.msk [vmem:[%s11860_s20 + $0x8] sm:$0xff] %vm1917_vm5, %v4912_v2  ;;  %v4976_v47 = vmax.f32 %v4912_v2, %v4914_v3  ;;  %v9334_v2 = vld [vmem:[%s13191_s9 + $0x28] sm:$0xff]  }
 0x4e0   : > { %4992 = vst.msk [vmem:[#allocation4 + $0x8] sm:$0xff] %vm1917_vm5, %v4976_v47  ;;  %v9335_v47 = vld [vmem:[%s13191_s9 + $0x70] sm:$0xff]  }
 0x4e5   : > { %v5028_v53 = vld [vmem:[#allocation4] sm:$0x1]  ;;  %v5036_v50 = vld [vmem:[#allocation4 + $0x1] sm:$0x1]  ;;  %v5062_v27 = vld [vmem:[#allocation4 + $0x2] sm:$0x1] }
 0x4e6   : > { %v5044_v42 = vmax.f32 %v5028_v53, %v5036_v50  ;;  %v5070_v58 = vld [vmem:[#allocation4 + $0x3] sm:$0x1]  ;;  %v5094_v57 = vld [vmem:[#allocation4 + $0x4] sm:$0x1]  ;;  %v5102_v24 = vld [vmem:[#allocation4 + $0x5] sm:$0x1] }
 0x4e7   : > { %v5078_v34 = vmax.f32 %v5062_v27, %v5070_v58  ;;  %v5110_v59 = vmax.f32 %v5094_v57, %v5102_v24  ;;  %v5126_v15 = vld [vmem:[#allocation4 + $0x6] sm:$0x1]  ;;  %v5134_v60 = vld [vmem:[#allocation4 + $0x7] sm:$0x1]  ;;  %v5158_v14 = vld [vmem:[#allocation4 + $0x8] sm:$0x1] }
 0x4e8   : > { %v5142_v43 = vmax.f32 %v5126_v15, %v5134_v60  ;;  %v5166_v56 = vld [vmem:[#allocation4 + $0x9] sm:$0x1]  ;;  %v5190_v1 = vld [vmem:[#allocation4 + $0xa] sm:$0x1]  ;;  %v5198_v23 = vld [vmem:[#allocation4 + $0xb] sm:$0x1] }
 0x4e9   : > { %5054 = vst.msk [vmem:[#allocation3 + $0x11] sm:$0x1] %vm5053_vm13, %v5044_v42  ;;  %v5174_v0 = vmax.f32 %v5158_v14, %v5166_v56  ;;  %v5206_v52 = vmax.f32 %v5190_v1, %v5198_v23  ;;  %v5222_v10 = vld [vmem:[#allocation4 + $0xc] sm:$0x1]  ;;  %v5230_v31 = vld [vmem:[#allocation4 + $0xd] sm:$0x1] }
 0x4ea   : > { %v5254_v63 = vld [vmem:[#allocation4 + $0xe] sm:$0x1]  ;;  %5086 = vst.msk [vmem:[#allocation3 + $0x12] sm:$0x1] %vm5053_vm13, %v5078_v34  ;;  %5118 = vst.msk [vmem:[#allocation3 + $0x13] sm:$0x1] %vm5053_vm13, %v5110_v59  ;;  %v5238_v25 = vmax.f32 %v5222_v10, %v5230_v31 }
 0x4eb   : > { %v5262_v5 = vld [vmem:[#allocation4 + $0xf] sm:$0x1]  ;;  %5150 = vst.msk [vmem:[#allocation3 + $0x14] sm:$0x1] %vm5053_vm13, %v5142_v43  ;;  %5182 = vst.msk [vmem:[#allocation3 + $0x15] sm:$0x1] %vm5053_vm13, %v5174_v0 }
 0x4ec   : > { %v5270_v12 = vmax.f32 %v5254_v63, %v5262_v5  ;;  %5214 = vst.msk [vmem:[#allocation3 + $0x16] sm:$0x1] %vm5053_vm13, %v5206_v52  ;;  %5246 = vst.msk [vmem:[#allocation3 + $0x17] sm:$0x1] %vm5053_vm13, %v5238_v25  ;;  %v9337_v5 = vld [vmem:[%s13191_s9 + $0x78] sm:$0xff]  }
 0x4ee   : > { %5278 = vst.msk [vmem:[#allocation3 + $0x18] sm:$0x1] %vm5053_vm13, %v5270_v12 }
 0x4ef   : > { %v8994_v26 = vpop.f32.mrb[96].mxu1 }
 0x4f0   : > { %v4745_v9 = vadd.f32 %v8994_v26, %v11853_v30  ;;  %v4736_v38 = vpop.f32.mrb[97].mxu1 }
 0x4f1   : > { %v4737_v33 = vadd.f32 %v11853_v30, %v4736_v38  ;;  %v8995_v51 = vpop.f32.mrb[98].mxu1 }
 0x4f2   : > { %vm4853_vm14 = vcmp.ge.f32.partialorder %v4745_v9, 0.0  ;;  %v4885_v40 = vmul.f32 0.1, %v4745_v9  ;;  %v4748_v4 = vadd.f32 %v8995_v51, %v11853_v30  ;;  %v4739_v16 = vpop.f32.mrb[99].mxu1 }
 0x4f3   : > { %vm4851_vm15 = vcmp.ge.f32.partialorder %v4737_v33, 0.0  ;;  %v4883_v55 = vmul.f32 0.1, %v4737_v33  ;;  %v4740_v62 = vadd.f32 %v11853_v30, %v4739_v16  ;;  %v11915_v19 = vld [vmem:[#allocation3 + $0x10] sm:$0xff] }
 0x4f4   : > { %v4917_v37 = vsel %vm4853_vm14, %v4745_v9, %v4885_v40  ;;  %vm4854_vm0 = vcmp.ge.f32.partialorder %v4748_v4, 0.0  ;;  %v4886_v13 = vmul.f32 0.1, %v4748_v4 }
 0x4f5   : > { %4949 = vst.msk [vmem:[%s11860_s20 + $0x30] sm:$0xff] %vm1917_vm5, %v4917_v37  ;;  %v4915_v6 = vsel %vm4851_vm15, %v4737_v33, %v4883_v55  ;;  %vm4852_vm1 = vcmp.ge.f32.partialorder %v4740_v62, 0.0  ;;  %v4884_v41 = vmul.f32 0.1, %v4740_v62  ;;  %v5299_v20 = vld [vmem:[#allocation3 + $0x11] sm:$0xff] }
 0x4f6   : > { %4947 = vst.msk [vmem:[%s11860_s20 + $0x20] sm:$0xff] %vm1917_vm5, %v4915_v6  ;;  %v4977_v35 = vmax.f32 %v4915_v6, %v4917_v37  ;;  %v4918_v44 = vsel %vm4854_vm0, %v4748_v4, %v4886_v13  ;;  %v5306_v21 = vpack.c.bf16 %v5299_v20, %v11806_v7  ;;  %v11923_v46 = vld [vmem:[#allocation3 + $0x12] sm:$0xff] }
 0x4f7   : > { %4950 = vst.msk [vmem:[%s11860_s20 + $0x38] sm:$0xff] %vm1917_vm5, %v4918_v44  ;;  %v4916_v18 = vsel %vm4852_vm1, %v4740_v62, %v4884_v41  ;;  %v11925_v45 = vld [vmem:[#allocation3 + $0x11] sm:$0xff] }
 0x4f8   : > { %4993 = vst.msk [vmem:[#allocation4 + $0x10] sm:$0xff] %vm1917_vm5, %v4977_v35  ;;  %4948 = vst.msk [vmem:[%s11860_s20 + $0x28] sm:$0xff] %vm1917_vm5, %v4916_v18  ;;  %v4978_v3 = vmax.f32 %v4916_v18, %v4918_v44  ;;  %5399 = vrot.lane.b32.xlu1 %v5306_v21, %s13272_s26  ;;  %v9333_v7 = vld [vmem:[%s13191_s9 + $0x68] sm:$0xff]  }
 0x4f9   : > { %6044 = vst.msk [vmem:[#allocation3 + $0x18] sm:$0x3] %vm5008_vm4, %v13409_v32  ;;  %8608 = vmatprep.subr.bf16.mxu0 %v9333_v7 }
 0x4fa   : > { %6043 = vst.msk [vmem:[#allocation3 + $0x10] sm:$0xff] %vm1917_vm5, %v13409_v32  ;;  %4994 = vst.msk [vmem:[#allocation4 + $0x18] sm:$0xff] %vm1917_vm5, %v4978_v3  ;;  %8609 = vmatpush3.bf16.msra.mxu0 %v9334_v2 }
 0x4fb   : > { %8610 = vmatprep.subr.bf16.mxu0 %v9335_v47 }
 0x4fe   : > { %8611 = vmatpush3.bf16.msra.mxu0 %v9336_v54 }
 0x4ff   : > { %v5029_v17 = vld [vmem:[#allocation4 + $0x10] sm:$0x1]  ;;  %v5037_v53 = vld [vmem:[#allocation4 + $0x11] sm:$0x1]  ;;  %v5063_v50 = vld [vmem:[#allocation4 + $0x12] sm:$0x1]  ;;  %8612 = vmatprep.subr.bf16.mxu0 %v9337_v5 }
 0x500   : > { %v5045_v27 = vmax.f32 %v5029_v17, %v5037_v53  ;;  %v5071_v42 = vld [vmem:[#allocation4 + $0x13] sm:$0x1]  ;;  %v5095_v58 = vld [vmem:[#allocation4 + $0x14] sm:$0x1]  ;;  %v5103_v57 = vld [vmem:[#allocation4 + $0x15] sm:$0x1] }
 0x501   : > { %v5079_v24 = vmax.f32 %v5063_v50, %v5071_v42  ;;  %v5111_v34 = vmax.f32 %v5095_v58, %v5103_v57  ;;  %v5127_v59 = vld [vmem:[#allocation4 + $0x16] sm:$0x1]  ;;  %v5135_v15 = vld [vmem:[#allocation4 + $0x17] sm:$0x1]  ;;  %v5159_v60 = vld [vmem:[#allocation4 + $0x18] sm:$0x1] }
 0x502   : > { %v5143_v14 = vmax.f32 %v5127_v59, %v5135_v15  ;;  %v5167_v43 = vld [vmem:[#allocation4 + $0x19] sm:$0x1]  ;;  %v5191_v56 = vld [vmem:[#allocation4 + $0x1a] sm:$0x1]  ;;  %v5199_v1 = vld [vmem:[#allocation4 + $0x1b] sm:$0x1]  ;;  %8613 = vmatpush3.bf16.msra.mxu0 %v9338_v22 }
 0x503   : > { %5055 = vst.msk [vmem:[#allocation3 + $0x21] sm:$0x1] %vm5053_vm13, %v5045_v27  ;;  %v5175_v23 = vmax.f32 %v5159_v60, %v5167_v43  ;;  %v5207_v0 = vmax.f32 %v5191_v56, %v5199_v1  ;;  %v5223_v52 = vld [vmem:[#allocation4 + $0x1c] sm:$0x1]  ;;  %v5231_v10 = vld [vmem:[#allocation4 + $0x1d] sm:$0x1] }
 0x504   : > { %v5255_v31 = vld [vmem:[#allocation4 + $0x1e] sm:$0x1]  ;;  %5087 = vst.msk [vmem:[#allocation3 + $0x22] sm:$0x1] %vm5053_vm13, %v5079_v24  ;;  %5119 = vst.msk [vmem:[#allocation3 + $0x23] sm:$0x1] %vm5053_vm13, %v5111_v34  ;;  %v5239_v63 = vmax.f32 %v5223_v52, %v5231_v10 }
 0x505   : > { %v5263_v25 = vld [vmem:[#allocation4 + $0x1f] sm:$0x1]  ;;  %5151 = vst.msk [vmem:[#allocation3 + $0x24] sm:$0x1] %vm5053_vm13, %v5143_v14  ;;  %5183 = vst.msk [vmem:[#allocation3 + $0x25] sm:$0x1] %vm5053_vm13, %v5175_v23 }
 0x506   : > { %v5271_v36 = vmax.f32 %v5255_v31, %v5263_v25  ;;  %5215 = vst.msk [vmem:[#allocation3 + $0x26] sm:$0x1] %vm5053_vm13, %v5207_v0  ;;  %5247 = vst.msk [vmem:[#allocation3 + $0x27] sm:$0x1] %vm5053_vm13, %v5239_v63  ;;  %v11995_v1 = vld [vmem:[#allocation3 + $0x91] sm:$0xff] }
 0x507   : > { %v8998_v12 = vpop.f32.mrb[100].mxu1  ;;  %v11997_v23 = vld [vmem:[#allocation3 + $0x92] sm:$0xff] }
 0x508   : > { %5279 = vst.msk [vmem:[#allocation3 + $0x28] sm:$0x1] %vm5053_vm13, %v5271_v36  ;;  %v4761_v28 = vadd.f32 %v8998_v12, %v11853_v30  ;;  %v4752_v26 = vpop.f32.mrb[101].mxu1  ;;  %v12003_v52 = vld [vmem:[#allocation3 + $0x90] sm:$0xff] }
 0x509   : > { %v4753_v48 = vadd.f32 %v11853_v30, %v4752_v26  ;;  %v8999_v9 = vpop.f32.mrb[102].mxu1  ;;  %6060 = vst.msk [vmem:[#allocation3 + $0x98] sm:$0x3] %vm5008_vm4, %v13409_v32 }
 0x50a   : > { %vm4857_vm12 = vcmp.ge.f32.partialorder %v4761_v28, 0.0  ;;  %v4889_v38 = vmul.f32 0.1, %v4761_v28  ;;  %v4764_v33 = vadd.f32 %v8999_v9, %v11853_v30  ;;  %v4755_v51 = vpop.f32.mrb[103].mxu1  ;;  %6059 = vst.msk [vmem:[#allocation3 + $0x90] sm:$0xff] %vm1917_vm5, %v13409_v32 }
 0x50b   : > { %vm4855_vm2 = vcmp.ge.f32.partialorder %v4753_v48, 0.0  ;;  %v4887_v49 = vmul.f32 0.1, %v4753_v48  ;;  %v4756_v40 = vadd.f32 %v11853_v30, %v4755_v51 }
 0x50c   : > { %v4921_v4 = vsel %vm4857_vm12, %v4761_v28, %v4889_v38  ;;  %vm4858_vm6 = vcmp.ge.f32.partialorder %v4764_v33, 0.0  ;;  %v4890_v16 = vmul.f32 0.1, %v4764_v33 }
 0x50d   : > { %4953 = vst.msk [vmem:[%s11860_s20 + $0x50] sm:$0xff] %vm1917_vm5, %v4921_v4  ;;  %v4919_v55 = vsel %vm4855_vm2, %v4753_v48, %v4887_v49  ;;  %vm4856_vm7 = vcmp.ge.f32.partialorder %v4756_v40, 0.0  ;;  %v4888_v62 = vmul.f32 0.1, %v4756_v40  ;;  %v11968_v61 = vld [vmem:[#allocation3 + $0x20] sm:$0xff] }
 0x50e   : > { %4951 = vst.msk [vmem:[%s11860_s20 + $0x40] sm:$0xff] %vm1917_vm5, %v4919_v55  ;;  %v4979_v37 = vmax.f32 %v4919_v55, %v4921_v4  ;;  %v4922_v13 = vsel %vm4858_vm6, %v4764_v33, %v4890_v16  ;;  %v5330_v6 = vpack.c.bf16 %v11968_v61, %v11915_v19  ;;  %v11978_v35 = vld [vmem:[#allocation3 + $0x20] sm:$0xff] }
 0x50f   : > { %v11974_v41 = vld [vmem:[#allocation3 + $0x21] sm:$0xff]  ;;  %4954 = vst.msk [vmem:[%s11860_s20 + $0x58] sm:$0xff] %vm1917_vm5, %v4922_v13  ;;  %v4920_v44 = vsel %vm4856_vm7, %v4756_v40, %v4888_v62 }
 0x510   : > { %v11976_v11 = vld [vmem:[#allocation3 + $0x22] sm:$0xff]  ;;  %4995 = vst.msk [vmem:[#allocation4 + $0x20] sm:$0xff] %vm1917_vm5, %v4979_v37  ;;  %4952 = vst.msk [vmem:[%s11860_s20 + $0x48] sm:$0xff] %vm1917_vm5, %v4920_v44  ;;  %v4980_v20 = vmax.f32 %v4920_v44, %v4922_v13  ;;  %5411 = vrot.lane.b32.xlu0 %v5330_v6, %s13272_s26 }
 0x511   : > { %6046 = vst.msk [vmem:[#allocation3 + $0x28] sm:$0x3] %vm5008_vm4, %v13409_v32 }
 0x512   : > { %6045 = vst.msk [vmem:[#allocation3 + $0x20] sm:$0xff] %vm1917_vm5, %v13409_v32  ;;  %4996 = vst.msk [vmem:[#allocation4 + $0x28] sm:$0xff] %vm1917_vm5, %v4980_v20 }
 0x517   : > { %v5030_v18 = vld [vmem:[#allocation4 + $0x20] sm:$0x1]  ;;  %v5038_v21 = vld [vmem:[#allocation4 + $0x21] sm:$0x1]  ;;  %v5064_v39 = vld [vmem:[#allocation4 + $0x22] sm:$0x1] }
 0x518   : > { %v5046_v3 = vmax.f32 %v5030_v18, %v5038_v21  ;;  %v5072_v7 = vld [vmem:[#allocation4 + $0x23] sm:$0x1]  ;;  %v5096_v2 = vld [vmem:[#allocation4 + $0x24] sm:$0x1]  ;;  %v5104_v47 = vld [vmem:[#allocation4 + $0x25] sm:$0x1] }
 0x519   : > { %v5080_v54 = vmax.f32 %v5064_v39, %v5072_v7  ;;  %v5112_v17 = vmax.f32 %v5096_v2, %v5104_v47  ;;  %v5128_v53 = vld [vmem:[#allocation4 + $0x26] sm:$0x1]  ;;  %v5136_v50 = vld [vmem:[#allocation4 + $0x27] sm:$0x1]  ;;  %v5160_v27 = vld [vmem:[#allocation4 + $0x28] sm:$0x1] }
 0x51a   : > { %v5144_v42 = vmax.f32 %v5128_v53, %v5136_v50  ;;  %5056 = vst.msk [vmem:[#allocation3 + $0x31] sm:$0x1] %vm5053_vm13, %v5046_v3  ;;  %v5168_v58 = vld [vmem:[#allocation4 + $0x29] sm:$0x1]  ;;  %v5192_v57 = vld [vmem:[#allocation4 + $0x2a] sm:$0x1] }
 0x51b   : > { %v5200_v24 = vld [vmem:[#allocation4 + $0x2b] sm:$0x1]  ;;  %5088 = vst.msk [vmem:[#allocation3 + $0x32] sm:$0x1] %vm5053_vm13, %v5080_v54  ;;  %5120 = vst.msk [vmem:[#allocation3 + $0x33] sm:$0x1] %vm5053_vm13, %v5112_v17  ;;  %v5176_v34 = vmax.f32 %v5160_v27, %v5168_v58 }
 0x51c   : > { %v5208_v59 = vmax.f32 %v5192_v57, %v5200_v24  ;;  %v5224_v15 = vld [vmem:[#allocation4 + $0x2c] sm:$0x1]  ;;  %v5232_v60 = vld [vmem:[#allocation4 + $0x2d] sm:$0x1]  ;;  %v5256_v14 = vld [vmem:[#allocation4 + $0x2e] sm:$0x1] }
 0x51d   : > { %5152 = vst.msk [vmem:[#allocation3 + $0x34] sm:$0x1] %vm5053_vm13, %v5144_v42  ;;  %v5240_v43 = vmax.f32 %v5224_v15, %v5232_v60  ;;  %v5264_v56 = vld [vmem:[#allocation4 + $0x2f] sm:$0x1]  ;;  %5184 = vst.msk [vmem:[#allocation3 + $0x35] sm:$0x1] %vm5053_vm13, %v5176_v34 }
 0x51e   : > { %v5272_v0 = vmax.f32 %v5256_v14, %v5264_v56  ;;  %5216 = vst.msk [vmem:[#allocation3 + $0x36] sm:$0x1] %vm5053_vm13, %v5208_v59 }
 0x51f   : > { %5248 = vst.msk [vmem:[#allocation3 + $0x37] sm:$0x1] %vm5053_vm13, %v5240_v43  ;;  %v9002_v10 = vpop.f32.mrb[104].mxu1 }
 0x520   : > { %5280 = vst.msk [vmem:[#allocation3 + $0x38] sm:$0x1] %vm5053_vm13, %v5272_v0  ;;  %v4777_v31 = vadd.f32 %v9002_v10, %v11853_v30  ;;  %v4768_v63 = vpop.f32.mrb[105].mxu1 }
 0x521   : > { %v4769_v25 = vadd.f32 %v11853_v30, %v4768_v63  ;;  %v9003_v5 = vpop.f32.mrb[106].mxu1 }
 0x522   : > { %vm4861_vm8 = vcmp.ge.f32.partialorder %v4777_v31, 0.0  ;;  %v4893_v22 = vmul.f32 0.1, %v4777_v31  ;;  %v4780_v36 = vadd.f32 %v9003_v5, %v11853_v30  ;;  %v4771_v12 = vpop.f32.mrb[107].mxu1 }
 0x523   : > { %vm4859_vm3 = vcmp.ge.f32.partialorder %v4769_v25, 0.0  ;;  %v4891_v28 = vmul.f32 0.1, %v4769_v25  ;;  %v4772_v26 = vadd.f32 %v11853_v30, %v4771_v12 }
 0x524   : > { %v4925_v48 = vsel %vm4861_vm8, %v4777_v31, %v4893_v22  ;;  %vm4862_vm9 = vcmp.ge.f32.partialorder %v4780_v36, 0.0  ;;  %v4894_v9 = vmul.f32 0.1, %v4780_v36 }
 0x525   : > { %4957 = vst.msk [vmem:[%s11860_s20 + $0x70] sm:$0xff] %vm1917_vm5, %v4925_v48  ;;  %v4923_v38 = vsel %vm4859_vm3, %v4769_v25, %v4891_v28  ;;  %vm4860_vm10 = vcmp.ge.f32.partialorder %v4772_v26, 0.0  ;;  %v4892_v33 = vmul.f32 0.1, %v4772_v26 }
 0x526   : > { %v12015_v51 = vld [vmem:[#allocation3 + $0x30] sm:$0xff]  ;;  %4955 = vst.msk [vmem:[%s11860_s20 + $0x60] sm:$0xff] %vm1917_vm5, %v4923_v38  ;;  %v4981_v49 = vmax.f32 %v4923_v38, %v4925_v48  ;;  %v4926_v40 = vsel %vm4862_vm9, %v4780_v36, %v4894_v9 }
 0x527   : > { %v5301_v4 = vld [vmem:[#allocation3 + $0x31] sm:$0xff]  ;;  %v5295_v55 = vpack.c.bf16 %v12015_v51, %v11968_v61  ;;  %v5367_v62 = vpack.c.bf16 %v12015_v51, %v11978_v35  ;;  %4958 = vst.msk [vmem:[%s11860_s20 + $0x78] sm:$0xff] %vm1917_vm5, %v4926_v40  ;;  %v4924_v13 = vsel %vm4860_vm10, %v4772_v26, %v4892_v33 }
 0x528   : > { %v12019_v16 = vld [vmem:[#allocation3 + $0x32] sm:$0xff]  ;;  %v12030_v6 = vpack.c.bf16 %v5301_v4, %v11974_v41  ;;  %4997 = vst.msk [vmem:[#allocation4 + $0x30] sm:$0xff] %vm1917_vm5, %v4981_v49  ;;  %4956 = vst.msk [vmem:[%s11860_s20 + $0x68] sm:$0xff] %vm1917_vm5, %v4924_v13  ;;  %v4982_v44 = vmax.f32 %v4924_v13, %v4926_v40 }
 0x529   : > { %v12025_v37 = vld [vmem:[#allocation3 + $0x31] sm:$0xff] }
 0x52a   : > { %6048 = vst.msk [vmem:[#allocation3 + $0x38] sm:$0x3] %vm5008_vm4, %v13409_v32  ;;  %5401 = vrot.lane.b32.xlu1 %v12030_v6, %s13272_s26 }
 0x52b   : > { %6047 = vst.msk [vmem:[#allocation3 + $0x30] sm:$0xff] %vm1917_vm5, %v13409_v32  ;;  %4998 = vst.msk [vmem:[#allocation4 + $0x38] sm:$0xff] %vm1917_vm5, %v4982_v44 }
 0x52f   : > { %v5031_v20 = vld [vmem:[#allocation4 + $0x30] sm:$0x1]  ;;  %v5039_v18 = vld [vmem:[#allocation4 + $0x31] sm:$0x1]  ;;  %v5065_v21 = vld [vmem:[#allocation4 + $0x32] sm:$0x1] }
 0x530   : > { %v5047_v39 = vmax.f32 %v5031_v20, %v5039_v18  ;;  %v5073_v3 = vld [vmem:[#allocation4 + $0x33] sm:$0x1]  ;;  %v5097_v7 = vld [vmem:[#allocation4 + $0x34] sm:$0x1]  ;;  %v5105_v2 = vld [vmem:[#allocation4 + $0x35] sm:$0x1] }
 0x531   : > { %v5081_v47 = vmax.f32 %v5065_v21, %v5073_v3  ;;  %v5113_v54 = vmax.f32 %v5097_v7, %v5105_v2  ;;  %v5129_v17 = vld [vmem:[#allocation4 + $0x36] sm:$0x1]  ;;  %v5137_v53 = vld [vmem:[#allocation4 + $0x37] sm:$0x1] }
 0x532   : > { %v5161_v50 = vld [vmem:[#allocation4 + $0x38] sm:$0x1]  ;;  %v5145_v27 = vmax.f32 %v5129_v17, %v5137_v53  ;;  %5057 = vst.msk [vmem:[#allocation3 + $0x41] sm:$0x1] %vm5053_vm13, %v5047_v39  ;;  %v5169_v42 = vld [vmem:[#allocation4 + $0x39] sm:$0x1] }
 0x533   : > { %v5193_v58 = vld [vmem:[#allocation4 + $0x3a] sm:$0x1]  ;;  %v5201_v57 = vld [vmem:[#allocation4 + $0x3b] sm:$0x1]  ;;  %5089 = vst.msk [vmem:[#allocation3 + $0x42] sm:$0x1] %vm5053_vm13, %v5081_v47  ;;  %v5177_v24 = vmax.f32 %v5161_v50, %v5169_v42 }
 0x534   : > { %5121 = vst.msk [vmem:[#allocation3 + $0x43] sm:$0x1] %vm5053_vm13, %v5113_v54  ;;  %v5209_v34 = vmax.f32 %v5193_v58, %v5201_v57  ;;  %v5225_v59 = vld [vmem:[#allocation4 + $0x3c] sm:$0x1]  ;;  %v5233_v15 = vld [vmem:[#allocation4 + $0x3d] sm:$0x1] }
 0x535   : > { %v5257_v60 = vld [vmem:[#allocation4 + $0x3e] sm:$0x1]  ;;  %5153 = vst.msk [vmem:[#allocation3 + $0x44] sm:$0x1] %vm5053_vm13, %v5145_v27  ;;  %v5241_v14 = vmax.f32 %v5225_v59, %v5233_v15  ;;  %v5265_v43 = vld [vmem:[#allocation4 + $0x3f] sm:$0x1] }
 0x536   : > { %v5273_v56 = vmax.f32 %v5257_v60, %v5265_v43  ;;  %5185 = vst.msk [vmem:[#allocation3 + $0x45] sm:$0x1] %vm5053_vm13, %v5177_v24  ;;  %5217 = vst.msk [vmem:[#allocation3 + $0x46] sm:$0x1] %vm5053_vm13, %v5209_v34 }
 0x537   : > { %5249 = vst.msk [vmem:[#allocation3 + $0x47] sm:$0x1] %vm5053_vm13, %v5241_v14  ;;  %v9006_v0 = vpop.f32.mrb[108].mxu1 }
 0x538   : > { %5281 = vst.msk [vmem:[#allocation3 + $0x48] sm:$0x1] %vm5053_vm13, %v5273_v56  ;;  %v4793_v10 = vadd.f32 %v9006_v0, %v11853_v30  ;;  %v4784_v31 = vpop.f32.mrb[109].mxu1 }
 0x539   : > { %v4785_v63 = vadd.f32 %v11853_v30, %v4784_v31  ;;  %v9007_v25 = vpop.f32.mrb[110].mxu1  ;;  %v9340_v31 = vld [vmem:[%s13191_s9 + $0x80] sm:$0xff]  }
 0x53a   : > { %vm4865_vm11 = vcmp.ge.f32.partialorder %v4793_v10, 0.0  ;;  %v4897_v5 = vmul.f32 0.1, %v4793_v10  ;;  %v4796_v22 = vadd.f32 %v9007_v25, %v11853_v30  ;;  %v4787_v36 = vpop.f32.mrb[111].mxu1  ;;  %v9341_v25 = vld [vmem:[%s13191_s9 + $0xc8] sm:$0xff]  }
 0x53b   : > { %vm4863_vm14 = vcmp.ge.f32.partialorder %v4785_v63, 0.0  ;;  %v4895_v12 = vmul.f32 0.1, %v4785_v63  ;;  %v4788_v28 = vadd.f32 %v11853_v30, %v4787_v36 }
 0x53c   : > { %v4929_v26 = vsel %vm4865_vm11, %v4793_v10, %v4897_v5  ;;  %vm4866_vm15 = vcmp.ge.f32.partialorder %v4796_v22, 0.0  ;;  %v4898_v48 = vmul.f32 0.1, %v4796_v22  ;;  %v9339_v10 = vld [vmem:[%s13191_s9 + $0xc0] sm:$0xff]  }
 0x53d   : > { %4961 = vst.msk [vmem:[%s11860_s20 + $0x90] sm:$0xff] %vm1917_vm5, %v4929_v26  ;;  %v4927_v9 = vsel %vm4863_vm14, %v4785_v63, %v4895_v12  ;;  %vm4864_vm0 = vcmp.ge.f32.partialorder %v4788_v28, 0.0  ;;  %v4896_v38 = vmul.f32 0.1, %v4788_v28  ;;  %8638 = vmatprep.subr.bf16.mxu1 %v9339_v10 }
 0x53e   : > { %v12056_v33 = vld [vmem:[#allocation3 + $0x40] sm:$0xff]  ;;  %4959 = vst.msk [vmem:[%s11860_s20 + $0x80] sm:$0xff] %vm1917_vm5, %v4927_v9  ;;  %v4983_v49 = vmax.f32 %v4927_v9, %v4929_v26  ;;  %v4930_v40 = vsel %vm4866_vm15, %v4796_v22, %v4898_v48  ;;  %8639 = vmatpush3.bf16.msra.mxu1 %v9340_v31  ;;  %v9342_v22 = vld [vmem:[%s13191_s9 + $0x88] sm:$0xff]  }
 0x53f   : > { %v5331_v4 = vpack.c.bf16 %v12056_v33, %v12015_v51  ;;  %v12062_v13 = vld [vmem:[#allocation3 + $0x41] sm:$0xff]  ;;  %4962 = vst.msk [vmem:[%s11860_s20 + $0x98] sm:$0xff] %vm1917_vm5, %v4930_v40  ;;  %v4928_v20 = vsel %vm4864_vm0, %v4788_v28, %v4896_v38  ;;  %8640 = vmatprep.subr.bf16.mxu1 %v9341_v25 }
 0x540   : > { %v12064_v44 = vld [vmem:[#allocation3 + $0x42] sm:$0xff]  ;;  %4999 = vst.msk [vmem:[#allocation4 + $0x40] sm:$0xff] %vm1917_vm5, %v4983_v49  ;;  %4960 = vst.msk [vmem:[%s11860_s20 + $0x88] sm:$0xff] %vm1917_vm5, %v4928_v20  ;;  %v4984_v18 = vmax.f32 %v4928_v20, %v4930_v40 }
 0x541   : > { %6050 = vst.msk [vmem:[#allocation3 + $0x48] sm:$0x3] %vm5008_vm4, %v13409_v32  ;;  %5413 = vrot.lane.b32.xlu0 %v5331_v4, %s13272_s26 }
 0x542   : > { %6049 = vst.msk [vmem:[#allocation3 + $0x40] sm:$0xff] %vm1917_vm5, %v13409_v32  ;;  %5000 = vst.msk [vmem:[#allocation4 + $0x48] sm:$0xff] %vm1917_vm5, %v4984_v18  ;;  %8641 = vmatpush3.bf16.msra.mxu1 %v9342_v22 }
 0x547   : > { %v5032_v21 = vld [vmem:[#allocation4 + $0x40] sm:$0x1]  ;;  %v5040_v39 = vld [vmem:[#allocation4 + $0x41] sm:$0x1]  ;;  %v5066_v3 = vld [vmem:[#allocation4 + $0x42] sm:$0x1] }
 0x548   : > { %v5048_v7 = vmax.f32 %v5032_v21, %v5040_v39  ;;  %v5074_v2 = vld [vmem:[#allocation4 + $0x43] sm:$0x1]  ;;  %v5098_v47 = vld [vmem:[#allocation4 + $0x44] sm:$0x1]  ;;  %v5106_v54 = vld [vmem:[#allocation4 + $0x45] sm:$0x1] }
 0x549   : > { %v5082_v17 = vmax.f32 %v5066_v3, %v5074_v2  ;;  %v5114_v53 = vmax.f32 %v5098_v47, %v5106_v54  ;;  %v5130_v50 = vld [vmem:[#allocation4 + $0x46] sm:$0x1]  ;;  %v5138_v27 = vld [vmem:[#allocation4 + $0x47] sm:$0x1]  ;;  %v5162_v42 = vld [vmem:[#allocation4 + $0x48] sm:$0x1] }
 0x54a   : > { %v5146_v58 = vmax.f32 %v5130_v50, %v5138_v27  ;;  %5058 = vst.msk [vmem:[#allocation3 + $0x51] sm:$0x1] %vm5053_vm13, %v5048_v7  ;;  %v5170_v57 = vld [vmem:[#allocation4 + $0x49] sm:$0x1]  ;;  %v5194_v24 = vld [vmem:[#allocation4 + $0x4a] sm:$0x1] }
 0x54b   : > { %v5202_v34 = vld [vmem:[#allocation4 + $0x4b] sm:$0x1]  ;;  %5090 = vst.msk [vmem:[#allocation3 + $0x52] sm:$0x1] %vm5053_vm13, %v5082_v17  ;;  %5122 = vst.msk [vmem:[#allocation3 + $0x53] sm:$0x1] %vm5053_vm13, %v5114_v53  ;;  %v5178_v59 = vmax.f32 %v5162_v42, %v5170_v57 }
 0x54c   : > { %v5210_v15 = vmax.f32 %v5194_v24, %v5202_v34  ;;  %v5226_v60 = vld [vmem:[#allocation4 + $0x4c] sm:$0x1]  ;;  %v5234_v14 = vld [vmem:[#allocation4 + $0x4d] sm:$0x1]  ;;  %v5258_v43 = vld [vmem:[#allocation4 + $0x4e] sm:$0x1] }
 0x54d   : > { %5154 = vst.msk [vmem:[#allocation3 + $0x54] sm:$0x1] %vm5053_vm13, %v5146_v58  ;;  %v5242_v56 = vmax.f32 %v5226_v60, %v5234_v14  ;;  %v5266_v0 = vld [vmem:[#allocation4 + $0x4f] sm:$0x1]  ;;  %5186 = vst.msk [vmem:[#allocation3 + $0x55] sm:$0x1] %vm5053_vm13, %v5178_v59 }
 0x54e   : > { %v5274_v63 = vmax.f32 %v5258_v43, %v5266_v0  ;;  %5218 = vst.msk [vmem:[#allocation3 + $0x56] sm:$0x1] %vm5053_vm13, %v5210_v15 }
 0x54f   : > { %5250 = vst.msk [vmem:[#allocation3 + $0x57] sm:$0x1] %vm5053_vm13, %v5242_v56  ;;  %v9010_v5 = vpop.f32.mrb[112].mxu1 }
 0x550   : > { %5282 = vst.msk [vmem:[#allocation3 + $0x58] sm:$0x1] %vm5053_vm13, %v5274_v63  ;;  %v4809_v36 = vadd.f32 %v9010_v5, %v11853_v30  ;;  %v4800_v12 = vpop.f32.mrb[113].mxu1 }
 0x551   : > { %v4801_v28 = vadd.f32 %v11853_v30, %v4800_v12  ;;  %v9011_v26 = vpop.f32.mrb[114].mxu1 }
 0x552   : > { %vm4869_vm1 = vcmp.ge.f32.partialorder %v4809_v36, 0.0  ;;  %v4901_v48 = vmul.f32 0.1, %v4809_v36  ;;  %v4812_v9 = vadd.f32 %v9011_v26, %v11853_v30  ;;  %v4803_v38 = vpop.f32.mrb[115].mxu1  ;;  %v9343_v26 = vld [vmem:[%s13191_s9 + $0xd0] sm:$0xff]  }
 0x553   : > { %vm4867_vm12 = vcmp.ge.f32.partialorder %v4801_v28, 0.0  ;;  %v4899_v49 = vmul.f32 0.1, %v4801_v28  ;;  %v4804_v40 = vadd.f32 %v11853_v30, %v4803_v38  ;;  %v9345_v38 = vld [vmem:[%s13191_s9 + $0xd8] sm:$0xff]   ;;  %8642 = vmatprep.subr.bf16.mxu1 %v9343_v26 }
 0x554   : > { %v4933_v4 = vsel %vm4869_vm1, %v4809_v36, %v4901_v48  ;;  %vm4870_vm2 = vcmp.ge.f32.partialorder %v4812_v9, 0.0  ;;  %v4902_v20 = vmul.f32 0.1, %v4812_v9 }
 0x555   : > { %4965 = vst.msk [vmem:[%s11860_s20 + $0xb0] sm:$0xff] %vm1917_vm5, %v4933_v4  ;;  %v4931_v18 = vsel %vm4867_vm12, %v4801_v28, %v4899_v49  ;;  %vm4868_vm6 = vcmp.ge.f32.partialorder %v4804_v40, 0.0  ;;  %v4900_v21 = vmul.f32 0.1, %v4804_v40  ;;  %v12150_v49 = vld [vmem:[%s13191_s9 + $0x100] sm:$0xff]  }
 0x556   : > { %v12103_v39 = vld [vmem:[#allocation3 + $0x50] sm:$0xff]  ;;  %4963 = vst.msk [vmem:[%s11860_s20 + $0xa0] sm:$0xff] %vm1917_vm5, %v4931_v18  ;;  %v4985_v3 = vmax.f32 %v4931_v18, %v4933_v4  ;;  %v4934_v7 = vsel %vm4870_vm2, %v4812_v9, %v4902_v20  ;;  %v9344_v9 = vld [vmem:[%s13191_s9 + $0x90] sm:$0xff]   ;;  %v9346_v4 = vld [vmem:[%s13191_s9 + $0x98] sm:$0xff]   ;;  %9020 = vmatprep.subr.bf16.mxu0 %v12150_v49 }
 0x557   : > { %v12107_v2 = vld [vmem:[#allocation3 + $0x51] sm:$0xff]  ;;  %v12113_v54 = vpack.c.bf16 %v12103_v39, %v12056_v33  ;;  %4966 = vst.msk [vmem:[%s11860_s20 + $0xb8] sm:$0xff] %vm1917_vm5, %v4934_v7  ;;  %v4932_v17 = vsel %vm4868_vm6, %v4804_v40, %v4900_v21  ;;  %8643 = vmatpush3.bf16.msra.mxu1 %v9344_v9 }
 0x558   : > { %v12109_v47 = vld [vmem:[#allocation3 + $0x52] sm:$0xff]  ;;  %v12119_v53 = vpack.c.bf16 %v12107_v2, %v12062_v13  ;;  %5001 = vst.msk [vmem:[#allocation4 + $0x50] sm:$0xff] %vm1917_vm5, %v4985_v3  ;;  %4964 = vst.msk [vmem:[%s11860_s20 + $0xa8] sm:$0xff] %vm1917_vm5, %v4932_v17  ;;  %v4986_v50 = vmax.f32 %v4932_v17, %v4934_v7  ;;  %8644 = vmatprep.subr.bf16.mxu1 %v9345_v38 }
 0x559   : > { %6052 = vst.msk [vmem:[#allocation3 + $0x58] sm:$0x3] %vm5008_vm4, %v13409_v32  ;;  %v9347_v21 = vld [vmem:[%s13191_s9 + $0xe0] sm:$0xff]  }
 0x55a   : > { %6051 = vst.msk [vmem:[#allocation3 + $0x50] sm:$0xff] %vm1917_vm5, %v13409_v32  ;;  %5403 = vrot.lane.b32.xlu1 %v12119_v53, %s13272_s26  ;;  %5002 = vst.msk [vmem:[#allocation4 + $0x58] sm:$0xff] %vm1917_vm5, %v4986_v50 }
 0x55b   : > { %8645 = vmatpush3.bf16.msra.mxu1 %v9346_v4 }
 0x55c   : > { %8646 = vmatprep.subr.bf16.mxu1 %v9347_v21 }
 0x55f   : > { %v5033_v33 = vld [vmem:[#allocation4 + $0x50] sm:$0x1]  ;;  %v5041_v27 = vld [vmem:[#allocation4 + $0x51] sm:$0x1]  ;;  %v5067_v42 = vld [vmem:[#allocation4 + $0x52] sm:$0x1] }
 0x560   : > { %v5049_v58 = vmax.f32 %v5033_v33, %v5041_v27  ;;  %v5075_v57 = vld [vmem:[#allocation4 + $0x53] sm:$0x1]  ;;  %v5099_v24 = vld [vmem:[#allocation4 + $0x54] sm:$0x1]  ;;  %v5107_v34 = vld [vmem:[#allocation4 + $0x55] sm:$0x1] }
 0x561   : > { %v5083_v59 = vmax.f32 %v5067_v42, %v5075_v57  ;;  %v5115_v15 = vmax.f32 %v5099_v24, %v5107_v34  ;;  %v5131_v60 = vld [vmem:[#allocation4 + $0x56] sm:$0x1]  ;;  %v5139_v14 = vld [vmem:[#allocation4 + $0x57] sm:$0x1]  ;;  %v5163_v43 = vld [vmem:[#allocation4 + $0x58] sm:$0x1] }
 0x562   : > { %v5147_v56 = vmax.f32 %v5131_v60, %v5139_v14  ;;  %5059 = vst.msk [vmem:[#allocation3 + $0x61] sm:$0x1] %vm5053_vm13, %v5049_v58  ;;  %v5171_v0 = vld [vmem:[#allocation4 + $0x59] sm:$0x1]  ;;  %v5195_v10 = vld [vmem:[#allocation4 + $0x5a] sm:$0x1] }
 0x563   : > { %v5203_v31 = vld [vmem:[#allocation4 + $0x5b] sm:$0x1]  ;;  %5091 = vst.msk [vmem:[#allocation3 + $0x62] sm:$0x1] %vm5053_vm13, %v5083_v59  ;;  %5123 = vst.msk [vmem:[#allocation3 + $0x63] sm:$0x1] %vm5053_vm13, %v5115_v15  ;;  %v5179_v63 = vmax.f32 %v5163_v43, %v5171_v0 }
 0x564   : > { %v5211_v25 = vmax.f32 %v5195_v10, %v5203_v31  ;;  %v5227_v5 = vld [vmem:[#allocation4 + $0x5c] sm:$0x1]  ;;  %v5235_v22 = vld [vmem:[#allocation4 + $0x5d] sm:$0x1]  ;;  %v5259_v36 = vld [vmem:[#allocation4 + $0x5e] sm:$0x1] }
 0x565   : > { %5155 = vst.msk [vmem:[#allocation3 + $0x64] sm:$0x1] %vm5053_vm13, %v5147_v56  ;;  %v5243_v12 = vmax.f32 %v5227_v5, %v5235_v22  ;;  %v5267_v28 = vld [vmem:[#allocation4 + $0x5f] sm:$0x1]  ;;  %5187 = vst.msk [vmem:[#allocation3 + $0x65] sm:$0x1] %vm5053_vm13, %v5179_v63 }
 0x566   : > { %v5275_v48 = vmax.f32 %v5259_v36, %v5267_v28  ;;  %5219 = vst.msk [vmem:[#allocation3 + $0x66] sm:$0x1] %vm5053_vm13, %v5211_v25  ;;  %v9348_v58 = vld [vmem:[%s13191_s9 + $0xa0] sm:$0xff]  }
 0x567   : > { %5251 = vst.msk [vmem:[#allocation3 + $0x67] sm:$0x1] %vm5053_vm13, %v5243_v12  ;;  %v9014_v40 = vpop.f32.mrb[116].mxu1  ;;  %8647 = vmatpush3.bf16.msra.mxu1 %v9348_v58  ;;  %v9351_v58 = vld [vmem:[%s13191_s9 + $0xa8] sm:$0xff]  }
 0x568   : > { %5283 = vst.msk [vmem:[#allocation3 + $0x68] sm:$0x1] %vm5053_vm13, %v5275_v48  ;;  %v4825_v20 = vadd.f32 %v9014_v40, %v11853_v30  ;;  %v4816_v18 = vpop.f32.mrb[117].mxu1 }
 0x569   : > { %v4817_v3 = vadd.f32 %v11853_v30, %v4816_v18  ;;  %v9015_v7 = vpop.f32.mrb[118].mxu1 }
 0x56a   : > { %vm4873_vm7 = vcmp.ge.f32.partialorder %v4825_v20, 0.0  ;;  %v4905_v17 = vmul.f32 0.1, %v4825_v20  ;;  %v4828_v50 = vadd.f32 %v9015_v7, %v11853_v30  ;;  %v4819_v33 = vpop.f32.mrb[119].mxu1 }
 0x56b   : > { %vm4871_vm8 = vcmp.ge.f32.partialorder %v4817_v3, 0.0  ;;  %v4903_v27 = vmul.f32 0.1, %v4817_v3  ;;  %v4820_v42 = vadd.f32 %v11853_v30, %v4819_v33 }
 0x56c   : > { %v4937_v57 = vsel %vm4873_vm7, %v4825_v20, %v4905_v17  ;;  %vm4874_vm3 = vcmp.ge.f32.partialorder %v4828_v50, 0.0  ;;  %v4906_v24 = vmul.f32 0.1, %v4828_v50 }
 0x56d   : > { %4969 = vst.msk [vmem:[%s11860_s20 + $0xd0] sm:$0xff] %vm1917_vm5, %v4937_v57  ;;  %v4935_v34 = vsel %vm4871_vm8, %v4817_v3, %v4903_v27  ;;  %vm4872_vm9 = vcmp.ge.f32.partialorder %v4820_v42, 0.0  ;;  %v4904_v59 = vmul.f32 0.1, %v4820_v42 }
 0x56e   : > { %v12169_v15 = vld [vmem:[#allocation3 + $0x60] sm:$0xff]  ;;  %4967 = vst.msk [vmem:[%s11860_s20 + $0xc0] sm:$0xff] %vm1917_vm5, %v4935_v34  ;;  %v4987_v30 = vmax.f32 %v4935_v34, %v4937_v57  ;;  %v4938_v60 = vsel %vm4874_vm3, %v4828_v50, %v4906_v24  ;;  %v9440_v24 = vld [vmem:[%s13190_s8] ss:$0 sm:$0xff] }
 0x56f   : > { %v5332_v14 = vpack.c.bf16 %v12169_v15, %v12103_v39  ;;  %v12175_v43 = vld [vmem:[#allocation3 + $0x61] sm:$0xff]  ;;  %4970 = vst.msk [vmem:[%s11860_s20 + $0xd8] sm:$0xff] %vm1917_vm5, %v4938_v60  ;;  %v4936_v0 = vsel %vm4872_vm9, %v4820_v42, %v4904_v59  ;;  %v9350_v42 = vld [vmem:[%s13191_s9 + $0xe8] sm:$0xff]  }
 0x570   : > { %v12177_v56 = vld [vmem:[#allocation3 + $0x62] sm:$0xff]  ;;  %5003 = vst.msk [vmem:[#allocation4 + $0x60] sm:$0xff] %vm1917_vm5, %v4987_v30  ;;  %4968 = vst.msk [vmem:[%s11860_s20 + $0xc8] sm:$0xff] %vm1917_vm5, %v4936_v0  ;;  %v4988_v10 = vmax.f32 %v4936_v0, %v4938_v60  ;;  %8648 = vmatprep.subr.bf16.mxu1 %v9350_v42 }
 0x571   : > { %6054 = vst.msk [vmem:[#allocation3 + $0x68] sm:$0x3] %vm5008_vm4, %v13409_v32  ;;  %5415 = vrot.lane.b32.xlu0 %v5332_v14, %s13272_s26  ;;  %8649 = vmatpush3.bf16.msra.mxu1 %v9351_v58 }
 0x572   : > { %6053 = vst.msk [vmem:[#allocation3 + $0x60] sm:$0xff] %vm1917_vm5, %v13409_v32  ;;  %5004 = vst.msk [vmem:[#allocation4 + $0x68] sm:$0xff] %vm1917_vm5, %v4988_v10 }
 0x577   : > { %v5034_v39 = vld [vmem:[#allocation4 + $0x60] sm:$0x1]  ;;  %v5042_v31 = vld [vmem:[#allocation4 + $0x61] sm:$0x1]  ;;  %v5068_v63 = vld [vmem:[#allocation4 + $0x62] sm:$0x1] }
 0x578   : > { %v5050_v25 = vmax.f32 %v5034_v39, %v5042_v31  ;;  %v5076_v5 = vld [vmem:[#allocation4 + $0x63] sm:$0x1]  ;;  %v5100_v22 = vld [vmem:[#allocation4 + $0x64] sm:$0x1]  ;;  %v5108_v36 = vld [vmem:[#allocation4 + $0x65] sm:$0x1] }
 0x579   : > { %v5084_v12 = vmax.f32 %v5068_v63, %v5076_v5  ;;  %v5116_v28 = vmax.f32 %v5100_v22, %v5108_v36  ;;  %v5132_v26 = vld [vmem:[#allocation4 + $0x66] sm:$0x1]  ;;  %v5140_v48 = vld [vmem:[#allocation4 + $0x67] sm:$0x1]  ;;  %v5164_v9 = vld [vmem:[#allocation4 + $0x68] sm:$0x1]  ;;  %v5400_v63 = vpop.permute.xlu1 %5399  ;;  %v5318_v22 = vpack.c.bf16 %v11923_v46, %v11810_v29  ;;  %v5294_v36 = vpack.c.bf16 %v11915_v19, %v11808_v8 }
 0x57a   : > { %v5148_v38 = vmax.f32 %v5132_v26, %v5140_v48  ;;  %5060 = vst.msk [vmem:[#allocation3 + $0x71] sm:$0x1] %vm5053_vm13, %v5050_v25  ;;  %v5172_v40 = vld [vmem:[#allocation4 + $0x69] sm:$0x1]  ;;  %v5196_v4 = vld [vmem:[#allocation4 + $0x6a] sm:$0x1] }
 0x57b   : > { %v5204_v20 = vld [vmem:[#allocation4 + $0x6b] sm:$0x1]  ;;  %5092 = vst.msk [vmem:[#allocation3 + $0x72] sm:$0x1] %vm5053_vm13, %v5084_v12  ;;  %5124 = vst.msk [vmem:[#allocation3 + $0x73] sm:$0x1] %vm5053_vm13, %v5116_v28  ;;  %v5180_v18 = vmax.f32 %v5164_v9, %v5172_v40  ;;  %v5445_v40 = vsel %vm1917_vm5, %v5294_v36, %v5400_v63 }
 0x57c   : > { %v5212_v21 = vmax.f32 %v5196_v4, %v5204_v20  ;;  %v5228_v3 = vld [vmem:[#allocation4 + $0x6c] sm:$0x1]  ;;  %v5236_v7 = vld [vmem:[#allocation4 + $0x6d] sm:$0x1]  ;;  %v5260_v17 = vld [vmem:[#allocation4 + $0x6e] sm:$0x1] }
 0x57d   : > { %5156 = vst.msk [vmem:[#allocation3 + $0x74] sm:$0x1] %vm5053_vm13, %v5148_v38  ;;  %v5244_v50 = vmax.f32 %v5228_v3, %v5236_v7  ;;  %v5268_v33 = vld [vmem:[#allocation4 + $0x6f] sm:$0x1]  ;;  %v9018_v27 = vpop.f32.mrb[120].mxu1  ;;  %v9352_v29 = vld [vmem:[%s13191_s9 + $0x108] sm:$0xff]  }
 0x57e   : > { %v5276_v57 = vmax.f32 %v5260_v17, %v5268_v33  ;;  %5188 = vst.msk [vmem:[#allocation3 + $0x75] sm:$0x1] %vm5053_vm13, %v5180_v18  ;;  %5220 = vst.msk [vmem:[#allocation3 + $0x76] sm:$0x1] %vm5053_vm13, %v5212_v21  ;;  %v4841_v34 = vadd.f32 %v9440_v24, %v9018_v27  ;;  %v4832_v59 = vpop.f32.mrb[121].mxu1  ;;  %v9353_v8 = vld [vmem:[%s13191_s9 + $0xf0] sm:$0xff]   ;;  %v5354_v33 = vpack.c.bf16 %v11976_v11, %v11923_v46 }
 0x57f   : > { %5252 = vst.msk [vmem:[#allocation3 + $0x77] sm:$0x1] %vm5053_vm13, %v5244_v50  ;;  %v4833_v30 = vadd.f32 %v9440_v24, %v4832_v59  ;;  %v9019_v60 = vpop.f32.mrb[122].mxu1  ;;  %v9354_v19 = vld [vmem:[%s13191_s9 + $0xb0] sm:$0xff]   ;;  %8650 = vmatprep.subr.bf16.mxu1 %v9353_v8 }
 0x580   : > { %5284 = vst.msk [vmem:[#allocation3 + $0x78] sm:$0x1] %vm5053_vm13, %v5276_v57  ;;  %vm4877_vm10 = vcmp.ge.f32.partialorder %v4841_v34, 0.0  ;;  %v4909_v14 = vmul.f32 0.1, %v4841_v34  ;;  %v4844_v0 = vadd.f32 %v9440_v24, %v9019_v60  ;;  %v4835_v10 = vpop.f32.mrb[123].mxu1  ;;  %8651 = vmatpush3.bf16.msra.mxu1 %v9354_v19 }
 0x581   : > { %vm4875_vm11 = vcmp.ge.f32.partialorder %v4833_v30, 0.0  ;;  %v4907_v39 = vmul.f32 0.1, %v4833_v30  ;;  %v4836_v31 = vadd.f32 %v9440_v24, %v4835_v10  ;;  %v9355_v50 = vld [vmem:[%s13191_s9 + $0x110] sm:$0xff]  }
 0x582   : > { %v4941_v25 = vsel %vm4877_vm10, %v4841_v34, %v4909_v14  ;;  %vm4878_vm14 = vcmp.ge.f32.partialorder %v4844_v0, 0.0  ;;  %v4910_v5 = vmul.f32 0.1, %v4844_v0  ;;  %v5412_v26 = vpop.permute.xlu0 %5411 }
 0x583   : > { %4973 = vst.msk [vmem:[%s11860_s20 + $0xf0] sm:$0xff] %vm1917_vm5, %v4941_v25  ;;  %v4939_v12 = vsel %vm4875_vm11, %v4833_v30, %v4907_v39  ;;  %vm4876_vm15 = vcmp.ge.f32.partialorder %v4836_v31, 0.0  ;;  %v4908_v28 = vmul.f32 0.1, %v4836_v31  ;;  %v5461_v38 = vsel %vm1917_vm5, %v5318_v22, %v5412_v26 }
 0x584   : > { %4971 = vst.msk [vmem:[%s11860_s20 + $0xe0] sm:$0xff] %vm1917_vm5, %v4939_v12  ;;  %v4989_v48 = vmax.f32 %v4939_v12, %v4941_v25  ;;  %v4942_v9 = vsel %vm4878_vm14, %v4844_v0, %v4910_v5  ;;  %5846 = vmatprep.mubr.bf16.mxu0 %v5461_v38  ;;  %v5355_v25 = vpack.c.bf16 %v12064_v44, %v12019_v16 }
 0x585   : > { %4974 = vst.msk [vmem:[%s11860_s20 + $0xf8] sm:$0xff] %vm1917_vm5, %v4942_v9  ;;  %v4940_v4 = vsel %vm4876_vm15, %v4836_v31, %v4908_v28  ;;  %5847 = vmatmul.mubr.bf16.vlgmr.msra.gmra.mrb[132].mxu0 %v5445_v40 }
 0x586   : > { %5005 = vst.msk [vmem:[#allocation4 + $0x70] sm:$0xff] %vm1917_vm5, %v4989_v48  ;;  %4972 = vst.msk [vmem:[%s11860_s20 + $0xe8] sm:$0xff] %vm1917_vm5, %v4940_v4  ;;  %v4990_v20 = vmax.f32 %v4940_v4, %v4942_v9  ;;  %v12231_v18 = vld [vmem:[#allocation3 + $0x70] sm:$0xff]  ;;  %9021 = vmatpush3.bf16.msra.mxu0 %v12150_v49  ;;  %v9356_v49 = vld [vmem:[%s13191_s9 + $0xf8] sm:$0xff]  }
 0x587   : > { %v12233_v21 = vld [vmem:[#allocation3 + $0x71] sm:$0xff]  ;;  %v12240_v7 = vpack.c.bf16 %v12231_v18, %v12169_v15  ;;  %9022 = vmatprep.subr.bf16.mxu0 %v9352_v29  ;;  %v9357_v15 = vld [vmem:[%s13191_s9 + $0xb8] sm:$0xff]   ;;  %8652 = vmatprep.subr.bf16.mxu1 %v9356_v49  ;;  %v5319_v49 = vpack.c.bf16 %v12019_v16, %v11976_v11 }
 0x588   : > { %v12235_v3 = vld [vmem:[#allocation3 + $0x72] sm:$0xff]  ;;  %5006 = vst.msk [vmem:[#allocation4 + $0x78] sm:$0xff] %vm1917_vm5, %v4990_v20  ;;  %v12245_v17 = vpack.c.bf16 %v12233_v21, %v12175_v43  ;;  %8653 = vmatpush3.bf16.msra.mxu1 %v9357_v15  ;;  %v9358_v9 = vld [vmem:[%s13191_s9 + $0x118] sm:$0xff]  }
 0x589   : > { %6056 = vst.msk [vmem:[#allocation3 + $0x78] sm:$0x3] %vm5008_vm4, %v13409_v32 }
 0x58a   : > { %6055 = vst.msk [vmem:[#allocation3 + $0x70] sm:$0xff] %vm1917_vm5, %v13409_v32  ;;  %5405 = vrot.lane.b32.xlu1 %v12245_v17, %s13272_s26  ;;  %9023 = vmatpush3.bf16.msra.mxu0 %v9352_v29  ;;  %v5356_v29 = vpack.c.bf16 %v12177_v56, %v12109_v47 }
 0x58b   : > { %9024 = vmatprep.subr.bf16.mxu0 %v9355_v50 }
 0x58d   : > { %v5035_v27 = vld [vmem:[#allocation4 + $0x70] sm:$0x1]  ;;  %v5043_v42 = vld [vmem:[#allocation4 + $0x71] sm:$0x1]  ;;  %v5069_v58 = vld [vmem:[#allocation4 + $0x72] sm:$0x1] }
 0x58e   : > { %v5051_v57 = vmax.f32 %v5035_v27, %v5043_v42  ;;  %v5077_v24 = vld [vmem:[#allocation4 + $0x73] sm:$0x1]  ;;  %v5101_v34 = vld [vmem:[#allocation4 + $0x74] sm:$0x1]  ;;  %v5109_v59 = vld [vmem:[#allocation4 + $0x75] sm:$0x1]  ;;  %5423 = vrot.lane.b32.xlu1 %v5354_v33, %s13272_s26  ;;  %9025 = vmatpush3.bf16.msra.mxu0 %v9355_v50  ;;  %v5321_v42 = vpack.c.bf16 %v12235_v3, %v12177_v56 }
 0x58f   : > { %v5085_v30 = vmax.f32 %v5069_v58, %v5077_v24  ;;  %v5117_v60 = vmax.f32 %v5101_v34, %v5109_v59  ;;  %v5133_v14 = vld [vmem:[#allocation4 + $0x76] sm:$0x1]  ;;  %v5141_v0 = vld [vmem:[#allocation4 + $0x77] sm:$0x1]  ;;  %v5165_v10 = vld [vmem:[#allocation4 + $0x78] sm:$0x1]  ;;  %9026 = vmatprep.subr.bf16.mxu0 %v9358_v9 }
 0x590   : > { %v5149_v39 = vmax.f32 %v5133_v14, %v5141_v0  ;;  %5061 = vst.msk [vmem:[#allocation3 + $0x81] sm:$0x1] %vm5053_vm13, %v5051_v57  ;;  %v5173_v46 = vld [vmem:[#allocation4 + $0x79] sm:$0x1]  ;;  %v5197_v31 = vld [vmem:[#allocation4 + $0x7a] sm:$0x1] }
 0x591   : > { %v5205_v63 = vld [vmem:[#allocation4 + $0x7b] sm:$0x1]  ;;  %5093 = vst.msk [vmem:[#allocation3 + $0x82] sm:$0x1] %vm5053_vm13, %v5085_v30  ;;  %5125 = vst.msk [vmem:[#allocation3 + $0x83] sm:$0x1] %vm5053_vm13, %v5117_v60  ;;  %v5181_v5 = vmax.f32 %v5165_v10, %v5173_v46  ;;  %v5344_v60 = vpack.c.bf16 %v12175_v43, %v12107_v2 }
 0x592   : > { %v5213_v22 = vmax.f32 %v5197_v31, %v5205_v63  ;;  %v5229_v36 = vld [vmem:[#allocation4 + $0x7c] sm:$0x1]  ;;  %v5237_v12 = vld [vmem:[#allocation4 + $0x7d] sm:$0x1]  ;;  %v5261_v28 = vld [vmem:[#allocation4 + $0x7e] sm:$0x1]  ;;  %5425 = vrot.lane.b32.xlu1 %v5355_v25, %s13272_s26  ;;  %9027 = vmatpush3.bf16.msra.mxu0 %v9358_v9 }
 0x593   : > { %5157 = vst.msk [vmem:[#allocation3 + $0x84] sm:$0x1] %vm5053_vm13, %v5149_v39  ;;  %v5245_v26 = vmax.f32 %v5229_v36, %v5237_v12  ;;  %v5269_v48 = vld [vmem:[#allocation4 + $0x7f] sm:$0x1]  ;;  %5189 = vst.msk [vmem:[#allocation3 + $0x85] sm:$0x1] %vm5053_vm13, %v5181_v5 }
 0x594   : > { %v5277_v38 = vmax.f32 %v5261_v28, %v5269_v48  ;;  %5221 = vst.msk [vmem:[#allocation3 + $0x86] sm:$0x1] %vm5053_vm13, %v5213_v22 }
 0x595   : > { %5253 = vst.msk [vmem:[#allocation3 + $0x87] sm:$0x1] %vm5053_vm13, %v5245_v26 }
 0x596   : > { %5285 = vst.msk [vmem:[#allocation3 + $0x88] sm:$0x1] %vm5053_vm13, %v5277_v38  ;;  %5427 = vrot.lane.b32.xlu1 %v5356_v29, %s13272_s26 }
 0x59c   : > { %v12282_v8 = vld [vmem:[#allocation3 + $0x80] sm:$0xff]  ;;  %v5402_v50 = vpop.permute.xlu1 %5401 }
 0x59d   : > { %v5333_v19 = vpack.c.bf16 %v12282_v8, %v12231_v18  ;;  %v5353_v40 = vld [vmem:[#allocation3 + $0x82] sm:$0xff]  ;;  %v5370_v14 = vpack.c.bf16 %v12003_v52, %v12282_v8 }
 0x59e   : > { %v12286_v4 = vld [vmem:[#allocation3 + $0x81] sm:$0xff]  ;;  %v5357_v20 = vpack.c.bf16 %v5353_v40, %v12235_v3 }
 0x59f   : > { %6058 = vst.msk [vmem:[#allocation3 + $0x88] sm:$0x3] %vm5008_vm4, %v13409_v32  ;;  %5417 = vrot.lane.b32.xlu0 %v5333_v19, %s13272_s26  ;;  %v5382_v18 = vpack.c.bf16 %v11995_v1, %v12286_v4  ;;  %v5320_v1 = vpack.c.bf16 %v12109_v47, %v12064_v44  ;;  %v5342_v47 = vpack.c.bf16 %v11974_v41, %v11925_v45 }
 0x5a0   : > { %6057 = vst.msk [vmem:[#allocation3 + $0x80] sm:$0xff] %vm1917_vm5, %v13409_v32  ;;  %5429 = vrot.lane.b32.xlu1 %v5357_v20, %s13272_s26  ;;  %v5343_v41 = vpack.c.bf16 %v12062_v13, %v12025_v37 }
 0x5a3   : > { %5435 = vrot.lane.b32.xlu0 %v12030_v6, %s13272_s26  ;;  %v5449_v6 = vsel %vm1917_vm5, %v5295_v55, %v5402_v50 }
 0x5a7   : > { %5437 = vrot.lane.b32.xlu0 %v12119_v53, %s13272_s26 }
 0x5ab   : > { %5439 = vrot.lane.b32.xlu0 %v12245_v17, %s13272_s26 }
 0x5af   : > { %5441 = vrot.lane.b32.xlu0 %v5382_v18, %s13272_s26 }
 0x5b3   : > { %v5414_v15 = vpop.permute.xlu0 %5413 }
 0x5b4   : > { %v5465_v33 = vsel %vm1917_vm5, %v5319_v49, %v5414_v15 }
 0x5b5   : > { %5854 = vmatprep.mubr.bf16.mxu0 %v5465_v33 }
 0x5b6   : > { %5855 = vmatmul.mubr.bf16.gmra.mrb[136].mxu0 %v5449_v6 }
 0x5cc   : > { %v5404_v53 = vpop.permute.xlu1 %5403 }
 0x5cd   : > { %v5453_v11 = vsel %vm1917_vm5, %v12113_v54, %v5404_v53 }
 0x5e3   : > { %v5416_v17 = vpop.permute.xlu0 %5415 }
 0x5e4   : > { %v5469_v27 = vsel %vm1917_vm5, %v5320_v1, %v5416_v17 }
 0x5e5   : > { %5862 = vmatprep.mubr.bf16.mxu0 %v5469_v27 }
 0x5e6   : > { %5863 = vmatmul.mubr.bf16.gmra.mrb[140].mxu0 %v5453_v11 }
 0x5fc   : > { %v5406_v16 = vpop.permute.xlu1 %5405 }
 0x5fd   : > { %v5457_v58 = vsel %vm1917_vm5, %v12240_v7, %v5406_v16 }
 0x600   : > { %v5424_v44 = vpop.permute.xlu1 %5423 }
 0x601   : > { %v5477_v3 = vsel %vm1917_vm5, %v5342_v47, %v5424_v44  ;;  %v12367_v44 = vld [vmem:[#allocation3] sm:$0xff] }
 0x602   : > { %v12369_v47 = vld [vmem:[#allocation3 + $0x2] sm:$0xff] }
 0x604   : > { %v5426_v59 = vpop.permute.xlu1 %5425 }
 0x605   : > { %v5481_v35 = vsel %vm1917_vm5, %v5343_v41, %v5426_v59 }
 0x611   : > { %v5418_v61 = vpop.permute.xlu0 %5417 }
 0x612   : > { %v5473_v55 = vsel %vm1917_vm5, %v5321_v42, %v5418_v61 }
 0x613   : > { %5870 = vmatprep.mubr.bf16.mxu0 %v5473_v55 }
 0x614   : > { %5871 = vmatmul.mubr.bf16.gmra.mrb[144].mxu0 %v5457_v58  ;;  %v12365_v58 = vld [vmem:[#allocation3 + $0x1] sm:$0xff] }
 0x615   : > { %v5436_v57 = vpop.permute.xlu0 %5435  ;;  %9028 = vmatprep.mubr.msk.bf16.mxu0 %vm1917_vm5, %v5319_v49  ;;  %6847 = vst.msk [vmem:[#allocation3] sm:$0xff] %vm1917_vm5, %v13409_v32 }
 0x616   : > { %v5493_v56 = vsel %vm1917_vm5, %v5367_v62, %v5436_v57  ;;  %v5394_v62 = vpack.c.bf16 %v11997_v23, %v5353_v40  ;;  %v5345_v23 = vpack.c.bf16 %v12286_v4, %v12233_v21  ;;  %v12358_v40 = vld [vmem:[%s13192_s10] ss:$0 sm:$0xff]  ;;  %6848 = vst.msk [vmem:[#allocation3 + $0x8] sm:$0x3] %vm5008_vm4, %v13409_v32 }
 0x617   : > { %5911 = vmatprep.mubr.bf16.mxu1 %v5493_v56 }
 0x618   : > { %5912 = vmatmul.mubr.bf16.vlgmr.msra.gmra.mrb[124].mxu1 %v5477_v3 }
 0x619   : > { %v5438_v24 = vpop.permute.xlu0 %5437 }
 0x61a   : > { %v5497_v34 = vsel %vm1917_vm5, %v12113_v54, %v5438_v24  ;;  %v5428_v54 = vpop.permute.xlu1 %5427 }
 0x61b   : > { %5919 = vmatprep.mubr.bf16.mxu1 %v5497_v34  ;;  %v5485_v37 = vsel %vm1917_vm5, %v5344_v60, %v5428_v54 }
 0x61c   : > { %9029 = vmatmul.mubr.msk.bf16.vlgmr.msra.gmra.mrb[148].mxu0 %vm1917_vm5, %v5320_v1 }
 0x61d   : > { %v5440_v45 = vpop.permute.xlu0 %5439  ;;  %9032 = vmatprep.mubr.msk.bf16.mxu0 %vm1917_vm5, %v5321_v42 }
 0x61e   : > { %v5501_v51 = vsel %vm1917_vm5, %v12240_v7, %v5440_v45  ;;  %v5430_v7 = vpop.permute.xlu1 %5429 }
 0x61f   : > { %v5489_v0 = vsel %vm1917_vm5, %v5345_v23, %v5430_v7 }
 0x620   : > { %5920 = vmatmul.mubr.bf16.gmra.mrb[128].mxu1 %v5481_v35 }
 0x621   : > { %5927 = vmatprep.mubr.bf16.mxu1 %v5501_v51  ;;  %v5442_v30 = vpop.permute.xlu0 %5441 }
 0x622   : > { %v5505_v13 = vsel %vm1917_vm5, %v5370_v14, %v5442_v30 }
 0x624   : > { %9033 = vmatmul.mubr.msk.bf16.gmra.mrb[152].mxu0 %vm1917_vm5, %v5394_v62 }
 0x628   : > { %5928 = vmatmul.mubr.bf16.gmra.mrb[132].mxu1 %v5485_v37 }
 0x629   : > { %5935 = vmatprep.mubr.bf16.mxu1 %v5505_v13 }
 0x630   : > { %5936 = vmatmul.mubr.bf16.gmra.mrb[136].mxu1 %v5489_v0 }
 0x658   : > { %v8614_v10 = vpop.f32.mrb[132].mxu0 }
 0x659   : > { %v8615_v39 = vpop.f32.mrb[133].mxu0 }
 0x65a   : > { %v8616_v46 = vadd.f32 %v8615_v39, %v8614_v10  ;;  %v8617_v2 = vpop.f32.mrb[134].mxu0 }
 0x65b   : > { %v8618_v43 = vpop.f32.mrb[135].mxu0 }
 0x65c   : > { %v8619_v31 = vadd.f32 %v8618_v43, %v8617_v2  ;;  %v5849_v49 = vadd.f32 %v8616_v46, %v12358_v40 }
 0x65e   : > { %v5852_v53 = vadd.f32 %v8619_v31, %v12358_v40 }
 0x689   : > { %v8620_v52 = vpop.f32.mrb[136].mxu0 }
 0x68a   : > { %v8621_v63 = vpop.f32.mrb[137].mxu0 }
 0x68b   : > { %v8622_v25 = vadd.f32 %v8621_v63, %v8620_v52  ;;  %v8623_v5 = vpop.f32.mrb[138].mxu0 }
 0x68c   : > { %v8624_v22 = vpop.f32.mrb[139].mxu0 }
 0x68d   : > { %v8625_v36 = vadd.f32 %v8624_v22, %v8623_v5  ;;  %v5857_v24 = vadd.f32 %v8622_v25, %v12358_v40 }
 0x68f   : > { %v5860_v62 = vadd.f32 %v8625_v36, %v12358_v40 }
 0x6b9   : > { %v8626_v12 = vpop.f32.mrb[140].mxu0 }
 0x6ba   : > { %v8627_v28 = vpop.f32.mrb[141].mxu0 }
 0x6bb   : > { %v12349_v26 = vadd.f32 %v8627_v28, %v8626_v12  ;;  %v8629_v21 = vpop.f32.mrb[142].mxu0 }
 0x6bc   : > { %v8630_v48 = vpop.f32.mrb[143].mxu0 }
 0x6bd   : > { %v12351_v9 = vadd.f32 %v8630_v48, %v8629_v21  ;;  %v5865_v2 = vadd.f32 %v12349_v26, %v12358_v40 }
 0x6bf   : > { %v5868_v22 = vadd.f32 %v12351_v9, %v12358_v40 }
 0x6e7   : > { %v8632_v38 = vpop.f32.mrb[144].mxu0 }
 0x6e8   : > { %v8633_v29 = vpop.f32.mrb[145].mxu0 }
 0x6e9   : > { %v12353_v8 = vadd.f32 %v8633_v29, %v8632_v38  ;;  %v8635_v19 = vpop.f32.mrb[146].mxu0 }
 0x6ea   : > { %v8636_v4 = vpop.f32.mrb[147].mxu0 }
 0x6eb   : > { %v12360_v20 = vadd.f32 %v8636_v4, %v8635_v19  ;;  %v8654_v18 = vpop.f32.mrb[124].mxu1  ;;  %v5873_v19 = vadd.f32 %v12353_v8, %v12358_v40 }
 0x6ec   : > { %v8655_v50 = vpop.f32.mrb[125].mxu1 }
 0x6ed   : > { %v8656_v15 = vadd.f32 %v8655_v50, %v8654_v18  ;;  %v8657_v33 = vpop.f32.mrb[126].mxu1 }
 0x6ee   : > { %v8658_v6 = vpop.f32.mrb[127].mxu1 }
 0x6ef   : > { %v8659_v1 = vadd.f32 %v8658_v6, %v8657_v33  ;;  %v9030_v17 = vpop.f32.mrb[148].mxu0  ;;  %v5914_v27 = vadd.f32 %v8656_v15, %v5849_v49  ;;  %v5876_v33 = vadd.f32 %v12360_v20, %v12358_v40 }
 0x6f0   : > { %v5978_v11 = vpop.f32.mrb[149].mxu0 }
 0x6f1   : > { %v5979_v16 = vadd.f32 %v5978_v11, %v5914_v27  ;;  %v9031_v42 = vpop.f32.mrb[150].mxu0  ;;  %v5917_v61 = vadd.f32 %v8659_v1, %v5852_v53 }
 0x6f2   : > { %v5981_v55 = vpop.f32.mrb[151].mxu0 }
 0x6f3   : > { %vm6009_vm13 = vcmp.ge.f32.partialorder %v5979_v16, 0.0  ;;  %v6017_v57 = vmul.f32 0.1, %v5979_v16  ;;  %v5982_v56 = vadd.f32 %v5981_v55, %v5917_v61  ;;  %v8660_v3 = vpop.f32.mrb[128].mxu1  ;;  %v12403_v61 = vld [vmem:[#allocation3 + $0x90] sm:$0xff] }
 0x6f4   : > { %v8661_v34 = vpop.f32.mrb[129].mxu1 }
 0x6f5   : > { %vm6010_vm0 = vcmp.ge.f32.partialorder %v5982_v56, 0.0  ;;  %v6018_v59 = vmul.f32 0.1, %v5982_v56  ;;  %v8662_v45 = vadd.f32 %v8661_v34, %v8660_v3  ;;  %v8663_v41 = vpop.f32.mrb[130].mxu1  ;;  %v6025_v35 = vsel %vm6009_vm13, %v5979_v16, %v6017_v57  ;;  %v12399_v16 = vld [vmem:[#allocation3 + $0x91] sm:$0xff]  ;;  %v9363_v34 = vld [vmem:[%s13193_s11 + $0x50] sm:$0xff]  }
 0x6f6   : > { %v8664_v51 = vpop.f32.mrb[131].mxu1  ;;  %6069 = vrot.lane.b32.xlu0 %v6025_v35, %s13272_s26  ;;  %6033 = vst [vmem:[%s12377_s24] sm:$0xff] %v6025_v35  ;;  %v9359_v57 = vld [vmem:[%s13193_s11 + $0x40] sm:$0xff]   ;;  %v9361_v3 = vld [vmem:[%s13193_s11 + $0x48] sm:$0xff]  }
 0x6f7   : > { %v5922_v54 = vadd.f32 %v8662_v45, %v5857_v24  ;;  %v8665_v30 = vadd.f32 %v8664_v51, %v8663_v41  ;;  %v9034_v60 = vpop.f32.mrb[152].mxu0  ;;  %v6026_v14 = vsel %vm6010_vm0, %v5982_v56, %v6018_v59  ;;  %v9360_v56 = vld [vmem:[%s13193_s11] sm:$0xff]   ;;  %8686 = vmatprep.subr.bf16.mxu1 %v9359_v57  ;;  %v9362_v24 = vld [vmem:[%s13193_s11 + $0x8] sm:$0xff]   ;;  %v9364_v59 = vld [vmem:[%s13193_s11 + $0x10] sm:$0xff]  }
 0x6f8   : > { %v5994_v37 = vpop.f32.mrb[153].mxu0  ;;  %6071 = vrot.lane.b32.xlu1 %v6026_v14, %s13272_s26  ;;  %6034 = vst [vmem:[%s12377_s24 + $0x10] sm:$0xff] %v6026_v14  ;;  %8687 = vmatpush3.bf16.msra.mxu1 %v9360_v56  ;;  %v9365_v45 = vld [vmem:[%s13193_s11 + $0x58] sm:$0xff]   ;;  %v9367_v35 = vld [vmem:[%s13193_s11 + $0x60] sm:$0xff]  }
 0x6f9   : > { %v5987_v13 = vadd.f32 %v9030_v17, %v5922_v54  ;;  %v5925_v7 = vadd.f32 %v8665_v30, %v5860_v62  ;;  %v9035_v23 = vpop.f32.mrb[154].mxu0  ;;  %8688 = vmatprep.subr.bf16.mxu1 %v9361_v3  ;;  %v9366_v41 = vld [vmem:[%s13193_s11 + $0x18] sm:$0xff]   ;;  %v9368_v51 = vld [vmem:[%s13193_s11 + $0x20] sm:$0xff]   ;;  %v9369_v62 = vld [vmem:[%s13193_s11 + $0x68] sm:$0xff]  }
 0x6fa   : > { %v5997_v0 = vpop.f32.mrb[155].mxu0  ;;  %v9370_v54 = vld [vmem:[%s13193_s11 + $0x28] sm:$0xff]   ;;  %v9371_v30 = vld [vmem:[%s13193_s11 + $0x70] sm:$0xff]   ;;  %v9373_v14 = vld [vmem:[%s13193_s11 + $0x78] sm:$0xff]  }
 0x6fb   : > { %v5990_v10 = vadd.f32 %v9031_v42, %v5925_v7  ;;  %v8666_v39 = vpop.f32.mrb[132].mxu1  ;;  %vm6011_vm1 = vcmp.ge.f32.partialorder %v5987_v13, 0.0  ;;  %v6019_v46 = vmul.f32 0.1, %v5987_v13  ;;  %v12401_v42 = vld [vmem:[#allocation3 + $0x92] sm:$0xff] }
 0x6fc   : > { %v8667_v43 = vpop.f32.mrb[133].mxu1  ;;  %6866 = vst.msk [vmem:[#allocation3 + $0x98] sm:$0x3] %vm5008_vm4, %v13409_v32  ;;  %8689 = vmatpush3.bf16.msra.mxu1 %v9362_v24  ;;  %v9376_v7 = vld [vmem:[%s13193_s11 + $0x80] sm:$0xff]  }
 0x6fd   : > { %v8668_v31 = vadd.f32 %v8667_v43, %v8666_v39  ;;  %v8669_v52 = vpop.f32.mrb[134].mxu1  ;;  %v6027_v63 = vsel %vm6011_vm1, %v5987_v13, %v6019_v46  ;;  %vm6012_vm12 = vcmp.ge.f32.partialorder %v5990_v10, 0.0  ;;  %v6020_v25 = vmul.f32 0.1, %v5990_v10  ;;  %6865 = vst.msk [vmem:[#allocation3 + $0x90] sm:$0xff] %vm1917_vm5, %v13409_v32  ;;  %8690 = vmatprep.subr.bf16.mxu1 %v9363_v34  ;;  %v9375_v13 = vld [vmem:[%s13193_s11 + $0xc0] sm:$0xff]  }
 0x6fe   : > { %v8670_v5 = vpop.f32.mrb[135].mxu1  ;;  %6073 = vrot.lane.b32.xlu0 %v6027_v63, %s13272_s26  ;;  %6035 = vst [vmem:[%s12377_s24 + $0x20] sm:$0xff] %v6027_v63  ;;  %8726 = vmatprep.subr.bf16.mxu0 %v9375_v13  ;;  %v9378_v39 = vld [vmem:[%s13193_s11 + $0xc8] sm:$0xff]   ;;  %v9381_v43 = vld [vmem:[%s13193_s11 + $0x90] sm:$0xff]  }
 0x6ff   : > { %v5930_v36 = vadd.f32 %v8668_v31, %v5865_v2  ;;  %v8671_v12 = vadd.f32 %v8670_v5, %v8669_v52  ;;  %v6028_v28 = vsel %vm6012_vm12, %v5990_v10, %v6020_v25  ;;  %8727 = vmatpush3.bf16.msra.mxu0 %v9376_v7  ;;  %v9379_v46 = vld [vmem:[%s13193_s11 + $0x88] sm:$0xff]   ;;  %v9380_v2 = vld [vmem:[%s13193_s11 + $0xd0] sm:$0xff]  }
 0x700   : > { %6075 = vrot.lane.b32.xlu1 %v6028_v28, %s13272_s26  ;;  %6036 = vst [vmem:[%s12377_s24 + $0x30] sm:$0xff] %v6028_v28  ;;  %8691 = vmatpush3.bf16.msra.mxu1 %v9364_v59 }
 0x701   : > { %v5995_v26 = vadd.f32 %v5994_v37, %v5930_v36  ;;  %v5933_v21 = vadd.f32 %v8671_v12, %v5868_v22  ;;  %8692 = vmatprep.subr.bf16.mxu1 %v9365_v45  ;;  %v9374_v37 = vld [vmem:[%s13193_s11 + $0x38] sm:$0xff]   ;;  %8728 = vmatprep.subr.bf16.mxu0 %v9378_v39 }
 0x703   : > { %v5998_v48 = vadd.f32 %v5997_v0, %v5933_v21  ;;  %v8672_v38 = vpop.f32.mrb[136].mxu1  ;;  %vm6013_vm2 = vcmp.ge.f32.partialorder %v5995_v26, 0.0  ;;  %v6021_v29 = vmul.f32 0.1, %v5995_v26  ;;  %v12471_v0 = vld [vmem:[%s13193_s11 + $0x100] sm:$0xff]   ;;  %8729 = vmatpush3.bf16.msra.mxu0 %v9379_v46  ;;  %v9384_v21 = vld [vmem:[%s13193_s11 + $0x98] sm:$0xff]  }
 0x704   : > { %v8673_v4 = vpop.f32.mrb[137].mxu1  ;;  %8693 = vmatpush3.bf16.msra.mxu1 %v9366_v41  ;;  %8730 = vmatprep.subr.bf16.mxu0 %v9380_v2  ;;  %v9393_v41 = vld [vmem:[%s13193_s11 + $0xf8] sm:$0xff]  }
 0x705   : > { %v8674_v18 = vadd.f32 %v8673_v4, %v8672_v38  ;;  %v8675_v9 = vpop.f32.mrb[138].mxu1  ;;  %v6029_v50 = vsel %vm6013_vm2, %v5995_v26, %v6021_v29  ;;  %vm6014_vm6 = vcmp.ge.f32.partialorder %v5998_v48, 0.0  ;;  %v6022_v49 = vmul.f32 0.1, %v5998_v48  ;;  %8694 = vmatprep.subr.bf16.mxu1 %v9367_v35  ;;  %v9386_v38 = vld [vmem:[%s13193_s11 + $0xa0] sm:$0xff]   ;;  %v9394_v35 = vld [vmem:[%s13193_s11 + $0xb8] sm:$0xff]  }
 0x706   : > { %v8676_v15 = vpop.f32.mrb[139].mxu1  ;;  %6077 = vrot.lane.b32.xlu0 %v6029_v50, %s13272_s26  ;;  %6037 = vst [vmem:[%s12377_s24 + $0x40] sm:$0xff] %v6029_v50 }
 0x707   : > { %v5938_v6 = vadd.f32 %v8674_v18, %v5873_v19  ;;  %v8677_v53 = vadd.f32 %v8676_v15, %v8675_v9  ;;  %v6030_v1 = vsel %vm6014_vm6, %v5998_v48, %v6022_v49  ;;  %8731 = vmatpush3.bf16.msra.mxu0 %v9381_v43  ;;  %v9385_v48 = vld [vmem:[%s13193_s11 + $0xe0] sm:$0xff]  }
 0x708   : > { %6079 = vrot.lane.b32.xlu1 %v6030_v1, %s13272_s26  ;;  %6038 = vst [vmem:[%s12377_s24 + $0x50] sm:$0xff] %v6030_v1  ;;  %8695 = vmatpush3.bf16.msra.mxu1 %v9368_v51  ;;  %v9388_v1 = vld [vmem:[%s13193_s11 + $0xe8] sm:$0xff]  }
 0x709   : > { %v6003_v8 = vadd.f32 %v9034_v60, %v5938_v6  ;;  %v5941_v17 = vadd.f32 %v8677_v53, %v5876_v33  ;;  %8696 = vmatprep.subr.bf16.mxu1 %v9369_v62  ;;  %v9372_v60 = vld [vmem:[%s13193_s11 + $0x30] sm:$0xff]  }
 0x70b   : > { %v6006_v27 = vadd.f32 %v9035_v23, %v5941_v17  ;;  %vm6015_vm7 = vcmp.ge.f32.partialorder %v6003_v8, 0.0  ;;  %v6023_v11 = vmul.f32 0.1, %v6003_v8  ;;  %v9390_v17 = vld [vmem:[%s13193_s11 + $0xf0] sm:$0xff]  }
 0x70c   : > { %8697 = vmatpush3.bf16.msra.mxu1 %v9370_v54 }
 0x70d   : > { %v6031_v40 = vsel %vm6015_vm7, %v6003_v8, %v6023_v11  ;;  %vm6016_vm8 = vcmp.ge.f32.partialorder %v6006_v27, 0.0  ;;  %v6024_v20 = vmul.f32 0.1, %v6006_v27  ;;  %8698 = vmatprep.subr.bf16.mxu1 %v9371_v30  ;;  %v9389_v8 = vld [vmem:[%s13193_s11 + $0xa8] sm:$0xff]  }
 0x70e   : > { %6081 = vrot.lane.b32.xlu0 %v6031_v40, %s13272_s26  ;;  %6039 = vst [vmem:[%s12377_s24 + $0x60] sm:$0xff] %v6031_v40 }
 0x70f   : > { %v6032_v55 = vsel %vm6016_vm8, %v6006_v27, %v6024_v20  ;;  %v9391_v27 = vld [vmem:[%s13193_s11 + $0xb0] sm:$0xff]  }
 0x710   : > { %6083 = vrot.lane.b32.xlu1 %v6032_v55, %s13272_s26  ;;  %6040 = vst [vmem:[%s12377_s24 + $0x70] sm:$0xff] %v6032_v55  ;;  %8699 = vmatpush3.bf16.msra.mxu1 %v9372_v60 }
 0x711   : > { %8700 = vmatprep.subr.bf16.mxu1 %v9373_v14 }
 0x714   : > { %8701 = vmatpush3.bf16.msra.mxu1 %v9374_v37 }
 0x715   : > { %9036 = vmatprep.subr.bf16.mxu1 %v12471_v0 }
 0x768   : > { %v6070_v23 = vpop.permute.xlu0 %6069 }
 0x769   : > { %6093 = vst.msk [vmem:[#allocation3 + $0x11] sm:$0xff] %vm1917_vm5, %v6070_v23 }
 0x76a   : > { %v6072_v10 = vpop.permute.xlu1 %6071 }
 0x76b   : > { %6094 = vst.msk [vmem:[#allocation3 + $0x21] sm:$0xff] %vm1917_vm5, %v6072_v10 }
 0x770   : > { %v6074_v31 = vpop.permute.xlu0 %6073  ;;  %v12487_v52 = vld [vmem:[#allocation3 + $0x11] sm:$0xff] }
 0x771   : > { %v12489_v63 = vld [vmem:[#allocation3 + $0x10] sm:$0xff]  ;;  %6095 = vst.msk [vmem:[#allocation3 + $0x31] sm:$0xff] %vm1917_vm5, %v6074_v31  ;;  %v6121_v5 = vpack.c.bf16 %v12487_v52, %v12365_v58  ;;  %v9383_v58 = vld [vmem:[%s13193_s11 + $0xd8] sm:$0xff]  }
 0x772   : > { %v12491_v25 = vld [vmem:[#allocation3 + $0x12] sm:$0xff]  ;;  %v6076_v22 = vpop.permute.xlu1 %6075  ;;  %v6138_v36 = vld [vmem:[#allocation3 + $0x20] sm:$0xff]  ;;  %8732 = vmatprep.subr.bf16.mxu0 %v9383_v58  ;;  %v6109_v31 = vpack.c.bf16 %v12489_v63, %v12367_v44  ;;  %v9392_v58 = vld [vmem:[%s13193_s11 + $0x118] sm:$0xff]  }
 0x773   : > { %6849 = vst.msk [vmem:[#allocation3 + $0x10] sm:$0xff] %vm1917_vm5, %v13409_v32  ;;  %v12500_v12 = vld [vmem:[#allocation3 + $0x21] sm:$0xff]  ;;  %6096 = vst.msk [vmem:[#allocation3 + $0x41] sm:$0xff] %vm1917_vm5, %v6076_v22  ;;  %6213 = vrot.lane.b32.xlu1 %v6121_v5, %s13272_s26  ;;  %v6145_v26 = vpack.c.bf16 %v6138_v36, %v12489_v63  ;;  %8733 = vmatpush3.bf16.msra.mxu0 %v9384_v21  ;;  %v6133_v43 = vpack.c.bf16 %v12491_v25, %v12369_v47 }
 0x774   : > { %6850 = vst.msk [vmem:[#allocation3 + $0x18] sm:$0x3] %vm5008_vm4, %v13409_v32  ;;  %v12502_v28 = vld [vmem:[#allocation3 + $0x22] sm:$0xff]  ;;  %8734 = vmatprep.subr.bf16.mxu0 %v9385_v48 }
 0x775   : > { %6852 = vst.msk [vmem:[#allocation3 + $0x28] sm:$0x3] %vm5008_vm4, %v13409_v32  ;;  %6225 = vrot.lane.b32.xlu0 %v6145_v26, %s13272_s26  ;;  %v6169_v23 = vpack.c.bf16 %v12502_v28, %v12491_v25  ;;  %v9387_v47 = vld [vmem:[%s13193_s11 + $0x110] sm:$0xff]  }
 0x776   : > { %6851 = vst.msk [vmem:[#allocation3 + $0x20] sm:$0xff] %vm1917_vm5, %v13409_v32 }
 0x777   : > { %8735 = vmatpush3.bf16.msra.mxu0 %v9386_v38 }
 0x778   : > { %v6078_v29 = vpop.permute.xlu0 %6077  ;;  %v12524_v19 = vld [vmem:[#allocation3 + $0x31] sm:$0xff]  ;;  %8736 = vmatprep.subr.bf16.mxu0 %v9388_v1 }
 0x779   : > { %v6139_v4 = vld [vmem:[#allocation3 + $0x30] sm:$0xff]  ;;  %6097 = vst.msk [vmem:[#allocation3 + $0x51] sm:$0xff] %vm1917_vm5, %v6078_v29  ;;  %v6122_v9 = vpack.c.bf16 %v12524_v19, %v12500_v12 }
 0x77a   : > { %v12526_v18 = vld [vmem:[#allocation3 + $0x32] sm:$0xff]  ;;  %v12531_v50 = vpack.c.bf16 %v6139_v4, %v6138_v36  ;;  %v6080_v49 = vpop.permute.xlu1 %6079  ;;  %v6140_v15 = vld [vmem:[#allocation3 + $0x40] sm:$0xff] }
 0x77b   : > { %6853 = vst.msk [vmem:[#allocation3 + $0x30] sm:$0xff] %vm1917_vm5, %v13409_v32  ;;  %v12537_v33 = vld [vmem:[#allocation3 + $0x41] sm:$0xff]  ;;  %6098 = vst.msk [vmem:[#allocation3 + $0x61] sm:$0xff] %vm1917_vm5, %v6080_v49  ;;  %6215 = vrot.lane.b32.xlu1 %v6122_v9, %s13272_s26  ;;  %v6146_v53 = vpack.c.bf16 %v6140_v15, %v6139_v4  ;;  %8737 = vmatpush3.bf16.msra.mxu0 %v9389_v8  ;;  %v9382_v36 = vld [vmem:[%s13193_s11 + $0x108] sm:$0xff]   ;;  %v6134_v44 = vpack.c.bf16 %v12526_v18, %v12502_v28 }
 0x77c   : > { %6854 = vst.msk [vmem:[#allocation3 + $0x38] sm:$0x3] %vm5008_vm4, %v13409_v32  ;;  %v12539_v6 = vld [vmem:[#allocation3 + $0x42] sm:$0xff]  ;;  %8738 = vmatprep.subr.bf16.mxu0 %v9390_v17 }
 0x77d   : > { %6856 = vst.msk [vmem:[#allocation3 + $0x48] sm:$0x3] %vm5008_vm4, %v13409_v32  ;;  %6227 = vrot.lane.b32.xlu0 %v6146_v53, %s13272_s26  ;;  %v6170_v10 = vpack.c.bf16 %v12539_v6, %v12526_v18  ;;  %v6157_v53 = vpack.c.bf16 %v12500_v12, %v12487_v52  ;;  %v6158_v12 = vpack.c.bf16 %v12537_v33, %v12524_v19 }
 0x77e   : > { %6855 = vst.msk [vmem:[#allocation3 + $0x40] sm:$0xff] %vm1917_vm5, %v13409_v32 }
 0x77f   : > { %8739 = vmatpush3.bf16.msra.mxu0 %v9391_v27 }
 0x780   : > { %v6082_v11 = vpop.permute.xlu0 %6081  ;;  %v12560_v40 = vld [vmem:[#allocation3 + $0x51] sm:$0xff]  ;;  %8740 = vmatprep.subr.bf16.mxu0 %v9393_v41 }
 0x781   : > { %v6141_v20 = vld [vmem:[#allocation3 + $0x50] sm:$0xff]  ;;  %6099 = vst.msk [vmem:[#allocation3 + $0x71] sm:$0xff] %vm1917_vm5, %v6082_v11  ;;  %v6123_v57 = vpack.c.bf16 %v12560_v40, %v12537_v33 }
 0x782   : > { %v12562_v55 = vld [vmem:[#allocation3 + $0x52] sm:$0xff]  ;;  %v12567_v56 = vpack.c.bf16 %v6141_v20, %v6140_v15  ;;  %v6084_v3 = vpop.permute.xlu1 %6083  ;;  %v6142_v24 = vld [vmem:[#allocation3 + $0x60] sm:$0xff] }
 0x783   : > { %6857 = vst.msk [vmem:[#allocation3 + $0x50] sm:$0xff] %vm1917_vm5, %v13409_v32  ;;  %v12573_v34 = vld [vmem:[#allocation3 + $0x61] sm:$0xff]  ;;  %6100 = vst.msk [vmem:[#allocation3 + $0x81] sm:$0xff] %vm1917_vm5, %v6084_v3  ;;  %6217 = vrot.lane.b32.xlu1 %v6123_v57, %s13272_s26  ;;  %v6147_v45 = vpack.c.bf16 %v6142_v24, %v6141_v20  ;;  %8741 = vmatpush3.bf16.msra.mxu0 %v9394_v35  ;;  %v6135_v28 = vpack.c.bf16 %v12562_v55, %v12539_v6  ;;  %v9403_v35 = vld [vmem:[%s13195_s13 + $0xc0] sm:$0xff]  }
 0x784   : > { %6858 = vst.msk [vmem:[#allocation3 + $0x58] sm:$0x3] %vm5008_vm4, %v13409_v32  ;;  %v12575_v59 = vld [vmem:[#allocation3 + $0x62] sm:$0xff] }
 0x785   : > { %6860 = vst.msk [vmem:[#allocation3 + $0x68] sm:$0x3] %vm5008_vm4, %v13409_v32  ;;  %6229 = vrot.lane.b32.xlu0 %v6147_v45, %s13272_s26  ;;  %v6171_v39 = vpack.c.bf16 %v12575_v59, %v12562_v55 }
 0x786   : > { %6859 = vst.msk [vmem:[#allocation3 + $0x60] sm:$0xff] %vm1917_vm5, %v13409_v32 }
 0x788   : > { %v12590_v51 = vld [vmem:[#allocation3 + $0x71] sm:$0xff] }
 0x789   : > { %v6143_v62 = vld [vmem:[#allocation3 + $0x70] sm:$0xff]  ;;  %v6124_v30 = vpack.c.bf16 %v12590_v51, %v12573_v34 }
 0x78a   : > { %v6167_v54 = vld [vmem:[#allocation3 + $0x72] sm:$0xff]  ;;  %v12594_v60 = vpack.c.bf16 %v6143_v62, %v6142_v24  ;;  %v12600_v14 = vld [vmem:[#allocation3 + $0x80] sm:$0xff]  ;;  %v6159_v24 = vpack.c.bf16 %v12573_v34, %v12560_v40 }
 0x78b   : > { %6861 = vst.msk [vmem:[#allocation3 + $0x70] sm:$0xff] %vm1917_vm5, %v13409_v32  ;;  %v12602_v37 = vld [vmem:[#allocation3 + $0x82] sm:$0xff]  ;;  %6219 = vrot.lane.b32.xlu1 %v6124_v30, %s13272_s26  ;;  %v6148_v7 = vpack.c.bf16 %v12600_v14, %v6143_v62  ;;  %v6136_v18 = vpack.c.bf16 %v6167_v54, %v12575_v59  ;;  %v6184_v19 = vpack.c.bf16 %v12403_v61, %v12600_v14  ;;  %v9395_v40 = vld [vmem:[%s13195_s13 + $0x40] sm:$0xff]   ;;  %v9397_v34 = vld [vmem:[%s13195_s13 + $0x48] sm:$0xff]  }
 0x78c   : > { %6862 = vst.msk [vmem:[#allocation3 + $0x78] sm:$0x3] %vm5008_vm4, %v13409_v32  ;;  %v12604_v13 = vld [vmem:[#allocation3 + $0x81] sm:$0xff]  ;;  %v9396_v61 = vld [vmem:[%s13195_s13] sm:$0xff]   ;;  %8774 = vmatprep.subr.bf16.mxu0 %v9395_v40 }
 0x78d   : > { %6863 = vst.msk [vmem:[#allocation3 + $0x80] sm:$0xff] %vm1917_vm5, %v13409_v32  ;;  %6231 = vrot.lane.b32.xlu0 %v6148_v7, %s13272_s26  ;;  %v6196_v46 = vpack.c.bf16 %v12399_v16, %v12604_v13  ;;  %v9404_v62 = vld [vmem:[%s13195_s13 + $0x80] sm:$0xff]   ;;  %v9411_v14 = vld [vmem:[%s13195_s13 + $0xd0] sm:$0xff]  }
 0x78e   : > { %6864 = vst.msk [vmem:[#allocation3 + $0x88] sm:$0x3] %vm5008_vm4, %v13409_v32  ;;  %v6172_v32 = vpack.c.bf16 %v12602_v37, %v6167_v54  ;;  %v9399_v54 = vld [vmem:[%s13195_s13 + $0x50] sm:$0xff]  }
 0x78f   : > { %6237 = vrot.lane.b32.xlu1 %v6169_v23, %s13272_s26  ;;  %v9412_v7 = vld [vmem:[%s13195_s13 + $0x90] sm:$0xff]   ;;  %v9415_v23 = vld [vmem:[%s13195_s13 + $0xd8] sm:$0xff]  }
 0x791   : > { %6249 = vrot.lane.b32.xlu0 %v6122_v9, %s13272_s26 }
 0x793   : > { %6239 = vrot.lane.b32.xlu1 %v6170_v10, %s13272_s26  ;;  %v9402_v10 = vld [vmem:[%s13195_s13 + $0x18] sm:$0xff]  }
 0x795   : > { %6251 = vrot.lane.b32.xlu0 %v6123_v57, %s13272_s26  ;;  %v6208_v57 = vpack.c.bf16 %v12401_v42, %v12602_v37  ;;  %v6160_v42 = vpack.c.bf16 %v12604_v13, %v12590_v51  ;;  %v9398_v51 = vld [vmem:[%s13195_s13 + $0x8] sm:$0xff]   ;;  %v9400_v37 = vld [vmem:[%s13195_s13 + $0x10] sm:$0xff]   ;;  %v9401_v13 = vld [vmem:[%s13195_s13 + $0x58] sm:$0xff]  }
 0x797   : > { %6241 = vrot.lane.b32.xlu1 %v6171_v39, %s13272_s26  ;;  %v9405_v39 = vld [vmem:[%s13195_s13 + $0x60] sm:$0xff]  }
 0x799   : > { %6253 = vrot.lane.b32.xlu0 %v6124_v30, %s13272_s26  ;;  %v9407_v30 = vld [vmem:[%s13195_s13 + $0xc8] sm:$0xff]  }
 0x79b   : > { %6243 = vrot.lane.b32.xlu1 %v6172_v32, %s13272_s26  ;;  %v9416_v32 = vld [vmem:[%s13195_s13 + $0x98] sm:$0xff]  }
 0x79d   : > { %6255 = vrot.lane.b32.xlu0 %v6196_v46, %s13272_s26  ;;  %v9406_v46 = vld [vmem:[%s13195_s13 + $0x20] sm:$0xff]  }
 0x7e5   : > { %v6214_v2 = vpop.permute.xlu1 %6213 }
 0x7e6   : > { %v6259_v26 = vsel %vm1917_vm5, %v6109_v31, %v6214_v2  ;;  %v9409_v2 = vld [vmem:[%s13195_s13 + $0x68] sm:$0xff]   ;;  %v9413_v31 = vld [vmem:[%s13195_s13 + $0x70] sm:$0xff]  }
 0x7e7   : > { %v6226_v5 = vpop.permute.xlu0 %6225 }
 0x7e8   : > { %v6275_v22 = vsel %vm1917_vm5, %v6133_v43, %v6226_v5  ;;  %v9410_v43 = vld [vmem:[%s13195_s13 + $0x28] sm:$0xff]   ;;  %v9414_v5 = vld [vmem:[%s13195_s13 + $0x30] sm:$0xff]  }
 0x7e9   : > { %6660 = vmatprep.mubr.bf16.mxu1 %v6275_v22  ;;  %v9417_v22 = vld [vmem:[%s13195_s13 + $0x78] sm:$0xff]  }
 0x7ea   : > { %6661 = vmatmul.mubr.bf16.vlgmr.msra.gmra.mrb[140].mxu1 %v6259_v26 }
 0x7eb   : > { %9037 = vmatpush3.bf16.msra.mxu1 %v12471_v0 }
 0x7ec   : > { %9038 = vmatprep.subr.bf16.mxu1 %v9382_v36 }
 0x7ed   : > { %v6216_v16 = vpop.permute.xlu1 %6215 }
 0x7ee   : > { %v6263_v0 = vsel %vm1917_vm5, %v12531_v50, %v6216_v16 }
 0x7ef   : > { %v6228_v63 = vpop.permute.xlu0 %6227  ;;  %9039 = vmatpush3.bf16.msra.mxu1 %v9382_v36 }
 0x7f0   : > { %v6279_v25 = vsel %vm1917_vm5, %v6134_v44, %v6228_v63  ;;  %9040 = vmatprep.subr.bf16.mxu1 %v9387_v47 }
 0x7f1   : > { %6668 = vmatprep.mubr.bf16.mxu1 %v6279_v25 }
 0x7f2   : > { %6669 = vmatmul.mubr.bf16.gmra.mrb[144].mxu1 %v6263_v0 }
 0x7f3   : > { %9041 = vmatpush3.bf16.msra.mxu1 %v9387_v47 }
 0x7f4   : > { %9042 = vmatprep.subr.bf16.mxu1 %v9392_v58 }
 0x7f5   : > { %v6218_v21 = vpop.permute.xlu1 %6217 }
 0x7f6   : > { %v6267_v29 = vsel %vm1917_vm5, %v12567_v56, %v6218_v21 }
 0x7f7   : > { %v6230_v48 = vpop.permute.xlu0 %6229  ;;  %9043 = vmatpush3.bf16.msra.mxu1 %v9392_v58 }
 0x7f8   : > { %v6283_v38 = vsel %vm1917_vm5, %v6135_v28, %v6230_v48  ;;  %8814 = vmatprep.subr.bf16.mxu1 %v9403_v35  ;;  %v9419_v35 = vld [vmem:[%s13195_s13 + $0xe0] sm:$0xff]  }
 0x7f9   : > { %6676 = vmatprep.mubr.bf16.mxu1 %v6283_v38 }
 0x7fa   : > { %6677 = vmatmul.mubr.bf16.gmra.mrb[148].mxu1 %v6267_v29 }
 0x7fd   : > { %v6220_v4 = vpop.permute.xlu1 %6219 }
 0x7fe   : > { %v6271_v15 = vsel %vm1917_vm5, %v12594_v60, %v6220_v4 }
 0x7ff   : > { %v6232_v9 = vpop.permute.xlu0 %6231 }
 0x800   : > { %v6287_v49 = vsel %vm1917_vm5, %v6136_v18, %v6232_v9 }
 0x801   : > { %6684 = vmatprep.mubr.bf16.mxu1 %v6287_v49  ;;  %v6238_v6 = vpop.permute.xlu1 %6237 }
 0x802   : > { %6685 = vmatmul.mubr.bf16.gmra.mrb[152].mxu1 %v6271_v15  ;;  %v6291_v17 = vsel %vm1917_vm5, %v6157_v53, %v6238_v6 }
 0x803   : > { %9044 = vmatprep.mubr.msk.bf16.mxu1 %vm1917_vm5, %v6134_v44  ;;  %v6250_v1 = vpop.permute.xlu0 %6249 }
 0x804   : > { %v6307_v8 = vsel %vm1917_vm5, %v12531_v50, %v6250_v1 }
 0x805   : > { %6725 = vmatprep.mubr.bf16.mxu0 %v6307_v8  ;;  %v6240_v20 = vpop.permute.xlu1 %6239  ;;  %v12765_v8 = vld [vmem:[%s13194_s12] ss:$0 sm:$0xff] }
 0x806   : > { %6726 = vmatmul.mubr.bf16.vlgmr.msra.gmra.mrb[156].mxu0 %v6291_v17  ;;  %v6295_v50 = vsel %vm1917_vm5, %v6158_v12, %v6240_v20 }
 0x807   : > { %v6252_v27 = vpop.permute.xlu0 %6251  ;;  %8775 = vmatpush3.bf16.msra.mxu0 %v9396_v61 }
 0x808   : > { %v6311_v11 = vsel %vm1917_vm5, %v12567_v56, %v6252_v27  ;;  %8776 = vmatprep.subr.bf16.mxu0 %v9397_v34  ;;  %v9418_v34 = vld [vmem:[%s13195_s13 + $0x38] sm:$0xff]  }
 0x809   : > { %6733 = vmatprep.mubr.bf16.mxu0 %v6311_v11  ;;  %v6242_v56 = vpop.permute.xlu1 %6241 }
 0x80a   : > { %9045 = vmatmul.mubr.msk.bf16.vlgmr.msra.gmra.mrb[156].mxu1 %vm1917_vm5, %v6135_v28  ;;  %v6299_v33 = vsel %vm1917_vm5, %v6159_v24, %v6242_v56 }
 0x80b   : > { %9048 = vmatprep.mubr.msk.bf16.mxu1 %vm1917_vm5, %v6136_v18  ;;  %v6254_v52 = vpop.permute.xlu0 %6253  ;;  %8815 = vmatpush3.bf16.msra.mxu1 %v9404_v62 }
 0x80c   : > { %v6315_v55 = vsel %vm1917_vm5, %v12594_v60, %v6254_v52  ;;  %v9408_v60 = vld [vmem:[%s13195_s13 + $0x88] sm:$0xff]   ;;  %8816 = vmatprep.subr.bf16.mxu1 %v9407_v30  ;;  %8777 = vmatpush3.bf16.msra.mxu0 %v9398_v51 }
 0x80d   : > { %v6244_v45 = vpop.permute.xlu1 %6243  ;;  %8778 = vmatprep.subr.bf16.mxu0 %v9399_v54  ;;  %v9420_v54 = vld [vmem:[%s13195_s13 + $0xa0] sm:$0xff]  }
 0x80e   : > { %6734 = vmatmul.mubr.bf16.gmra.mrb[160].mxu0 %v6295_v50  ;;  %v6303_v41 = vsel %vm1917_vm5, %v6160_v42, %v6244_v45 }
 0x80f   : > { %6741 = vmatprep.mubr.bf16.mxu0 %v6315_v55  ;;  %v6256_v3 = vpop.permute.xlu0 %6255  ;;  %8817 = vmatpush3.bf16.msra.mxu1 %v9408_v60 }
 0x810   : > { %v6319_v59 = vsel %vm1917_vm5, %v6184_v19, %v6256_v3  ;;  %8818 = vmatprep.subr.bf16.mxu1 %v9411_v14  ;;  %8779 = vmatpush3.bf16.msra.mxu0 %v9400_v37 }
 0x811   : > { %8780 = vmatprep.subr.bf16.mxu0 %v9401_v13 }
 0x812   : > { %9049 = vmatmul.mubr.msk.bf16.gmra.mrb[160].mxu1 %vm1917_vm5, %v6208_v57 }
 0x813   : > { %8819 = vmatpush3.bf16.msra.mxu1 %v9412_v7  ;;  %v12788_v7 = vld [vmem:[%s13195_s13 + $0x100] sm:$0xff]  }
 0x814   : > { %8820 = vmatprep.subr.bf16.mxu1 %v9415_v23  ;;  %8781 = vmatpush3.bf16.msra.mxu0 %v9402_v10 }
 0x815   : > { %8782 = vmatprep.subr.bf16.mxu0 %v9405_v39 }
 0x816   : > { %6742 = vmatmul.mubr.bf16.gmra.mrb[164].mxu0 %v6299_v33 }
 0x817   : > { %6749 = vmatprep.mubr.bf16.mxu0 %v6319_v59  ;;  %8821 = vmatpush3.bf16.msra.mxu1 %v9416_v32 }
 0x818   : > { %8783 = vmatpush3.bf16.msra.mxu0 %v9406_v46  ;;  %8822 = vmatprep.subr.bf16.mxu1 %v9419_v35 }
 0x819   : > { %8784 = vmatprep.subr.bf16.mxu0 %v9409_v2  ;;  %v9422_v2 = vld [vmem:[%s13195_s13 + $0xe8] sm:$0xff]  }
 0x81b   : > { %8823 = vmatpush3.bf16.msra.mxu1 %v9420_v54 }
 0x81c   : > { %8785 = vmatpush3.bf16.msra.mxu0 %v9410_v43  ;;  %8824 = vmatprep.subr.bf16.mxu1 %v9422_v2 }
 0x81d   : > { %8786 = vmatprep.subr.bf16.mxu0 %v9413_v31 }
 0x81e   : > { %6750 = vmatmul.mubr.bf16.gmra.mrb[168].mxu0 %v6303_v41 }
 0x820   : > { %8787 = vmatpush3.bf16.msra.mxu0 %v9414_v5  ;;  %v9423_v5 = vld [vmem:[%s13195_s13 + $0xa8] sm:$0xff]  }
 0x821   : > { %8788 = vmatprep.subr.bf16.mxu0 %v9417_v22  ;;  %8825 = vmatpush3.bf16.msra.mxu1 %v9423_v5 }
 0x824   : > { %8789 = vmatpush3.bf16.msra.mxu0 %v9418_v34 }
 0x825   : > { %9052 = vmatprep.subr.bf16.mxu0 %v12788_v7 }
 0x8bd   : > { %v8702_v36 = vpop.f32.mrb[140].mxu1 }
 0x8be   : > { %v8703_v26 = vpop.f32.mrb[141].mxu1 }
 0x8bf   : > { %v8704_v47 = vadd.f32 %v8703_v26, %v8702_v36  ;;  %v8705_v16 = vpop.f32.mrb[142].mxu1 }
 0x8c0   : > { %v8706_v44 = vpop.f32.mrb[143].mxu1 }
 0x8c1   : > { %v8707_v63 = vadd.f32 %v8706_v44, %v8705_v16  ;;  %v6663_v52 = vadd.f32 %v8704_v47, %v12765_v8  ;;  %v9424_v16 = vld [vmem:[%s13195_s13 + $0xf0] sm:$0xff]  }
 0x8c2   : > { %v9425_v44 = vld [vmem:[%s13195_s13 + $0xb0] sm:$0xff]   ;;  %8826 = vmatprep.subr.bf16.mxu1 %v9424_v16 }
 0x8c3   : > { %v6666_v57 = vadd.f32 %v8707_v63, %v12765_v8  ;;  %8827 = vmatpush3.bf16.msra.mxu1 %v9425_v44 }
 0x8c5   : > { %v8708_v25 = vpop.f32.mrb[144].mxu1 }
 0x8c6   : > { %v8709_v58 = vpop.f32.mrb[145].mxu1 }
 0x8c7   : > { %v8710_v0 = vadd.f32 %v8709_v58, %v8708_v25  ;;  %v8711_v21 = vpop.f32.mrb[146].mxu1 }
 0x8c8   : > { %v8712_v28 = vpop.f32.mrb[147].mxu1 }
 0x8c9   : > { %v8713_v48 = vadd.f32 %v8712_v28, %v8711_v21  ;;  %v6671_v51 = vadd.f32 %v8710_v0, %v12765_v8  ;;  %v6887_v0 = vld [vmem:[#allocation3 + $0x1] sm:$0xff] }
 0x8cb   : > { %v6674_v23 = vadd.f32 %v8713_v48, %v12765_v8 }
 0x8cd   : > { %v8714_v38 = vpop.f32.mrb[148].mxu1 }
 0x8ce   : > { %v8715_v29 = vpop.f32.mrb[149].mxu1 }
 0x8cf   : > { %v12756_v4 = vadd.f32 %v8715_v29, %v8714_v38  ;;  %v8717_v18 = vpop.f32.mrb[150].mxu1 }
 0x8d0   : > { %v8718_v9 = vpop.f32.mrb[151].mxu1 }
 0x8d1   : > { %v12758_v49 = vadd.f32 %v8718_v9, %v8717_v18  ;;  %v6679_v21 = vadd.f32 %v12756_v4, %v12765_v8 }
 0x8d3   : > { %v6682_v4 = vadd.f32 %v12758_v49, %v12765_v8 }
 0x8d5   : > { %v8720_v15 = vpop.f32.mrb[152].mxu1 }
 0x8d6   : > { %v8721_v6 = vpop.f32.mrb[153].mxu1 }
 0x8d7   : > { %v12760_v53 = vadd.f32 %v8721_v6, %v8720_v15  ;;  %v8723_v1 = vpop.f32.mrb[154].mxu1 }
 0x8d8   : > { %v8724_v17 = vpop.f32.mrb[155].mxu1 }
 0x8d9   : > { %v12767_v27 = vadd.f32 %v8724_v17, %v8723_v1  ;;  %v8742_v11 = vpop.f32.mrb[156].mxu0 }
 0x8da   : > { %v8743_v20 = vpop.f32.mrb[157].mxu0 }
 0x8db   : > { %v8744_v12 = vadd.f32 %v8743_v20, %v8742_v11  ;;  %v8745_v50 = vpop.f32.mrb[158].mxu0 }
 0x8dc   : > { %v8746_v55 = vpop.f32.mrb[159].mxu0 }
 0x8dd   : > { %v8747_v56 = vadd.f32 %v8746_v55, %v8745_v50  ;;  %v9046_v3 = vpop.f32.mrb[156].mxu1  ;;  %v6728_v24 = vadd.f32 %v8744_v12, %v6663_v52 }
 0x8de   : > { %v6792_v19 = vpop.f32.mrb[157].mxu1 }
 0x8df   : > { %v6793_v33 = vadd.f32 %v6792_v19, %v6728_v24  ;;  %v9047_v59 = vpop.f32.mrb[158].mxu1  ;;  %v6731_v45 = vadd.f32 %v8747_v56, %v6666_v57  ;;  %v9427_v57 = vld [vmem:[%s13195_s13 + $0xf8] sm:$0xff]  }
 0x8e0   : > { %v6795_v42 = vpop.f32.mrb[159].mxu1  ;;  %v9428_v56 = vld [vmem:[%s13195_s13 + $0xb8] sm:$0xff]   ;;  %8828 = vmatprep.subr.bf16.mxu1 %v9427_v57 }
 0x8e1   : > { %vm6823_vm4 = vcmp.ge.f32.partialorder %v6793_v33, 0.0  ;;  %v6831_v41 = vmul.f32 0.1, %v6793_v33  ;;  %v6796_v40 = vadd.f32 %v6795_v42, %v6731_v45  ;;  %v8748_v61 = vpop.f32.mrb[160].mxu0  ;;  %8829 = vmatpush3.bf16.msra.mxu1 %v9428_v56  ;;  %v6687_v45 = vadd.f32 %v12760_v53, %v12765_v8 }
 0x8e2   : > { %v8749_v62 = vpop.f32.mrb[161].mxu0 }
 0x8e3   : > { %v12781_v30 = vsel %vm6823_vm4, %v6793_v33, %v6831_v41  ;;  %vm6824_vm3 = vcmp.ge.f32.partialorder %v6796_v40, 0.0  ;;  %v6832_v60 = vmul.f32 0.1, %v6796_v40  ;;  %v8750_v14 = vadd.f32 %v8749_v62, %v8748_v61  ;;  %v8751_v37 = vpop.f32.mrb[162].mxu0 }
 0x8e4   : > { %6867 = vst.msk [vmem:[#allocation3 + $0x11] sm:$0xff] %vm1917_vm5, %v12781_v30  ;;  %v8752_v13 = vpop.f32.mrb[163].mxu0  ;;  %v6690_v62 = vadd.f32 %v12767_v27, %v12765_v8 }
 0x8e5   : > { %v12791_v10 = vsel %vm6824_vm3, %v6796_v40, %v6832_v60  ;;  %v6736_v39 = vadd.f32 %v8750_v14, %v6671_v51  ;;  %v8753_v32 = vadd.f32 %v8752_v13, %v8751_v37  ;;  %v12793_v46 = vpop.f32.mrb[160].mxu1 }
 0x8e6   : > { %v9246_v43 = vpack.i.bf16 %v12791_v10, %v12781_v30  ;;  %6868 = vst.msk [vmem:[#allocation3 + $0x21] sm:$0xff] %vm1917_vm5, %v12791_v10  ;;  %v6808_v31 = vpop.f32.mrb[161].mxu1  ;;  %v9429_v10 = vld [vmem:[%s13195_s13 + $0x110] sm:$0xff]  }
 0x8e7   : > { %v6801_v22 = vadd.f32 %v9046_v3, %v6736_v39  ;;  %v6739_v36 = vadd.f32 %v8753_v32, %v6674_v23  ;;  %v12806_v26 = vpop.f32.mrb[162].mxu1 }
 0x8e8   : > { %v6811_v47 = vpop.f32.mrb[163].mxu1 }
 0x8e9   : > { %vm6825_vm9 = vcmp.ge.f32.partialorder %v6801_v22, 0.0  ;;  %v6833_v63 = vmul.f32 0.1, %v6801_v22  ;;  %v6804_v25 = vadd.f32 %v9047_v59, %v6739_v36  ;;  %v8754_v58 = vpop.f32.mrb[164].mxu0 }
 0x8ea   : > { %v8755_v28 = vpop.f32.mrb[165].mxu0 }
 0x8eb   : > { %v12816_v48 = vsel %vm6825_vm9, %v6801_v22, %v6833_v63  ;;  %vm6826_vm10 = vcmp.ge.f32.partialorder %v6804_v25, 0.0  ;;  %v6834_v38 = vmul.f32 0.1, %v6804_v25  ;;  %v8756_v29 = vadd.f32 %v8755_v28, %v8754_v58  ;;  %v8757_v18 = vpop.f32.mrb[166].mxu0  ;;  %v12818_v9 = vld [vmem:[#allocation3 + $0x11] sm:$0xff] }
 0x8ec   : > { %6869 = vst.msk [vmem:[#allocation3 + $0x31] sm:$0xff] %vm1917_vm5, %v12816_v48  ;;  %v8758_v15 = vpop.f32.mrb[167].mxu0  ;;  %v6895_v6 = vpack.c.bf16 %v12818_v9, %v6887_v0  ;;  %v12827_v20 = vld [vmem:[#allocation3 + $0x10] sm:$0xff] }
 0x8ed   : > { %v12825_v1 = vsel %vm6826_vm10, %v6804_v25, %v6834_v38  ;;  %v6744_v17 = vadd.f32 %v8756_v29, %v6679_v21  ;;  %v8759_v11 = vadd.f32 %v8758_v15, %v8757_v18  ;;  %v6912_v52 = vld [vmem:[#allocation3 + $0x20] sm:$0xff] }
 0x8ee   : > { %v12829_v12 = vld [vmem:[#allocation3 + $0x21] sm:$0xff]  ;;  %6870 = vst.msk [vmem:[#allocation3 + $0x41] sm:$0xff] %vm1917_vm5, %v12825_v1  ;;  %6987 = vrot.lane.b32.xlu1 %v6895_v6, %s13272_s26  ;;  %v6919_v50 = vpack.c.bf16 %v6912_v52, %v12827_v20  ;;  %v9251_v55 = vpack.i.bf16 %v12825_v1, %v12816_v48  ;;  %v9426_v1 = vld [vmem:[%s13195_s13 + $0x108] sm:$0xff]  }
 0x8ef   : > { %v6931_v49 = vpack.c.bf16 %v12829_v12, %v12818_v9  ;;  %v6809_v3 = vadd.f32 %v6808_v31, %v6744_v17  ;;  %v6747_v24 = vadd.f32 %v8759_v11, %v6682_v4  ;;  %v6936_v60 = vld [vmem:[#allocation3 + $0x22] sm:$0xff] }
 0x8f0   : > { %6999 = vrot.lane.b32.xlu0 %v6919_v50, %s13272_s26 }
 0x8f1   : > { %vm6827_vm11 = vcmp.ge.f32.partialorder %v6809_v3, 0.0  ;;  %v6835_v19 = vmul.f32 0.1, %v6809_v3  ;;  %v6812_v33 = vadd.f32 %v6811_v47, %v6747_v24  ;;  %v8760_v59 = vpop.f32.mrb[168].mxu0  ;;  %v12874_v47 = vld [vmem:[#allocation3 + $0x12] sm:$0xff] }
 0x8f2   : > { %v8761_v42 = vpop.f32.mrb[169].mxu0  ;;  %v6943_v16 = vpack.c.bf16 %v6936_v60, %v12874_v47 }
 0x8f3   : > { %v12848_v41 = vsel %vm6827_vm11, %v6809_v3, %v6835_v19  ;;  %vm6828_vm14 = vcmp.ge.f32.partialorder %v6812_v33, 0.0  ;;  %v6836_v40 = vmul.f32 0.1, %v6812_v33  ;;  %v8762_v61 = vadd.f32 %v8761_v42, %v8760_v59  ;;  %v8763_v34 = vpop.f32.mrb[170].mxu0  ;;  %v12850_v35 = vld [vmem:[#allocation3 + $0x31] sm:$0xff] }
 0x8f4   : > { %v6913_v51 = vld [vmem:[#allocation3 + $0x30] sm:$0xff]  ;;  %6871 = vst.msk [vmem:[#allocation3 + $0x51] sm:$0xff] %vm1917_vm5, %v12848_v41  ;;  %v8764_v54 = vpop.f32.mrb[171].mxu0  ;;  %v6896_v53 = vpack.c.bf16 %v12850_v35, %v12829_v12 }
 0x8f5   : > { %v6937_v14 = vld [vmem:[#allocation3 + $0x32] sm:$0xff]  ;;  %v12858_v37 = vpack.c.bf16 %v6913_v51, %v6912_v52  ;;  %v12860_v13 = vsel %vm6828_vm14, %v6812_v33, %v6836_v40  ;;  %v6752_v23 = vadd.f32 %v8762_v61, %v6687_v45  ;;  %v8765_v39 = vadd.f32 %v8764_v54, %v8763_v34  ;;  %v6914_v32 = vld [vmem:[#allocation3 + $0x40] sm:$0xff] }
 0x8f6   : > { %v12862_v2 = vld [vmem:[#allocation3 + $0x41] sm:$0xff]  ;;  %v12864_v31 = vpack.c.bf16 %v6937_v14, %v6936_v60  ;;  %6872 = vst.msk [vmem:[#allocation3 + $0x61] sm:$0xff] %vm1917_vm5, %v12860_v13  ;;  %6989 = vrot.lane.b32.xlu1 %v6896_v53, %s13272_s26  ;;  %v6920_v8 = vpack.c.bf16 %v6914_v32, %v6913_v51  ;;  %v9256_v27 = vpack.i.bf16 %v12860_v13, %v12848_v41  ;;  %v6966_v34 = vld [vmem:[#allocation3 + $0x91] sm:$0xff] }
 0x8f7   : > { %v6932_v5 = vpack.c.bf16 %v12862_v2, %v12850_v35  ;;  %v6817_v22 = vadd.f32 %v12793_v46, %v6752_v23  ;;  %v6755_v36 = vadd.f32 %v8765_v39, %v6690_v62  ;;  %v6938_v25 = vld [vmem:[#allocation3 + $0x42] sm:$0xff] }
 0x8f8   : > { %7001 = vrot.lane.b32.xlu0 %v6920_v8, %s13272_s26  ;;  %v6944_v52 = vpack.c.bf16 %v6938_v25, %v6937_v14  ;;  %v6899_v54 = vld [vmem:[#allocation3 + $0x2] sm:$0xff] }
 0x8f9   : > { %vm6829_vm15 = vcmp.ge.f32.partialorder %v6817_v22, 0.0  ;;  %v6837_v44 = vmul.f32 0.1, %v6817_v22  ;;  %v6820_v63 = vadd.f32 %v12806_v26, %v6755_v36  ;;  %v6907_v14 = vpack.c.bf16 %v12874_v47, %v6899_v54  ;;  %v9430_v39 = vld [vmem:[%s13195_s13 + $0x118] sm:$0xff]  }
 0x8fa   : > { %7011 = vrot.lane.b32.xlu1 %v6943_v16, %s13272_s26 }
 0x8fb   : > { %v6845_v58 = vsel %vm6829_vm15, %v6817_v22, %v6837_v44  ;;  %vm6830_vm13 = vcmp.ge.f32.partialorder %v6820_v63, 0.0  ;;  %v6838_v0 = vmul.f32 0.1, %v6820_v63  ;;  %v12880_v21 = vld [vmem:[#allocation3 + $0x51] sm:$0xff] }
 0x8fc   : > { %v6915_v46 = vld [vmem:[#allocation3 + $0x50] sm:$0xff]  ;;  %6873 = vst.msk [vmem:[#allocation3 + $0x71] sm:$0xff] %vm1917_vm5, %v6845_v58  ;;  %7023 = vrot.lane.b32.xlu0 %v6896_v53, %s13272_s26  ;;  %v6897_v38 = vpack.c.bf16 %v12880_v21, %v12862_v2  ;;  %v6875_v53 = vld [vmem:[#allocation3] sm:$0xff] }
 0x8fd   : > { %v6939_v28 = vld [vmem:[#allocation3 + $0x52] sm:$0xff]  ;;  %v12888_v26 = vpack.c.bf16 %v6915_v46, %v6914_v32  ;;  %v6846_v18 = vsel %vm6830_vm13, %v6820_v63, %v6838_v0  ;;  %v6916_v15 = vld [vmem:[#allocation3 + $0x60] sm:$0xff]  ;;  %v6883_v13 = vpack.c.bf16 %v12827_v20, %v6875_v53 }
 0x8fe   : > { %v12886_v29 = vpack.c.bf16 %v6939_v28, %v6938_v25  ;;  %v12890_v6 = vld [vmem:[#allocation3 + $0x61] sm:$0xff]  ;;  %6874 = vst.msk [vmem:[#allocation3 + $0x81] sm:$0xff] %vm1917_vm5, %v6846_v18  ;;  %6991 = vrot.lane.b32.xlu1 %v6897_v38, %s13272_s26  ;;  %v6921_v4 = vpack.c.bf16 %v6916_v15, %v6915_v46  ;;  %v9261_v17 = vpack.i.bf16 %v6846_v18, %v6845_v58 }
 0x8ff   : > { %v6933_v11 = vpack.c.bf16 %v12890_v6, %v12880_v21  ;;  %v6940_v50 = vld [vmem:[#allocation3 + $0x62] sm:$0xff]  ;;  %v6978_v21 = vld [vmem:[#allocation3 + $0x92] sm:$0xff] }
 0x900   : > { %7003 = vrot.lane.b32.xlu0 %v6921_v4, %s13272_s26  ;;  %v6945_v40 = vpack.c.bf16 %v6940_v50, %v6939_v28  ;;  %v9431_v4 = vld [vmem:[%s13197_s15] sm:$0xff]  }
 0x901   : > { %9068 = vmatprep.subr.bf16.mxu1 %v9431_v4 }
 0x902   : > { %7013 = vrot.lane.b32.xlu1 %v6944_v52, %s13272_s26  ;;  %v9435_v52 = vld [vmem:[%s13197_s15 + $0x20] sm:$0xff]  }
 0x903   : > { %v12898_v57 = vld [vmem:[#allocation3 + $0x71] sm:$0xff] }
 0x904   : > { %v6917_v56 = vld [vmem:[#allocation3 + $0x70] sm:$0xff]  ;;  %7025 = vrot.lane.b32.xlu0 %v6897_v38, %s13272_s26  ;;  %v6898_v24 = vpack.c.bf16 %v12898_v57, %v12890_v6 }
 0x905   : > { %v6941_v3 = vld [vmem:[#allocation3 + $0x72] sm:$0xff]  ;;  %v12905_v33 = vpack.c.bf16 %v6917_v56, %v6916_v15  ;;  %v12907_v59 = vld [vmem:[#allocation3 + $0x80] sm:$0xff] }
 0x906   : > { %v12903_v19 = vpack.c.bf16 %v6941_v3, %v6940_v50  ;;  %v12909_v45 = vld [vmem:[#allocation3 + $0x81] sm:$0xff]  ;;  %6993 = vrot.lane.b32.xlu1 %v6898_v24, %s13272_s26  ;;  %v6922_v42 = vpack.c.bf16 %v12907_v59, %v6917_v56  ;;  %v6954_v38 = vld [vmem:[#allocation3 + $0x90] sm:$0xff]  ;;  %v9436_v50 = vld [vmem:[%s13197_s15 + $0x28] sm:$0xff]  }
 0x907   : > { %v6934_v41 = vpack.c.bf16 %v12909_v45, %v12898_v57  ;;  %v12916_v61 = vld [vmem:[#allocation3 + $0x82] sm:$0xff]  ;;  %v6970_v62 = vpack.c.bf16 %v6966_v34, %v12909_v45  ;;  %v13019_v34 = vld [vmem:[%s13196_s14] ss:$0 sm:$0xff] }
 0x908   : > { %7005 = vrot.lane.b32.xlu0 %v6922_v42, %s13272_s26  ;;  %v6946_v51 = vpack.c.bf16 %v12916_v61, %v6941_v3  ;;  %v6982_v6 = vpack.c.bf16 %v6978_v21, %v12916_v61  ;;  %v9437_v57 = vld [vmem:[%s13197_s15 + $0x30] sm:$0xff]   ;;  %v9438_v56 = vld [vmem:[%s13197_s15 + $0x38] sm:$0xff]  }
 0x90a   : > { %7015 = vrot.lane.b32.xlu1 %v6945_v40, %s13272_s26 }
 0x90c   : > { %7027 = vrot.lane.b32.xlu0 %v6898_v24, %s13272_s26 }
 0x90e   : > { %7017 = vrot.lane.b32.xlu1 %v6946_v51, %s13272_s26 }
 0x910   : > { %7029 = vrot.lane.b32.xlu0 %v6970_v62, %s13272_s26 }
 0x912   : > { %9252 = vrot.lane.b32.xlu1 %v9251_v55, %s13272_s26 }
 0x914   : > { %9247 = vrot.lane.b32.xlu0 %v9246_v43, %s13272_s26 }
 0x916   : > { %9262 = vrot.lane.b32.xlu1 %v9261_v17, %s13272_s26  ;;  %v9433_v17 = vld [vmem:[%s13197_s15 + $0x10] sm:$0xff]  }
 0x918   : > { %9257 = vrot.lane.b32.xlu0 %v9256_v27, %s13272_s26  ;;  %s7846_s26 = sand.u32 1, %s9698_s1  }
 0x919   : > { %s13047_s4 = scalar_lea.sflag [#allocation8], %s7846_s26 }
 0x960   : > { %v6988_v60 = vpop.permute.xlu1 %6987 }
 0x961   : > { %v7033_v30 = vsel %vm1917_vm5, %v6883_v13, %v6988_v60 }
 0x962   : > { %v7000_v23 = vpop.permute.xlu0 %6999 }
 0x963   : > { %v7049_v48 = vsel %vm1917_vm5, %v6907_v14, %v7000_v23 }
 0x964   : > { %7434 = vmatprep.mubr.bf16.mxu0 %v7049_v48 }
 0x965   : > { %7435 = vmatmul.mubr.bf16.vlgmr.msra.gmra.mrb[172].mxu0 %v7033_v30 }
 0x966   : > { %9053 = vmatpush3.bf16.msra.mxu0 %v12788_v7 }
 0x967   : > { %9054 = vmatprep.subr.bf16.mxu0 %v9426_v1 }
 0x968   : > { %v6990_v43 = vpop.permute.xlu1 %6989 }
 0x969   : > { %v7037_v7 = vsel %vm1917_vm5, %v12858_v37, %v6990_v43 }
 0x96a   : > { %v7002_v20 = vpop.permute.xlu0 %7001  ;;  %9055 = vmatpush3.bf16.msra.mxu0 %v9426_v1 }
 0x96b   : > { %v7053_v55 = vsel %vm1917_vm5, %v12864_v31, %v7002_v20  ;;  %9056 = vmatprep.subr.bf16.mxu0 %v9429_v10 }
 0x96c   : > { %v7012_v32 = vpop.permute.xlu1 %7011  ;;  %7442 = vmatprep.mubr.bf16.mxu0 %v7053_v55 }
 0x96d   : > { %7443 = vmatmul.mubr.bf16.gmra.mrb[176].mxu0 %v7037_v7  ;;  %v7065_v22 = vsel %vm1917_vm5, %v6931_v49, %v7012_v32 }
 0x96e   : > { %v7024_v8 = vpop.permute.xlu0 %7023  ;;  %9057 = vmatpush3.bf16.msra.mxu0 %v9429_v10 }
 0x96f   : > { %v7081_v27 = vsel %vm1917_vm5, %v12858_v37, %v7024_v8  ;;  %9058 = vmatprep.subr.bf16.mxu0 %v9430_v39 }
 0x970   : > { %v6992_v36 = vpop.permute.xlu1 %6991  ;;  %7499 = vmatprep.mubr.bf16.mxu1 %v7081_v27 }
 0x971   : > { %7500 = vmatmul.mubr.bf16.vlgmr.msra.gmra.mrb[164].mxu1 %v7065_v22  ;;  %v7041_v63 = vsel %vm1917_vm5, %v12888_v26, %v6992_v36 }
 0x972   : > { %v7004_v47 = vpop.permute.xlu0 %7003  ;;  %9059 = vmatpush3.bf16.msra.mxu0 %v9430_v39  ;;  %9069 = vmatpush3.bf16.msra.mxu1 %v9431_v4 }
 0x973   : > { %v7057_v16 = vsel %vm1917_vm5, %v12886_v29, %v7004_v47 }
 0x974   : > { %v7014_v44 = vpop.permute.xlu1 %7013  ;;  %7450 = vmatprep.mubr.bf16.mxu0 %v7057_v16 }
 0x975   : > { %7451 = vmatmul.mubr.bf16.gmra.mrb[180].mxu0 %v7041_v63  ;;  %v7069_v49 = vsel %vm1917_vm5, %v6932_v5, %v7014_v44  ;;  %v6958_v5 = vpack.c.bf16 %v6954_v38, %v12907_v59 }
 0x976   : > { %v7026_v37 = vpop.permute.xlu0 %7025 }
 0x977   : > { %v7085_v9 = vsel %vm1917_vm5, %v12888_v26, %v7026_v37 }
 0x978   : > { %v6994_v12 = vpop.permute.xlu1 %6993  ;;  %7507 = vmatprep.mubr.bf16.mxu1 %v7085_v9 }
 0x979   : > { %7508 = vmatmul.mubr.bf16.gmra.mrb[168].mxu1 %v7069_v49  ;;  %v7045_v0 = vsel %vm1917_vm5, %v12905_v33, %v6994_v12 }
 0x97a   : > { %v7006_v25 = vpop.permute.xlu0 %7005 }
 0x97b   : > { %v7061_v58 = vsel %vm1917_vm5, %v12903_v19, %v7006_v25 }
 0x97c   : > { %7458 = vmatprep.mubr.bf16.mxu0 %v7061_v58  ;;  %v7016_v46 = vpop.permute.xlu1 %7015 }
 0x97d   : > { %7459 = vmatmul.mubr.bf16.gmra.mrb[184].mxu0 %v7045_v0  ;;  %v7073_v2 = vsel %vm1917_vm5, %v6933_v11, %v7016_v46  ;;  %v9434_v11 = vld [vmem:[%s13197_s15 + $0x18] sm:$0xff]  }
 0x97e   : > { %9060 = vmatprep.mubr.msk.bf16.mxu0 %vm1917_vm5, %v12864_v31  ;;  %v7028_v28 = vpop.permute.xlu0 %7027 }
 0x97f   : > { %v7089_v35 = vsel %vm1917_vm5, %v12905_v33, %v7028_v28 }
 0x980   : > { %7515 = vmatprep.mubr.bf16.mxu1 %v7089_v35  ;;  %v7018_v15 = vpop.permute.xlu1 %7017 }
 0x981   : > { %7516 = vmatmul.mubr.bf16.gmra.mrb[172].mxu1 %v7073_v2  ;;  %v7077_v31 = vsel %vm1917_vm5, %v6934_v41, %v7018_v15 }
 0x982   : > { %v7030_v26 = vpop.permute.xlu0 %7029 }
 0x983   : > { %v7093_v18 = vsel %vm1917_vm5, %v6958_v5, %v7030_v26 }
 0x984   : > { %7523 = vmatprep.mubr.bf16.mxu1 %v7093_v18  ;;  %v9253_v18 = vpop.permute.xlu1 %9252 }
 0x985   : > { %9061 = vmatmul.mubr.msk.bf16.vlgmr.msra.gmra.mrb[188].mxu0 %vm1917_vm5, %v12886_v29  ;;  %v9432_v29 = vld [vmem:[%s13197_s15 + $0x8] sm:$0xff]  }
 0x986   : > { %9064 = vmatprep.mubr.msk.bf16.mxu0 %vm1917_vm5, %v12903_v19  ;;  %9070 = vmatprep.subr.bf16.mxu1 %v9432_v29 }
 0x987   : > { %9071 = vmatpush3.bf16.msra.mxu1 %v9432_v29 }
 0x988   : > { %9072 = vmatprep.subr.bf16.mxu1 %v9433_v17 }
 0x989   : > { %7524 = vmatmul.mubr.bf16.gmra.mrb[176].mxu1 %v7077_v31 }
 0x98b   : > { %9073 = vmatpush3.bf16.msra.mxu1 %v9433_v17  ;;  %v9248_v17 = vpop.permute.xlu0 %9247 }
 0x98c   : > { %9074 = vmatprep.subr.bf16.mxu1 %v9434_v11 }
 0x98d   : > { %9065 = vmatmul.mubr.msk.bf16.gmra.mrb[192].mxu0 %vm1917_vm5, %v6982_v6 }
 0x98f   : > { %9075 = vmatpush3.bf16.msra.mxu1 %v9434_v11 }
 0x990   : > { %9076 = vmatprep.subr.bf16.mxu1 %v9435_v52 }
 0x993   : > { %9077 = vmatpush3.bf16.msra.mxu1 %v9435_v52 }
 0x994   : > { %9078 = vmatprep.subr.bf16.mxu1 %v9436_v50 }
 0x997   : > { %9079 = vmatpush3.bf16.msra.mxu1 %v9436_v50 }
 0x998   : > { %9080 = vmatprep.subr.bf16.mxu1 %v9437_v57 }
 0x99b   : > { %9081 = vmatpush3.bf16.msra.mxu1 %v9437_v57  ;;  %v9255_v57 = vunpack.i.h.bf16 %v9253_v18 }
 0x99c   : > { %9082 = vmatprep.subr.bf16.mxu1 %v9438_v56 }
 0x99f   : > { %9083 = vmatpush3.bf16.msra.mxu1 %v9438_v56 }
 0xa38   : > { %v8790_v3 = vpop.f32.mrb[172].mxu0 }
 0xa39   : > { %v8791_v24 = vpop.f32.mrb[173].mxu0 }
 0xa3a   : > { %v8792_v19 = vadd.f32 %v8791_v24, %v8790_v3  ;;  %v8793_v33 = vpop.f32.mrb[174].mxu0 }
 0xa3b   : > { %v8794_v59 = vpop.f32.mrb[175].mxu0 }
 0xa3c   : > { %v8795_v45 = vadd.f32 %v8794_v59, %v8793_v33  ;;  %v7437_v60 = vadd.f32 %v8792_v19, %v13019_v34  ;;  %v9254_v19 = vunpack.i.l.bf16 %v9253_v18 }
 0xa3e   : > { %v7440_v48 = vadd.f32 %v8795_v45, %v13019_v34 }
 0xa40   : > { %v8796_v42 = vpop.f32.mrb[176].mxu0 }
 0xa41   : > { %v8797_v41 = vpop.f32.mrb[177].mxu0 }
 0xa42   : > { %v8798_v40 = vadd.f32 %v8797_v41, %v8796_v42  ;;  %v8799_v61 = vpop.f32.mrb[178].mxu0  ;;  %v9250_v42 = vunpack.i.h.bf16 %v9248_v17 }
 0xa43   : > { %v8800_v51 = vpop.f32.mrb[179].mxu0 }
 0xa44   : > { %v8801_v62 = vadd.f32 %v8800_v51, %v8799_v61  ;;  %v8830_v54 = vpop.f32.mrb[164].mxu1  ;;  %v7445_v22 = vadd.f32 %v8798_v40, %v13019_v34  ;;  %v9249_v51 = vunpack.i.l.bf16 %v9248_v17 }
 0xa45   : > { %v8831_v53 = vpop.f32.mrb[165].mxu1 }
 0xa46   : > { %v8832_v14 = vadd.f32 %v8831_v53, %v8830_v54  ;;  %v8833_v13 = vpop.f32.mrb[166].mxu1  ;;  %v7448_v44 = vadd.f32 %v8801_v62, %v13019_v34 }
 0xa47   : > { %v8834_v23 = vpop.f32.mrb[167].mxu1 }
 0xa48   : > { %v8835_v1 = vadd.f32 %v8834_v23, %v8833_v13  ;;  %v8802_v30 = vpop.f32.mrb[180].mxu0  ;;  %v7502_v10 = vadd.f32 %v8832_v14, %v7437_v60 }
 0xa49   : > { %v8803_v43 = vpop.f32.mrb[181].mxu0 }
 0xa4a   : > { %v8804_v20 = vadd.f32 %v8803_v43, %v8802_v30  ;;  %v8805_v55 = vpop.f32.mrb[182].mxu0  ;;  %v7505_v39 = vadd.f32 %v8835_v1, %v7440_v48 }
 0xa4b   : > { %v8806_v32 = vpop.f32.mrb[183].mxu0 }
 0xa4c   : > { %v8807_v7 = vadd.f32 %v8806_v32, %v8805_v55  ;;  %v8836_v8 = vpop.f32.mrb[168].mxu1  ;;  %v7453_v35 = vadd.f32 %v8804_v20, %v13019_v34 }
 0xa4d   : > { %v8837_v27 = vpop.f32.mrb[169].mxu1 }
 0xa4e   : > { %v8838_v36 = vadd.f32 %v8837_v27, %v8836_v8  ;;  %v8839_v47 = vpop.f32.mrb[170].mxu1  ;;  %v7456_v15 = vadd.f32 %v8807_v7, %v13019_v34 }
 0xa4f   : > { %v8840_v16 = vpop.f32.mrb[171].mxu1 }
 0xa50   : > { %v8841_v63 = vadd.f32 %v8840_v16, %v8839_v47  ;;  %v8808_v37 = vpop.f32.mrb[184].mxu0  ;;  %v7510_v9 = vadd.f32 %v8838_v36, %v7445_v22  ;;  %v9263_v47 = vpop.permute.xlu1 %9262 }
 0xa51   : > { %v8809_v12 = vpop.f32.mrb[185].mxu0 }
 0xa52   : > { %v8810_v49 = vadd.f32 %v8809_v12, %v8808_v37  ;;  %v8811_v25 = vpop.f32.mrb[186].mxu0  ;;  %v7513_v58 = vadd.f32 %v8841_v63, %v7448_v44  ;;  %v9258_v12 = vpop.permute.xlu0 %9257 }
 0xa53   : > { %v8812_v0 = vpop.f32.mrb[187].mxu0 }
 0xa54   : > { %v8813_v46 = vadd.f32 %v8812_v0, %v8811_v25  ;;  %v8842_v28 = vpop.f32.mrb[172].mxu1  ;;  %v7461_v60 = vadd.f32 %v8810_v49, %v13019_v34  ;;  %v9265_v25 = vunpack.i.h.bf16 %v9263_v47  ;;  %v9264_v0 = vunpack.i.l.bf16 %v9263_v47 }
 0xa55   : > { %v8843_v38 = vpop.f32.mrb[173].mxu1 }
 0xa56   : > { %v8844_v2 = vadd.f32 %v8843_v38, %v8842_v28  ;;  %v8845_v5 = vpop.f32.mrb[174].mxu1  ;;  %v7464_v14 = vadd.f32 %v8813_v46, %v13019_v34 }
 0xa57   : > { %v8846_v26 = vpop.f32.mrb[175].mxu1 }
 0xa58   : > { %v8847_v31 = vadd.f32 %v8846_v26, %v8845_v5  ;;  %v9062_v21 = vpop.f32.mrb[188].mxu0  ;;  %v7518_v6 = vadd.f32 %v8844_v2, %v7453_v35  ;;  %v9260_v35 = vunpack.i.h.bf16 %v9258_v12  ;;  %v9259_v2 = vunpack.i.l.bf16 %v9258_v12 }
 0xa59   : > { %v7575_v4 = vadd.f32 %v9062_v21, %v7510_v9  ;;  %v7566_v29 = vpop.f32.mrb[189].mxu0 }
 0xa5a   : > { %v7567_v11 = vadd.f32 %v7566_v29, %v7502_v10  ;;  %v9063_v52 = vpop.f32.mrb[190].mxu0  ;;  %v7521_v50 = vadd.f32 %v8847_v31, %v7456_v15 }
 0xa5b   : > { %vm7599_vm0 = vcmp.ge.f32.partialorder %v7575_v4, 0.0  ;;  %v7607_v56 = vmul.f32 0.1, %v7575_v4  ;;  %v7578_v3 = vadd.f32 %v9063_v52, %v7513_v58  ;;  %v7569_v24 = vpop.f32.mrb[191].mxu0 }
 0xa5c   : > { %vm7597_vm1 = vcmp.ge.f32.partialorder %v7567_v11, 0.0  ;;  %v7605_v33 = vmul.f32 0.1, %v7567_v11  ;;  %v7570_v59 = vadd.f32 %v7569_v24, %v7505_v39  ;;  %v8848_v45 = vpop.f32.mrb[176].mxu1 }
 0xa5d   : > { %v7615_v41 = vsel %vm7599_vm0, %v7575_v4, %v7607_v56  ;;  %vm7600_vm12 = vcmp.ge.f32.partialorder %v7578_v3, 0.0  ;;  %v7608_v40 = vmul.f32 0.1, %v7578_v3  ;;  %v8849_v61 = vpop.f32.mrb[177].mxu1 }
 0xa5e   : > { %v7613_v62 = vsel %vm7597_vm1, %v7567_v11, %v7605_v33  ;;  %vm7598_vm2 = vcmp.ge.f32.partialorder %v7570_v59, 0.0  ;;  %v7606_v54 = vmul.f32 0.1, %v7570_v59  ;;  %v8851_v53 = vpop.f32.mrb[178].mxu1  ;;  %v8850_v23 = vadd.f32 %v8849_v61, %v8848_v45 }
 0xa5f   : > { %v7616_v13 = vsel %vm7600_vm12, %v7578_v3, %v7608_v40  ;;  %v8852_v48 = vpop.f32.mrb[179].mxu1  ;;  %v7655_v1 = vsel %vm1917_vm5, %v7615_v41, %v9254_v19  ;;  %v7653_v7 = vsel %vm1917_vm5, %v7613_v62, %v9249_v51 }
 0xa60   : > { %v7656_v30 = vsel %vm1917_vm5, %v7616_v13, %v9255_v57  ;;  %v7614_v10 = vsel %vm7598_vm2, %v7570_v59, %v7606_v54  ;;  %v8853_v43 = vadd.f32 %v8852_v48, %v8851_v53  ;;  %v9066_v20 = vpop.f32.mrb[192].mxu0  ;;  %v7526_v39 = vadd.f32 %v8850_v23, %v7461_v60 }
 0xa61   : > { %v7662_v55 = vpack.c.bf16 %v7656_v30, %v7655_v1  ;;  %v7582_v32 = vpop.f32.mrb[193].mxu0  ;;  %v7654_v8 = vsel %vm1917_vm5, %v7614_v10, %v9250_v42 }
 0xa62   : > { %v7583_v27 = vadd.f32 %v7582_v32, %v7518_v6  ;;  %v7529_v22 = vadd.f32 %v8853_v43, %v7464_v14  ;;  %v9067_v34 = vpop.f32.mrb[194].mxu0  ;;  %v7661_v36 = vpack.c.bf16 %v7654_v8, %v7653_v7  ;;  %v7591_v16 = vadd.f32 %v9066_v20, %v7526_v39 }
 0xa63   : > { %v7585_v44 = vpop.f32.mrb[195].mxu0 }
 0xa64   : > { %vm7601_vm6 = vcmp.ge.f32.partialorder %v7583_v27, 0.0  ;;  %v7609_v63 = vmul.f32 0.1, %v7583_v27  ;;  %v7594_v37 = vadd.f32 %v9067_v34, %v7529_v22  ;;  %v7586_v9 = vadd.f32 %v7585_v44, %v7521_v50  ;;  %9084 = vmatprep.mubr.bf16.mxu1 %v7661_v36 }
 0xa65   : > { %vm7603_vm7 = vcmp.ge.f32.partialorder %v7591_v16, 0.0  ;;  %v7611_v49 = vmul.f32 0.1, %v7591_v16  ;;  %9085 = vmatmul.mubr.bf16.vlgmr.msra.gmra.mrb[180].mxu1 %v7662_v55 }
 0xa66   : > { %vm7604_vm8 = vcmp.ge.f32.partialorder %v7594_v37, 0.0  ;;  %v7612_v58 = vmul.f32 0.1, %v7594_v37  ;;  %vm7602_vm4 = vcmp.ge.f32.partialorder %v7586_v9, 0.0  ;;  %v7617_v28 = vsel %vm7601_vm6, %v7583_v27, %v7609_v63 }
 0xa67   : > { %v7619_v46 = vsel %vm7603_vm7, %v7591_v16, %v7611_v49  ;;  %v7610_v38 = vmul.f32 0.1, %v7586_v9  ;;  %v7657_v31 = vsel %vm1917_vm5, %v7617_v28, %v9259_v2 }
 0xa68   : > { %v7620_v5 = vsel %vm7604_vm8, %v7594_v37, %v7612_v58  ;;  %v7659_v18 = vsel %vm1917_vm5, %v7619_v46, %v9264_v0 }
 0xa69   : > { %v7618_v26 = vsel %vm7602_vm4, %v7586_v9, %v7610_v38  ;;  %v7660_v15 = vsel %vm1917_vm5, %v7620_v5, %v9265_v25 }
 0xa6a   : > { %v7658_v21 = vsel %vm1917_vm5, %v7618_v26, %v9260_v35  ;;  %v7664_v6 = vpack.c.bf16 %v7660_v15, %v7659_v18 }
 0xa6b   : > { %v7663_v4 = vpack.c.bf16 %v7658_v21, %v7657_v31 }
 0xa6d   : > { %9088 = vmatprep.mubr.bf16.mxu1 %v7663_v4 }
 0xa6e   : > { %9089 = vmatmul.mubr.bf16.gmra.mrb[184].mxu1 %v7664_v6 }
 0xa6f   : > { %9454 = shalt.err (!%p9451_p3)
}
 0xa70   : > { %s9455_s20 = scalar_lea.hbm %s13042_s22, 4096  ;;  %s9459_s29 = scalar_lea.hbm %s13200_s18, 8192 }
 0xa71   : > { %p9456_p4 = scmp.ne.s32.totalorder %s13042_s22, %s9455_s20  ;;  %p9460_p9 = scmp.lt.u32.totalorder %s13042_s22, %s13200_s18 }
 0xa72   : > { %p9461_p10 = scmp.lt.u32.totalorder %s9459_s29, %s9455_s20  ;;  %p9463_p12 = scmp.lt.u32.totalorder %s9455_s20, %s13042_s22 }
 0xa73   : > { %p9457_p7 = pnand %p9456_p4, %p9717_p5 }
 0xa74   : > { %p9462_p11 = por %p9461_p10, %p9460_p9 }
 0xa75   : > { %p9458_p8 = pneg %p9457_p7 }
 0xa76   : > { %p9464_p13 = por %p9463_p12, %p9462_p11 }
 0xa78   : > { %p9465_p0 = pnand %p9464_p13, %p9458_p8 }
 0xa7a   : > { %9468 = shalt.err (!%p9465_p0)
}
 0xa7b   : > { %s13248_s6 = smov 128   ;;  %s13249_s2 = smov 8   ;;  %v8277_v29 = vld [vmem:[%s13198_s16] ss:$0 sm:$0xff] }
 0xa7c   : > { %9109 = dma.vmem_to_hbm [thread:$0]  (%p9717_p5), %s13045_s5, 4096, %s13042_s22, %s13047_s4, %s13248_s6, %s13248_s6, %s13249_s2  }
 0xa7d   : > { %s8024_s20 = sshll.u32 %s11848_s27, 6  ;;  %s8298_s5 = sshll.u32 %s9698_s1, 10 }
 0xa7e   : > { %s13078_s22 = scalar_lea.vmem [#allocation5], %s8024_s20  ;;  %s8300_s29 = sshll.u32 %s9698_s1, 11 }
 0xa7f   : > { %s7865_s28 = sshll.u32 %s13078_s22, 4  ;;  %s7897_s23 = sshll.u32 %s12377_s24, 4  ;;  %s13099_s28 = int_to_ptr.vmem [resolvable:$true] %s7865_s28  ;;  %s13108_s23 = int_to_ptr.vmem [resolvable:$true] %s7897_s23 }
 0xa80   : > { %s13097_s26 = scalar_lea.hbm %s13199_s17, %s8298_s5  ;;  %s13106_s6 = scalar_lea.hbm %s13201_s19, %s8300_s29 }
 0xa81   : > { %s7842_s5 = scalar_lea.sflag [#allocation6], %s11848_s27  ;;  %s9469_s7 = scalar_lea.vmem %s13099_s28, 1024 }
 0xa82   : > { %p9470_p1 = scmp.ne.s32.totalorder %s13099_s28, %s9469_s7  ;;  %s9573_s25 = smov [#allocation5]  }
 0xa83   : > { %s9473_s2 = sshll.u32 %s9573_s25, 4  ;;  %s9474_s2 = int_to_ptr.vmem [resolvable:$false] %s9473_s2 }
 0xa84   : > { %p9471_p2 = pnand %p9470_p1, %p9717_p5  ;;  %s9475_s1 = scalar_lea.vmem %s9474_s2, 2048 }
 0xa85   : > { %p9476_p4 = scmp.lt.s32.totalorder %s13099_s28, %s9474_s2  ;;  %p9477_p7 = scmp.lt.s32.totalorder %s9475_s1, %s9469_s7 }
 0xa86   : > { %p9472_p3 = pneg %p9471_p2 }
 0xa87   : > { %p9478_p8 = por %p9477_p7, %p9476_p4 }
 0xa89   : > { %p9479_p9 = pnand %p9478_p8, %p9472_p3 }
 0xb38   : > { %v9086_v17 = vpop.f32.mrb[180].mxu1 }
 0xb39   : > { %v7779_v11 = vadd.f32 %v9086_v17, %v8277_v29  ;;  %v7770_v52 = vpop.f32.mrb[181].mxu1 }
 0xb3a   : > { %v7771_v50 = vadd.f32 %v8277_v29, %v7770_v52  ;;  %v9087_v57 = vpop.f32.mrb[182].mxu1 }
 0xb3b   : > { %vm7803_vm5 = vcmp.ge.f32.partialorder %v7779_v11, 0.0  ;;  %v7811_v56 = vmul.f32 0.1, %v7779_v11  ;;  %v7782_v3 = vadd.f32 %v9087_v57, %v8277_v29  ;;  %v7773_v24 = vpop.f32.mrb[183].mxu1 }
 0xb3c   : > { %vm7801_vm3 = vcmp.ge.f32.partialorder %v7771_v50, 0.0  ;;  %v7809_v19 = vmul.f32 0.1, %v7771_v50  ;;  %v7774_v33 = vadd.f32 %v8277_v29, %v7773_v24 }
 0xb3d   : > { %v7819_v59 = vsel %vm7803_vm5, %v7779_v11, %v7811_v56  ;;  %vm7804_vm9 = vcmp.ge.f32.partialorder %v7782_v3, 0.0  ;;  %v7812_v45 = vmul.f32 0.1, %v7782_v3 }
 0xb3e   : > { %7827 = vst [vmem:[%s13078_s22 + $0x10] sm:$0xff] %v7819_v59  ;;  %7835 = vst [vmem:[%s12377_s24 + $0x28] sm:$0xff] %v7819_v59  ;;  %v7817_v42 = vsel %vm7801_vm3, %v7771_v50, %v7809_v19  ;;  %vm7802_vm10 = vcmp.ge.f32.partialorder %v7774_v33, 0.0  ;;  %v7810_v41 = vmul.f32 0.1, %v7774_v33 }
 0xb3f   : > { %7825 = vst [vmem:[%s13078_s22] sm:$0xff] %v7817_v42  ;;  %7833 = vst [vmem:[%s12377_s24 + $0x8] sm:$0xff] %v7817_v42  ;;  %v7820_v40 = vsel %vm7804_vm9, %v7782_v3, %v7812_v45 }
 0xb40   : > { %7828 = vst [vmem:[%s13078_s22 + $0x18] sm:$0xff] %v7820_v40  ;;  %7836 = vst [vmem:[%s12377_s24 + $0x38] sm:$0xff] %v7820_v40  ;;  %v7818_v61 = vsel %vm7802_vm10, %v7774_v33, %v7810_v41 }
 0xb41   : > { %7826 = vst [vmem:[%s13078_s22 + $0x8] sm:$0xff] %v7818_v61  ;;  %7834 = vst [vmem:[%s12377_s24 + $0x18] sm:$0xff] %v7818_v61  ;;  %v9090_v51 = vpop.f32.mrb[184].mxu1 }
 0xb42   : > { %v7795_v62 = vadd.f32 %v9090_v51, %v8277_v29  ;;  %v7786_v54 = vpop.f32.mrb[185].mxu1 }
 0xb43   : > { %v7787_v53 = vadd.f32 %v8277_v29, %v7786_v54  ;;  %v9091_v60 = vpop.f32.mrb[186].mxu1 }
 0xb44   : > { %vm7807_vm11 = vcmp.ge.f32.partialorder %v7795_v62, 0.0  ;;  %v7815_v14 = vmul.f32 0.1, %v7795_v62  ;;  %v7798_v13 = vadd.f32 %v9091_v60, %v8277_v29  ;;  %v7789_v23 = vpop.f32.mrb[187].mxu1 }
 0xb45   : > { %vm7805_vm14 = vcmp.ge.f32.partialorder %v7787_v53, 0.0  ;;  %v7813_v48 = vmul.f32 0.1, %v7787_v53  ;;  %v7790_v1 = vadd.f32 %v8277_v29, %v7789_v23 }
 0xb46   : > { %v7823_v30 = vsel %vm7807_vm11, %v7795_v62, %v7815_v14  ;;  %vm7808_vm15 = vcmp.ge.f32.partialorder %v7798_v13, 0.0  ;;  %v7816_v10 = vmul.f32 0.1, %v7798_v13 }
 0xb47   : > { %7831 = vst [vmem:[%s13078_s22 + $0x30] sm:$0xff] %v7823_v30  ;;  %7839 = vst [vmem:[%s12377_s24 + $0x68] sm:$0xff] %v7823_v30  ;;  %v7821_v43 = vsel %vm7805_vm14, %v7787_v53, %v7813_v48  ;;  %vm7806_vm13 = vcmp.ge.f32.partialorder %v7790_v1, 0.0  ;;  %v7814_v20 = vmul.f32 0.1, %v7790_v1 }
 0xb48   : > { %7829 = vst [vmem:[%s13078_s22 + $0x20] sm:$0xff] %v7821_v43  ;;  %7837 = vst [vmem:[%s12377_s24 + $0x48] sm:$0xff] %v7821_v43  ;;  %v7824_v55 = vsel %vm7808_vm15, %v7798_v13, %v7816_v10 }
 0xb49   : > { %7832 = vst [vmem:[%s13078_s22 + $0x38] sm:$0xff] %v7824_v55  ;;  %7840 = vst [vmem:[%s12377_s24 + $0x78] sm:$0xff] %v7824_v55  ;;  %v7822_v39 = vsel %vm7806_vm13, %v7790_v1, %v7814_v20 }
 0xb4a   : > { %7830 = vst [vmem:[%s13078_s22 + $0x28] sm:$0xff] %v7822_v39  ;;  %7838 = vst [vmem:[%s12377_s24 + $0x58] sm:$0xff] %v7822_v39 }
 0xb4b   : > { %9482 = shalt.err (!%p9479_p9)
}
 0xb4c   : > { %s9483_s24 = scalar_lea.hbm %s13097_s26, 1024  ;;  %s9487_s20 = scalar_lea.hbm %s13199_s17, 2048 }
 0xb4d   : > { %p9484_p10 = scmp.ne.s32.totalorder %s13097_s26, %s9483_s24  ;;  %p9488_p13 = scmp.lt.u32.totalorder %s13097_s26, %s13199_s17 }
 0xb4e   : > { %p9489_p0 = scmp.lt.u32.totalorder %s9487_s20, %s9483_s24  ;;  %p9491_p2 = scmp.lt.u32.totalorder %s9483_s24, %s13097_s26 }
 0xb4f   : > { %p9485_p11 = pnand %p9484_p10, %p9717_p5 }
 0xb50   : > { %p9490_p1 = por %p9489_p0, %p9488_p13 }
 0xb51   : > { %p9486_p12 = pneg %p9485_p11 }
 0xb52   : > { %p9492_p3 = por %p9491_p2, %p9490_p1 }
 0xb54   : > { %p9493_p4 = pnand %p9492_p3, %p9486_p12 }
 0xb56   : > { %9496 = shalt.err (!%p9493_p4)
}
 0xb57   : > { %s13410_s7 = smov 8   ;;  %s13411_s1 = smov 128  }
 0xb58   : > { %9108 = dma.vmem_to_hbm [thread:$0]  (%p9717_p5), %s13099_s28, 1024, %s13097_s26, %s7842_s5, %s13411_s1, %s13411_s1, %s13410_s7  }
 0xb59   : > { %s9497_s22 = scalar_lea.vmem %s13108_s23, 2048  ;;  %s9574_s24 = smov [#allocation9]  }
 0xb5a   : > { %p9498_p7 = scmp.ne.s32.totalorder %s13108_s23, %s9497_s22  ;;  %s9501_s29 = sshll.u32 %s9574_s24, 4  ;;  %s9502_s29 = int_to_ptr.vmem [resolvable:$false] %s9501_s29 }
 0xb5b   : > { %s9503_s20 = scalar_lea.vmem %s9502_s29, 4096  ;;  %p9504_p10 = scmp.lt.s32.totalorder %s13108_s23, %s9502_s29 }
 0xb5c   : > { %p9499_p8 = pnand %p9498_p7, %p9717_p5  ;;  %p9505_p11 = scmp.lt.s32.totalorder %s9503_s20, %s9497_s22 }
 0xb5e   : > { %p9500_p9 = pneg %p9499_p8  ;;  %p9506_p12 = por %p9505_p11, %p9504_p10 }
 0xb60   : > { %p9507_p13 = pnand %p9506_p12, %p9500_p9 }
 0xb62   : > { %9510 = shalt.err (!%p9507_p13)
}
 0xb63   : > { %s9511_s27 = scalar_lea.hbm %s13106_s6, 2048  ;;  %s9515_s5 = scalar_lea.hbm %s13201_s19, 4096 }
 0xb64   : > { %p9512_p0 = scmp.ne.s32.totalorder %s13106_s6, %s9511_s27  ;;  %p9516_p3 = scmp.lt.u32.totalorder %s13106_s6, %s13201_s19 }
 0xb65   : > { %p9517_p4 = scmp.lt.u32.totalorder %s9515_s5, %s9511_s27  ;;  %p9519_p8 = scmp.lt.u32.totalorder %s9511_s27, %s13106_s6 }
 0xb66   : > { %p9513_p1 = pnand %p9512_p0, %p9717_p5 }
 0xb67   : > { %p9518_p7 = por %p9517_p4, %p9516_p3 }
 0xb68   : > { %p9514_p2 = pneg %p9513_p1 }
 0xb69   : > { %p9520_p9 = por %p9519_p8, %p9518_p7 }
 0xb6b   : > { %p9521_p10 = pnand %p9520_p9, %p9514_p2 }
 0xb6d   : > { %9524 = shalt.err (!%p9521_p10)
}
 0xb6e   : > { %s9575_s7 = smov 256   ;;  %s9576_s1 = smov 16  }
 0xb6f   : > { %9110 = dma.vmem_to_hbm [thread:$0]  (%p9717_p5), %s13108_s23, 2048, %s13106_s6, %s13047_s4, %s9575_s7, %s9575_s7, %s9576_s1  }
 0xb70 PF: > { %p9124_p11 = scmp.ge.s32.totalorder %s9563_s21, 2  ;;  %s7912_s24 = sand.u32 1, %s9551_s0  }
 0xb71   : > { %s7913_s29 = scalar_lea.sflag [#allocation6], %s7912_s24 }
 0xb72   : > { %p9115_p12 = pnand %p9124_p11, %p9721_p6 }
 0xb74   : > { %9542 = dma.done.wait (!%p9115_p12), %s7913_s29, 1024  }
 0xb75   : > { %9544 = vsyncadd (!%p9115_p12), %s7913_s29, 4294966272  ;;  %s13413_s20 = sadd.s32 4294967294, %s9563_s21  }
 0xb76   : > { %s7921_s27 = sand.u32 1, %s13413_s20  }
 0xb77   : > { %s7922_s28 = scalar_lea.sflag [#allocation8], %s7921_s27 }
 0xb78   : > { %9546 = dma.done.wait (!%p9115_p12), %s7922_s28, 6144  }
 0xb79   : > { %9548 = vsyncadd (!%p9115_p12), %s7922_s28, 4294961152  ;;  %s13414_s21 = sld [smem:[#allocation13_spill]]  ;;  %s13415_s3 = sld [smem:[#allocation12_spill]] }
 0xb7a   : > { %s13416_s20 = sld [smem:[#allocation14_spill]]  ;;  %s13417_s0 = smov %s9555_s30 }
 0xb7f   : > { %p33_p5 = scmp.ge.s32.totalorder %s13414_s21, 4   ;;  %s13418_s30 = smov %s13415_s3 }
 0xb81   :  { %35 = sbr.rel (!%p33_p5) target bundleno = 14 (0xe), region = 159 }
 0xb88   :  { %7936 = vsyncpa [#allocation6], 1 }
 0xb89   :  { %7938 = vsyncpa [#allocation6 + $0x1], 1 }
 0xb8a   :  { %7939 = vsyncpa [#allocation8], 1 }
 0xb8b   :  { %7941 = vsyncpa [#allocation8 + $0x1], 1 }

</bundles_post_ra>
